<compile_context>
chip_gen: v6e
topology: v6e:2x2x1
jax: 0.10.0
libtpu: 0.0.40
codegen_flags: <defaults>
</compile_context>

<pallas_src>
import numpy as np
import jax
import jax.numpy as jnp
from jax.experimental import pallas as pl
from jax.experimental.pallas import tpu as pltpu

num_to_word = {4: "four", 9: "nine"}
chars = sorted(list(set("".join(num_to_word.values()))))
vocab_size = len(chars)                       # 7
EMBED_DIM = 128
VMEM_LIMIT = 48 * 1024 * 1024                 # fits v7x's 64 MiB physical VMEM


# ---------------------------------------------------------------------------
# Pallas kernels
# ---------------------------------------------------------------------------
def _image_tower_kernel(x_ref, b1w_ref, bias1_ref, b2w_ref, bias2_ref,
                        wfc_ref, bfc_ref, o_ref, pp1_ref):
    """Fused conv1+pool1+conv2+pool2+FC+L2norm for one batch tile.

    x_ref:    (TB, 30, 30)    zero-padded 28x28 inputs
    b1w_ref:  (3, 30, 1024)   conv1 band weights, out lane = r*512+(wq+1)*32+c
    b2w_ref:  (3, 512, 1024)  conv2 band weights, in lane  = wp*32+ci,
                              out lane = r*512+wq*64+co
    wfc_ref:  (7, 512, 128)   FC weight per pooled row, 10 cols zero-padded to 128
    o_ref:    (TB, 128)       L2-normalized embedding (cols 10..127 are zero)
    pp1_ref:  (TB, 16, 512)   VMEM scratch: H-zero-padded pooled conv1 output
    """
    tb = x_ref.shape[0]

    # ---- conv1 (3x3, pad 1, Cin=1) as 3 banded MXU dots over the kh taps ----
    acc1 = jnp.zeros((tb * 28, 1024), jnp.float32)
    for kh in range(3):
        lhs = x_ref[:, kh:kh + 28, :].reshape(tb * 28, 30).astype(jnp.bfloat16)
        acc1 = acc1 + jnp.dot(lhs, b1w_ref[kh],
                              preferred_element_type=jnp.float32)
    y1 = jnp.maximum(acc1 + bias1_ref[...], 0.0)          # (tb*28, 1024)

    # ---- 2x2 max-pool #1: W via 128-aligned lane halves, H via row pairs ----
    p1 = jnp.maximum(y1[:, :512], y1[:, 512:])             # (tb*28, 512)
    p1 = p1.reshape(tb * 14, 2, 512)
    p1 = jnp.maximum(p1[:, 0, :], p1[:, 1, :])             # (tb*14, 512)

    # ---- stage H-zero-padded conv2 input in VMEM scratch (rows 0,15 = pad) --
    pp1_ref[:, 0, :] = jnp.zeros((tb, 512), jnp.float32)
    pp1_ref[:, 15, :] = jnp.zeros((tb, 512), jnp.float32)
    pp1_ref[:, 1:15, :] = p1.reshape(tb, 14, 512)

    # ---- conv2 (3x3, pad 1, Cin=32) as 3 banded MXU dots (K=512) ------------
    acc2 = jnp.zeros((tb * 14, 1024), jnp.float32)
    for kh in range(3):
        lhs = pp1_ref[:, kh:kh + 14, :].reshape(tb * 14, 512).astype(jnp.bfloat16)
        acc2 = acc2 + jnp.dot(lhs, b2w_ref[kh],
                              preferred_element_type=jnp.float32)
    y2 = jnp.maximum(acc2 + bias2_ref[...], 0.0)            # (tb*14, 1024)

    # ---- 2x2 max-pool #2 -----------------------------------------------------
    p2 = jnp.maximum(y2[:, :512], y2[:, 512:])              # (tb*14, 512)
    p2 = p2.reshape(tb * 7, 2, 512)
    p2 = jnp.maximum(p2[:, 0, :], p2[:, 1, :])              # (tb*7, 512)
    p2 = p2.reshape(tb, 7, 512)

    # ---- FC (3136 -> 10, zero-padded to 128 lanes) + L2 normalize -----------
    acc = jnp.zeros((tb, 128), jnp.float32)
    for t in range(7):
        xt = p2[:, t, :].astype(jnp.bfloat16)               # (tb, 512)
        acc = acc + jnp.dot(xt, wfc_ref[t],
                            preferred_element_type=jnp.float32)
    y = acc + bfc_ref[...]
    ss = jnp.sum(y * y, axis=-1, keepdims=True)
    # F.normalize(dim=-1): x * rsqrt(max(||x||^2, eps^2))
    o_ref[...] = y * jax.lax.rsqrt(jnp.maximum(ss, 1e-24))


def _text_encoder_kernel(tok_ref, emb_ref, w1_ref, b1_ref, w2_ref, b2_ref,
                         o_ref):
    """Embedding mean -> Linear+ReLU -> Linear -> L2 normalize (all fused).

    The embedding gather is done as a per-vocab masked accumulation against the
    VMEM-resident (vocab, 128) table, so the (B, L, 128) tensor never exists.
    """
    tb, seq_len = tok_ref.shape
    vocab = emb_ref.shape[0]
    tok = tok_ref[...]
    x = jnp.zeros((tb, 128), jnp.float32)
    for v in range(vocab):
        cnt = jnp.sum((tok == v).astype(jnp.float32), axis=1, keepdims=True)
        x = x + cnt * emb_ref[v:v + 1, :]                   # (tb,1)*(1,128)
    x = x * (1.0 / seq_len)

    h = jnp.dot(x.astype(jnp.bfloat16), w1_ref[...],
                preferred_element_type=jnp.float32) + b1_ref[...]
    h = jnp.maximum(h, 0.0)
    y = jnp.dot(h.astype(jnp.bfloat16), w2_ref[...],
                preferred_element_type=jnp.float32) + b2_ref[...]
    ss = jnp.sum(y * y, axis=-1, keepdims=True)
    o_ref[...] = y * jax.lax.rsqrt(jnp.maximum(ss, 1e-24))


# ---------------------------------------------------------------------------
# Wrappers
# ---------------------------------------------------------------------------
def _batch_tile(b):
    """Single step for tiny batches; TB=8 (multiple of 8, >=2 steps) otherwise."""
    if b <= 8:
        return b, b
    bp = ((b + 7) // 8) * 8
    return 8, bp


def image_encoder_forward(images, params):
    b = images.shape[0]
    x = images.reshape(b, 28, 28).astype(jnp.float32)
    x = jnp.pad(x, ((0, 0), (1, 1), (1, 1)))                # spatial zero pad
    tb, bp = _batch_tile(b)
    if bp != b:
        x = jnp.pad(x, ((0, bp - b), (0, 0), (0, 0)))
    out = pl.pallas_call(
        _image_tower_kernel,
        out_shape=jax.ShapeDtypeStruct((bp, 128), jnp.float32),
        grid_spec=pltpu.PrefetchScalarGridSpec(
            num_scalar_prefetch=0,
            grid=(bp // tb,),
            in_specs=[
                pl.BlockSpec((tb, 30, 30), lambda i: (i, 0, 0)),
                pl.BlockSpec((3, 30, 1024), lambda i: (0, 0, 0)),
                pl.BlockSpec((1, 1024), lambda i: (0, 0)),
                pl.BlockSpec((3, 512, 1024), lambda i: (0, 0, 0)),
                pl.BlockSpec((1, 1024), lambda i: (0, 0)),
                pl.BlockSpec((7, 512, 128), lambda i: (0, 0, 0)),
                pl.BlockSpec((1, 128), lambda i: (0, 0)),
            ],
            out_specs=pl.BlockSpec((tb, 128), lambda i: (i, 0)),
            scratch_shapes=[pltpu.VMEM((tb, 16, 512), jnp.float32)],
        ),
        compiler_params=pltpu.CompilerParams(
            dimension_semantics=("parallel",),
            vmem_limit_bytes=VMEM_LIMIT),
    )(x, params["b1w"], params["bias1"], params["b2w"], params["bias2"],
      params["wfc"], params["bfc"])
    return out[:b, :10]


def text_encoder_forward(tokens, params):
    b, seq_len = tokens.shape
    tok = tokens.astype(jnp.int32)
    tb, bp = _batch_tile(b)
    if bp != b:
        tok = jnp.pad(tok, ((0, bp - b), (0, 0)))
    out = pl.pallas_call(
        _text_encoder_kernel,
        out_shape=jax.ShapeDtypeStruct((bp, 128), jnp.float32),
        grid_spec=pltpu.PrefetchScalarGridSpec(
            num_scalar_prefetch=0,
            grid=(bp // tb,),
            in_specs=[
                pl.BlockSpec((tb, seq_len), lambda i: (i, 0)),
                pl.BlockSpec((vocab_size, 128), lambda i: (0, 0)),
                pl.BlockSpec((128, 128), lambda i: (0, 0)),
                pl.BlockSpec((1, 128), lambda i: (0, 0)),
                pl.BlockSpec((128, 128), lambda i: (0, 0)),
                pl.BlockSpec((1, 128), lambda i: (0, 0)),
            ],
            out_specs=pl.BlockSpec((tb, 128), lambda i: (i, 0)),
        ),
        compiler_params=pltpu.CompilerParams(
            dimension_semantics=("parallel",),
            vmem_limit_bytes=VMEM_LIMIT),
    )(tok, params["emb"], params["wt1"], params["bt1"],
      params["wt2"], params["bt2"])
    return out[:b, :10]


# ---------------------------------------------------------------------------
# Parameters: PyTorch-layout weights re-packed into banded / lane-dense form.
# ---------------------------------------------------------------------------
def _pack_params(w1, b1, w2, b2, wfc, bfc, emb, wt1, bt1, wt2, bt2):
    # conv1 bands: out lane(w,c) = r*512 + (wq+1)*32 + c  with w = 2*wq + r.
    # (wq+1) leaves zero lane-groups at wq_p=0,15 -> conv2's W padding for free.
    b1w = np.zeros((3, 30, 1024), np.float32)
    bias1 = np.zeros((1024,), np.float32)
    for w in range(28):
        wq, r = divmod(w, 2)
        lane0 = r * 512 + (wq + 1) * 32
        bias1[lane0:lane0 + 32] = b1
        for kh in range(3):
            for kw in range(3):
                b1w[kh, w + kw, lane0:lane0 + 32] = w1[:, 0, kh, kw]

    # conv2 bands: in lane = wp*32+ci (wp = padded col), out lane = r*512+wq*64+co.
    b2w = np.zeros((3, 512, 1024), np.float32)
    bias2 = np.zeros((1024,), np.float32)
    for w in range(14):
        wq, r = divmod(w, 2)
        out0 = r * 512 + wq * 64
        bias2[out0:out0 + 64] = b2
        for kh in range(3):
            for kw in range(3):
                in0 = (w + kw) * 32
                b2w[kh, in0:in0 + 32, out0:out0 + 64] = w2[:, :, kh, kw].T

    # FC: per pooled row t, input lane wq*64+co holds pooled2[h=t, w=wq, co];
    # PyTorch flattens (C,H,W) -> column co*49 + t*7 + wq.  10 outputs padded
    # to 128 zero columns (keeps the L2 norm over the padded axis exact).
    wfc_t = np.zeros((7, 512, 128), np.float32)
    wfc_chw = wfc.reshape(10, 64, 7, 7)
    for t in range(7):
        for wq in range(7):
            wfc_t[t, wq * 64:(wq + 1) * 64, :10] = wfc_chw[:, :, t, wq].T
    bfc_p = np.zeros((128,), np.float32)
    bfc_p[:10] = bfc

    # Text head: x @ W.T + b with outputs zero-padded to 128 lanes.
    w1p = np.zeros((128, 128), np.float32)
    w1p[:, :64] = wt1.T
    b1p = np.zeros((128,), np.float32)
    b1p[:64] = bt1
    w2p = np.zeros((128, 128), np.float32)
    w2p[:64, :10] = wt2.T
    b2p = np.zeros((128,), np.float32)
    b2p[:10] = bt2

    return {
        "b1w": jnp.asarray(b1w, jnp.bfloat16),
        "bias1": jnp.asarray(bias1, jnp.float32).reshape(1, 1024),
        "b2w": jnp.asarray(b2w, jnp.bfloat16),
        "bias2": jnp.asarray(bias2, jnp.float32).reshape(1, 1024),
        "wfc": jnp.asarray(wfc_t, jnp.bfloat16),
        "bfc": jnp.asarray(bfc_p, jnp.float32).reshape(1, 128),
        "emb": jnp.asarray(emb, jnp.float32),
        "wt1": jnp.asarray(w1p, jnp.bfloat16),
        "bt1": jnp.asarray(b1p, jnp.float32).reshape(1, 128),
        "wt2": jnp.asarray(w2p, jnp.bfloat16),
        "bt2": jnp.asarray(b2p, jnp.float32).reshape(1, 128),
    }


def init_params(key):
    ks = jax.random.split(key, 11)
    w1 = jax.random.normal(ks[0], (32, 1, 3, 3), jnp.float32) * 0.10
    b1 = jax.random.normal(ks[1], (32,), jnp.float32) * 0.01
    w2 = jax.random.normal(ks[2], (64, 32, 3, 3), jnp.float32) * 0.05
    b2 = jax.random.normal(ks[3], (64,), jnp.float32) * 0.01
    wfc = jax.random.normal(ks[4], (10, 64 * 7 * 7), jnp.float32) * 0.02
    bfc = jax.random.normal(ks[5], (10,), jnp.float32) * 0.01
    emb = jax.random.normal(ks[6], (vocab_size, EMBED_DIM), jnp.float32) * 0.10
    wt1 = jax.random.normal(ks[7], (64, EMBED_DIM), jnp.float32) * 0.05
    bt1 = jax.random.normal(ks[8], (64,), jnp.float32) * 0.01
    wt2 = jax.random.normal(ks[9], (10, 64), jnp.float32) * 0.05
    bt2 = jax.random.normal(ks[10], (10,), jnp.float32) * 0.01
    return _pack_params(*(np.asarray(a) for a in
                          (w1, b1, w2, b2, wfc, bfc, emb, wt1, bt1, wt2, bt2)))


@jax.jit
def clip_forward(images, tokens, params):
    return image_encoder_forward(images, params), text_encoder_forward(tokens, params)


if __name__ == "__main__":
    key = jax.random.PRNGKey(0)
    k_img, k_par = jax.random.split(key)

    # 64*7*7 in the Linear implies 28x28 single-channel input (MNIST-like).
    images = jax.random.normal(k_img, (2, 1, 28, 28), jnp.float32)
    stoi = {c: i for i, c in enumerate(chars)}
    tokens = jnp.array([[stoi[c] for c in num_to_word[4]],
                        [stoi[c] for c in num_to_word[9]]], jnp.int32)   # (2, 4)

    params = init_params(k_par)

    img_emb, txt_emb = clip_forward(images, tokens, params)
    img_emb = jax.block_until_ready(img_emb)
    txt_emb = jax.block_until_ready(txt_emb)

    assert img_emb.shape == (2, 10), img_emb.shape
    assert txt_emb.shape == (2, 10), txt_emb.shape
    assert bool(jnp.all(jnp.isfinite(img_emb)))
    assert bool(jnp.all(jnp.isfinite(txt_emb)))
    for e in (img_emb, txt_emb):
        n = jnp.sqrt(jnp.sum(e * e, axis=-1))
        assert bool(jnp.all(jnp.abs(n - 1.0) < 1e-4))
    print("KERNEL_OK")
</pallas_src>

<mosaic_0001>
module attributes {stable_mosaic.version = 11 : i64} {
  func.func @_image_tower_kernel(%arg0: i32, %arg1: memref<2x30x30xf32, #tpu.memory_space<vmem>>, %arg2: memref<3x30x1024xbf16, #tpu.memory_space<vmem>>, %arg3: memref<1x1024xf32, #tpu.memory_space<vmem>>, %arg4: memref<3x512x1024xbf16, #tpu.memory_space<vmem>>, %arg5: memref<1x1024xf32, #tpu.memory_space<vmem>>, %arg6: memref<7x512x128xbf16, #tpu.memory_space<vmem>>, %arg7: memref<1x128xf32, #tpu.memory_space<vmem>>, %arg8: memref<2x128xf32, #tpu.memory_space<vmem>>, %arg9: memref<2x16x512xf32, #tpu.memory_space<vmem>>) attributes {dimension_semantics = [#tpu.dimension_semantics<parallel>], iteration_bounds = array<i64: 1>, scalar_prefetch = 0 : i64, scratch_operands = 1 : i64, tpu.core_type = #tpu.core_type<tc>, window_params = [{transform_indices = @transform_0, window_bounds = array<i64: 2, 30, 30>}, {pipeline_mode = #tpu.pipeline_mode<synchronous>, transform_indices = @transform_1, window_bounds = array<i64: 3, 30, 1024>}, {pipeline_mode = #tpu.pipeline_mode<synchronous>, transform_indices = @transform_2, window_bounds = array<i64: 1, 1024>}, {pipeline_mode = #tpu.pipeline_mode<synchronous>, transform_indices = @transform_3, window_bounds = array<i64: 3, 512, 1024>}, {pipeline_mode = #tpu.pipeline_mode<synchronous>, transform_indices = @transform_4, window_bounds = array<i64: 1, 1024>}, {pipeline_mode = #tpu.pipeline_mode<synchronous>, transform_indices = @transform_5, window_bounds = array<i64: 7, 512, 128>}, {pipeline_mode = #tpu.pipeline_mode<synchronous>, transform_indices = @transform_6, window_bounds = array<i64: 1, 128>}, {transform_indices = @transform_7, window_bounds = array<i64: 2, 128>}]} {
    %cst = arith.constant 0.000000e+00 : f32
    %0 = vector.broadcast %cst : f32 to vector<56x1024xf32>
    %c0 = arith.constant 0 : index
    %c0_0 = arith.constant 0 : index
    %c0_1 = arith.constant 0 : index
    %1 = vector.load %arg1[%c0, %c0_0, %c0_1] : memref<2x30x30xf32, #tpu.memory_space<vmem>>, vector<2x28x30xf32>
    %2 = vector.shape_cast %1 : vector<2x28x30xf32> to vector<56x30xf32>
    %3 = arith.truncf %2 : vector<56x30xf32> to vector<56x30xbf16>
    %c0_2 = arith.constant 0 : index
    %c0_3 = arith.constant 0 : index
    %c0_4 = arith.constant 0 : index
    %4 = vector.load %arg2[%c0_2, %c0_3, %c0_4] : memref<3x30x1024xbf16, #tpu.memory_space<vmem>>, vector<1x30x1024xbf16>
    %5 = vector.shape_cast %4 : vector<1x30x1024xbf16> to vector<30x1024xbf16>
    %cst_5 = arith.constant dense<0.000000e+00> : vector<56x1024xf32>
    %6 = tpu.matmul %3, %5, %cst_5 {dimension_numbers = #tpu.dot_dimension_numbers<[1], [0], [0], [1], [0, 0, 1, 1], [], []>} : vector<56x30xbf16>, vector<30x1024xbf16>, vector<56x1024xf32> -> vector<56x1024xf32>
    %7 = arith.addf %0, %6 : vector<56x1024xf32>
    %c0_6 = arith.constant 0 : index
    %c1 = arith.constant 1 : index
    %c0_7 = arith.constant 0 : index
    %8 = vector.load %arg1[%c0_6, %c1, %c0_7] : memref<2x30x30xf32, #tpu.memory_space<vmem>>, vector<2x28x30xf32>
    %9 = vector.shape_cast %8 : vector<2x28x30xf32> to vector<56x30xf32>
    %10 = arith.truncf %9 : vector<56x30xf32> to vector<56x30xbf16>
    %c1_8 = arith.constant 1 : index
    %c0_9 = arith.constant 0 : index
    %c0_10 = arith.constant 0 : index
    %11 = vector.load %arg2[%c1_8, %c0_9, %c0_10] : memref<3x30x1024xbf16, #tpu.memory_space<vmem>>, vector<1x30x1024xbf16>
    %12 = vector.shape_cast %11 : vector<1x30x1024xbf16> to vector<30x1024xbf16>
    %cst_11 = arith.constant dense<0.000000e+00> : vector<56x1024xf32>
    %13 = tpu.matmul %10, %12, %cst_11 {dimension_numbers = #tpu.dot_dimension_numbers<[1], [0], [0], [1], [0, 0, 1, 1], [], []>} : vector<56x30xbf16>, vector<30x1024xbf16>, vector<56x1024xf32> -> vector<56x1024xf32>
    %14 = arith.addf %7, %13 : vector<56x1024xf32>
    %c0_12 = arith.constant 0 : index
    %c2 = arith.constant 2 : index
    %c0_13 = arith.constant 0 : index
    %15 = vector.load %arg1[%c0_12, %c2, %c0_13] : memref<2x30x30xf32, #tpu.memory_space<vmem>>, vector<2x28x30xf32>
    %16 = vector.shape_cast %15 : vector<2x28x30xf32> to vector<56x30xf32>
    %17 = arith.truncf %16 : vector<56x30xf32> to vector<56x30xbf16>
    %c2_14 = arith.constant 2 : index
    %c0_15 = arith.constant 0 : index
    %c0_16 = arith.constant 0 : index
    %18 = vector.load %arg2[%c2_14, %c0_15, %c0_16] : memref<3x30x1024xbf16, #tpu.memory_space<vmem>>, vector<1x30x1024xbf16>
    %19 = vector.shape_cast %18 : vector<1x30x1024xbf16> to vector<30x1024xbf16>
    %cst_17 = arith.constant dense<0.000000e+00> : vector<56x1024xf32>
    %20 = tpu.matmul %17, %19, %cst_17 {dimension_numbers = #tpu.dot_dimension_numbers<[1], [0], [0], [1], [0, 0, 1, 1], [], []>} : vector<56x30xbf16>, vector<30x1024xbf16>, vector<56x1024xf32> -> vector<56x1024xf32>
    %21 = arith.addf %14, %20 : vector<56x1024xf32>
    %c0_18 = arith.constant 0 : index
    %c0_19 = arith.constant 0 : index
    %22 = vector.load %arg3[%c0_18, %c0_19] : memref<1x1024xf32, #tpu.memory_space<vmem>>, vector<1x1024xf32>
    %23 = vector.broadcast %22 : vector<1x1024xf32> to vector<56x1024xf32>
    %24 = arith.addf %21, %23 : vector<56x1024xf32>
    %cst_20 = arith.constant 0.000000e+00 : f32
    %25 = vector.broadcast %cst_20 : f32 to vector<56x1024xf32>
    %26 = arith.maximumf %24, %25 : vector<56x1024xf32>
    %27 = vector.extract_strided_slice %26 {offsets = [0, 0], sizes = [56, 512], strides = [1, 1]} : vector<56x1024xf32> to vector<56x512xf32>
    %28 = vector.extract_strided_slice %26 {offsets = [0, 512], sizes = [56, 512], strides = [1, 1]} : vector<56x1024xf32> to vector<56x512xf32>
    %29 = arith.maximumf %27, %28 : vector<56x512xf32>
    %30 = vector.shape_cast %29 : vector<56x512xf32> to vector<28x2x512xf32>
    %31 = vector.extract_strided_slice %30 {offsets = [0, 0, 0], sizes = [28, 1, 512], strides = [1, 1, 1]} : vector<28x2x512xf32> to vector<28x1x512xf32>
    %32 = vector.shape_cast %31 : vector<28x1x512xf32> to vector<28x512xf32>
    %33 = vector.extract_strided_slice %30 {offsets = [0, 1, 0], sizes = [28, 1, 512], strides = [1, 1, 1]} : vector<28x2x512xf32> to vector<28x1x512xf32>
    %34 = vector.shape_cast %33 : vector<28x1x512xf32> to vector<28x512xf32>
    %35 = arith.maximumf %32, %34 : vector<28x512xf32>
    %cst_21 = arith.constant 0.000000e+00 : f32
    %36 = vector.broadcast %cst_21 : f32 to vector<2x512xf32>
    %c0_22 = arith.constant 0 : index
    %c0_23 = arith.constant 0 : index
    %c0_24 = arith.constant 0 : index
    %37 = vector.load %arg9[%c0_22, %c0_23, %c0_24] : memref<2x16x512xf32, #tpu.memory_space<vmem>>, vector<2x1x512xf32>
    %38 = vector.shape_cast %37 : vector<2x1x512xf32> to vector<2x512xf32>
    %39 = vector.shape_cast %36 : vector<2x512xf32> to vector<2x1x512xf32>
    tpu.vector_store %arg9[%c0_22, %c0_23, %c0_24], %39 {strides = array<i32>} : memref<2x16x512xf32, #tpu.memory_space<vmem>>, vector<2x1x512xf32>,
    %cst_25 = arith.constant 0.000000e+00 : f32
    %40 = vector.broadcast %cst_25 : f32 to vector<2x512xf32>
    %c0_26 = arith.constant 0 : index
    %c15 = arith.constant 15 : index
    %c0_27 = arith.constant 0 : index
    %41 = vector.load %arg9[%c0_26, %c15, %c0_27] : memref<2x16x512xf32, #tpu.memory_space<vmem>>, vector<2x1x512xf32>
    %42 = vector.shape_cast %41 : vector<2x1x512xf32> to vector<2x512xf32>
    %43 = vector.shape_cast %40 : vector<2x512xf32> to vector<2x1x512xf32>
    tpu.vector_store %arg9[%c0_26, %c15, %c0_27], %43 {strides = array<i32>} : memref<2x16x512xf32, #tpu.memory_space<vmem>>, vector<2x1x512xf32>,
    %44 = vector.shape_cast %35 : vector<28x512xf32> to vector<2x14x512xf32>
    %c0_28 = arith.constant 0 : index
    %c1_29 = arith.constant 1 : index
    %c0_30 = arith.constant 0 : index
    %45 = vector.load %arg9[%c0_28, %c1_29, %c0_30] : memref<2x16x512xf32, #tpu.memory_space<vmem>>, vector<2x14x512xf32>
    tpu.vector_store %arg9[%c0_28, %c1_29, %c0_30], %44 {strides = array<i32>} : memref<2x16x512xf32, #tpu.memory_space<vmem>>, vector<2x14x512xf32>,
    %cst_31 = arith.constant 0.000000e+00 : f32
    %46 = vector.broadcast %cst_31 : f32 to vector<28x1024xf32>
    %c0_32 = arith.constant 0 : index
    %c0_33 = arith.constant 0 : index
    %c0_34 = arith.constant 0 : index
    %47 = vector.load %arg9[%c0_32, %c0_33, %c0_34] : memref<2x16x512xf32, #tpu.memory_space<vmem>>, vector<2x14x512xf32>
    %48 = vector.shape_cast %47 : vector<2x14x512xf32> to vector<28x512xf32>
    %49 = arith.truncf %48 : vector<28x512xf32> to vector<28x512xbf16>
    %c0_35 = arith.constant 0 : index
    %c0_36 = arith.constant 0 : index
    %c0_37 = arith.constant 0 : index
    %50 = vector.load %arg4[%c0_35, %c0_36, %c0_37] : memref<3x512x1024xbf16, #tpu.memory_space<vmem>>, vector<1x512x1024xbf16>
    %51 = vector.shape_cast %50 : vector<1x512x1024xbf16> to vector<512x1024xbf16>
    %cst_38 = arith.constant dense<0.000000e+00> : vector<28x1024xf32>
    %52 = tpu.matmul %49, %51, %cst_38 {dimension_numbers = #tpu.dot_dimension_numbers<[1], [0], [0], [1], [0, 0, 1, 1], [], []>} : vector<28x512xbf16>, vector<512x1024xbf16>, vector<28x1024xf32> -> vector<28x1024xf32>
    %53 = arith.addf %46, %52 : vector<28x1024xf32>
    %c0_39 = arith.constant 0 : index
    %c1_40 = arith.constant 1 : index
    %c0_41 = arith.constant 0 : index
    %54 = vector.load %arg9[%c0_39, %c1_40, %c0_41] : memref<2x16x512xf32, #tpu.memory_space<vmem>>, vector<2x14x512xf32>
    %55 = vector.shape_cast %54 : vector<2x14x512xf32> to vector<28x512xf32>
    %56 = arith.truncf %55 : vector<28x512xf32> to vector<28x512xbf16>
    %c1_42 = arith.constant 1 : index
    %c0_43 = arith.constant 0 : index
    %c0_44 = arith.constant 0 : index
    %57 = vector.load %arg4[%c1_42, %c0_43, %c0_44] : memref<3x512x1024xbf16, #tpu.memory_space<vmem>>, vector<1x512x1024xbf16>
    %58 = vector.shape_cast %57 : vector<1x512x1024xbf16> to vector<512x1024xbf16>
    %cst_45 = arith.constant dense<0.000000e+00> : vector<28x1024xf32>
    %59 = tpu.matmul %56, %58, %cst_45 {dimension_numbers = #tpu.dot_dimension_numbers<[1], [0], [0], [1], [0, 0, 1, 1], [], []>} : vector<28x512xbf16>, vector<512x1024xbf16>, vector<28x1024xf32> -> vector<28x1024xf32>
    %60 = arith.addf %53, %59 : vector<28x1024xf32>
    %c0_46 = arith.constant 0 : index
    %c2_47 = arith.constant 2 : index
    %c0_48 = arith.constant 0 : index
    %61 = vector.load %arg9[%c0_46, %c2_47, %c0_48] : memref<2x16x512xf32, #tpu.memory_space<vmem>>, vector<2x14x512xf32>
    %62 = vector.shape_cast %61 : vector<2x14x512xf32> to vector<28x512xf32>
    %63 = arith.truncf %62 : vector<28x512xf32> to vector<28x512xbf16>
    %c2_49 = arith.constant 2 : index
    %c0_50 = arith.constant 0 : index
    %c0_51 = arith.constant 0 : index
    %64 = vector.load %arg4[%c2_49, %c0_50, %c0_51] : memref<3x512x1024xbf16, #tpu.memory_space<vmem>>, vector<1x512x1024xbf16>
    %65 = vector.shape_cast %64 : vector<1x512x1024xbf16> to vector<512x1024xbf16>
    %cst_52 = arith.constant dense<0.000000e+00> : vector<28x1024xf32>
    %66 = tpu.matmul %63, %65, %cst_52 {dimension_numbers = #tpu.dot_dimension_numbers<[1], [0], [0], [1], [0, 0, 1, 1], [], []>} : vector<28x512xbf16>, vector<512x1024xbf16>, vector<28x1024xf32> -> vector<28x1024xf32>
    %67 = arith.addf %60, %66 : vector<28x1024xf32>
    %c0_53 = arith.constant 0 : index
    %c0_54 = arith.constant 0 : index
    %68 = vector.load %arg5[%c0_53, %c0_54] : memref<1x1024xf32, #tpu.memory_space<vmem>>, vector<1x1024xf32>
    %69 = vector.broadcast %68 : vector<1x1024xf32> to vector<28x1024xf32>
    %70 = arith.addf %67, %69 : vector<28x1024xf32>
    %cst_55 = arith.constant 0.000000e+00 : f32
    %71 = vector.broadcast %cst_55 : f32 to vector<28x1024xf32>
    %72 = arith.maximumf %70, %71 : vector<28x1024xf32>
    %73 = vector.extract_strided_slice %72 {offsets = [0, 0], sizes = [28, 512], strides = [1, 1]} : vector<28x1024xf32> to vector<28x512xf32>
    %74 = vector.extract_strided_slice %72 {offsets = [0, 512], sizes = [28, 512], strides = [1, 1]} : vector<28x1024xf32> to vector<28x512xf32>
    %75 = arith.maximumf %73, %74 : vector<28x512xf32>
    %76 = vector.shape_cast %75 : vector<28x512xf32> to vector<14x2x512xf32>
    %77 = vector.extract_strided_slice %76 {offsets = [0, 0, 0], sizes = [14, 1, 512], strides = [1, 1, 1]} : vector<14x2x512xf32> to vector<14x1x512xf32>
    %78 = vector.shape_cast %77 : vector<14x1x512xf32> to vector<14x512xf32>
    %79 = vector.extract_strided_slice %76 {offsets = [0, 1, 0], sizes = [14, 1, 512], strides = [1, 1, 1]} : vector<14x2x512xf32> to vector<14x1x512xf32>
    %80 = vector.shape_cast %79 : vector<14x1x512xf32> to vector<14x512xf32>
    %81 = arith.maximumf %78, %80 : vector<14x512xf32>
    %82 = vector.shape_cast %81 : vector<14x512xf32> to vector<2x7x512xf32>
    %cst_56 = arith.constant 0.000000e+00 : f32
    %83 = vector.broadcast %cst_56 : f32 to vector<2x128xf32>
    %84 = vector.extract_strided_slice %82 {offsets = [0, 0, 0], sizes = [2, 1, 512], strides = [1, 1, 1]} : vector<2x7x512xf32> to vector<2x1x512xf32>
    %85 = vector.shape_cast %84 : vector<2x1x512xf32> to vector<2x512xf32>
    %86 = arith.truncf %85 : vector<2x512xf32> to vector<2x512xbf16>
    %c0_57 = arith.constant 0 : index
    %c0_58 = arith.constant 0 : index
    %c0_59 = arith.constant 0 : index
    %87 = vector.load %arg6[%c0_57, %c0_58, %c0_59] : memref<7x512x128xbf16, #tpu.memory_space<vmem>>, vector<1x512x128xbf16>
    %88 = vector.shape_cast %87 : vector<1x512x128xbf16> to vector<512x128xbf16>
    %cst_60 = arith.constant dense<0.000000e+00> : vector<2x128xf32>
    %89 = tpu.matmul %86, %88, %cst_60 {dimension_numbers = #tpu.dot_dimension_numbers<[1], [0], [0], [1], [0, 0, 1, 1], [], []>} : vector<2x512xbf16>, vector<512x128xbf16>, vector<2x128xf32> -> vector<2x128xf32>
    %90 = arith.addf %83, %89 : vector<2x128xf32>
    %91 = vector.extract_strided_slice %82 {offsets = [0, 1, 0], sizes = [2, 1, 512], strides = [1, 1, 1]} : vector<2x7x512xf32> to vector<2x1x512xf32>
    %92 = vector.shape_cast %91 : vector<2x1x512xf32> to vector<2x512xf32>
    %93 = arith.truncf %92 : vector<2x512xf32> to vector<2x512xbf16>
    %c1_61 = arith.constant 1 : index
    %c0_62 = arith.constant 0 : index
    %c0_63 = arith.constant 0 : index
    %94 = vector.load %arg6[%c1_61, %c0_62, %c0_63] : memref<7x512x128xbf16, #tpu.memory_space<vmem>>, vector<1x512x128xbf16>
    %95 = vector.shape_cast %94 : vector<1x512x128xbf16> to vector<512x128xbf16>
    %cst_64 = arith.constant dense<0.000000e+00> : vector<2x128xf32>
    %96 = tpu.matmul %93, %95, %cst_64 {dimension_numbers = #tpu.dot_dimension_numbers<[1], [0], [0], [1], [0, 0, 1, 1], [], []>} : vector<2x512xbf16>, vector<512x128xbf16>, vector<2x128xf32> -> vector<2x128xf32>
    %97 = arith.addf %90, %96 : vector<2x128xf32>
    %98 = vector.extract_strided_slice %82 {offsets = [0, 2, 0], sizes = [2, 1, 512], strides = [1, 1, 1]} : vector<2x7x512xf32> to vector<2x1x512xf32>
    %99 = vector.shape_cast %98 : vector<2x1x512xf32> to vector<2x512xf32>
    %100 = arith.truncf %99 : vector<2x512xf32> to vector<2x512xbf16>
    %c2_65 = arith.constant 2 : index
    %c0_66 = arith.constant 0 : index
    %c0_67 = arith.constant 0 : index
    %101 = vector.load %arg6[%c2_65, %c0_66, %c0_67] : memref<7x512x128xbf16, #tpu.memory_space<vmem>>, vector<1x512x128xbf16>
    %102 = vector.shape_cast %101 : vector<1x512x128xbf16> to vector<512x128xbf16>
    %cst_68 = arith.constant dense<0.000000e+00> : vector<2x128xf32>
    %103 = tpu.matmul %100, %102, %cst_68 {dimension_numbers = #tpu.dot_dimension_numbers<[1], [0], [0], [1], [0, 0, 1, 1], [], []>} : vector<2x512xbf16>, vector<512x128xbf16>, vector<2x128xf32> -> vector<2x128xf32>
    %104 = arith.addf %97, %103 : vector<2x128xf32>
    %105 = vector.extract_strided_slice %82 {offsets = [0, 3, 0], sizes = [2, 1, 512], strides = [1, 1, 1]} : vector<2x7x512xf32> to vector<2x1x512xf32>
    %106 = vector.shape_cast %105 : vector<2x1x512xf32> to vector<2x512xf32>
    %107 = arith.truncf %106 : vector<2x512xf32> to vector<2x512xbf16>
    %c3 = arith.constant 3 : index
    %c0_69 = arith.constant 0 : index
    %c0_70 = arith.constant 0 : index
    %108 = vector.load %arg6[%c3, %c0_69, %c0_70] : memref<7x512x128xbf16, #tpu.memory_space<vmem>>, vector<1x512x128xbf16>
    %109 = vector.shape_cast %108 : vector<1x512x128xbf16> to vector<512x128xbf16>
    %cst_71 = arith.constant dense<0.000000e+00> : vector<2x128xf32>
    %110 = tpu.matmul %107, %109, %cst_71 {dimension_numbers = #tpu.dot_dimension_numbers<[1], [0], [0], [1], [0, 0, 1, 1], [], []>} : vector<2x512xbf16>, vector<512x128xbf16>, vector<2x128xf32> -> vector<2x128xf32>
    %111 = arith.addf %104, %110 : vector<2x128xf32>
    %112 = vector.extract_strided_slice %82 {offsets = [0, 4, 0], sizes = [2, 1, 512], strides = [1, 1, 1]} : vector<2x7x512xf32> to vector<2x1x512xf32>
    %113 = vector.shape_cast %112 : vector<2x1x512xf32> to vector<2x512xf32>
    %114 = arith.truncf %113 : vector<2x512xf32> to vector<2x512xbf16>
    %c4 = arith.constant 4 : index
    %c0_72 = arith.constant 0 : index
    %c0_73 = arith.constant 0 : index
    %115 = vector.load %arg6[%c4, %c0_72, %c0_73] : memref<7x512x128xbf16, #tpu.memory_space<vmem>>, vector<1x512x128xbf16>
    %116 = vector.shape_cast %115 : vector<1x512x128xbf16> to vector<512x128xbf16>
    %cst_74 = arith.constant dense<0.000000e+00> : vector<2x128xf32>
    %117 = tpu.matmul %114, %116, %cst_74 {dimension_numbers = #tpu.dot_dimension_numbers<[1], [0], [0], [1], [0, 0, 1, 1], [], []>} : vector<2x512xbf16>, vector<512x128xbf16>, vector<2x128xf32> -> vector<2x128xf32>
    %118 = arith.addf %111, %117 : vector<2x128xf32>
    %119 = vector.extract_strided_slice %82 {offsets = [0, 5, 0], sizes = [2, 1, 512], strides = [1, 1, 1]} : vector<2x7x512xf32> to vector<2x1x512xf32>
    %120 = vector.shape_cast %119 : vector<2x1x512xf32> to vector<2x512xf32>
    %121 = arith.truncf %120 : vector<2x512xf32> to vector<2x512xbf16>
    %c5 = arith.constant 5 : index
    %c0_75 = arith.constant 0 : index
    %c0_76 = arith.constant 0 : index
    %122 = vector.load %arg6[%c5, %c0_75, %c0_76] : memref<7x512x128xbf16, #tpu.memory_space<vmem>>, vector<1x512x128xbf16>
    %123 = vector.shape_cast %122 : vector<1x512x128xbf16> to vector<512x128xbf16>
    %cst_77 = arith.constant dense<0.000000e+00> : vector<2x128xf32>
    %124 = tpu.matmul %121, %123, %cst_77 {dimension_numbers = #tpu.dot_dimension_numbers<[1], [0], [0], [1], [0, 0, 1, 1], [], []>} : vector<2x512xbf16>, vector<512x128xbf16>, vector<2x128xf32> -> vector<2x128xf32>
    %125 = arith.addf %118, %124 : vector<2x128xf32>
    %126 = vector.extract_strided_slice %82 {offsets = [0, 6, 0], sizes = [2, 1, 512], strides = [1, 1, 1]} : vector<2x7x512xf32> to vector<2x1x512xf32>
    %127 = vector.shape_cast %126 : vector<2x1x512xf32> to vector<2x512xf32>
    %128 = arith.truncf %127 : vector<2x512xf32> to vector<2x512xbf16>
    %c6 = arith.constant 6 : index
    %c0_78 = arith.constant 0 : index
    %c0_79 = arith.constant 0 : index
    %129 = vector.load %arg6[%c6, %c0_78, %c0_79] : memref<7x512x128xbf16, #tpu.memory_space<vmem>>, vector<1x512x128xbf16>
    %130 = vector.shape_cast %129 : vector<1x512x128xbf16> to vector<512x128xbf16>
    %cst_80 = arith.constant dense<0.000000e+00> : vector<2x128xf32>
    %131 = tpu.matmul %128, %130, %cst_80 {dimension_numbers = #tpu.dot_dimension_numbers<[1], [0], [0], [1], [0, 0, 1, 1], [], []>} : vector<2x512xbf16>, vector<512x128xbf16>, vector<2x128xf32> -> vector<2x128xf32>
    %132 = arith.addf %125, %131 : vector<2x128xf32>
    %c0_81 = arith.constant 0 : index
    %c0_82 = arith.constant 0 : index
    %133 = vector.load %arg7[%c0_81, %c0_82] : memref<1x128xf32, #tpu.memory_space<vmem>>, vector<1x128xf32>
    %134 = vector.broadcast %133 : vector<1x128xf32> to vector<2x128xf32>
    %135 = arith.addf %132, %134 : vector<2x128xf32>
    %136 = arith.mulf %135, %135 : vector<2x128xf32>
    %cst_83 = arith.constant dense<0.000000e+00> : vector<2xf32>
    %137 = vector.multi_reduction <add>, %136, %cst_83 [1] : vector<2x128xf32> to vector<2xf32>
    %138 = vector.shape_cast %137 : vector<2xf32> to vector<2x1xf32>
    %cst_84 = arith.constant 1.000000e-24 : f32
    %139 = vector.broadcast %cst_84 : f32 to vector<2x1xf32>
    %140 = arith.maximumf %138, %139 : vector<2x1xf32>
    %141 = math.rsqrt %140 : vector<2x1xf32>
    %142 = vector.broadcast %141 : vector<2x1xf32> to vector<2x128xf32>
    %143 = arith.mulf %135, %142 : vector<2x128xf32>
    %c0_85 = arith.constant 0 : index
    %c0_86 = arith.constant 0 : index
    %144 = vector.load %arg8[%c0_85, %c0_86] : memref<2x128xf32, #tpu.memory_space<vmem>>, vector<2x128xf32>
    tpu.vector_store %arg8[%c0_85, %c0_86], %143 {strides = array<i32>} : memref<2x128xf32, #tpu.memory_space<vmem>>, vector<2x128xf32>,
    return
  }
  func.func @transform_0(%arg0: i32) -> (i32, i32, i32) {
    %c0_i32 = arith.constant 0 : i32
    %c0_i32_0 = arith.constant 0 : i32
    %c0_i32_1 = arith.constant 0 : i32
    return %arg0, %c0_i32, %c0_i32_0 : i32, i32, i32
  }
  func.func @transform_1(%arg0: i32) -> (i32, i32, i32) {
    %c0_i32 = arith.constant 0 : i32
    %c0_i32_0 = arith.constant 0 : i32
    %c0_i32_1 = arith.constant 0 : i32
    %c0_i32_2 = arith.constant 0 : i32
    return %c0_i32, %c0_i32_0, %c0_i32_1 : i32, i32, i32
  }
  func.func @transform_2(%arg0: i32) -> (i32, i32) {
    %c0_i32 = arith.constant 0 : i32
    %c0_i32_0 = arith.constant 0 : i32
    %c0_i32_1 = arith.constant 0 : i32
    return %c0_i32, %c0_i32_0 : i32, i32
  }
  func.func @transform_3(%arg0: i32) -> (i32, i32, i32) {
    %c0_i32 = arith.constant 0 : i32
    %c0_i32_0 = arith.constant 0 : i32
    %c0_i32_1 = arith.constant 0 : i32
    %c0_i32_2 = arith.constant 0 : i32
    return %c0_i32, %c0_i32_0, %c0_i32_1 : i32, i32, i32
  }
  func.func @transform_4(%arg0: i32) -> (i32, i32) {
    %c0_i32 = arith.constant 0 : i32
    %c0_i32_0 = arith.constant 0 : i32
    %c0_i32_1 = arith.constant 0 : i32
    return %c0_i32, %c0_i32_0 : i32, i32
  }
  func.func @transform_5(%arg0: i32) -> (i32, i32, i32) {
    %c0_i32 = arith.constant 0 : i32
    %c0_i32_0 = arith.constant 0 : i32
    %c0_i32_1 = arith.constant 0 : i32
    %c0_i32_2 = arith.constant 0 : i32
    return %c0_i32, %c0_i32_0, %c0_i32_1 : i32, i32, i32
  }
  func.func @transform_6(%arg0: i32) -> (i32, i32) {
    %c0_i32 = arith.constant 0 : i32
    %c0_i32_0 = arith.constant 0 : i32
    %c0_i32_1 = arith.constant 0 : i32
    return %c0_i32, %c0_i32_0 : i32, i32
  }
  func.func @transform_7(%arg0: i32) -> (i32, i32) {
    %c0_i32 = arith.constant 0 : i32
    %c0_i32_0 = arith.constant 0 : i32
    return %arg0, %c0_i32 : i32, i32
  }
}

module attributes {stable_mosaic.version = 11 : i64} {
  func.func @_text_encoder_kernel(%arg0: i32, %arg1: memref<2x4xi32, #tpu.memory_space<vmem>>, %arg2: memref<7x128xf32, #tpu.memory_space<vmem>>, %arg3: memref<128x128xbf16, #tpu.memory_space<vmem>>, %arg4: memref<1x128xf32, #tpu.memory_space<vmem>>, %arg5: memref<128x128xbf16, #tpu.memory_space<vmem>>, %arg6: memref<1x128xf32, #tpu.memory_space<vmem>>, %arg7: memref<2x128xf32, #tpu.memory_space<vmem>>) attributes {dimension_semantics = [#tpu.dimension_semantics<parallel>], iteration_bounds = array<i64: 1>, scalar_prefetch = 0 : i64, scratch_operands = 0 : i64, tpu.core_type = #tpu.core_type<tc>, window_params = [{transform_indices = @transform_0, window_bounds = array<i64: 2, 4>}, {pipeline_mode = #tpu.pipeline_mode<synchronous>, transform_indices = @transform_1, window_bounds = array<i64: 7, 128>}, {pipeline_mode = #tpu.pipeline_mode<synchronous>, transform_indices = @transform_2, window_bounds = array<i64: 128, 128>}, {pipeline_mode = #tpu.pipeline_mode<synchronous>, transform_indices = @transform_3, window_bounds = array<i64: 1, 128>}, {pipeline_mode = #tpu.pipeline_mode<synchronous>, transform_indices = @transform_4, window_bounds = array<i64: 128, 128>}, {pipeline_mode = #tpu.pipeline_mode<synchronous>, transform_indices = @transform_5, window_bounds = array<i64: 1, 128>}, {transform_indices = @transform_6, window_bounds = array<i64: 2, 128>}]} {
    %c0 = arith.constant 0 : index
    %c0_0 = arith.constant 0 : index
    %0 = vector.load %arg1[%c0, %c0_0] : memref<2x4xi32, #tpu.memory_space<vmem>>, vector<2x4xi32>
    %cst = arith.constant 0.000000e+00 : f32
    %1 = vector.broadcast %cst : f32 to vector<2x128xf32>
    %c0_i32 = arith.constant 0 : i32
    %2 = vector.broadcast %c0_i32 : i32 to vector<2x4xi32>
    %3 = arith.cmpi eq, %0, %2 : vector<2x4xi32>
    %4 = arith.extui %3 : vector<2x4xi1> to vector<2x4xi32>
    %5 = arith.sitofp %4 : vector<2x4xi32> to vector<2x4xf32>
    %cst_1 = arith.constant dense<0.000000e+00> : vector<2xf32>
    %6 = vector.multi_reduction <add>, %5, %cst_1 [1] : vector<2x4xf32> to vector<2xf32>
    %7 = vector.shape_cast %6 : vector<2xf32> to vector<2x1xf32>
    %c0_2 = arith.constant 0 : index
    %c0_3 = arith.constant 0 : index
    %8 = vector.load %arg2[%c0_2, %c0_3] : memref<7x128xf32, #tpu.memory_space<vmem>>, vector<1x128xf32>
    %9 = vector.broadcast %7 : vector<2x1xf32> to vector<2x128xf32>
    %10 = vector.broadcast %8 : vector<1x128xf32> to vector<2x128xf32>
    %11 = arith.mulf %9, %10 : vector<2x128xf32>
    %12 = arith.addf %1, %11 : vector<2x128xf32>
    %c1_i32 = arith.constant 1 : i32
    %13 = vector.broadcast %c1_i32 : i32 to vector<2x4xi32>
    %14 = arith.cmpi eq, %0, %13 : vector<2x4xi32>
    %15 = arith.extui %14 : vector<2x4xi1> to vector<2x4xi32>
    %16 = arith.sitofp %15 : vector<2x4xi32> to vector<2x4xf32>
    %cst_4 = arith.constant dense<0.000000e+00> : vector<2xf32>
    %17 = vector.multi_reduction <add>, %16, %cst_4 [1] : vector<2x4xf32> to vector<2xf32>
    %18 = vector.shape_cast %17 : vector<2xf32> to vector<2x1xf32>
    %c1 = arith.constant 1 : index
    %c0_5 = arith.constant 0 : index
    %19 = vector.load %arg2[%c1, %c0_5] : memref<7x128xf32, #tpu.memory_space<vmem>>, vector<1x128xf32>
    %20 = vector.broadcast %18 : vector<2x1xf32> to vector<2x128xf32>
    %21 = vector.broadcast %19 : vector<1x128xf32> to vector<2x128xf32>
    %22 = arith.mulf %20, %21 : vector<2x128xf32>
    %23 = arith.addf %12, %22 : vector<2x128xf32>
    %c2_i32 = arith.constant 2 : i32
    %24 = vector.broadcast %c2_i32 : i32 to vector<2x4xi32>
    %25 = arith.cmpi eq, %0, %24 : vector<2x4xi32>
    %26 = arith.extui %25 : vector<2x4xi1> to vector<2x4xi32>
    %27 = arith.sitofp %26 : vector<2x4xi32> to vector<2x4xf32>
    %cst_6 = arith.constant dense<0.000000e+00> : vector<2xf32>
    %28 = vector.multi_reduction <add>, %27, %cst_6 [1] : vector<2x4xf32> to vector<2xf32>
    %29 = vector.shape_cast %28 : vector<2xf32> to vector<2x1xf32>
    %c2 = arith.constant 2 : index
    %c0_7 = arith.constant 0 : index
    %30 = vector.load %arg2[%c2, %c0_7] : memref<7x128xf32, #tpu.memory_space<vmem>>, vector<1x128xf32>
    %31 = vector.broadcast %29 : vector<2x1xf32> to vector<2x128xf32>
    %32 = vector.broadcast %30 : vector<1x128xf32> to vector<2x128xf32>
    %33 = arith.mulf %31, %32 : vector<2x128xf32>
    %34 = arith.addf %23, %33 : vector<2x128xf32>
    %c3_i32 = arith.constant 3 : i32
    %35 = vector.broadcast %c3_i32 : i32 to vector<2x4xi32>
    %36 = arith.cmpi eq, %0, %35 : vector<2x4xi32>
    %37 = arith.extui %36 : vector<2x4xi1> to vector<2x4xi32>
    %38 = arith.sitofp %37 : vector<2x4xi32> to vector<2x4xf32>
    %cst_8 = arith.constant dense<0.000000e+00> : vector<2xf32>
    %39 = vector.multi_reduction <add>, %38, %cst_8 [1] : vector<2x4xf32> to vector<2xf32>
    %40 = vector.shape_cast %39 : vector<2xf32> to vector<2x1xf32>
    %c3 = arith.constant 3 : index
    %c0_9 = arith.constant 0 : index
    %41 = vector.load %arg2[%c3, %c0_9] : memref<7x128xf32, #tpu.memory_space<vmem>>, vector<1x128xf32>
    %42 = vector.broadcast %40 : vector<2x1xf32> to vector<2x128xf32>
    %43 = vector.broadcast %41 : vector<1x128xf32> to vector<2x128xf32>
    %44 = arith.mulf %42, %43 : vector<2x128xf32>
    %45 = arith.addf %34, %44 : vector<2x128xf32>
    %c4_i32 = arith.constant 4 : i32
    %46 = vector.broadcast %c4_i32 : i32 to vector<2x4xi32>
    %47 = arith.cmpi eq, %0, %46 : vector<2x4xi32>
    %48 = arith.extui %47 : vector<2x4xi1> to vector<2x4xi32>
    %49 = arith.sitofp %48 : vector<2x4xi32> to vector<2x4xf32>
    %cst_10 = arith.constant dense<0.000000e+00> : vector<2xf32>
    %50 = vector.multi_reduction <add>, %49, %cst_10 [1] : vector<2x4xf32> to vector<2xf32>
    %51 = vector.shape_cast %50 : vector<2xf32> to vector<2x1xf32>
    %c4 = arith.constant 4 : index
    %c0_11 = arith.constant 0 : index
    %52 = vector.load %arg2[%c4, %c0_11] : memref<7x128xf32, #tpu.memory_space<vmem>>, vector<1x128xf32>
    %53 = vector.broadcast %51 : vector<2x1xf32> to vector<2x128xf32>
    %54 = vector.broadcast %52 : vector<1x128xf32> to vector<2x128xf32>
    %55 = arith.mulf %53, %54 : vector<2x128xf32>
    %56 = arith.addf %45, %55 : vector<2x128xf32>
    %c5_i32 = arith.constant 5 : i32
    %57 = vector.broadcast %c5_i32 : i32 to vector<2x4xi32>
    %58 = arith.cmpi eq, %0, %57 : vector<2x4xi32>
    %59 = arith.extui %58 : vector<2x4xi1> to vector<2x4xi32>
    %60 = arith.sitofp %59 : vector<2x4xi32> to vector<2x4xf32>
    %cst_12 = arith.constant dense<0.000000e+00> : vector<2xf32>
    %61 = vector.multi_reduction <add>, %60, %cst_12 [1] : vector<2x4xf32> to vector<2xf32>
    %62 = vector.shape_cast %61 : vector<2xf32> to vector<2x1xf32>
    %c5 = arith.constant 5 : index
    %c0_13 = arith.constant 0 : index
    %63 = vector.load %arg2[%c5, %c0_13] : memref<7x128xf32, #tpu.memory_space<vmem>>, vector<1x128xf32>
    %64 = vector.broadcast %62 : vector<2x1xf32> to vector<2x128xf32>
    %65 = vector.broadcast %63 : vector<1x128xf32> to vector<2x128xf32>
    %66 = arith.mulf %64, %65 : vector<2x128xf32>
    %67 = arith.addf %56, %66 : vector<2x128xf32>
    %c6_i32 = arith.constant 6 : i32
    %68 = vector.broadcast %c6_i32 : i32 to vector<2x4xi32>
    %69 = arith.cmpi eq, %0, %68 : vector<2x4xi32>
    %70 = arith.extui %69 : vector<2x4xi1> to vector<2x4xi32>
    %71 = arith.sitofp %70 : vector<2x4xi32> to vector<2x4xf32>
    %cst_14 = arith.constant dense<0.000000e+00> : vector<2xf32>
    %72 = vector.multi_reduction <add>, %71, %cst_14 [1] : vector<2x4xf32> to vector<2xf32>
    %73 = vector.shape_cast %72 : vector<2xf32> to vector<2x1xf32>
    %c6 = arith.constant 6 : index
    %c0_15 = arith.constant 0 : index
    %74 = vector.load %arg2[%c6, %c0_15] : memref<7x128xf32, #tpu.memory_space<vmem>>, vector<1x128xf32>
    %75 = vector.broadcast %73 : vector<2x1xf32> to vector<2x128xf32>
    %76 = vector.broadcast %74 : vector<1x128xf32> to vector<2x128xf32>
    %77 = arith.mulf %75, %76 : vector<2x128xf32>
    %78 = arith.addf %67, %77 : vector<2x128xf32>
    %cst_16 = arith.constant 2.500000e-01 : f32
    %79 = vector.broadcast %cst_16 : f32 to vector<2x128xf32>
    %80 = arith.mulf %78, %79 : vector<2x128xf32>
    %81 = arith.truncf %80 : vector<2x128xf32> to vector<2x128xbf16>
    %c0_17 = arith.constant 0 : index
    %c0_18 = arith.constant 0 : index
    %82 = vector.load %arg3[%c0_17, %c0_18] : memref<128x128xbf16, #tpu.memory_space<vmem>>, vector<128x128xbf16>
    %cst_19 = arith.constant dense<0.000000e+00> : vector<2x128xf32>
    %83 = tpu.matmul %81, %82, %cst_19 {dimension_numbers = #tpu.dot_dimension_numbers<[1], [0], [0], [1], [0, 0, 1, 1], [], []>} : vector<2x128xbf16>, vector<128x128xbf16>, vector<2x128xf32> -> vector<2x128xf32>
    %c0_20 = arith.constant 0 : index
    %c0_21 = arith.constant 0 : index
    %84 = vector.load %arg4[%c0_20, %c0_21] : memref<1x128xf32, #tpu.memory_space<vmem>>, vector<1x128xf32>
    %85 = vector.broadcast %84 : vector<1x128xf32> to vector<2x128xf32>
    %86 = arith.addf %83, %85 : vector<2x128xf32>
    %cst_22 = arith.constant 0.000000e+00 : f32
    %87 = vector.broadcast %cst_22 : f32 to vector<2x128xf32>
    %88 = arith.maximumf %86, %87 : vector<2x128xf32>
    %89 = arith.truncf %88 : vector<2x128xf32> to vector<2x128xbf16>
    %c0_23 = arith.constant 0 : index
    %c0_24 = arith.constant 0 : index
    %90 = vector.load %arg5[%c0_23, %c0_24] : memref<128x128xbf16, #tpu.memory_space<vmem>>, vector<128x128xbf16>
    %cst_25 = arith.constant dense<0.000000e+00> : vector<2x128xf32>
    %91 = tpu.matmul %89, %90, %cst_25 {dimension_numbers = #tpu.dot_dimension_numbers<[1], [0], [0], [1], [0, 0, 1, 1], [], []>} : vector<2x128xbf16>, vector<128x128xbf16>, vector<2x128xf32> -> vector<2x128xf32>
    %c0_26 = arith.constant 0 : index
    %c0_27 = arith.constant 0 : index
    %92 = vector.load %arg6[%c0_26, %c0_27] : memref<1x128xf32, #tpu.memory_space<vmem>>, vector<1x128xf32>
    %93 = vector.broadcast %92 : vector<1x128xf32> to vector<2x128xf32>
    %94 = arith.addf %91, %93 : vector<2x128xf32>
    %95 = arith.mulf %94, %94 : vector<2x128xf32>
    %cst_28 = arith.constant dense<0.000000e+00> : vector<2xf32>
    %96 = vector.multi_reduction <add>, %95, %cst_28 [1] : vector<2x128xf32> to vector<2xf32>
    %97 = vector.shape_cast %96 : vector<2xf32> to vector<2x1xf32>
    %cst_29 = arith.constant 1.000000e-24 : f32
    %98 = vector.broadcast %cst_29 : f32 to vector<2x1xf32>
    %99 = arith.maximumf %97, %98 : vector<2x1xf32>
    %100 = math.rsqrt %99 : vector<2x1xf32>
    %101 = vector.broadcast %100 : vector<2x1xf32> to vector<2x128xf32>
    %102 = arith.mulf %94, %101 : vector<2x128xf32>
    %c0_30 = arith.constant 0 : index
    %c0_31 = arith.constant 0 : index
    %103 = vector.load %arg7[%c0_30, %c0_31] : memref<2x128xf32, #tpu.memory_space<vmem>>, vector<2x128xf32>
    tpu.vector_store %arg7[%c0_30, %c0_31], %102 {strides = array<i32>} : memref<2x128xf32, #tpu.memory_space<vmem>>, vector<2x128xf32>,
    return
  }
  func.func @transform_0(%arg0: i32) -> (i32, i32) {
    %c0_i32 = arith.constant 0 : i32
    %c0_i32_0 = arith.constant 0 : i32
    return %arg0, %c0_i32 : i32, i32
  }
  func.func @transform_1(%arg0: i32) -> (i32, i32) {
    %c0_i32 = arith.constant 0 : i32
    %c0_i32_0 = arith.constant 0 : i32
    %c0_i32_1 = arith.constant 0 : i32
    return %c0_i32, %c0_i32_0 : i32, i32
  }
  func.func @transform_2(%arg0: i32) -> (i32, i32) {
    %c0_i32 = arith.constant 0 : i32
    %c0_i32_0 = arith.constant 0 : i32
    %c0_i32_1 = arith.constant 0 : i32
    return %c0_i32, %c0_i32_0 : i32, i32
  }
  func.func @transform_3(%arg0: i32) -> (i32, i32) {
    %c0_i32 = arith.constant 0 : i32
    %c0_i32_0 = arith.constant 0 : i32
    %c0_i32_1 = arith.constant 0 : i32
    return %c0_i32, %c0_i32_0 : i32, i32
  }
  func.func @transform_4(%arg0: i32) -> (i32, i32) {
    %c0_i32 = arith.constant 0 : i32
    %c0_i32_0 = arith.constant 0 : i32
    %c0_i32_1 = arith.constant 0 : i32
    return %c0_i32, %c0_i32_0 : i32, i32
  }
  func.func @transform_5(%arg0: i32) -> (i32, i32) {
    %c0_i32 = arith.constant 0 : i32
    %c0_i32_0 = arith.constant 0 : i32
    %c0_i32_1 = arith.constant 0 : i32
    return %c0_i32, %c0_i32_0 : i32, i32
  }
  func.func @transform_6(%arg0: i32) -> (i32, i32) {
    %c0_i32 = arith.constant 0 : i32
    %c0_i32_0 = arith.constant 0 : i32
    return %arg0, %c0_i32 : i32, i32
  }
}

</mosaic_0001>

<bundles_post_ra>
// kernel: clip_forward.3
= control target key start
LH: loop header
LB: loop body
LE: loop exit
PB: predicated region body
PF: predicated region fallthrough
CT: control target
= control target key end

     0   :  { %vm29_vm0 = vcmask 25600   ;;  %v500_v1 = vmov 0.0   ;;  %s651_s0 = inlined_call_operand.vmem [shape: s32[2,4], index: 0, kind: input, shape index: {}]   ;;  %s652_s1 = inlined_call_operand.vmem [shape: f32[7,128], index: 1, kind: input, shape index: {}]   ;;  %s653_s2 = inlined_call_operand.vmem [shape: bf16[128,128], index: 2, kind: input, shape index: {}]   ;;  %s654_s3 = inlined_call_operand.vmem [shape: f32[1,128], index: 3, kind: input, shape index: {}]   ;;  %s655_s4 = inlined_call_operand.vmem [shape: bf16[128,128], index: 4, kind: input, shape index: {}]   ;;  %s656_s5 = inlined_call_operand.vmem [shape: f32[1,128], index: 5, kind: input, shape index: {}]   ;;  %s657_s6 = inlined_call_operand.hbm [shape: f32[2,128], index: 6, kind: output, shape index: {}]  }
   0x1   :  { %v25_v0 = vld [vmem:[%s651_s0] sm:$0x3]  ;;  %417 = vmatprep.subr.bf16.mxu0 %v500_v1  ;;  %437 = vmatprep.subr.bf16.mxu1 %v500_v1  ;;  %v460_v6 = vld [vmem:[%s653_s2 + $0x38] sm:$0xff]   ;;  %v461_v9 = vld [vmem:[%s653_s2 + $0x30] sm:$0xff]  }
   0x2   :  { %vm26_vm1 = vcmp.eq.s32.totalorder %v25_v0, 0  ;;  %vm53_vm2 = vcmp.eq.s32.totalorder %v25_v0, 2  ;;  %vm40_vm3 = vcmp.eq.s32.totalorder %v25_v0, 1  ;;  %vm66_vm4 = vcmp.eq.s32.totalorder %v25_v0, 3  ;;  %418 = vmatpush3.bf16.msra.mxu0 %v460_v6  ;;  %v462_v18 = vld [vmem:[%s653_s2 + $0x28] sm:$0xff]   ;;  %v463_v19 = vld [vmem:[%s653_s2 + $0x20] sm:$0xff]  }
   0x3   :  { %v367_v2 = vsel %vm26_vm1, 1.0, %v500_v1  ;;  %v371_v3 = vsel %vm53_vm2, 1.0, %v500_v1  ;;  %v369_v4 = vsel %vm40_vm3, 1.0, %v500_v1  ;;  %v373_v5 = vsel %vm66_vm4, 1.0, %v500_v1  ;;  %419 = vmatprep.subr.bf16.mxu0 %v500_v1 }
   0x4   :  { %v30_v7 = vsel %vm29_vm0, %v367_v2, 0.0  ;;  %v56_v8 = vsel %vm29_vm0, %v371_v3, 0.0  ;;  %v43_v10 = vsel %vm29_vm0, %v369_v4, 0.0  ;;  %vm79_vm5 = vcmp.eq.s32.totalorder %v25_v0, 4 }
   0x5   :  { %31 = vadd.xlane.f32.xlu0 %v30_v7  ;;  %57 = vadd.xlane.f32.xlu1 %v56_v8  ;;  %vm92_vm6 = vcmp.eq.s32.totalorder %v25_v0, 5  ;;  %vm105_vm7 = vcmp.eq.s32.totalorder %v25_v0, 6  ;;  %v69_v11 = vsel %vm29_vm0, %v373_v5, 0.0  ;;  %v375_v12 = vsel %vm79_vm5, 1.0, %v500_v1 }
   0x6   :  { %v377_v13 = vsel %vm92_vm6, 1.0, %v500_v1  ;;  %v379_v14 = vsel %vm105_vm7, 1.0, %v500_v1  ;;  %v82_v15 = vsel %vm29_vm0, %v375_v12, 0.0  ;;  %420 = vmatpush3.bf16.msra.mxu0 %v461_v9 }
   0x7   :  { %v95_v16 = vsel %vm29_vm0, %v377_v13, 0.0  ;;  %v108_v17 = vsel %vm29_vm0, %v379_v14, 0.0  ;;  %421 = vmatprep.subr.bf16.mxu0 %v500_v1 }
   0x9   :  { %44 = vadd.xlane.f32.xlu0 %v43_v10  ;;  %70 = vadd.xlane.f32.xlu1 %v69_v11 }
   0xa   :  { %422 = vmatpush3.bf16.msra.mxu0 %v462_v18 }
   0xb   :  { %423 = vmatprep.subr.bf16.mxu0 %v500_v1 }
   0xd   :  { %83 = vadd.xlane.f32.xlu0 %v82_v15  ;;  %96 = vadd.xlane.f32.xlu1 %v95_v16 }
   0xe   :  { %424 = vmatpush3.bf16.msra.mxu0 %v463_v19 }
  0x11   :  { %109 = vadd.xlane.f32.xlu0 %v108_v17 }
  0x12   :  { %11 = vsyncpa [#allocation3], 0  ;;  %425 = vmatprep.subr.bf16.mxu0 %v500_v1  ;;  %v464_v20 = vld [vmem:[%s653_s2 + $0x18] sm:$0xff]   ;;  %v465_v21 = vld [vmem:[%s653_s2 + $0x10] sm:$0xff]   ;;  %vm501_vm8 = vmmov 0   ;;  %vm345_vm9 = vcmask 1041408  }
  0x13   :  { %426 = vmatpush3.bf16.msra.mxu0 %v464_v20  ;;  %v466_v22 = vld [vmem:[%s653_s2 + $0x8] sm:$0xff]   ;;  %v467_v23 = vld [vmem:[%s653_s2] sm:$0xff]   ;;  %433 = vmatprep.mubr.msk.bf16.mxu0 %vm501_vm8, %v500_v1  ;;  %v468_v24 = vld [vmem:[%s655_s4 + $0x38] sm:$0xff]  }
  0x14   :  { %427 = vmatprep.subr.bf16.mxu0 %v500_v1  ;;  %453 = vmatprep.mubr.msk.bf16.mxu1 %vm501_vm8, %v500_v1  ;;  %v469_v25 = vld [vmem:[%s655_s4 + $0x30] sm:$0xff]   ;;  %v470_v26 = vld [vmem:[%s655_s4 + $0x28] sm:$0xff]   ;;  %v471_v27 = vld [vmem:[%s655_s4 + $0x20] sm:$0xff]  }
  0x15   :  { %438 = vmatpush3.bf16.msra.mxu1 %v468_v24  ;;  %v472_v28 = vld [vmem:[%s655_s4 + $0x18] sm:$0xff]   ;;  %v473_v29 = vld [vmem:[%s655_s4 + $0x10] sm:$0xff]   ;;  %v368_v32 = vld [vmem:[%s652_s1] ss:$0 sm:$0xff] }
  0x16   :  { %439 = vmatprep.subr.bf16.mxu1 %v500_v1  ;;  %v370_v33 = vld [vmem:[%s652_s1 + $0x1] ss:$0 sm:$0xff]  ;;  %v372_v34 = vld [vmem:[%s652_s1 + $0x2] ss:$0 sm:$0xff]  ;;  %v374_v36 = vld [vmem:[%s652_s1 + $0x3] ss:$0 sm:$0xff] }
  0x17   :  { %428 = vmatpush3.bf16.msra.mxu0 %v465_v21  ;;  %v376_v40 = vld [vmem:[%s652_s1 + $0x4] ss:$0 sm:$0xff]  ;;  %v378_v45 = vld [vmem:[%s652_s1 + $0x5] ss:$0 sm:$0xff]  ;;  %v380_v49 = vld [vmem:[%s652_s1 + $0x6] ss:$0 sm:$0xff] }
  0x18   :  { %429 = vmatprep.subr.bf16.mxu0 %v500_v1  ;;  %v474_v59 = vld [vmem:[%s655_s4 + $0x8] sm:$0xff]   ;;  %v475_v60 = vld [vmem:[%s655_s4] sm:$0xff]  }
  0x19   :  { %440 = vmatpush3.bf16.msra.mxu1 %v469_v25  ;;  %v381_v61 = vld [vmem:[%s654_s3] ss:$0 sm:$0xff]  ;;  %s502_s3 = smov [#allocation2]  }
  0x1a   :  { %441 = vmatprep.subr.bf16.mxu1 %v500_v1  ;;  %s359_s4 = sshll.u32 %s502_s3, 4  ;;  %s360_s4 = int_to_ptr.vmem [resolvable:$true] %s359_s4 }
  0x1b   :  { %430 = vmatpush3.bf16.msra.mxu0 %v466_v22  ;;  %s478_s20 = scalar_lea.vmem %s360_s4, 32  ;;  %p483_p1 = scmp.lt.s32.totalorder %s360_s4, %s360_s4 }
  0x1c   :  { %431 = vmatprep.subr.bf16.mxu0 %v500_v1  ;;  %p479_p0 = scmp.ne.s32.totalorder %s360_s4, %s478_s20  ;;  %p484_p2 = scmp.lt.s32.totalorder %s478_s20, %s478_s20 }
  0x1d   :  { %442 = vmatpush3.bf16.msra.mxu1 %v470_v26 }
  0x1e   :  { %443 = vmatprep.subr.bf16.mxu1 %v500_v1  ;;  %p485_p3 = por %p484_p2, %p483_p1 }
  0x1f   :  { %432 = vmatpush3.bf16.msra.mxu0 %v467_v23 }
  0x20   :  { %p486_p4 = pnand %p485_p3, %p479_p0 }
  0x21   :  { %444 = vmatpush3.bf16.msra.mxu1 %v471_v27 }
  0x22   :  { %445 = vmatprep.subr.bf16.mxu1 %v500_v1 }
  0x25   :  { %446 = vmatpush3.bf16.msra.mxu1 %v472_v28 }
  0x26   :  { %447 = vmatprep.subr.bf16.mxu1 %v500_v1 }
  0x29   :  { %448 = vmatpush3.bf16.msra.mxu1 %v473_v29 }
  0x2a   :  { %449 = vmatprep.subr.bf16.mxu1 %v500_v1 }
  0x2d   :  { %450 = vmatpush3.bf16.msra.mxu1 %v474_v59 }
  0x2e   :  { %451 = vmatprep.subr.bf16.mxu1 %v500_v1  ;;  %v390_v1 = vld [vmem:[%s656_s5] ss:$0 sm:$0xff] }
  0x31   :  { %452 = vmatpush3.bf16.msra.mxu1 %v475_v60 }
  0x8e   :  { %v32_v30 = vpop.xlane.xlu0 %31  ;;  %v58_v31 = vpop.xlane.xlu1 %57 }
  0x8f   :  { %v38_v38 = vmul.f32 %v368_v32, %v32_v30  ;;  %v64_v41 = vmul.f32 %v372_v34, %v58_v31 }
  0x92   :  { %v45_v35 = vpop.xlane.xlu0 %44  ;;  %v71_v37 = vpop.xlane.xlu1 %70 }
  0x93   :  { %v51_v39 = vmul.f32 %v370_v33, %v45_v35  ;;  %v77_v43 = vmul.f32 %v374_v36, %v71_v37 }
  0x95   :  { %v52_v42 = vadd.f32 %v51_v39, %v38_v38 }
  0x96   :  { %v84_v44 = vpop.xlane.xlu0 %83  ;;  %v97_v46 = vpop.xlane.xlu1 %96 }
  0x97   :  { %v65_v47 = vadd.f32 %v64_v41, %v52_v42  ;;  %v90_v48 = vmul.f32 %v376_v40, %v84_v44  ;;  %v103_v51 = vmul.f32 %v378_v45, %v97_v46 }
  0x99   :  { %v78_v50 = vadd.f32 %v77_v43, %v65_v47 }
  0x9a   :  { %v110_v52 = vpop.xlane.xlu0 %109 }
  0x9b   :  { %v91_v53 = vadd.f32 %v90_v48, %v78_v50  ;;  %v116_v54 = vmul.f32 %v380_v49, %v110_v52 }
  0x9d   :  { %v104_v55 = vadd.f32 %v103_v51, %v91_v53 }
  0x9f   :  { %v117_v56 = vadd.f32 %v116_v54, %v104_v55 }
  0xa1   :  { %v118_v57 = vmul.f32 0.25, %v117_v56 }
  0xa3   :  { %v119_v58 = vpack.c.bf16 %v118_v57, %v118_v57 }
  0xa5   :  { %434 = vmatmul.mubr.bf16.vlgmr.msra.gmra.mxu0 %v119_v58 }
 0x165   :  { %v225_v62 = vpop.f32.mrf.mxu0 }
 0x166   :  { %v226_v63 = vadd.f32 %v381_v61, %v225_v62 }
 0x167   :  { %v435_v0 = vpop.f32.mrf.mxu0 }
 0x168   :  { %v231_v2 = vmax.f32 %v226_v63, 0.0 }
 0x169   :  { %v228_v3 = vpop.f32.mrf.mxu0 }
 0x16a   :  { %v232_v4 = vpack.c.bf16 %v231_v2, %v231_v2 }
 0x16b   :  { %v436_v5 = vpop.f32.mrf.mxu0 }
 0x16c   :  { %454 = vmatmul.mubr.bf16.vlgmr.msra.gmra.mxu1 %v232_v4 }
 0x22c   :  { %v338_v6 = vpop.f32.mrf.mxu1 }
 0x22d   :  { %v339_v7 = vadd.f32 %v390_v1, %v338_v6 }
 0x22e   :  { %v455_v8 = vpop.f32.mrf.mxu1 }
 0x22f   :  { %v344_v9 = vmul.f32 %v339_v7, %v339_v7 }
 0x230   :  { %v341_v10 = vpop.f32.mrf.mxu1 }
 0x231   :  { %v346_v11 = vsel %vm345_vm9, %v344_v9, 0.0 }
 0x232   :  { %347 = vadd.xlane.f32.xlu1 %v346_v11  ;;  %v456_v12 = vpop.f32.mrf.mxu1 }
 0x2bb   :  { %v348_v13 = vpop.xlane.xlu1 %347 }
 0x2bc   :  { %v349_v14 = vmax.f32 %v348_v13, 1e-24 }
 0x2be   :  { %476 = vrsqrt.f32 %v349_v14 }
 0x2cb   :  { %v477_v15 = vpop.eup %476 }
 0x2cc   :  { %v351_v16 = vmul.f32 %v477_v15, %v339_v7 }
 0x2ce   :  { %352 = vst [vmem:[#allocation2] sm:$0x3] %v351_v16 }
 0x2cf   :  { %489 = shalt.err (!%p486_p4)
}
 0x2d0   :  { %362 = dma.vmem_to_hbm [thread:$0]  %s360_s4, 32, %s657_s6, [#allocation3]  }
 0x2d1   :  { %498 = dma.done.wait [#allocation3], 32  }
 0x2d2   :  { %499 = vsyncadd [#allocation3], 4294967264 }
 0x2d3   :  { %366 = vsyncpa [#allocation3], 1 }

// kernel: clip_forward.2
= control target key start
LH: loop header
LB: loop body
LE: loop exit
PB: predicated region body
PF: predicated region fallthrough
CT: control target
= control target key end

     0   :  { %12 = vsyncpa [#allocation4], 0  ;;  %s17522_s0 = inlined_call_operand.vmem [shape: f32[2,30,30], index: 0, kind: input, shape index: {}]   ;;  %s17523_s1 = inlined_call_operand.hbm [shape: bf16[3,30,1024], index: 1, kind: input, shape index: {}]   ;;  %s17524_s2 = inlined_call_operand.hbm [shape: f32[1,1024], index: 2, kind: input, shape index: {}]   ;;  %s17525_s3 = inlined_call_operand.hbm [shape: bf16[3,512,1024], index: 3, kind: input, shape index: {}]   ;;  %s17526_s4 = inlined_call_operand.hbm [shape: f32[1,1024], index: 4, kind: input, shape index: {}]   ;;  %s17527_s5 = inlined_call_operand.hbm [shape: bf16[7,512,128], index: 5, kind: input, shape index: {}]   ;;  %s17528_s6 = inlined_call_operand.hbm [shape: f32[1,128], index: 6, kind: input, shape index: {}]   ;;  %s17529_s7 = inlined_call_operand.hbm [shape: f32[2,128], index: 7, kind: output, shape index: {}]  }
   0x1   :  { %13 = vsyncpa [#allocation7], 0 }
   0x2   :  { %14 = vsyncpa [#allocation10], 0 }
   0x3   :  { %15 = vsyncpa [#allocation13], 0 }
   0x4   :  { %16 = vsyncpa [#allocation5], 0  ;;  %s14930_s24 = smov [#allocation6]   ;;  %s14931_s26 = smov [#allocation9]  }
   0x5   :  { %s37_s25 = sshll.u32 %s14930_s24, 4  ;;  %s59_s27 = sshll.u32 %s14931_s26, 4  ;;  %s38_s25 = int_to_ptr.vmem [resolvable:$true] %s37_s25  ;;  %s60_s27 = int_to_ptr.vmem [resolvable:$true] %s59_s27 }
   0x6   :  { %s14788_s28 = scalar_lea.vmem %s38_s25, 128  ;;  %p14793_p1 = scmp.lt.s32.totalorder %s38_s25, %s38_s25 }
   0x7   :  { %p14789_p0 = scmp.ne.s32.totalorder %s38_s25, %s14788_s28  ;;  %p14794_p2 = scmp.lt.s32.totalorder %s14788_s28, %s14788_s28 }
   0x9   :  { %p14795_p3 = por %p14794_p2, %p14793_p1 }
   0xb   :  { %p14796_p4 = pnand %p14795_p3, %p14789_p0 }
   0xd   :  { %14799 = shalt.err (!%p14796_p4)
}
   0xe   :  { %40 = dma.hbm_to_vmem [thread:$0]  %s17524_s2, 128, %s38_s25, [#allocation7]  }
   0xf   :  { %s14808_s8 = scalar_lea.vmem %s60_s27, 128  ;;  %p14813_p6 = scmp.lt.s32.totalorder %s60_s27, %s60_s27 }
  0x10   :  { %p14809_p5 = scmp.ne.s32.totalorder %s60_s27, %s14808_s8  ;;  %p14814_p7 = scmp.lt.s32.totalorder %s14808_s8, %s14808_s8 }
  0x12   :  { %p14815_p8 = por %p14814_p7, %p14813_p6 }
  0x14   :  { %p14816_p9 = pnand %p14815_p8, %p14809_p5 }
  0x16   :  { %14819 = shalt.err (!%p14816_p9)
}
  0x17   :  { %62 = dma.hbm_to_vmem [thread:$0]  %s17526_s4, 128, %s60_s27, [#allocation10]  }
  0x18   :  { %s14932_s11 = smov [#allocation3]  }
  0x19   :  { %s24_s12 = sshll.u32 %s14932_s11, 4  ;;  %s25_s12 = int_to_ptr.vmem [resolvable:$true] %s24_s12 }
  0x1a   :  { %s14828_s13 = scalar_lea.vmem %s25_s12, 6144  ;;  %p14833_p11 = scmp.lt.s32.totalorder %s25_s12, %s25_s12 }
  0x1b   :  { %p14829_p10 = scmp.ne.s32.totalorder %s25_s12, %s14828_s13  ;;  %p14834_p12 = scmp.lt.s32.totalorder %s14828_s13, %s14828_s13 }
  0x1d   :  { %p14835_p13 = por %p14834_p12, %p14833_p11 }
  0x1f   :  { %p14836_p0 = pnand %p14835_p13, %p14829_p10 }
  0x21   :  { %14839 = shalt.err (!%p14836_p0)
}
  0x22   :  { %s14933_s2 = smov 512   ;;  %s14934_s14 = smov 32  }
  0x23   :  { %30 = dma.hbm_to_vmem [thread:$0]  %s17523_s1, 6144, %s25_s12, [#allocation4], %s14933_s2, %s14933_s2, %s14934_s14  }
  0x24   :  { %s14935_s17 = smov [#allocation8]   ;;  %s14936_s4 = smov [#allocation11]  }
  0x25   :  { %s46_s18 = sshll.u32 %s14935_s17, 4  ;;  %s68_s19 = sshll.u32 %s14936_s4, 4  ;;  %s47_s18 = int_to_ptr.vmem [resolvable:$true] %s46_s18  ;;  %s69_s19 = int_to_ptr.vmem [resolvable:$true] %s68_s19 }
  0x26   :  { %s14848_s20 = scalar_lea.vmem %s47_s18, 98304  ;;  %p14853_p2 = scmp.lt.s32.totalorder %s47_s18, %s47_s18 }
  0x27   :  { %p14849_p1 = scmp.ne.s32.totalorder %s47_s18, %s14848_s20  ;;  %p14854_p3 = scmp.lt.s32.totalorder %s14848_s20, %s14848_s20 }
  0x29   :  { %p14855_p4 = por %p14854_p3, %p14853_p2 }
  0x2b   :  { %p14856_p5 = pnand %p14855_p4, %p14849_p1 }
  0x2d   :  { %14859 = shalt.err (!%p14856_p5)
}
  0x2e   :  { %52 = dma.hbm_to_vmem [thread:$0]  %s17525_s3, 98304, %s47_s18, [#allocation7], %s14933_s2, %s14933_s2, %s14934_s14  }
  0x2f   :  { %s14868_s23 = scalar_lea.vmem %s69_s19, 28672  ;;  %p14873_p7 = scmp.lt.s32.totalorder %s69_s19, %s69_s19 }
  0x30   :  { %p14869_p6 = scmp.ne.s32.totalorder %s69_s19, %s14868_s23  ;;  %p14874_p8 = scmp.lt.s32.totalorder %s14868_s23, %s14868_s23 }
  0x32   :  { %p14875_p9 = por %p14874_p8, %p14873_p7 }
  0x34   :  { %p14876_p10 = pnand %p14875_p9, %p14869_p6 }
  0x36   :  { %14879 = shalt.err (!%p14876_p10)
}
  0x37   :  { %s14937_s1 = smov 64   ;;  %s14938_s24 = smov 4  }
  0x38   :  { %74 = dma.hbm_to_vmem [thread:$0]  %s17527_s5, 28672, %s69_s19, [#allocation10], %s14937_s1, %s14937_s1, %s14938_s24  }
  0x39   :  { %s14939_s27 = smov [#allocation12]  }
  0x3a   :  { %s81_s28 = sshll.u32 %s14939_s27, 4  ;;  %s82_s28 = int_to_ptr.vmem [resolvable:$true] %s81_s28 }
  0x3b   :  { %s14888_s29 = scalar_lea.vmem %s82_s28, 16  ;;  %s14892_s3 = scalar_lea.vmem %s82_s28, 32 }
  0x3c   :  { %p14889_p11 = scmp.ne.s32.totalorder %s82_s28, %s14888_s29  ;;  %p14893_p12 = scmp.lt.s32.totalorder %s82_s28, %s82_s28 }
  0x3d   :  { %p14894_p13 = scmp.lt.s32.totalorder %s14892_s3, %s14888_s29 }
  0x3f   :  { %p14895_p0 = por %p14894_p13, %p14893_p12 }
  0x41   :  { %p14896_p1 = pnand %p14895_p0, %p14889_p11 }
  0x43   :  { %14899 = shalt.err (!%p14896_p1)
}
  0x44   :  { %84 = dma.hbm_to_vmem [thread:$0]  %s17528_s6, 16, %s82_s28, [#allocation13]  }
  0x45   :  { %14920 = dma.done.wait [#allocation4], 6144  }
  0x46   :  { %14921 = vsyncadd [#allocation4], 4294961152 }
  0x47   :  { %14922 = dma.done.wait [#allocation7], 98432  }
  0x48   :  { %14923 = vsyncadd [#allocation7], 4294868864 }
  0x49   :  { %14924 = dma.done.wait [#allocation10], 28800  }
  0x4a   :  { %14925 = vsyncadd [#allocation10], 4294938496 }
  0x4b   :  { %14926 = dma.done.wait [#allocation13], 16  }
  0x4c   :  { %14927 = vsyncadd [#allocation13], 4294967280  ;;  %v14940_v0 = vmov 0   ;;  %v209_v1 = vld [vmem:[#allocation3 + $0xc0] sm:$0xff]  ;;  %vm302_vm0 = vcmask 1046528   ;;  %v210_v3 = vld [vmem:[#allocation3 + $0xc8] sm:$0xff] }
  0x4d   :  { %359 = vmatprep.mubr.bf16.mxu0 %v14940_v0  ;;  %430 = vmatprep.mubr.bf16.mxu1 %v14940_v0  ;;  %v213_v2 = vld [vmem:[#allocation3 + $0xe0] sm:$0x77]  ;;  %v214_v5 = vld [vmem:[#allocation3 + $0xe8] sm:$0x77]  ;;  %v211_v19 = vld [vmem:[#allocation3 + $0xd0] sm:$0xff]  ;;  %vm289_vm1 = vcmask 244736  }
  0x4e   :  { %v12987_v4 = vcombine.high %v209_v1, %v213_v2  ;;  %v12986_v6 = vcombine.low %v209_v1, %v213_v2  ;;  %v201_v7 = vld [vmem:[#allocation3 + $0x80] sm:$0xff]  ;;  %v12989_v9 = vcombine.high %v210_v3, %v214_v5  ;;  %v12988_v10 = vcombine.low %v210_v3, %v214_v5  ;;  %v202_v12 = vld [vmem:[#allocation3 + $0x88] sm:$0xff]  ;;  %v215_v20 = vld [vmem:[#allocation3 + $0xf0] sm:$0x77] }
  0x4f   :  { %v205_v8 = vld [vmem:[#allocation3 + $0xa0] sm:$0xff]  ;;  %v206_v13 = vld [vmem:[#allocation3 + $0xa8] sm:$0xff]  ;;  %v212_v25 = vld [vmem:[#allocation3 + $0xd8] sm:$0xff]  ;;  %v12991_v29 = vcombine.high %v211_v19, %v215_v20  ;;  %v12990_v30 = vcombine.low %v211_v19, %v215_v20  ;;  %vm2601_vm3 = vcmask 1042434   ;;  %vm2603_vm4 = vcmask 1043459  }
  0x50   :  { %v12979_v11 = vcombine.high %v201_v7, %v205_v8  ;;  %v160_v14 = vld [vmem:[%s17522_s0 + $0x1] sm:$0xff]  ;;  %12994 = vmatprep.subr.msk.bf16.mxu0 %vm302_vm0, %v12987_v4  ;;  %v304_v15 = vsel %vm302_vm0, %v12986_v6, 0  ;;  %v12981_v16 = vcombine.high %v202_v12, %v206_v13  ;;  %v161_v17 = vld [vmem:[%s17522_s0 + $0x9] sm:$0xff]  ;;  %12999 = vmatprep.subr.msk.bf16.mxu1 %vm302_vm0, %v12989_v9  ;;  %v310_v21 = vsel %vm302_vm0, %v12988_v10, 0  ;;  %v216_v26 = vld [vmem:[#allocation3 + $0xf8] sm:$0x77] }
  0x51   :  { %v176_v18 = vcombine.high %v160_v14, %v160_v14  ;;  %340 = vmatpush1.bf16.msra.mxu0 %v304_v15  ;;  %v12978_v22 = vcombine.low %v201_v7, %v205_v8  ;;  %v12980_v23 = vcombine.low %v202_v12, %v206_v13  ;;  %v177_v24 = vcombine.high %v161_v17, %v161_v17  ;;  %v162_v27 = vld [vmem:[%s17522_s0 + $0x11] sm:$0xff]  ;;  %v163_v34 = vld [vmem:[%s17522_s0 + $0x19] sm:$0xf]  ;;  %v164_v39 = vld [vmem:[%s17522_s0 + $0x21] sm:$0xff] }
  0x52   :  { %411 = vmatpush1.bf16.msra.mxu1 %v310_v21  ;;  %341 = vmatprep.subr.bf16.mxu0 %v12979_v11  ;;  %v12993_v32 = vcombine.high %v212_v25, %v216_v26  ;;  %v12992_v33 = vcombine.low %v212_v25, %v216_v26  ;;  %v178_v35 = vcombine.high %v162_v27, %v162_v27  ;;  %v203_v36 = vld [vmem:[#allocation3 + $0x90] sm:$0xff]  ;;  %v204_v40 = vld [vmem:[#allocation3 + $0x98] sm:$0xff]  ;;  %v316_v42 = vsel %vm302_vm0, %v12990_v30, 0  ;;  %v152_v45 = vld [vmem:[#allocation3 + $0x40] sm:$0xff] }
  0x53   :  { %v182_v28 = vcombine.low %v160_v14, %v176_v18  ;;  %412 = vmatprep.subr.bf16.mxu1 %v12981_v16  ;;  %v183_v31 = vcombine.low %v161_v17, %v177_v24  ;;  %v207_v37 = vld [vmem:[#allocation3 + $0xb0] sm:$0xff]  ;;  %v208_v41 = vld [vmem:[#allocation3 + $0xb8] sm:$0xff]  ;;  %v156_v46 = vld [vmem:[#allocation3 + $0x60] sm:$0x77]  ;;  %v185_v48 = vcombine.low %v163_v34, %v164_v39  ;;  %v179_v58 = vcombine.high %v164_v39, %v164_v39 }
  0x54   :  { %v322_v43 = vsel %vm302_vm0, %v12992_v33, 0  ;;  %v12983_v44 = vcombine.high %v203_v36, %v207_v37  ;;  %v184_v47 = vcombine.low %v162_v27, %v178_v35  ;;  %v12985_v49 = vcombine.high %v204_v40, %v208_v41  ;;  %v153_v50 = vld [vmem:[#allocation3 + $0x48] sm:$0xff]  ;;  %v166_v60 = vld [vmem:[%s17522_s0 + $0x31] sm:$0xff]  ;;  %v15058_v4 = vld [vmem:[#allocation3 + $0x140] sm:$0xff] }
  0x55   :  { %342 = vmatpush1.bf16.msra.mxu0 %v12978_v22  ;;  %v15020_v38 = vpack.c.bf16 %v183_v31, %v182_v28  ;;  %v157_v51 = vld [vmem:[#allocation3 + $0x68] sm:$0x77]  ;;  %v12982_v53 = vcombine.low %v203_v36, %v207_v37  ;;  %v12984_v54 = vcombine.low %v204_v40, %v208_v41  ;;  %v13023_v55 = vcombine.high %v152_v45, %v156_v46  ;;  %v15047_v63 = vld [vmem:[#allocation3 + $0x50] sm:$0xff]  ;;  %v15051_v2 = vld [vmem:[#allocation3 + $0x58] sm:$0xff] }
  0x56   :  { %413 = vmatpush1.bf16.msra.mxu1 %v12980_v23  ;;  %13004 = vmatprep.subr.msk.bf16.mxu0 %vm302_vm0, %v12991_v29  ;;  %v165_v52 = vld [vmem:[%s17522_s0 + $0x29] sm:$0xff]  ;;  %v13025_v56 = vcombine.high %v153_v50, %v157_v51  ;;  %v15038_v57 = vpack.c.bf16 %v185_v48, %v184_v47  ;;  %v15053_v3 = vld [vmem:[#allocation3 + $0x78] sm:$0x77]  ;;  %v15060_v5 = vld [vmem:[#allocation3 + $0x160] sm:$0x77]  ;;  %v181_v14 = vcombine.high %v166_v60, %v166_v60  ;;  %vm2605_vm5 = vcmask 1044484  }
  0x57   :  { %13009 = vmatprep.subr.msk.bf16.mxu1 %vm302_vm0, %v12993_v32  ;;  %v180_v59 = vcombine.high %v165_v52, %v165_v52  ;;  %v186_v61 = vcombine.low %v179_v58, %v165_v52  ;;  %v15049_v1 = vld [vmem:[#allocation3 + $0x70] sm:$0x77]  ;;  %v15062_v6 = vld [vmem:[#allocation3 + $0x148] sm:$0xff]  ;;  %v15071_v10 = vld [vmem:[#allocation3 + $0x158] sm:$0xff]  ;;  %v13022_v15 = vcombine.low %v152_v45, %v156_v46  ;;  %v13024_v16 = vcombine.low %v153_v50, %v157_v51 }
  0x58   :  { %12995 = vmatmul.mubr.msk.bf16.vlgmr.msra.gmra.mxu0 %vm289_vm1, %v15020_v38  ;;  %v15064_v7 = vld [vmem:[#allocation3 + $0x168] sm:$0x77]  ;;  %v15067_v8 = vld [vmem:[#allocation3 + $0x150] sm:$0xff]  ;;  %v15073_v11 = vld [vmem:[#allocation3 + $0x178] sm:$0x77]  ;;  %v13026_v17 = vcombine.low %v15047_v63, %v15049_v1  ;;  %v13028_v18 = vcombine.low %v15051_v2, %v15053_v3  ;;  %v13058_v19 = vcombine.low %v15058_v4, %v15060_v5  ;;  %vm2607_vm6 = vcmask 1045509  }
  0x59   :  { %13000 = vmatmul.mubr.msk.bf16.vlgmr.msra.gmra.mxu1 %vm289_vm1, %v15020_v38  ;;  %482 = vmatpush1.bf16.msra.mxu0 %v316_v42  ;;  %v187_v62 = vcombine.low %v180_v59, %v166_v60  ;;  %v15069_v9 = vld [vmem:[#allocation3 + $0x170] sm:$0x77]  ;;  %v167_v13 = vld [vmem:[%s17522_s0 + $0x39] sm:$0xf]  ;;  %v13060_v20 = vcombine.low %v15062_v6, %v15064_v7  ;;  %v13064_v22 = vcombine.low %v15071_v10, %v15073_v11  ;;  %v696_v24 = vsel %vm302_vm0, %v13022_v15, 0  ;;  %v144_v33 = vld [vmem:[#allocation3] sm:$0xff] }
  0x5a   :  { %553 = vmatpush1.bf16.msra.mxu1 %v322_v43  ;;  %369 = vmatprep.mubr.bf16.mxu0 %v14940_v0  ;;  %v13062_v21 = vcombine.low %v15067_v8, %v15069_v9  ;;  %v188_v23 = vcombine.low %v181_v14, %v167_v13  ;;  %v702_v25 = vsel %vm302_vm0, %v13024_v16, 0  ;;  %v15096_v26 = vsel %vm302_vm0, %v13026_v17, 0  ;;  %v148_v34 = vld [vmem:[#allocation3 + $0x20] sm:$0xff]  ;;  %v145_v35 = vld [vmem:[#allocation3 + $0x8] sm:$0xff]  ;;  %v106_v47 = vld [vmem:[%s17522_s0 + $0x10] sm:$0xff] }
  0x5b   :  { %440 = vmatprep.mubr.bf16.mxu1 %v14940_v0  ;;  %483 = vmatprep.subr.bf16.mxu0 %v12983_v44  ;;  %v198_v12 = vpack.c.bf16 %v187_v62, %v186_v61  ;;  %v15099_v27 = vsel %vm302_vm0, %v13028_v18, 0  ;;  %v15103_v28 = vsel %vm302_vm0, %v13058_v19, 0  ;;  %v15106_v29 = vsel %vm302_vm0, %v13060_v20, 0  ;;  %v149_v36 = vld [vmem:[#allocation3 + $0x28] sm:$0xff]  ;;  %v146_v50 = vld [vmem:[#allocation3 + $0x10] sm:$0xff]  ;;  %v1044_v19 = vld [vmem:[#allocation3 + $0x100] sm:$0xff] }
  0x5c   :  { %554 = vmatprep.subr.bf16.mxu1 %v12985_v49  ;;  %v15109_v30 = vsel %vm302_vm0, %v13062_v21, 0  ;;  %v15112_v31 = vsel %vm302_vm0, %v13064_v22, 0  ;;  %v199_v32 = vpack.c.bf16 %v188_v23, %v188_v23  ;;  %v13015_v37 = vcombine.high %v144_v33, %v148_v34  ;;  %v105_v44 = vld [vmem:[%s17522_s0 + $0x8] sm:$0xff]  ;;  %v150_v51 = vld [vmem:[#allocation3 + $0x30] sm:$0xff]  ;;  %v107_v52 = vld [vmem:[%s17522_s0 + $0x18] sm:$0xf] }
  0x5d   :  { %484 = vmatpush1.bf16.msra.mxu0 %v12982_v53  ;;  %v13017_v39 = vcombine.high %v145_v35, %v149_v36  ;;  %v13014_v40 = vcombine.low %v144_v33, %v148_v34  ;;  %v13016_v41 = vcombine.low %v145_v35, %v149_v36  ;;  %v13027_v42 = vcombine.high %v15047_v63, %v15049_v1  ;;  %v108_v53 = vld [vmem:[%s17522_s0 + $0x20] sm:$0xff]  ;;  %v109_v58 = vld [vmem:[%s17522_s0 + $0x28] sm:$0xff]  ;;  %v1046_v34 = vld [vmem:[#allocation3 + $0x110] sm:$0xff] }
  0x5e   :  { %555 = vmatpush1.bf16.msra.mxu1 %v12984_v54  ;;  %13030 = vmatprep.subr.msk.bf16.mxu0 %vm302_vm0, %v13023_v55  ;;  %v13029_v43 = vcombine.high %v15051_v2, %v15053_v3  ;;  %v121_v46 = vcombine.high %v105_v44, %v105_v44  ;;  %v147_v54 = vld [vmem:[#allocation3 + $0x18] sm:$0xff]  ;;  %v13019_v59 = vcombine.high %v146_v50, %v150_v51  ;;  %v110_v3 = vld [vmem:[%s17522_s0 + $0x30] sm:$0xff]  ;;  %v1048_v20 = vld [vmem:[#allocation3 + $0x120] sm:$0xff]  ;;  %vm2609_vm7 = vcmask 1046534  }
  0x5f   :  { %13035 = vmatprep.subr.msk.bf16.mxu1 %vm302_vm0, %v13025_v56  ;;  %v151_v55 = vld [vmem:[#allocation3 + $0x38] sm:$0xff]  ;;  %v129_v61 = vcombine.low %v107_v52, %v108_v53  ;;  %v13018_v63 = vcombine.low %v146_v50, %v150_v51  ;;  %v13059_v2 = vcombine.high %v15058_v4, %v15060_v5  ;;  %v123_v14 = vcombine.high %v108_v53, %v108_v53  ;;  %v1045_v21 = vld [vmem:[#allocation3 + $0x108] sm:$0xff]  ;;  %v1050_v35 = vld [vmem:[#allocation3 + $0x130] sm:$0xff] }
  0x60   :  { %12996 = vmatmul.mubr.msk.bf16.gmra.mxu0 %vm289_vm1, %v15038_v57  ;;  %v127_v49 = vcombine.low %v105_v44, %v121_v46  ;;  %v13021_v62 = vcombine.high %v147_v54, %v151_v55  ;;  %v13020_v1 = vcombine.low %v147_v54, %v151_v55  ;;  %v124_v15 = vcombine.high %v109_v58, %v109_v58  ;;  %v1049_v22 = vld [vmem:[#allocation3 + $0x128] sm:$0xff]  ;;  %v1006_v36 = vld [vmem:[%s17522_s0 + $0x1a] sm:$0xf] }
  0x61   :  { %13001 = vmatmul.mubr.msk.bf16.gmra.mxu1 %vm289_vm1, %v15038_v57  ;;  %379 = vmatprep.mubr.bf16.mxu0 %v14940_v0  ;;  %v130_v4 = vcombine.low %v123_v14, %v109_v58  ;;  %v125_v16 = vcombine.high %v110_v3, %v110_v3  ;;  %v13051_v23 = vcombine.high %v1044_v19, %v1048_v20  ;;  %v1010_v53 = vld [vmem:[%s17522_s0 + $0x3a] sm:$0xf]  ;;  %vm2611_vm8 = vcmask 1047559  }
  0x62   :  { %450 = vmatprep.mubr.bf16.mxu1 %v14940_v0  ;;  %v131_v5 = vcombine.low %v124_v15, %v110_v3  ;;  %vm2631_vm9 = vcmask 1041409   ;;  %vm3492_vm10 = vcmask 1040384   ;;  %vm12952_vm14 = vcmask 1041408  }
  0x63   :  { %vm3493_vm11 = vmor %vm3492_vm10, %vm2601_vm3 }
  0x64   :  { %vm16314_vm12 = vmor %vm3493_vm11, %vm2605_vm5 }
  0x65   :  { %vm16325_vm13 = vmor %vm16314_vm12, %vm2609_vm7 }
  0x68   :  { %12997 = vmatmul.mubr.msk.bf16.gmra.mxu0 %vm289_vm1, %v198_v12 }
  0x69   :  { %13002 = vmatmul.mubr.msk.bf16.gmra.mxu1 %vm289_vm1, %v198_v12  ;;  %389 = vmatprep.mubr.bf16.mxu0 %v14940_v0 }
  0x6a   :  { %460 = vmatprep.mubr.bf16.mxu1 %v14940_v0 }
  0x70   :  { %12998 = vmatmul.mubr.msk.bf16.gmra.mxu0 %vm289_vm1, %v199_v32 }
  0x71   :  { %13003 = vmatmul.mubr.msk.bf16.gmra.mxu1 %vm289_vm1, %v199_v32  ;;  %501 = vmatprep.mubr.bf16.mxu0 %v14940_v0 }
  0x72   :  { %572 = vmatprep.mubr.bf16.mxu1 %v14940_v0 }
  0x78   :  { %13005 = vmatmul.mubr.msk.bf16.vlgmr.msra.gmra.mxu0 %vm289_vm1, %v15020_v38 }
  0x79   :  { %13010 = vmatmul.mubr.msk.bf16.vlgmr.msra.gmra.mxu1 %vm289_vm1, %v15020_v38  ;;  %732 = vmatpush1.bf16.msra.mxu0 %v696_v24  ;;  %v104_v38 = vld [vmem:[%s17522_s0] sm:$0xff]  ;;  %v13053_v24 = vcombine.high %v1045_v21, %v1049_v22 }
  0x7a   :  { %803 = vmatpush1.bf16.msra.mxu1 %v702_v25  ;;  %511 = vmatprep.mubr.bf16.mxu0 %v14940_v0  ;;  %v120_v45 = vcombine.high %v104_v38, %v104_v38  ;;  %v13050_v25 = vcombine.low %v1044_v19, %v1048_v20 }
  0x7b   :  { %582 = vmatprep.mubr.bf16.mxu1 %v14940_v0  ;;  %733 = vmatprep.subr.bf16.mxu0 %v13015_v37  ;;  %v1007_v37 = vld [vmem:[%s17522_s0 + $0x22] sm:$0xff] }
  0x7c   :  { %804 = vmatprep.subr.bf16.mxu1 %v13017_v39  ;;  %v126_v48 = vcombine.low %v104_v38, %v120_v45  ;;  %v1047_v39 = vld [vmem:[#allocation3 + $0x118] sm:$0xff]  ;;  %v13055_v38 = vcombine.high %v1046_v34, %v1050_v35  ;;  %v1028_v45 = vcombine.low %v1006_v36, %v1007_v37  ;;  %v1022_v51 = vcombine.high %v1007_v37, %v1007_v37  ;;  %v3875_v36 = vld [vmem:[#allocation8 + $0xdc0] sm:$0xff] }
  0x7d   :  { %734 = vmatpush1.bf16.msra.mxu0 %v13014_v40  ;;  %v1051_v40 = vld [vmem:[#allocation3 + $0x138] sm:$0xff] }
  0x7e   :  { %805 = vmatpush1.bf16.msra.mxu1 %v13016_v41  ;;  %13040 = vmatprep.subr.msk.bf16.mxu0 %vm302_vm0, %v13027_v42  ;;  %v140_v56 = vpack.c.bf16 %v127_v49, %v126_v48  ;;  %v13057_v46 = vcombine.high %v1047_v39, %v1051_v40  ;;  %v13056_v48 = vcombine.low %v1047_v39, %v1051_v40  ;;  %v1009_v49 = vld [vmem:[%s17522_s0 + $0x32] sm:$0xff]  ;;  %v3879_v40 = vld [vmem:[#allocation8 + $0xde0] sm:$0xff] }
  0x7f   :  { %13045 = vmatprep.subr.msk.bf16.mxu1 %vm302_vm0, %v13029_v43  ;;  %v1008_v43 = vld [vmem:[%s17522_s0 + $0x2a] sm:$0xff]  ;;  %v1024_v55 = vcombine.high %v1009_v49, %v1009_v49 }
  0x80   :  { %13006 = vmatmul.mubr.msk.bf16.gmra.mxu0 %vm289_vm1, %v15038_v57  ;;  %v1023_v52 = vcombine.high %v1008_v43, %v1008_v43 }
  0x81   :  { %13011 = vmatmul.mubr.msk.bf16.gmra.mxu1 %vm289_vm1, %v15038_v57  ;;  %521 = vmatprep.mubr.bf16.mxu0 %v14940_v0  ;;  %v122_v57 = vcombine.high %v106_v47, %v106_v47 }
  0x82   :  { %592 = vmatprep.mubr.bf16.mxu1 %v14940_v0 }
  0x83   :  { %v128_v60 = vcombine.low %v106_v47, %v122_v57  ;;  %v13054_v47 = vcombine.low %v1046_v34, %v1050_v35  ;;  %v3747_v34 = vld [vmem:[#allocation8 + $0x9c0] sm:$0xff] }
  0x84   :  { %v3751_v35 = vld [vmem:[#allocation8 + $0x9e0] sm:$0xff] }
  0x85   :  { %v141_v13 = vpack.c.bf16 %v129_v61, %v128_v60  ;;  %v13181_v39 = vcombine.high %v3747_v34, %v3751_v35 }
  0x88   :  { %13007 = vmatmul.mubr.msk.bf16.gmra.mxu0 %vm289_vm1, %v198_v12 }
  0x89   :  { %13012 = vmatmul.mubr.msk.bf16.gmra.mxu1 %vm289_vm1, %v198_v12  ;;  %531 = vmatprep.mubr.bf16.mxu0 %v14940_v0  ;;  %v13061_v12 = vcombine.high %v15062_v6, %v15064_v7  ;;  %v111_v6 = vld [vmem:[%s17522_s0 + $0x38] sm:$0xf]  ;;  %v142_v7 = vpack.c.bf16 %v131_v5, %v130_v4 }
  0x8a   :  { %602 = vmatprep.mubr.bf16.mxu1 %v14940_v0  ;;  %v132_v17 = vcombine.low %v125_v16, %v111_v6 }
  0x8c   :  { %v143_v18 = vpack.c.bf16 %v132_v17, %v132_v17 }
  0x90   :  { %13008 = vmatmul.mubr.msk.bf16.gmra.mxu0 %vm289_vm1, %v199_v32 }
  0x91   :  { %13013 = vmatmul.mubr.msk.bf16.gmra.mxu1 %vm289_vm1, %v199_v32  ;;  %751 = vmatprep.mubr.bf16.mxu0 %v14940_v0  ;;  %v13065_v32 = vcombine.high %v15071_v10, %v15073_v11 }
  0x92   :  { %822 = vmatprep.mubr.bf16.mxu1 %v14940_v0 }
  0x98   :  { %13031 = vmatmul.mubr.msk.bf16.vlgmr.msra.gmra.mxu0 %vm289_vm1, %v140_v56 }
  0x99   :  { %13036 = vmatmul.mubr.msk.bf16.vlgmr.msra.gmra.mxu1 %vm289_vm1, %v140_v56  ;;  %874 = vmatpush1.bf16.msra.mxu0 %v15096_v26  ;;  %v13052_v26 = vcombine.low %v1045_v21, %v1049_v22 }
  0x9a   :  { %945 = vmatpush1.bf16.msra.mxu1 %v15099_v27  ;;  %761 = vmatprep.mubr.bf16.mxu0 %v14940_v0  ;;  %v13063_v27 = vcombine.high %v15067_v8, %v15069_v9  ;;  %v1003_v8 = vld [vmem:[%s17522_s0 + $0x2] sm:$0xff]  ;;  %v1004_v9 = vld [vmem:[%s17522_s0 + $0xa] sm:$0xff] }
  0x9b   :  { %832 = vmatprep.mubr.bf16.mxu1 %v14940_v0  ;;  %875 = vmatprep.subr.bf16.mxu0 %v13019_v59  ;;  %v1019_v10 = vcombine.high %v1003_v8, %v1003_v8  ;;  %v1020_v11 = vcombine.high %v1004_v9, %v1004_v9 }
  0x9c   :  { %946 = vmatprep.subr.bf16.mxu1 %v13021_v62 }
  0x9d   :  { %876 = vmatpush1.bf16.msra.mxu0 %v13018_v63  ;;  %v1026_v33 = vcombine.low %v1004_v9, %v1020_v11 }
  0x9e   :  { %947 = vmatpush1.bf16.msra.mxu1 %v13020_v1  ;;  %13066 = vmatprep.subr.msk.bf16.mxu0 %vm302_vm0, %v13059_v2 }
  0x9f   :  { %13071 = vmatprep.subr.msk.bf16.mxu1 %vm302_vm0, %v13061_v12 }
  0xa0   :  { %13032 = vmatmul.mubr.msk.bf16.gmra.mxu0 %vm289_vm1, %v141_v13 }
  0xa1   :  { %13037 = vmatmul.mubr.msk.bf16.gmra.mxu1 %vm289_vm1, %v141_v13  ;;  %771 = vmatprep.mubr.bf16.mxu0 %v14940_v0 }
  0xa2   :  { %842 = vmatprep.mubr.bf16.mxu1 %v14940_v0 }
  0xa8   :  { %13033 = vmatmul.mubr.msk.bf16.gmra.mxu0 %vm289_vm1, %v142_v7 }
  0xa9   :  { %13038 = vmatmul.mubr.msk.bf16.gmra.mxu1 %vm289_vm1, %v142_v7  ;;  %781 = vmatprep.mubr.bf16.mxu0 %v14940_v0 }
  0xaa   :  { %852 = vmatprep.mubr.bf16.mxu1 %v14940_v0 }
  0xb0   :  { %13034 = vmatmul.mubr.msk.bf16.gmra.mxu0 %vm289_vm1, %v143_v18 }
  0xb1   :  { %13039 = vmatmul.mubr.msk.bf16.gmra.mxu1 %vm289_vm1, %v143_v18  ;;  %893 = vmatprep.mubr.bf16.mxu0 %v14940_v0 }
  0xb2   :  { %964 = vmatprep.mubr.bf16.mxu1 %v14940_v0 }
  0xb8   :  { %13041 = vmatmul.mubr.msk.bf16.vlgmr.msra.gmra.mxu0 %vm289_vm1, %v140_v56 }
  0xb9   :  { %13046 = vmatmul.mubr.msk.bf16.vlgmr.msra.gmra.mxu1 %vm289_vm1, %v140_v56  ;;  %1181 = vmatpush1.bf16.msra.mxu0 %v15103_v28  ;;  %v1005_v28 = vld [vmem:[%s17522_s0 + $0x12] sm:$0xff]  ;;  %v1031_v56 = vcombine.low %v1024_v55, %v1010_v53  ;;  %v3739_v55 = vld [vmem:[#allocation8 + $0x980] sm:$0xff]  ;;  %s14943_s0 = smov [#allocation14]  }
  0xba   :  { %1252 = vmatpush1.bf16.msra.mxu1 %v15106_v29  ;;  %903 = vmatprep.mubr.bf16.mxu0 %v14940_v0  ;;  %v1025_v29 = vcombine.low %v1003_v8, %v1019_v10  ;;  %v1021_v42 = vcombine.high %v1005_v28, %v1005_v28  ;;  %s12966_s1 = sshll.u32 %s14943_s0, 4  ;;  %s12967_s1 = int_to_ptr.vmem [resolvable:$true] %s12966_s1 }
  0xbb   :  { %974 = vmatprep.mubr.bf16.mxu1 %v14940_v0  ;;  %1182 = vmatprep.subr.bf16.mxu0 %v13051_v23  ;;  %v1042_v57 = vpack.c.bf16 %v1031_v56, %v1031_v56  ;;  %v3743_v56 = vld [vmem:[#allocation8 + $0x9a0] sm:$0xff]  ;;  %s14900_s24 = scalar_lea.vmem %s12967_s1, 32  ;;  %p14905_p3 = scmp.lt.s32.totalorder %s12967_s1, %s12967_s1 }
  0xbc   :  { %1253 = vmatprep.subr.bf16.mxu1 %v13053_v24  ;;  %v1039_v41 = vpack.c.bf16 %v1026_v33, %v1025_v29  ;;  %v1027_v44 = vcombine.low %v1005_v28, %v1021_v42  ;;  %v13180_v42 = vcombine.low %v3747_v34, %v3751_v35  ;;  %v13172_v34 = vcombine.low %v3739_v55, %v3743_v56  ;;  %p14901_p2 = scmp.ne.s32.totalorder %s12967_s1, %s14900_s24  ;;  %p14906_p4 = scmp.lt.s32.totalorder %s14900_s24, %s14900_s24 }
  0xbd   :  { %1183 = vmatpush1.bf16.msra.mxu0 %v13050_v25 }
  0xbe   :  { %1254 = vmatpush1.bf16.msra.mxu1 %v13052_v26  ;;  %13076 = vmatprep.subr.msk.bf16.mxu0 %vm302_vm0, %v13063_v27  ;;  %v1040_v50 = vpack.c.bf16 %v1028_v45, %v1027_v44  ;;  %p14907_p5 = por %p14906_p4, %p14905_p3 }
  0xbf   :  { %13081 = vmatprep.subr.msk.bf16.mxu1 %vm302_vm0, %v13065_v32 }
  0xc0   :  { %13042 = vmatmul.mubr.msk.bf16.gmra.mxu0 %vm289_vm1, %v141_v13  ;;  %p14908_p6 = pnand %p14907_p5, %p14901_p2 }
  0xc1   :  { %13047 = vmatmul.mubr.msk.bf16.gmra.mxu1 %vm289_vm1, %v141_v13  ;;  %913 = vmatprep.mubr.bf16.mxu0 %v14940_v0 }
  0xc2   :  { %984 = vmatprep.mubr.bf16.mxu1 %v14940_v0 }
  0xc8   :  { %13043 = vmatmul.mubr.msk.bf16.gmra.mxu0 %vm289_vm1, %v142_v7 }
  0xc9   :  { %13048 = vmatmul.mubr.msk.bf16.gmra.mxu1 %vm289_vm1, %v142_v7  ;;  %923 = vmatprep.mubr.bf16.mxu0 %v14940_v0 }
  0xca   :  { %994 = vmatprep.mubr.bf16.mxu1 %v14940_v0 }
  0xd0   :  { %13044 = vmatmul.mubr.msk.bf16.gmra.mxu0 %vm289_vm1, %v143_v18 }
  0xd1   :  { %13049 = vmatmul.mubr.msk.bf16.gmra.mxu1 %vm289_vm1, %v143_v18  ;;  %1200 = vmatprep.mubr.bf16.mxu0 %v14940_v0 }
  0xd2   :  { %1271 = vmatprep.mubr.bf16.mxu1 %v14940_v0 }
  0xd8   :  { %13067 = vmatmul.mubr.msk.bf16.vlgmr.msra.gmra.mxu0 %vm289_vm1, %v1039_v41 }
  0xd9   :  { %13072 = vmatmul.mubr.msk.bf16.vlgmr.msra.gmra.mxu1 %vm289_vm1, %v1039_v41  ;;  %1323 = vmatpush1.bf16.msra.mxu0 %v15109_v30  ;;  %v1029_v30 = vcombine.low %v1022_v51, %v1008_v43  ;;  %v13308_v43 = vcombine.low %v3875_v36, %v3879_v40 }
  0xda   :  { %1394 = vmatpush1.bf16.msra.mxu1 %v15112_v31  ;;  %1210 = vmatprep.mubr.bf16.mxu0 %v14940_v0  ;;  %v1030_v31 = vcombine.low %v1023_v52, %v1009_v49 }
  0xdb   :  { %1281 = vmatprep.mubr.bf16.mxu1 %v14940_v0  ;;  %1324 = vmatprep.subr.bf16.mxu0 %v13055_v38  ;;  %v13309_v38 = vcombine.high %v3875_v36, %v3879_v40 }
  0xdc   :  { %1395 = vmatprep.subr.bf16.mxu1 %v13057_v46  ;;  %v1041_v54 = vpack.c.bf16 %v1030_v31, %v1029_v30 }
  0xdd   :  { %1325 = vmatpush1.bf16.msra.mxu0 %v13054_v47 }
  0xde   :  { %1396 = vmatpush1.bf16.msra.mxu1 %v13056_v48  ;;  %5227 = vmatprep.subr.bf16.mxu0 %v13181_v39 }
  0xdf   :  { %5280 = vmatprep.subr.bf16.mxu1 %v13309_v38 }
  0xe0   :  { %13068 = vmatmul.mubr.msk.bf16.gmra.mxu0 %vm289_vm1, %v1040_v50 }
  0xe1   :  { %13073 = vmatmul.mubr.msk.bf16.gmra.mxu1 %vm289_vm1, %v1040_v50  ;;  %1220 = vmatprep.mubr.bf16.mxu0 %v14940_v0 }
  0xe2   :  { %1291 = vmatprep.mubr.bf16.mxu1 %v14940_v0 }
  0xe8   :  { %13069 = vmatmul.mubr.msk.bf16.gmra.mxu0 %vm289_vm1, %v1041_v54 }
  0xe9   :  { %13074 = vmatmul.mubr.msk.bf16.gmra.mxu1 %vm289_vm1, %v1041_v54  ;;  %1230 = vmatprep.mubr.bf16.mxu0 %v14940_v0 }
  0xea   :  { %1301 = vmatprep.mubr.bf16.mxu1 %v14940_v0 }
  0xf0   :  { %13070 = vmatmul.mubr.msk.bf16.gmra.mxu0 %vm289_vm1, %v1042_v57 }
  0xf1   :  { %13075 = vmatmul.mubr.msk.bf16.gmra.mxu1 %vm289_vm1, %v1042_v57  ;;  %1342 = vmatprep.mubr.bf16.mxu0 %v14940_v0 }
  0xf2   :  { %1413 = vmatprep.mubr.bf16.mxu1 %v14940_v0 }
  0xf8   :  { %13077 = vmatmul.mubr.msk.bf16.vlgmr.msra.gmra.mxu0 %vm289_vm1, %v1039_v41 }
  0xf9   :  { %13082 = vmatmul.mubr.msk.bf16.vlgmr.msra.gmra.mxu1 %vm289_vm1, %v1039_v41  ;;  %1352 = vmatprep.mubr.bf16.mxu0 %v14940_v0 }
  0xfa   :  { %1423 = vmatprep.mubr.bf16.mxu1 %v14940_v0  ;;  %5228 = vmatpush1.bf16.msra.mxu0 %v13180_v42 }
  0xfb   :  { %5281 = vmatpush1.bf16.msra.mxu1 %v13308_v43 }
 0x100   :  { %13078 = vmatmul.mubr.msk.bf16.gmra.mxu0 %vm289_vm1, %v1040_v50 }
 0x101   :  { %13083 = vmatmul.mubr.msk.bf16.gmra.mxu1 %vm289_vm1, %v1040_v50  ;;  %1362 = vmatprep.mubr.bf16.mxu0 %v14940_v0 }
 0x102   :  { %1433 = vmatprep.mubr.bf16.mxu1 %v14940_v0 }
 0x108   :  { %13079 = vmatmul.mubr.msk.bf16.gmra.mxu0 %vm289_vm1, %v1041_v54 }
 0x109   :  { %13084 = vmatmul.mubr.msk.bf16.gmra.mxu1 %vm289_vm1, %v1041_v54  ;;  %1372 = vmatprep.mubr.bf16.mxu0 %v14940_v0 }
 0x10a   :  { %1443 = vmatprep.mubr.bf16.mxu1 %v14940_v0 }
 0x110   :  { %13080 = vmatmul.mubr.msk.bf16.gmra.mxu0 %vm289_vm1, %v1042_v57 }
 0x111   :  { %13085 = vmatmul.mubr.msk.bf16.gmra.mxu1 %vm289_vm1, %v1042_v57  ;;  %v3867_v57 = vld [vmem:[#allocation8 + $0xd80] sm:$0xff] }
 0x118   :  { %v15272_v58 = vpop.f32.mrf.mxu0 }
 0x119   :  { %v15274_v59 = vpop.f32.mrf.mxu1 }
 0x11a   :  { %v15276_v60 = vpop.f32.mrf.mxu0 }
 0x11b   :  { %v15278_v61 = vpop.f32.mrf.mxu1 }
 0x11c   :  { %v15280_v62 = vpop.f32.mrf.mxu0 }
 0x11d   :  { %v15282_v63 = vpop.f32.mrf.mxu1 }
 0x11e   :  { %v15284_v1 = vpop.f32.mrf.mxu0 }
 0x11f   :  { %v15286_v2 = vpop.f32.mrf.mxu1 }
 0x120   :  { %v15288_v0 = vpop.f32.mrf.mxu0 }
 0x121   :  { %v15290_v3 = vpop.f32.mrf.mxu1 }
 0x122   :  { %v15292_v12 = vpop.f32.mrf.mxu0 }
 0x123   :  { %v15294_v13 = vpop.f32.mrf.mxu1 }
 0x124   :  { %v15296_v14 = vpop.f32.mrf.mxu0 }
 0x125   :  { %v15298_v15 = vpop.f32.mrf.mxu1 }
 0x126   :  { %v15300_v4 = vpop.f32.mrf.mxu0 }
 0x127   :  { %v15302_v5 = vpop.f32.mrf.mxu1 }
 0x128   :  { %v15304_v6 = vpop.f32.mrf.mxu0 }
 0x129   :  { %v15306_v7 = vpop.f32.mrf.mxu1 }
 0x12a   :  { %v15308_v16 = vpop.f32.mrf.mxu0 }
 0x12b   :  { %v15310_v17 = vpop.f32.mrf.mxu1 }
 0x12c   :  { %v15312_v18 = vpop.f32.mrf.mxu0 }
 0x12d   :  { %v15314_v19 = vpop.f32.mrf.mxu1 }
 0x12e   :  { %v15316_v20 = vpop.f32.mrf.mxu0 }
 0x12f   :  { %v15318_v21 = vpop.f32.mrf.mxu1 }
 0x130   :  { %v15320_v22 = vpop.f32.mrf.mxu0 }
 0x131   :  { %v15322_v23 = vpop.f32.mrf.mxu1 }
 0x132   :  { %v15324_v24 = vpop.f32.mrf.mxu0 }
 0x133   :  { %v15326_v25 = vpop.f32.mrf.mxu1 }
 0x134   :  { %v395_v26 = vpop.f32.mrf.mxu0 }
 0x135   :  { %v466_v27 = vpop.f32.mrf.mxu1 }
 0x136   :  { %v396_v32 = vpop.f32.mrf.mxu0  ;;  %v13173_v27 = vcombine.high %v3739_v55, %v3743_v56 }
 0x137   :  { %v467_v8 = vpop.f32.mrf.mxu1  ;;  %v3871_v32 = vld [vmem:[#allocation8 + $0xda0] sm:$0xff] }
 0x138   :  { %v15328_v9 = vpop.f32.mrf.mxu0  ;;  %v13300_v35 = vcombine.low %v3867_v57, %v3871_v32  ;;  %v13301_v36 = vcombine.high %v3867_v57, %v3871_v32  ;;  %5229 = vmatprep.subr.bf16.mxu0 %v13173_v27 }
 0x139   :  { %v15330_v10 = vpop.f32.mrf.mxu1  ;;  %5230 = vmatpush1.bf16.msra.mxu0 %v13172_v34 }
 0x13a   :  { %v15332_v11 = vpop.f32.mrf.mxu0  ;;  %5282 = vmatprep.subr.bf16.mxu1 %v13301_v36 }
 0x13b   :  { %v15334_v28 = vpop.f32.mrf.mxu1  ;;  %5283 = vmatpush1.bf16.msra.mxu1 %v13300_v35 }
 0x13c   :  { %v15336_v29 = vpop.f32.mrf.mxu0 }
 0x13d   :  { %v15338_v33 = vpop.f32.mrf.mxu1 }
 0x13e   :  { %v15340_v37 = vpop.f32.mrf.mxu0 }
 0x13f   :  { %17559 = vst [vmem:[#allocation20_spill] sm:$0xff] %v15340_v37  ;;  %v15342_v41 = vpop.f32.mrf.mxu1 }
 0x140   :  { %17560 = vst [vmem:[#allocation21_spill] sm:$0xff] %v15342_v41  ;;  %v15344_v44 = vpop.f32.mrf.mxu0 }
 0x141   :  { %v15346_v45 = vpop.f32.mrf.mxu1 }
 0x142   :  { %v15348_v46 = vpop.f32.mrf.mxu0 }
 0x143   :  { %v15350_v47 = vpop.f32.mrf.mxu1 }
 0x144   :  { %v15352_v48 = vpop.f32.mrf.mxu0 }
 0x145   :  { %v15354_v49 = vpop.f32.mrf.mxu1 }
 0x146   :  { %v15356_v50 = vpop.f32.mrf.mxu0 }
 0x147   :  { %17561 = vst [vmem:[#allocation22_spill] sm:$0xff] %v15356_v50  ;;  %v15358_v51 = vpop.f32.mrf.mxu1 }
 0x148   :  { %17562 = vst [vmem:[#allocation23_spill] sm:$0xff] %v15358_v51  ;;  %v15360_v52 = vpop.f32.mrf.mxu0 }
 0x149   :  { %v15362_v30 = vpop.f32.mrf.mxu1 }
 0x14a   :  { %v15364_v31 = vpop.f32.mrf.mxu0 }
 0x14b   :  { %v15366_v53 = vpop.f32.mrf.mxu1 }
 0x14c   :  { %v15368_v54 = vpop.f32.mrf.mxu0 }
 0x14d   :  { %v15370_v26 = vpop.f32.mrf.mxu1 }
 0x14e   :  { %v15372_v8 = vpop.f32.mrf.mxu0 }
 0x14f   :  { %17563 = vst [vmem:[#allocation24_spill] sm:$0xff] %v15372_v8  ;;  %v15374_v39 = vpop.f32.mrf.mxu1 }
 0x150   :  { %17564 = vst [vmem:[#allocation25_spill] sm:$0xff] %v15374_v39  ;;  %v15376_v40 = vpop.f32.mrf.mxu0 }
 0x151   :  { %v15378_v42 = vpop.f32.mrf.mxu1 }
 0x152   :  { %v15380_v43 = vpop.f32.mrf.mxu0 }
 0x153   :  { %v15382_v38 = vpop.f32.mrf.mxu1 }
 0x154   :  { %v537_v51 = vpop.f32.mrf.mxu0 }
 0x155   :  { %v608_v50 = vpop.f32.mrf.mxu1 }
 0x156   :  { %v538_v8 = vpop.f32.mrf.mxu0 }
 0x157   :  { %v609_v55 = vpop.f32.mrf.mxu1 }
 0x158   :  { %v753_v56 = vpop.f32.mrf.mxu0  ;;  %v3731_v55 = vld [vmem:[#allocation8 + $0x940] sm:$0xff] }
 0x159   :  { %v15385_v57 = vadd.f32 %v753_v56, %v15272_v58  ;;  %v824_v27 = vpop.f32.mrf.mxu1  ;;  %v3735_v58 = vld [vmem:[#allocation8 + $0x960] sm:$0xff] }
 0x15a   :  { %v15388_v32 = vadd.f32 %v824_v27, %v15274_v59  ;;  %v755_v34 = vpop.f32.mrf.mxu0  ;;  %v3859_v56 = vld [vmem:[#allocation8 + $0xd40] sm:$0xff]  ;;  %v13165_v27 = vcombine.high %v3731_v55, %v3735_v58  ;;  %v13164_v37 = vcombine.low %v3731_v55, %v3735_v58 }
 0x15b   :  { %v15391_v36 = vadd.f32 %v755_v34, %v15276_v60  ;;  %v826_v35 = vpop.f32.mrf.mxu1  ;;  %v3863_v60 = vld [vmem:[#allocation8 + $0xd60] sm:$0xff] }
 0x15c   :  { %v15394_v39 = vadd.f32 %v826_v35, %v15278_v61  ;;  %v757_v51 = vpop.f32.mrf.mxu0  ;;  %v13292_v61 = vcombine.low %v3859_v56, %v3863_v60  ;;  %v13293_v35 = vcombine.high %v3859_v56, %v3863_v60  ;;  %5231 = vmatprep.subr.bf16.mxu0 %v13165_v27 }
 0x15d   :  { %v15397_v50 = vadd.f32 %v757_v51, %v15280_v62  ;;  %v828_v8 = vpop.f32.mrf.mxu1  ;;  %5232 = vmatpush1.bf16.msra.mxu0 %v13164_v37 }
 0x15e   :  { %17565 = vst [vmem:[#allocation26_spill] sm:$0xff] %v15394_v39  ;;  %v15400_v41 = vadd.f32 %v828_v8, %v15282_v63  ;;  %v15402_v59 = vpop.f32.mrf.mxu0  ;;  %5284 = vmatprep.subr.bf16.mxu1 %v13293_v35 }
 0x15f   :  { %17566 = vst [vmem:[#allocation27_spill] sm:$0xff] %v15397_v50  ;;  %v15404_v34 = vpop.f32.mrf.mxu1  ;;  %5285 = vmatpush1.bf16.msra.mxu1 %v13292_v61 }
 0x160   :  { %17567 = vst [vmem:[#allocation28_spill] sm:$0xff] %v15400_v41  ;;  %v763_v39 = vpop.f32.mrf.mxu0 }
 0x161   :  { %v15407_v62 = vadd.f32 %v763_v39, %v15288_v0  ;;  %v834_v51 = vpop.f32.mrf.mxu1 }
 0x162   :  { %v15410_v63 = vadd.f32 %v834_v51, %v15290_v3  ;;  %v765_v8 = vpop.f32.mrf.mxu0 }
 0x163   :  { %v15413_v41 = vadd.f32 %v765_v8, %v15292_v12  ;;  %v836_v50 = vpop.f32.mrf.mxu1 }
 0x164   :  { %v15416_v55 = vadd.f32 %v836_v50, %v15294_v13  ;;  %v767_v58 = vpop.f32.mrf.mxu0 }
 0x165   :  { %v15419_v56 = vadd.f32 %v767_v58, %v15296_v14  ;;  %v838_v0 = vpop.f32.mrf.mxu1 }
 0x166   :  { %v15422_v39 = vadd.f32 %v838_v0, %v15298_v15  ;;  %v15424_v37 = vpop.f32.mrf.mxu0  ;;  %v3723_v0 = vld [vmem:[#allocation8 + $0x900] sm:$0xff] }
 0x167   :  { %v15426_v3 = vpop.f32.mrf.mxu1 }
 0x168   :  { %v773_v27 = vpop.f32.mrf.mxu0 }
 0x169   :  { %v15429_v12 = vadd.f32 %v773_v27, %v15304_v6  ;;  %v844_v60 = vpop.f32.mrf.mxu1  ;;  %v3727_v27 = vld [vmem:[#allocation8 + $0x920] sm:$0xff] }
 0x16a   :  { %v15432_v13 = vadd.f32 %v844_v60, %v15306_v7  ;;  %v775_v50 = vpop.f32.mrf.mxu0 }
 0x16b   :  { %17568 = vst [vmem:[#allocation29_spill] sm:$0xff] %v15429_v12  ;;  %v15435_v14 = vadd.f32 %v775_v50, %v15308_v16  ;;  %v846_v61 = vpop.f32.mrf.mxu1  ;;  %v3851_v16 = vld [vmem:[#allocation8 + $0xd00] sm:$0xff]  ;;  %v13157_v50 = vcombine.high %v3723_v0, %v3727_v27 }
 0x16c   :  { %17569 = vst [vmem:[#allocation30_spill] sm:$0xff] %v15432_v13  ;;  %v15438_v15 = vadd.f32 %v846_v61, %v15310_v17  ;;  %v777_v35 = vpop.f32.mrf.mxu0 }
 0x16d   :  { %17570 = vst [vmem:[#allocation31_spill] sm:$0xff] %v15435_v14  ;;  %v15441_v51 = vadd.f32 %v777_v35, %v15312_v18  ;;  %v848_v8 = vpop.f32.mrf.mxu1  ;;  %v3855_v14 = vld [vmem:[#allocation8 + $0xd20] sm:$0xff]  ;;  %v13156_v18 = vcombine.low %v3723_v0, %v3727_v27  ;;  %5233 = vmatprep.subr.bf16.mxu0 %v13157_v50 }
 0x16e   :  { %17571 = vst [vmem:[#allocation32_spill] sm:$0xff] %v15438_v15  ;;  %v15444_v6 = vadd.f32 %v848_v8, %v15314_v19  ;;  %v15446_v58 = vpop.f32.mrf.mxu0  ;;  %v13284_v35 = vcombine.low %v3851_v16, %v3855_v14  ;;  %v13285_v8 = vcombine.high %v3851_v16, %v3855_v14 }
 0x16f   :  { %17572 = vst [vmem:[#allocation33_spill] sm:$0xff] %v15441_v51  ;;  %v15448_v7 = vpop.f32.mrf.mxu1  ;;  %5234 = vmatpush1.bf16.msra.mxu0 %v13156_v18 }
 0x170   :  { %17573 = vst [vmem:[#allocation34_spill] sm:$0xff] %v15444_v6  ;;  %v783_v60 = vpop.f32.mrf.mxu0  ;;  %5286 = vmatprep.subr.bf16.mxu1 %v13285_v8  ;;  %v3843_v8 = vld [vmem:[#allocation8 + $0xcc0] sm:$0xff] }
 0x171   :  { %v15451_v17 = vadd.f32 %v783_v60, %v15320_v22  ;;  %v854_v61 = vpop.f32.mrf.mxu1  ;;  %5287 = vmatpush1.bf16.msra.mxu1 %v13284_v35 }
 0x172   :  { %v15454_v51 = vadd.f32 %v854_v61, %v15322_v23  ;;  %v785_v19 = vpop.f32.mrf.mxu0 }
 0x173   :  { %v15457_v6 = vadd.f32 %v785_v19, %v15324_v24  ;;  %v856_v15 = vpop.f32.mrf.mxu1  ;;  %v3719_v19 = vld [vmem:[#allocation8 + $0x8e0] sm:$0xff] }
 0x174   :  { %v15460_v13 = vadd.f32 %v856_v15, %v15326_v25  ;;  %v787_v12 = vpop.f32.mrf.mxu0 }
 0x175   :  { %v858_v22 = vpop.f32.mrf.mxu1 }
 0x176   :  { %v788_v0 = vpop.f32.mrf.mxu0 }
 0x177   :  { %v859_v27 = vpop.f32.mrf.mxu1  ;;  %v3847_v0 = vld [vmem:[#allocation8 + $0xce0] sm:$0xff] }
 0x178   :  { %v895_v60 = vpop.f32.mrf.mxu0 }
 0x179   :  { %v15463_v23 = vadd.f32 %v895_v60, %v15328_v9  ;;  %v966_v50 = vpop.f32.mrf.mxu1  ;;  %v13276_v60 = vcombine.low %v3843_v8, %v3847_v0 }
 0x17a   :  { %v15466_v14 = vadd.f32 %v966_v50, %v15330_v10  ;;  %v897_v24 = vpop.f32.mrf.mxu0  ;;  %v3715_v10 = vld [vmem:[#allocation8 + $0x8c0] sm:$0xff]  ;;  %v13277_v50 = vcombine.high %v3843_v8, %v3847_v0 }
 0x17b   :  { %v15469_v16 = vadd.f32 %v897_v24, %v15332_v11  ;;  %v968_v25 = vpop.f32.mrf.mxu1  ;;  %v13149_v11 = vcombine.high %v3715_v10, %v3719_v19 }
 0x17c   :  { %v15472_v12 = vadd.f32 %v968_v25, %v15334_v28  ;;  %v899_v15 = vpop.f32.mrf.mxu0  ;;  %v13148_v28 = vcombine.low %v3715_v10, %v3719_v19  ;;  %5288 = vmatprep.subr.bf16.mxu1 %v13277_v50 }
 0x17d   :  { %v15475_v61 = vadd.f32 %v899_v15, %v15336_v29  ;;  %v970_v18 = vpop.f32.mrf.mxu1  ;;  %5235 = vmatprep.subr.bf16.mxu0 %v13149_v11  ;;  %5289 = vmatpush1.bf16.msra.mxu1 %v13276_v60  ;;  %v17530_v60 = vlaneseq }
 0x17e   :  { %v15478_v9 = vadd.f32 %v970_v18, %v15338_v33  ;;  %v15480_v35 = vpop.f32.mrf.mxu0  ;;  %5236 = vmatpush1.bf16.msra.mxu0 %v13148_v28 }
 0x17f   :  { %v15482_v22 = vpop.f32.mrf.mxu1 }
 0x180   :  { %v905_v27 = vpop.f32.mrf.mxu0 }
 0x181   :  { %v15485_v29 = vadd.f32 %v905_v27, %v15344_v44  ;;  %v976_v24 = vpop.f32.mrf.mxu1 }
 0x182   :  { %v15488_v33 = vadd.f32 %v976_v24, %v15346_v45  ;;  %v907_v25 = vpop.f32.mrf.mxu0 }
 0x183   :  { %v15491_v15 = vadd.f32 %v907_v25, %v15348_v46  ;;  %v978_v18 = vpop.f32.mrf.mxu1 }
 0x184   :  { %v15494_v10 = vadd.f32 %v978_v18, %v15350_v47  ;;  %v909_v19 = vpop.f32.mrf.mxu0 }
 0x185   :  { %v15497_v44 = vadd.f32 %v909_v19, %v15352_v48  ;;  %v980_v8 = vpop.f32.mrf.mxu1 }
 0x186   :  { %17574 = vst [vmem:[#allocation35_spill] sm:$0xff] %v15494_v10  ;;  %v15500_v11 = vadd.f32 %v980_v8, %v15354_v49  ;;  %v15502_v45 = vpop.f32.mrf.mxu0 }
 0x187   :  { %17575 = vst [vmem:[#allocation36_spill] sm:$0xff] %v15497_v44  ;;  %v15504_v0 = vpop.f32.mrf.mxu1 }
 0x188   :  { %17576 = vst [vmem:[#allocation37_spill] sm:$0xff] %v15500_v11  ;;  %v915_v27 = vpop.f32.mrf.mxu0 }
 0x189   :  { %v15507_v46 = vadd.f32 %v915_v27, %v15360_v52  ;;  %v986_v28 = vpop.f32.mrf.mxu1  ;;  %v15522_v52 = vshrl.u32 %v17530_v60, 7 }
 0x18a   :  { %v15510_v47 = vadd.f32 %v986_v28, %v15362_v30  ;;  %v917_v50 = vpop.f32.mrf.mxu0  ;;  %v14941_v28 = vmov 1983009808  }
 0x18b   :  { %17577 = vst [vmem:[#allocation38_spill] sm:$0xff] %v15507_v46  ;;  %v15513_v48 = vadd.f32 %v917_v50, %v15364_v31  ;;  %v988_v24 = vpop.f32.mrf.mxu1  ;;  %17582 = vst [vmem:[#allocation43_spill] sm:$0xff] %v15522_v52  ;;  %v1723_v50 = vunpack.c.l.s4 %v14941_v28  ;;  %v15535_v60 = vsub.s32 0, %v15522_v52 }
 0x18c   :  { %17578 = vst [vmem:[#allocation39_spill] sm:$0xff] %v15510_v47  ;;  %v15516_v49 = vadd.f32 %v988_v24, %v15366_v53  ;;  %v919_v25 = vpop.f32.mrf.mxu0  ;;  %v3707_v53 = vld [vmem:[#allocation8 + $0x880] sm:$0xff] }
 0x18d   :  { %17579 = vst [vmem:[#allocation40_spill] sm:$0xff] %v15513_v48  ;;  %v15519_v18 = vadd.f32 %v919_v25, %v15368_v54  ;;  %v990_v19 = vpop.f32.mrf.mxu1  ;;  %v3711_v24 = vld [vmem:[#allocation8 + $0x8a0] sm:$0xff]  ;;  %17585 = vst [vmem:[#allocation46_spill] sm:$0xff] %v15535_v60 }
 0x18e   :  { %17580 = vst [vmem:[#allocation41_spill] sm:$0xff] %v15516_v49  ;;  %v15525_v8 = vadd.f32 %v990_v19, %v15370_v26  ;;  %v15527_v30 = vpop.f32.mrf.mxu0  ;;  %v3835_v49 = vld [vmem:[#allocation8 + $0xc80] sm:$0xff]  ;;  %v13140_v48 = vcombine.low %v3707_v53, %v3711_v24 }
 0x18f   :  { %17581 = vst [vmem:[#allocation42_spill] sm:$0xff] %v15519_v18  ;;  %v15529_v27 = vpop.f32.mrf.mxu1  ;;  %v13141_v18 = vcombine.high %v3707_v53, %v3711_v24  ;;  %v3839_v26 = vld [vmem:[#allocation8 + $0xca0] sm:$0xff]  ;;  %v15552_v53 = vsub.s32 4, %v15522_v52  ;;  %v17532_v24 = vsub.s32 5, %v15522_v52 }
 0x190   :  { %17583 = vst [vmem:[#allocation44_spill] sm:$0xff] %v15525_v8  ;;  %v925_v31 = vpop.f32.mrf.mxu0  ;;  %v13268_v47 = vcombine.low %v3835_v49, %v3839_v26  ;;  %v13269_v46 = vcombine.high %v3835_v49, %v3839_v26  ;;  %v1724_v49 = vunpack.c.0.s8 %v1723_v50  ;;  %v17593_v50 = vsub.s32 3, %v15522_v52 }
 0x191   :  { %v15532_v54 = vadd.f32 %v925_v31, %v15376_v40  ;;  %v996_v25 = vpop.f32.mrf.mxu1  ;;  %v15544_v40 = vsub.s32 2, %v15522_v52  ;;  %v17531_v31 = vsub.s32 1, %v15522_v52  ;;  %5237 = vmatprep.subr.bf16.mxu0 %v13141_v18  ;;  %17590 = vst [vmem:[#allocation51_spill] sm:$0xff] %v15552_v53 }
 0x192   :  { %v15538_v19 = vadd.f32 %v996_v25, %v15378_v42  ;;  %v927_v8 = vpop.f32.mrf.mxu0  ;;  %v1508_v25 = vld [vmem:[#allocation6] sm:$0xff]  ;;  %5290 = vmatprep.subr.bf16.mxu1 %v13269_v46  ;;  %5238 = vmatpush1.bf16.msra.mxu0 %v13140_v48  ;;  %v15570_v48 = vsub.s32 %v1724_v49, %v15522_v52 }
 0x193   :  { %17584 = vst [vmem:[#allocation45_spill] sm:$0xff] %v15532_v54  ;;  %v15541_v28 = vadd.f32 %v927_v8, %v15380_v43  ;;  %v998_v11 = vpop.f32.mrf.mxu1  ;;  %17588 = vst [vmem:[#allocation49_spill] sm:$0xff] %v15544_v40  ;;  %v15555_v43 = vsub.s32 6, %v15522_v52  ;;  %5291 = vmatpush1.bf16.msra.mxu1 %v13268_v47  ;;  %v15567_v54 = vrot.slane %v1508_v25, %v17531_v31 }
 0x194   :  { %17586 = vst [vmem:[#allocation47_spill] sm:$0xff] %v15538_v19  ;;  %v15549_v44 = vadd.f32 %v998_v11, %v15382_v38  ;;  %v929_v42 = vpop.f32.mrf.mxu0  ;;  %v15560_v11 = vrot.slane %v1508_v25, %v15535_v60  ;;  %17592 = vst [vmem:[#allocation53_spill] sm:$0xff] %v15570_v48  ;;  %v15577_v47 = vrot.slane %v1508_v25, %v15552_v53 }
 0x195   :  { %17587 = vst [vmem:[#allocation48_spill] sm:$0xff] %v15541_v28  ;;  %17591 = vst [vmem:[#allocation52_spill] sm:$0xff] %v15555_v43  ;;  %v1000_v8 = vpop.f32.mrf.mxu1  ;;  %v15563_v42 = vrot.slane %v1508_v25, %v15544_v40  ;;  %v15587_v49 = vrot.slane %v1508_v25, %v17532_v24  ;;  %v831_v28 = vadd.f32 %v15404_v34, %v15286_v2  ;;  %v3827_v24 = vld [vmem:[#allocation8 + $0xc40] sm:$0xff] }
 0x196   :  { %17589 = vst [vmem:[#allocation50_spill] sm:$0xff] %v15549_v44  ;;  %v930_v18 = vpop.f32.mrf.mxu0  ;;  %v15574_v8 = vrot.slane %v1508_v25, %v17593_v50  ;;  %v17594_v44 = vsub.s32 7, %v15522_v52  ;;  %v15597_v19 = vadd.f32 %v15424_v37, %v15300_v4  ;;  %v17595_v37 = vld [vmem:[#allocation20_spill] sm:$0xff] }
 0x197   :  { %v1001_v38 = vpop.f32.mrf.mxu1  ;;  %v15580_v18 = vrot.slane %v1508_v25, %v15555_v43  ;;  %v17603_v52 = vld [vmem:[#allocation24_spill] sm:$0xff] }
 0x198   :  { %v1202_v46 = vpop.f32.mrf.mxu0  ;;  %v760_v38 = vadd.f32 %v15402_v59, %v15284_v1  ;;  %v15591_v50 = vrot.slane %v1508_v25, %v17594_v44  ;;  %v15601_v1 = vadd.f32 %v15426_v3, %v15302_v5  ;;  %v15610_v44 = vadd.f32 %v15448_v7, %v15318_v21  ;;  %v17598_v25 = vld [vmem:[#allocation22_spill] sm:$0xff] }
 0x199   :  { %v1452_v31 = vadd.f32 %v1202_v46, %v15385_v57  ;;  %v1273_v26 = vpop.f32.mrf.mxu1  ;;  %v15606_v46 = vadd.f32 %v15446_v58, %v15316_v20  ;;  %v15618_v5 = vadd.f32 %v15480_v35, %v17595_v37  ;;  %v17597_v58 = vld [vmem:[#allocation26_spill] sm:$0xff] }
 0x19a   :  { %v1454_v57 = vadd.f32 %v1273_v26, %v15388_v32  ;;  %v1204_v59 = vpop.f32.mrf.mxu0  ;;  %v17596_v32 = vld [vmem:[#allocation21_spill] sm:$0xff] }
 0x19b   :  { %v15613_v2 = vadd.f32 %v15560_v11, %v1452_v31  ;;  %v1453_v4 = vadd.f32 %v1204_v59, %v15391_v36  ;;  %v1275_v34 = vpop.f32.mrf.mxu1  ;;  %v15622_v3 = vadd.f32 %v15482_v22, %v17596_v32  ;;  %v15630_v31 = vadd.f32 %v15502_v45, %v17598_v25  ;;  %v17600_v36 = vld [vmem:[#allocation23_spill] sm:$0xff] }
 0x19c   :  { %v15625_v20 = vadd.f32 %v15563_v42, %v1454_v57  ;;  %v1455_v21 = vadd.f32 %v1275_v34, %v17597_v58  ;;  %v1206_v7 = vpop.f32.mrf.mxu0  ;;  %v15634_v26 = vadd.f32 %v15504_v0, %v17600_v36  ;;  %v17602_v59 = vld [vmem:[#allocation27_spill] sm:$0xff]  ;;  %v15642_v34 = vadd.f32 %v15527_v30, %v17603_v52  ;;  %v17605_v58 = vld [vmem:[#allocation28_spill] sm:$0xff] }
 0x19d   :  { %17599 = vst [vmem:[#allocation20_spill] sm:$0xff] %v15630_v31  ;;  %v15637_v35 = vadd.f32 %v15567_v54, %v1453_v4  ;;  %v1460_v22 = vadd.f32 %v1206_v7, %v17602_v59  ;;  %v1277_v37 = vpop.f32.mrf.mxu1  ;;  %v3699_v32 = vld [vmem:[#allocation8 + $0x840] sm:$0xff]  ;;  %v17606_v4 = vld [vmem:[#allocation25_spill] sm:$0xff] }
 0x19e   :  { %17601 = vst [vmem:[#allocation21_spill] sm:$0xff] %v15634_v26  ;;  %v3703_v57 = vld [vmem:[#allocation8 + $0x860] sm:$0xff]  ;;  %17604 = vst [vmem:[#allocation26_spill] sm:$0xff] %v15642_v34  ;;  %v15645_v45 = vadd.f32 %v15574_v8, %v1455_v21  ;;  %v1462_v25 = vadd.f32 %v1277_v37, %v17605_v58  ;;  %v1208_v0 = vpop.f32.mrf.mxu0  ;;  %v15650_v31 = vadd.f32 %v15529_v27, %v17606_v4 }
 0x19f   :  { %v13133_v36 = vcombine.high %v3699_v32, %v3703_v57  ;;  %v3831_v26 = vld [vmem:[#allocation8 + $0xc60] sm:$0xff]  ;;  %v1461_v59 = vadd.f32 %v1208_v0, %v760_v38  ;;  %v1279_v10 = vpop.f32.mrf.mxu1  ;;  %v13132_v43 = vcombine.low %v3699_v32, %v3703_v57  ;;  %v15655_v30 = vadd.f32 %v15560_v11, %v1460_v22 }
 0x1a0   :  { %17607 = vst [vmem:[#allocation22_spill] sm:$0xff] %v15650_v31  ;;  %v1463_v21 = vadd.f32 %v1279_v10, %v831_v28  ;;  %v1212_v34 = vpop.f32.mrf.mxu0  ;;  %v13260_v37 = vcombine.low %v3827_v24, %v3831_v26  ;;  %v15659_v53 = vadd.f32 %v15563_v42, %v1462_v25  ;;  %v13261_v38 = vcombine.high %v3827_v24, %v3831_v26  ;;  %v3691_v32 = vld [vmem:[#allocation8 + $0x800] sm:$0xff] }
 0x1a1   :  { %5239 = vmatprep.subr.bf16.mxu0 %v13133_v36  ;;  %v1468_v27 = vadd.f32 %v1212_v34, %v15407_v62  ;;  %v1283_v4 = vpop.f32.mrf.mxu1  ;;  %v3695_v57 = vld [vmem:[#allocation8 + $0x820] sm:$0xff]  ;;  %v15664_v10 = vadd.f32 %v15567_v54, %v1461_v59 }
 0x1a2   :  { %5240 = vmatpush1.bf16.msra.mxu0 %v13132_v43  ;;  %v3819_v0 = vld [vmem:[#allocation8 + $0xc00] sm:$0xff]  ;;  %v1470_v28 = vadd.f32 %v1283_v4, %v15410_v63  ;;  %v1214_v36 = vpop.f32.mrf.mxu0  ;;  %v13125_v58 = vcombine.high %v3691_v32, %v3695_v57  ;;  %v15668_v25 = vadd.f32 %v15574_v8, %v1463_v21  ;;  %5292 = vmatprep.subr.bf16.mxu1 %v13261_v38 }
 0x1a3   :  { %v3823_v52 = vld [vmem:[#allocation8 + $0xc20] sm:$0xff]  ;;  %v15671_v62 = vadd.f32 %v15560_v11, %v1468_v27  ;;  %v1469_v43 = vadd.f32 %v1214_v36, %v15413_v41  ;;  %v1285_v24 = vpop.f32.mrf.mxu1  ;;  %v13124_v26 = vcombine.low %v3691_v32, %v3695_v57  ;;  %5293 = vmatpush1.bf16.msra.mxu1 %v13260_v37 }
 0x1a4   :  { %v15676_v59 = vadd.f32 %v15563_v42, %v1470_v28  ;;  %v1471_v63 = vadd.f32 %v1285_v24, %v15416_v55  ;;  %v1216_v4 = vpop.f32.mrf.mxu0  ;;  %5241 = vmatprep.subr.bf16.mxu0 %v13125_v58  ;;  %v13252_v21 = vcombine.low %v3819_v0, %v3823_v52  ;;  %v13253_v32 = vcombine.high %v3819_v0, %v3823_v52  ;;  %v3811_v57 = vld [vmem:[#allocation8 + $0xbc0] sm:$0xff] }
 0x1a5   :  { %v15681_v27 = vadd.f32 %v15567_v54, %v1469_v43  ;;  %v1476_v41 = vadd.f32 %v1216_v4, %v15419_v56  ;;  %v1287_v38 = vpop.f32.mrf.mxu1  ;;  %v3815_v36 = vld [vmem:[#allocation8 + $0xbe0] sm:$0xff] }
 0x1a6   :  { %5242 = vmatpush1.bf16.msra.mxu0 %v13124_v26  ;;  %v3939_v28 = vld [vmem:[#allocation8 + $0xfc0] sm:$0xff]  ;;  %v15686_v55 = vadd.f32 %v15574_v8, %v1471_v63  ;;  %v1478_v37 = vadd.f32 %v1287_v38, %v15422_v39  ;;  %v1218_v58 = vpop.f32.mrf.mxu0  ;;  %v13245_v24 = vcombine.high %v3811_v57, %v3815_v36  ;;  %5294 = vmatprep.subr.bf16.mxu1 %v13253_v32 }
 0x1a7   :  { %17608 = vst [vmem:[#allocation23_spill] sm:$0xff] %v15681_v27  ;;  %v3943_v22 = vld [vmem:[#allocation8 + $0xfe0] sm:$0xff]  ;;  %v1477_v52 = vadd.f32 %v1218_v58, %v15597_v19  ;;  %v1289_v0 = vpop.f32.mrf.mxu1  ;;  %v13244_v26 = vcombine.low %v3811_v57, %v3815_v36  ;;  %v15694_v34 = vadd.f32 %v15560_v11, %v1476_v41  ;;  %5295 = vmatpush1.bf16.msra.mxu1 %v13252_v21  ;;  %v17612_v19 = vld [vmem:[#allocation29_spill] sm:$0xff] }
 0x1a8   :  { %17609 = vst [vmem:[#allocation27_spill] sm:$0xff] %v15686_v55  ;;  %v1479_v63 = vadd.f32 %v1289_v0, %v15601_v1  ;;  %v1222_v39 = vpop.f32.mrf.mxu0  ;;  %5243 = vmatprep.subr.bf16.mxu0 %v13245_v24  ;;  %v13372_v38 = vcombine.low %v3939_v28, %v3943_v22  ;;  %v15699_v56 = vadd.f32 %v15563_v42, %v1478_v37  ;;  %v3803_v36 = vld [vmem:[#allocation8 + $0xb80] sm:$0xff] }
 0x1a9   :  { %17610 = vst [vmem:[#allocation24_spill] sm:$0xff] %v15694_v34  ;;  %v1484_v58 = vadd.f32 %v1222_v39, %v17612_v19  ;;  %v1293_v32 = vpop.f32.mrf.mxu1  ;;  %v13373_v57 = vcombine.high %v3939_v28, %v3943_v22  ;;  %v3807_v4 = vld [vmem:[#allocation8 + $0xba0] sm:$0xff]  ;;  %v15704_v1 = vadd.f32 %v15567_v54, %v1477_v52 }
 0x1aa   :  { %17611 = vst [vmem:[#allocation28_spill] sm:$0xff] %v15699_v56  ;;  %5244 = vmatpush2.bf16.msra.mxu0 %v13244_v26  ;;  %v3931_v41 = vld [vmem:[#allocation8 + $0xf80] sm:$0xff]  ;;  %v1224_v0 = vpop.f32.mrf.mxu0  ;;  %v13237_v43 = vcombine.high %v3803_v36, %v3807_v4  ;;  %v15708_v37 = vadd.f32 %v15574_v8, %v1479_v63  ;;  %v13236_v19 = vcombine.low %v3803_v36, %v3807_v4 }
 0x1ab   :  { %v17613_v21 = vld [vmem:[#allocation30_spill] sm:$0xff]  ;;  %v15711_v39 = vadd.f32 %v15560_v11, %v1484_v58  ;;  %v17614_v22 = vld [vmem:[#allocation31_spill] sm:$0xff]  ;;  %v1295_v26 = vpop.f32.mrf.mxu1  ;;  %5296 = vmatprep.subr.bf16.mxu1 %v13373_v57 }
 0x1ac   :  { %v1486_v24 = vadd.f32 %v1293_v32, %v17613_v21  ;;  %v3935_v31 = vld [vmem:[#allocation8 + $0xfa0] sm:$0xff]  ;;  %v1485_v28 = vadd.f32 %v1224_v0, %v17614_v22  ;;  %v17615_v32 = vld [vmem:[#allocation32_spill] sm:$0xff]  ;;  %v1226_v55 = vpop.f32.mrf.mxu0  ;;  %5297 = vmatpush2.bf16.msra.mxu1 %v13372_v38  ;;  %5245 = vmatprep.subr.bf16.mxu0 %v13237_v43  ;;  %v17616_v0 = vld [vmem:[#allocation33_spill] sm:$0xff] }
 0x1ad   :  { %v1487_v21 = vadd.f32 %v1295_v26, %v17615_v32  ;;  %v13364_v63 = vcombine.low %v3931_v41, %v3935_v31  ;;  %v1492_v22 = vadd.f32 %v1226_v55, %v17616_v0  ;;  %v1297_v57 = vpop.f32.mrf.mxu1  ;;  %v13365_v4 = vcombine.high %v3931_v41, %v3935_v31  ;;  %v3795_v36 = vld [vmem:[#allocation8 + $0xb40] sm:$0xff] }
 0x1ae   :  { %v15716_v52 = vadd.f32 %v15563_v42, %v1486_v24  ;;  %v15721_v58 = vadd.f32 %v15567_v54, %v1485_v28  ;;  %5246 = vmatpush2.bf16.msra.mxu0 %v13236_v19  ;;  %v3799_v7 = vld [vmem:[#allocation8 + $0xb60] sm:$0xff]  ;;  %v1228_v32 = vpop.f32.mrf.mxu0 }
 0x1af   :  { %v3923_v24 = vld [vmem:[#allocation8 + $0xf40] sm:$0xff]  ;;  %v15726_v26 = vadd.f32 %v15574_v8, %v1487_v21  ;;  %v13229_v27 = vcombine.high %v3795_v36, %v3799_v7  ;;  %v15731_v55 = vadd.f32 %v15560_v11, %v1492_v22  ;;  %v1493_v31 = vadd.f32 %v1228_v32, %v15606_v46  ;;  %v1299_v41 = vpop.f32.mrf.mxu1  ;;  %5298 = vmatprep.subr.bf16.mxu1 %v13365_v4 }
 0x1b0   :  { %v17617_v43 = vld [vmem:[#allocation34_spill] sm:$0xff]  ;;  %v13228_v19 = vcombine.low %v3795_v36, %v3799_v7  ;;  %5299 = vmatpush2.bf16.msra.mxu1 %v13364_v63 }
 0x1b1   :  { %v1494_v38 = vadd.f32 %v1297_v57, %v17617_v43  ;;  %v3927_v56 = vld [vmem:[#allocation8 + $0xf60] sm:$0xff]  ;;  %17618 = vst [vmem:[#allocation25_spill] sm:$0xff] %v15731_v55  ;;  %v1495_v57 = vadd.f32 %v1299_v41, %v15610_v44  ;;  %v1232_v43 = vpop.f32.mrf.mxu0  ;;  %5247 = vmatprep.subr.bf16.mxu0 %v13229_v27  ;;  %v15741_v22 = vadd.f32 %v15567_v54, %v1493_v31  ;;  %v1303_v4 = vpop.f32.mrf.mxu1 }
 0x1b2   :  { %v13356_v34 = vcombine.low %v3923_v24, %v3927_v56  ;;  %v1500_v46 = vadd.f32 %v1232_v43, %v15451_v17  ;;  %v13357_v7 = vcombine.high %v3923_v24, %v3927_v56  ;;  %5248 = vmatpush2.bf16.msra.mxu0 %v13228_v19  ;;  %v3787_v36 = vld [vmem:[#allocation8 + $0xb00] sm:$0xff]  ;;  %v1502_v27 = vadd.f32 %v1303_v4, %v15454_v51 }
 0x1b3   :  { %v15736_v21 = vadd.f32 %v15563_v42, %v1494_v38  ;;  %17620 = vst [vmem:[#allocation30_spill] sm:$0xff] %v15741_v22  ;;  %v3791_v32 = vld [vmem:[#allocation8 + $0xb20] sm:$0xff]  ;;  %v15746_v44 = vadd.f32 %v15574_v8, %v1495_v57  ;;  %v1234_v63 = vpop.f32.mrf.mxu0  ;;  %v1305_v24 = vpop.f32.mrf.mxu1 }
 0x1b4   :  { %v3915_v38 = vld [vmem:[#allocation8 + $0xf00] sm:$0xff]  ;;  %v13221_v41 = vcombine.high %v3787_v36, %v3791_v32  ;;  %v15751_v17 = vadd.f32 %v15560_v11, %v1500_v46  ;;  %v1501_v56 = vadd.f32 %v1234_v63, %v15457_v6  ;;  %5300 = vmatprep.subr.bf16.mxu1 %v13357_v7  ;;  %v13220_v19 = vcombine.low %v3787_v36, %v3791_v32 }
 0x1b5   :  { %17619 = vst [vmem:[#allocation29_spill] sm:$0xff] %v15736_v21  ;;  %17621 = vst [vmem:[#allocation31_spill] sm:$0xff] %v15746_v44  ;;  %v3919_v28 = vld [vmem:[#allocation8 + $0xf20] sm:$0xff]  ;;  %v15756_v57 = vadd.f32 %v15563_v42, %v1502_v27  ;;  %v1503_v51 = vadd.f32 %v1305_v24, %v15460_v13  ;;  %v1236_v4 = vpop.f32.mrf.mxu0  ;;  %5301 = vmatpush2.bf16.msra.mxu1 %v13356_v34  ;;  %v1307_v46 = vpop.f32.mrf.mxu1 }
 0x1b6   :  { %17622 = vst [vmem:[#allocation32_spill] sm:$0xff] %v15751_v17  ;;  %5249 = vmatprep.subr.bf16.mxu0 %v13221_v41  ;;  %v13348_v0 = vcombine.low %v3915_v38, %v3919_v28  ;;  %v15762_v6 = vadd.f32 %v15567_v54, %v1501_v56  ;;  %v13349_v7 = vcombine.high %v3915_v38, %v3919_v28  ;;  %v3779_v36 = vld [vmem:[#allocation8 + $0xac0] sm:$0xff] }
 0x1b7   :  { %17623 = vst [vmem:[#allocation33_spill] sm:$0xff] %v15756_v57  ;;  %5250 = vmatpush2.bf16.msra.mxu0 %v13220_v19  ;;  %v3783_v32 = vld [vmem:[#allocation8 + $0xae0] sm:$0xff]  ;;  %v15766_v13 = vadd.f32 %v15574_v8, %v1503_v51  ;;  %v1237_v34 = vpop.f32.mrf.mxu0  ;;  %v1308_v28 = vpop.f32.mrf.mxu1  ;;  %v14942_v57 = vmov 0.0  }
 0x1b8   :  { %17624 = vst [vmem:[#allocation34_spill] sm:$0xff] %v15762_v6  ;;  %v3907_v42 = vld [vmem:[#allocation8 + $0xec0] sm:$0xff]  ;;  %v13212_v63 = vcombine.low %v3779_v36, %v3783_v32  ;;  %v13213_v41 = vcombine.high %v3779_v36, %v3783_v32  ;;  %5302 = vmatprep.subr.bf16.mxu1 %v13349_v7 }
 0x1b9   :  { %17625 = vst [vmem:[#allocation54_spill] sm:$0xff] %v15766_v13  ;;  %v3911_v24 = vld [vmem:[#allocation8 + $0xee0] sm:$0xff]  ;;  %v1344_v36 = vpop.f32.mrf.mxu0  ;;  %5303 = vmatpush2.bf16.msra.mxu1 %v13348_v0  ;;  %v1415_v31 = vpop.f32.mrf.mxu1 }
 0x1ba   :  { %v3771_v4 = vld [vmem:[#allocation8 + $0xa80] sm:$0xff]  ;;  %v13340_v38 = vcombine.low %v3907_v42, %v3911_v24  ;;  %v13341_v19 = vcombine.high %v3907_v42, %v3911_v24  ;;  %5251 = vmatprep.subr.bf16.mxu0 %v13213_v41  ;;  %v1456_v54 = vadd.f32 %v1344_v36, %v15463_v23  ;;  %v1458_v51 = vadd.f32 %v1415_v31, %v15466_v14 }
 0x1bb   :  { %v3775_v11 = vld [vmem:[#allocation8 + $0xaa0] sm:$0xff]  ;;  %5252 = vmatpush2.bf16.msra.mxu0 %v13212_v63  ;;  %v1346_v43 = vpop.f32.mrf.mxu0  ;;  %v1417_v31 = vpop.f32.mrf.mxu1 }
 0x1bc   :  { %v15770_v46 = vld [vmem:[#allocation8 + $0xe80] sm:$0xff]  ;;  %v13204_v32 = vcombine.low %v3771_v4, %v3775_v11  ;;  %v13205_v34 = vcombine.high %v3771_v4, %v3775_v11  ;;  %5304 = vmatprep.subr.bf16.mxu1 %v13341_v19  ;;  %v1554_v24 = vadd.f32 %v15577_v47, %v1456_v54  ;;  %v1457_v14 = vadd.f32 %v1346_v43, %v15469_v16 }
 0x1bd   :  { %v15772_v27 = vld [vmem:[#allocation8 + $0xea0] sm:$0xff]  ;;  %v1459_v63 = vadd.f32 %v1417_v31, %v15472_v12  ;;  %v1348_v13 = vpop.f32.mrf.mxu0  ;;  %5305 = vmatpush2.bf16.msra.mxu1 %v13340_v38  ;;  %v1419_v43 = vpop.f32.mrf.mxu1 }
 0x1be   :  { %v15774_v8 = vld [vmem:[#allocation8 + $0xa40] sm:$0xff]  ;;  %v13332_v56 = vcombine.low %v15770_v46, %v15772_v27  ;;  %v13333_v0 = vcombine.high %v15770_v46, %v15772_v27  ;;  %5253 = vmatprep.subr.bf16.mxu0 %v13205_v34  ;;  %v17626_v46 = vlaneseq  ;;  %v1610_v6 = vmax.f32 %v1554_v24, 0.0 }
 0x1bf   :  { %v15779_v28 = vld [vmem:[#allocation8 + $0xa60] sm:$0xff]  ;;  %v1555_v54 = vadd.f32 %v15587_v49, %v1457_v14  ;;  %v1464_v16 = vadd.f32 %v1348_v13, %v15475_v61  ;;  %5254 = vmatpush2.bf16.msra.mxu0 %v13204_v32  ;;  %v1557_v61 = vadd.f32 %v15591_v50, %v1459_v63  ;;  %v1466_v13 = vadd.f32 %v1419_v43, %v15478_v9  ;;  %v1350_v38 = vpop.f32.mrf.mxu0  ;;  %v1421_v36 = vpop.f32.mrf.mxu1 }
 0x1c0   :  { %v15781_v7 = vld [vmem:[#allocation8 + $0xe40] sm:$0xff]  ;;  %v13196_v11 = vcombine.low %v15774_v8, %v15779_v28  ;;  %v13197_v23 = vcombine.high %v15774_v8, %v15779_v28  ;;  %vm15805_vm2 = vcmp.lt.s32.totalorder %v17626_v46, 512  ;;  %v1556_v28 = vadd.f32 %v15580_v18, %v1458_v51  ;;  %5306 = vmatprep.subr.bf16.mxu1 %v13333_v0 }
 0x1c1   :  { %v15783_v42 = vld [vmem:[#allocation8 + $0xe60] sm:$0xff]  ;;  %2114 = vst.msk [vmem:[#allocation2] ss:$8 sm:$0xf] %vm15805_vm2, %v14942_v57  ;;  %v17629_v32 = vmax.f32 %v15613_v2, 0.0  ;;  %v1611_v0 = vmax.f32 %v1555_v54, 0.0  ;;  %v1562_v14 = vadd.f32 %v15577_v47, %v1464_v16  ;;  %v1465_v31 = vadd.f32 %v1350_v38, %v15618_v5  ;;  %v1354_v43 = vpop.f32.mrf.mxu0  ;;  %5307 = vmatpush2.bf16.msra.mxu1 %v13332_v56  ;;  %v1425_v5 = vpop.f32.mrf.mxu1 }
 0x1c2   :  { %v15791_v41 = vld [vmem:[#allocation8 + $0xa00] sm:$0xff]  ;;  %v13325_v8 = vcombine.high %v15781_v7, %v15783_v42  ;;  %2117 = vst.msk [vmem:[#allocation2 + $0x40] ss:$8 sm:$0xf] %vm15805_vm2, %v14942_v57  ;;  %v1612_v12 = vmax.f32 %v1556_v28, 0.0  ;;  %5255 = vmatprep.subr.bf16.mxu0 %v13197_v23  ;;  %v1613_v63 = vmax.f32 %v1557_v61, 0.0  ;;  %v1564_v9 = vadd.f32 %v15580_v18, %v1466_v13 }
 0x1c3   :  { %v15793_v4 = vld [vmem:[#allocation8 + $0xa20] sm:$0xff]  ;;  %2120 = vst.msk [vmem:[#allocation2 + $0x27] ss:$8 sm:$0xf] %vm15805_vm2, %v14942_v57  ;;  %v1662_v24 = vmax.f32 %v17629_v32, %v1610_v6  ;;  %v1467_v23 = vadd.f32 %v1421_v36, %v15622_v3  ;;  %v17631_v34 = vmax.f32 %v15637_v35, 0.0  ;;  %v1618_v6 = vmax.f32 %v1562_v14, 0.0  ;;  %5256 = vmatpush2.bf16.msra.mxu0 %v13196_v11  ;;  %v1356_v56 = vpop.f32.mrf.mxu0 }
 0x1c4   :  { %v15800_v19 = vld [vmem:[#allocation8 + $0xe00] sm:$0xff]  ;;  %v13189_v46 = vcombine.high %v15791_v41, %v15793_v4  ;;  %2123 = vst.msk [vmem:[#allocation2 + $0x67] ss:$8 sm:$0xf] %vm15805_vm2, %v14942_v57  ;;  %v17630_v57 = vmax.f32 %v15625_v20, 0.0  ;;  %v1563_v54 = vadd.f32 %v15587_v49, %v1465_v31  ;;  %v1472_v16 = vadd.f32 %v1354_v43, %v15485_v29  ;;  %5308 = vmatprep.subr.bf16.mxu1 %v13325_v8  ;;  %v15853_v29 = vpop.f32.mrf.mxu1 }
 0x1c5   :  { %v15802_v27 = vld [vmem:[#allocation8 + $0xe20] sm:$0xff]  ;;  %v1663_v2 = vmax.f32 %v17631_v34, %v1611_v0  ;;  %v17632_v20 = vmax.f32 %v15645_v45, 0.0  ;;  %v1620_v61 = vmax.f32 %v1564_v9, 0.0  ;;  %v1565_v13 = vadd.f32 %v15591_v50, %v1467_v23  ;;  %v15857_v36 = vpop.f32.mrf.mxu0 }
 0x1c6   :  { %v13317_v51 = vcombine.high %v15800_v19, %v15802_v27  ;;  %v1664_v28 = vmax.f32 %v17630_v57, %v1612_v12  ;;  %v1474_v3 = vadd.f32 %v1425_v5, %v15488_v33  ;;  %5257 = vmatprep.subr.bf16.mxu0 %v13189_v46  ;;  %v17633_v38 = vmax.f32 %v15655_v30, 0.0 }
 0x1c7   :  { %v1665_v12 = vmax.f32 %v17632_v20, %v1613_v63  ;;  %v1718_v35 = vcombine.low %v1662_v24, %v1663_v2  ;;  %v1719_v34 = vcombine.high %v1662_v24, %v1663_v2  ;;  %v1619_v0 = vmax.f32 %v1563_v54, 0.0  ;;  %v15876_v43 = vpop.f32.mrf.mxu0 }
 0x1c8   :  { %v1666_v32 = vmax.f32 %v17633_v38, %v1618_v6  ;;  %v17634_v45 = vmax.f32 %v15659_v53, 0.0  ;;  %v1621_v31 = vmax.f32 %v1565_v13, 0.0  ;;  %v17635_v33 = vcombine.low %v15781_v7, %v15783_v42 }
 0x1c9   :  { %v1720_v8 = vcombine.low %v1664_v28, %v1665_v12  ;;  %v1721_v11 = vcombine.high %v1664_v28, %v1665_v12  ;;  %v1728_v46 = vrot.slane %v1718_v35, %v15570_v48  ;;  %v1735_v30 = vrot.slane %v1719_v34, %v15570_v48  ;;  %v15867_v28 = vpop.f32.mrf.mxu1 }
 0x1ca   :  { %v1668_v14 = vmax.f32 %v17634_v45, %v1620_v61  ;;  %5309 = vmatpush2.bf16.msra.mxu1 %v17635_v33  ;;  %v17636_v24 = vmax.f32 %v15664_v10, 0.0  ;;  %v1570_v63 = vadd.f32 %v15577_v47, %v1472_v16  ;;  %v17637_v23 = vmax.f32 %v15668_v25, 0.0  ;;  %v15886_v61 = vpop.f32.mrf.mxu0 }
 0x1cb   :  { %5310 = vmatprep.subr.bf16.mxu1 %v13317_v51  ;;  %v1742_v53 = vrot.slane %v1720_v8, %v15570_v48  ;;  %v1749_v9 = vrot.slane %v1721_v11, %v15570_v48  ;;  %v15874_v42 = vadd.f32 %v15580_v18, %v1474_v3  ;;  %v17638_v10 = vcombine.low %v15791_v41, %v15793_v4  ;;  %v15884_v16 = vpop.f32.mrf.mxu1 }
 0x1cc   :  { %v1667_v57 = vmax.f32 %v17636_v24, %v1619_v0  ;;  %v1669_v7 = vmax.f32 %v17637_v23, %v1621_v31  ;;  %v1626_v51 = vmax.f32 %v1570_v63, 0.0  ;;  %v15882_v54 = vadd.f32 %v1356_v56, %v15491_v15  ;;  %v15895_v0 = vpop.f32.mrf.mxu0 }
 0x1cd   :  { %5258 = vmatpush2.bf16.msra.mxu0 %v17638_v10  ;;  %v1750_v25 = vcombine.low %v1728_v46, %v1742_v53  ;;  %v1751_v5 = vcombine.high %v1728_v46, %v1742_v53  ;;  %v1752_v20 = vcombine.low %v1735_v30, %v1749_v9  ;;  %v1753_v12 = vcombine.high %v1735_v30, %v1749_v9  ;;  %v15893_v56 = vpop.f32.mrf.mxu1  ;;  %v17641_v10 = vld [vmem:[#allocation51_spill] sm:$0xff] }
 0x1ce   :  { %v1754_v2 = vcombine.low %v1666_v32, %v1667_v57  ;;  %v1755_v6 = vcombine.high %v1666_v32, %v1667_v57  ;;  %v17639_v41 = vcombine.low %v15800_v19, %v15802_v27  ;;  %v1756_v15 = vcombine.low %v1668_v14, %v1669_v7  ;;  %v15906_v24 = vpop.f32.mrf.mxu0 }
 0x1cf   :  { %v1757_v3 = vcombine.high %v1668_v14, %v1669_v7  ;;  %v13086_v35 = vrot.slane %v1750_v25, 9  ;;  %v13087_v34 = vrot.slane %v1751_v5, 9  ;;  %v13088_v38 = vrot.slane %v1752_v20, 9  ;;  %v15904_v31 = vpop.f32.mrf.mxu1 }
 0x1d0   :  { %5311 = vmatpush2.bf16.msra.mxu1 %v17639_v41  ;;  %v1764_v4 = vrot.slane %v1754_v2, %v15570_v48  ;;  %v1771_v13 = vrot.slane %v1755_v6, %v15570_v48  ;;  %v13089_v32 = vrot.slane %v1753_v12, 9  ;;  %v1778_v8 = vrot.slane %v1756_v15, %v15570_v48  ;;  %v17642_v2 = vld [vmem:[#allocation52_spill] sm:$0xff] }
 0x1d1   :  { %v1785_v19 = vrot.slane %v1757_v3, %v15570_v48  ;;  %v17640_v27 = vmax.f32 %v15671_v62, 0.0  ;;  %v1628_v45 = vmax.f32 %v15874_v42, 0.0  ;;  %v2082_v14 = vmax.f32 %v1750_v25, %v13086_v35  ;;  %v15908_v23 = vpop.f32.mrf.mxu1 }
 0x1d2   :  { %v2083_v33 = vmax.f32 %v1751_v5, %v13087_v34  ;;  %v2084_v46 = vmax.f32 %v1752_v20, %v13088_v38  ;;  %v2085_v30 = vmax.f32 %v1753_v12, %v13089_v32  ;;  %v1786_v57 = vcombine.low %v1764_v4, %v1778_v8 }
 0x1d3   :  { %v15901_v11 = vmax.f32 %v17640_v27, %v1626_v51  ;;  %v1787_v63 = vcombine.high %v1764_v4, %v1778_v8  ;;  %v1788_v53 = vcombine.low %v1771_v13, %v1785_v19  ;;  %v1789_v9 = vcombine.high %v1771_v13, %v1785_v19  ;;  %v15914_v51 = vpop.f32.mrf.mxu0  ;;  %v15920_v41 = vpop.f32.mrf.mxu1 }
 0x1d4   :  { %v2156_v62 = vrot.slane %v2082_v14, %v15535_v60  ;;  %v2160_v7 = vrot.slane %v2082_v14, %v15544_v40  ;;  %v2164_v42 = vrot.slane %v2082_v14, %v17641_v10  ;;  %v2168_v6 = vrot.slane %v2082_v14, %v17642_v2 }
 0x1d5   :  { %v2172_v25 = vrot.slane %v2083_v33, %v15535_v60  ;;  %v2176_v5 = vrot.slane %v2083_v33, %v15544_v40  ;;  %v2180_v20 = vrot.slane %v2083_v33, %v17641_v10  ;;  %v2184_v12 = vrot.slane %v2083_v33, %v17642_v2  ;;  %v15926_v35 = vpop.f32.mrf.mxu0  ;;  %v15932_v19 = vpop.f32.mrf.mxu1 }
 0x1d6   :  { %v2188_v4 = vrot.slane %v2084_v46, %v15535_v60  ;;  %v2192_v13 = vrot.slane %v2084_v46, %v15544_v40  ;;  %v2196_v15 = vrot.slane %v2084_v46, %v17641_v10  ;;  %v2200_v3 = vrot.slane %v2084_v46, %v17642_v2 }
 0x1d7   :  { %v2204_v34 = vrot.slane %v2085_v30, %v15535_v60  ;;  %v2208_v38 = vrot.slane %v2085_v30, %v15544_v40  ;;  %v2212_v32 = vrot.slane %v2085_v30, %v17641_v10  ;;  %v2216_v8 = vrot.slane %v2085_v30, %v17642_v2  ;;  %v15938_v17 = vpop.f32.mrf.mxu0  ;;  %v15944_v55 = vpop.f32.mrf.mxu1 }
 0x1d8   :  { %v2602_v27 = vsel %vm2601_vm3, %v2172_v25, %v2156_v62  ;;  %v2613_v14 = vsel %vm2601_vm3, %v2176_v5, %v2160_v7  ;;  %v2619_v33 = vsel %vm2601_vm3, %v2180_v20, %v2164_v42  ;;  %v2625_v46 = vsel %vm2601_vm3, %v2184_v12, %v2168_v6 }
 0x1d9   :  { %v2604_v44 = vsel %vm2603_vm4, %v2188_v4, %v2602_v27  ;;  %v2614_v22 = vsel %vm2603_vm4, %v2192_v13, %v2613_v14  ;;  %v2620_v21 = vsel %vm2603_vm4, %v2196_v15, %v2619_v33  ;;  %v2626_v30 = vsel %vm2603_vm4, %v2200_v3, %v2625_v46  ;;  %v1378_v25 = vpop.f32.mrf.mxu0  ;;  %v1449_v13 = vpop.f32.mrf.mxu1 }
 0x1da   :  { %v2606_v62 = vsel %vm2605_vm5, %v2204_v34, %v2604_v44  ;;  %v2615_v7 = vsel %vm2605_vm5, %v2208_v38, %v2614_v22  ;;  %v2621_v42 = vsel %vm2605_vm5, %v2212_v32, %v2620_v21  ;;  %v2627_v6 = vsel %vm2605_vm5, %v2216_v8, %v2626_v30  ;;  %v17644_v34 = vld [vmem:[#allocation35_spill] sm:$0xff]  ;;  %v17645_v21 = vld [vmem:[#allocation36_spill] sm:$0xff]  ;;  %v17646_v25 = vld [vmem:[#allocation37_spill] sm:$0xff] }
 0x1db   :  { %v13090_v5 = vrot.slane %v1786_v57, 9  ;;  %v13091_v20 = vrot.slane %v1787_v63, 9  ;;  %v13092_v12 = vrot.slane %v1788_v53, 9  ;;  %v13093_v4 = vrot.slane %v1789_v9, 9  ;;  %v1379_v32 = vpop.f32.mrf.mxu0  ;;  %v1450_v46 = vpop.f32.mrf.mxu1 }
 0x1dc   :  { %v17643_v15 = vmax.f32 %v15676_v59, 0.0  ;;  %v1571_v44 = vadd.f32 %v15587_v49, %v15882_v54  ;;  %v1475_v22 = vadd.f32 %v15853_v29, %v17644_v34  ;;  %v1480_v38 = vadd.f32 %v15857_v36, %v17645_v21 }
 0x1dd   :  { %v2086_v8 = vmax.f32 %v1786_v57, %v13090_v5  ;;  %v2087_v27 = vmax.f32 %v1787_v63, %v13091_v20  ;;  %v2088_v14 = vmax.f32 %v1788_v53, %v13092_v12  ;;  %v15960_v33 = vmax.f32 %v1789_v9, %v13093_v4 }
 0x1de   :  { %v15952_v3 = vmax.f32 %v17643_v15, %v1628_v45  ;;  %v1627_v30 = vmax.f32 %v1571_v44, 0.0  ;;  %v1573_v59 = vadd.f32 %v15591_v50, %v1475_v22  ;;  %v1578_v45 = vadd.f32 %v15577_v47, %v1480_v38 }
 0x1df   :  { %v1482_v54 = vadd.f32 %v15867_v28, %v17646_v25  ;;  %v2220_v29 = vrot.slane %v2086_v8, %v15535_v60  ;;  %v2224_v13 = vrot.slane %v2086_v8, %v15544_v40  ;;  %v2228_v36 = vrot.slane %v2086_v8, %v17641_v10 }
 0x1e0   :  { %v2232_v57 = vrot.slane %v2086_v8, %v17642_v2  ;;  %v2236_v63 = vrot.slane %v2087_v27, %v15535_v60  ;;  %v2240_v53 = vrot.slane %v2087_v27, %v15544_v40  ;;  %v2244_v9 = vrot.slane %v2087_v27, %v17641_v10 }
 0x1e1   :  { %v2248_v5 = vrot.slane %v2087_v27, %v17642_v2  ;;  %v2252_v20 = vrot.slane %v2088_v14, %v15535_v60  ;;  %v2256_v28 = vrot.slane %v2088_v14, %v15544_v40  ;;  %v2260_v12 = vrot.slane %v2088_v14, %v17641_v10 }
 0x1e2   :  { %v2264_v4 = vrot.slane %v2088_v14, %v17642_v2  ;;  %v2268_v15 = vrot.slane %v15960_v33, %v15535_v60  ;;  %v2272_v44 = vrot.slane %v15960_v33, %v15544_v40  ;;  %v2608_v21 = vsel %vm2607_vm6, %v2220_v29, %v2606_v62 }
 0x1e3   :  { %v2616_v38 = vsel %vm2607_vm6, %v2224_v13, %v2615_v7  ;;  %v2622_v32 = vsel %vm2607_vm6, %v2228_v36, %v2621_v42  ;;  %v2628_v8 = vsel %vm2607_vm6, %v2232_v57, %v2627_v6  ;;  %v2610_v27 = vsel %vm2609_vm7, %v2236_v63, %v2608_v21  ;;  %v17647_v42 = vld [vmem:[#allocation23_spill] sm:$0xff]  ;;  %v17649_v63 = vld [vmem:[#allocation20_spill] sm:$0xff] }
 0x1e4   :  { %v2617_v14 = vsel %vm2609_vm7, %v2240_v53, %v2616_v38  ;;  %v2623_v46 = vsel %vm2609_vm7, %v2244_v9, %v2622_v32  ;;  %v2629_v25 = vsel %vm2609_vm7, %v2248_v5, %v2628_v8  ;;  %v2612_v34 = vsel %vm2611_vm8, %v2252_v20, %v2610_v27  ;;  %v17650_v9 = vld [vmem:[#allocation21_spill] sm:$0xff]  ;;  %v17651_v20 = vld [vmem:[#allocation38_spill] sm:$0xff] }
 0x1e5   :  { %v2618_v22 = vsel %vm2611_vm8, %v2256_v28, %v2617_v14  ;;  %v2624_v62 = vsel %vm2611_vm8, %v2260_v12, %v2623_v46  ;;  %v2630_v7 = vsel %vm2611_vm8, %v2264_v4, %v2629_v25  ;;  %2720 = vst [vmem:[#allocation2] sm:$0xfe] %v2612_v34  ;;  %v17648_v6 = vmax.f32 %v17647_v42, 0.0  ;;  %v17652_v12 = vld [vmem:[#allocation39_spill] sm:$0xff]  ;;  %v17657_v14 = vld [vmem:[#allocation28_spill] sm:$0xff] }
 0x1e6   :  { %2721 = vst [vmem:[#allocation2 + $0x8] sm:$0xfe] %v2618_v22  ;;  %2722 = vst [vmem:[#allocation2 + $0x10] sm:$0xfe] %v2624_v62  ;;  %v1629_v13 = vmax.f32 %v1573_v59, 0.0  ;;  %v1634_v36 = vmax.f32 %v1578_v45, 0.0  ;;  %v1580_v57 = vadd.f32 %v15580_v18, %v1482_v54  ;;  %v1481_v53 = vadd.f32 %v15876_v43, %v17649_v63 }
 0x1e7   :  { %2723 = vst [vmem:[#allocation2 + $0x18] sm:$0xfe] %v2630_v7  ;;  %v1671_v29 = vmax.f32 %v17648_v6, %v1627_v30  ;;  %v1483_v5 = vadd.f32 %v15884_v16, %v17650_v9  ;;  %v1488_v28 = vadd.f32 %v15886_v61, %v17651_v20  ;;  %v1490_v4 = vadd.f32 %v15893_v56, %v17652_v12  ;;  %v17653_v59 = vld [vmem:[#allocation27_spill] sm:$0xff]  ;;  %v17655_v54 = vld [vmem:[#allocation24_spill] sm:$0xff] }
 0x1e8   :  { %v17654_v45 = vmax.f32 %v17653_v59, 0.0  ;;  %v17656_v21 = vmax.f32 %v17655_v54, 0.0  ;;  %v1636_v43 = vmax.f32 %v1580_v57, 0.0  ;;  %v1579_v32 = vadd.f32 %v15587_v49, %v1481_v53 }
 0x1e9   :  { %v1790_v34 = vcombine.low %v15901_v11, %v1671_v29  ;;  %v1791_v30 = vcombine.high %v15901_v11, %v1671_v29  ;;  %v1581_v16 = vadd.f32 %v15591_v50, %v1483_v5  ;;  %v1586_v61 = vadd.f32 %v15577_v47, %v1488_v28  ;;  %v17663_v28 = vld [vmem:[#allocation41_spill] sm:$0xff] }
 0x1ea   :  { %v1673_v22 = vmax.f32 %v17654_v45, %v1629_v13  ;;  %v1674_v38 = vmax.f32 %v17656_v21, %v1634_v36  ;;  %v17658_v46 = vmax.f32 %v17657_v14, 0.0  ;;  %v1635_v62 = vmax.f32 %v1579_v32, 0.0  ;;  %v17659_v36 = vld [vmem:[#allocation40_spill] sm:$0xff] }
 0x1eb   :  { %v1800_v8 = vrot.slane %v1790_v34, %v15570_v48  ;;  %v1807_v56 = vrot.slane %v1791_v30, %v15570_v48  ;;  %v1637_v7 = vmax.f32 %v1581_v16, 0.0  ;;  %v1642_v42 = vmax.f32 %v1586_v61, 0.0 }
 0x1ec   :  { %v1792_v27 = vcombine.low %v15952_v3, %v1673_v22  ;;  %v1793_v11 = vcombine.high %v15952_v3, %v1673_v22  ;;  %v1676_v25 = vmax.f32 %v17658_v46, %v1636_v43  ;;  %v16027_v13 = vadd.f32 %v15580_v18, %v1490_v4 }
 0x1ed   :  { %v16031_v57 = vadd.f32 %v15895_v0, %v17659_v36  ;;  %v17660_v3 = vmax.f32 %v15704_v1, 0.0  ;;  %v17661_v53 = vmax.f32 %v15708_v37, 0.0  ;;  %v17662_v5 = vmax.f32 %v15711_v39, 0.0 }
 0x1ee   :  { %v1814_v6 = vrot.slane %v1792_v27, %v15570_v48  ;;  %v1821_v29 = vrot.slane %v1793_v11, %v15570_v48  ;;  %v16043_v12 = vadd.f32 %v15904_v31, %v17663_v28 }
 0x1ef   :  { %v1675_v63 = vmax.f32 %v17660_v3, %v1635_v62  ;;  %v1677_v9 = vmax.f32 %v17661_v53, %v1637_v7  ;;  %v16039_v20 = vmax.f32 %v17662_v5, %v1642_v42 }
 0x1f0   :  { %v1822_v4 = vcombine.low %v1800_v8, %v1814_v6  ;;  %v1823_v34 = vcombine.high %v1800_v8, %v1814_v6  ;;  %v1824_v30 = vcombine.low %v1807_v56, %v1821_v29  ;;  %v1825_v0 = vcombine.high %v1807_v56, %v1821_v29 }
 0x1f1   :  { %v1826_v59 = vcombine.low %v1674_v38, %v1675_v63  ;;  %v1827_v45 = vcombine.high %v1674_v38, %v1675_v63  ;;  %v1828_v22 = vcombine.low %v1676_v25, %v1677_v9  ;;  %v1829_v1 = vcombine.high %v1676_v25, %v1677_v9 }
 0x1f2   :  { %v13094_v54 = vrot.slane %v1822_v4, 9  ;;  %v13095_v21 = vrot.slane %v1823_v34, 9  ;;  %v13096_v37 = vrot.slane %v1824_v30, 9  ;;  %v13097_v43 = vrot.slane %v1825_v0, 9 }
 0x1f3   :  { %v1836_v39 = vrot.slane %v1826_v59, %v15570_v48  ;;  %v1843_v32 = vrot.slane %v1827_v45, %v15570_v48  ;;  %v1850_v16 = vrot.slane %v1828_v22, %v15570_v48  ;;  %v1857_v31 = vrot.slane %v1829_v1, %v15570_v48 }
 0x1f4   :  { %v2090_v61 = vmax.f32 %v1822_v4, %v13094_v54  ;;  %v2091_v8 = vmax.f32 %v1823_v34, %v13095_v21  ;;  %v2092_v27 = vmax.f32 %v1824_v30, %v13096_v37  ;;  %v2093_v56 = vmax.f32 %v1825_v0, %v13097_v43 }
 0x1f5   :  { %v1858_v11 = vcombine.low %v1836_v39, %v1850_v16  ;;  %v1859_v38 = vcombine.high %v1836_v39, %v1850_v16  ;;  %v1860_v14 = vcombine.low %v1843_v32, %v1857_v31  ;;  %v1861_v46 = vcombine.high %v1843_v32, %v1857_v31 }
 0x1f6   :  { %v2284_v25 = vrot.slane %v2090_v61, %v15535_v60  ;;  %v2288_v62 = vrot.slane %v2090_v61, %v15544_v40  ;;  %v2292_v7 = vrot.slane %v2090_v61, %v17641_v10  ;;  %v2296_v42 = vrot.slane %v2090_v61, %v17642_v2 }
 0x1f7   :  { %v2300_v6 = vrot.slane %v2091_v8, %v15535_v60  ;;  %v2304_v29 = vrot.slane %v2091_v8, %v15544_v40  ;;  %v2308_v36 = vrot.slane %v2091_v8, %v17641_v10  ;;  %v2312_v3 = vrot.slane %v2091_v8, %v17642_v2 }
 0x1f8   :  { %v2316_v63 = vrot.slane %v2092_v27, %v15535_v60  ;;  %v2320_v53 = vrot.slane %v2092_v27, %v15544_v40  ;;  %v2324_v9 = vrot.slane %v2092_v27, %v17641_v10  ;;  %v2328_v5 = vrot.slane %v2092_v27, %v17642_v2 }
 0x1f9   :  { %v2332_v28 = vrot.slane %v2093_v56, %v15535_v60  ;;  %v2336_v4 = vrot.slane %v2093_v56, %v15544_v40  ;;  %v2340_v34 = vrot.slane %v2093_v56, %v17641_v10  ;;  %v2344_v30 = vrot.slane %v2093_v56, %v17642_v2 }
 0x1fa   :  { %v2632_v0 = vsel %vm2631_vm9, %v2284_v25, %v2268_v15  ;;  %v2638_v59 = vsel %vm2631_vm9, %v2288_v62, %v2272_v44  ;;  %v17664_v45 = vrot.slane %v15960_v33, %v17641_v10  ;;  %v17665_v1 = vrot.slane %v15960_v33, %v17642_v2 }
 0x1fb   :  { %v2633_v21 = vsel %vm2601_vm3, %v2300_v6, %v2632_v0  ;;  %v2639_v37 = vsel %vm2601_vm3, %v2304_v29, %v2638_v59  ;;  %v13098_v27 = vrot.slane %v1858_v11, 9  ;;  %v13099_v56 = vrot.slane %v1859_v38, 9  ;;  %v17666_v29 = vld [vmem:[#allocation42_spill] sm:$0xff] }
 0x1fc   :  { %v2644_v22 = vsel %vm2631_vm9, %v2292_v7, %v17664_v45  ;;  %v2650_v54 = vsel %vm2631_vm9, %v2296_v42, %v17665_v1  ;;  %v2634_v44 = vsel %vm2603_vm4, %v2316_v63, %v2633_v21  ;;  %v2640_v39 = vsel %vm2603_vm4, %v2320_v53, %v2639_v37 }
 0x1fd   :  { %v2645_v15 = vsel %vm2601_vm3, %v2308_v36, %v2644_v22  ;;  %v2651_v43 = vsel %vm2601_vm3, %v2312_v3, %v2650_v54  ;;  %v2635_v33 = vsel %vm2605_vm5, %v2332_v28, %v2634_v44  ;;  %v2641_v31 = vsel %vm2605_vm5, %v2336_v4, %v2640_v39 }
 0x1fe   :  { %v2646_v32 = vsel %vm2603_vm4, %v2324_v9, %v2645_v15  ;;  %v2652_v16 = vsel %vm2603_vm4, %v2328_v5, %v2651_v43  ;;  %v13100_v25 = vrot.slane %v1860_v14, 9  ;;  %v13101_v62 = vrot.slane %v1861_v46, 9 }
 0x1ff   :  { %v2647_v61 = vsel %vm2605_vm5, %v2340_v34, %v2646_v32  ;;  %v2653_v8 = vsel %vm2605_vm5, %v2344_v30, %v2652_v16  ;;  %v1644_v7 = vmax.f32 %v16027_v13, 0.0  ;;  %v1587_v42 = vadd.f32 %v15587_v49, %v16031_v57 }
 0x200   :  { %v1589_v6 = vadd.f32 %v15591_v50, %v16043_v12  ;;  %v1496_v36 = vadd.f32 %v15906_v24, %v17666_v29  ;;  %v2094_v3 = vmax.f32 %v1858_v11, %v13098_v27  ;;  %v2095_v63 = vmax.f32 %v1859_v38, %v13099_v56 }
 0x201   :  { %v2096_v53 = vmax.f32 %v1860_v14, %v13100_v25  ;;  %v2097_v9 = vmax.f32 %v1861_v46, %v13101_v62  ;;  %v17667_v5 = vmax.f32 %v15716_v52, 0.0  ;;  %v1643_v4 = vmax.f32 %v1587_v42, 0.0 }
 0x202   :  { %v1645_v34 = vmax.f32 %v1589_v6, 0.0  ;;  %v1594_v13 = vadd.f32 %v15577_v47, %v1496_v36  ;;  %v2348_v30 = vrot.slane %v2094_v3, %v15535_v60  ;;  %v2352_v57 = vrot.slane %v2094_v3, %v15544_v40  ;;  %v17670_v6 = vld [vmem:[#allocation44_spill] sm:$0xff]  ;;  %v17671_v36 = vld [vmem:[#allocation26_spill] sm:$0xff] }
 0x203   :  { %v1680_v28 = vmax.f32 %v17667_v5, %v1644_v7  ;;  %v2356_v12 = vrot.slane %v2094_v3, %v17641_v10  ;;  %v2360_v0 = vrot.slane %v2094_v3, %v17642_v2  ;;  %v2364_v24 = vrot.slane %v2095_v63, %v15535_v60 }
 0x204   :  { %v2368_v11 = vrot.slane %v2095_v63, %v15544_v40  ;;  %v2372_v38 = vrot.slane %v2095_v63, %v17641_v10  ;;  %v2376_v52 = vrot.slane %v2095_v63, %v17642_v2  ;;  %v2380_v14 = vrot.slane %v2096_v53, %v15535_v60  ;;  %v17672_v63 = vld [vmem:[#allocation22_spill] sm:$0xff] }
 0x205   :  { %v2384_v46 = vrot.slane %v2096_v53, %v15544_v40  ;;  %v2388_v59 = vrot.slane %v2096_v53, %v17641_v10  ;;  %v2392_v45 = vrot.slane %v2096_v53, %v17642_v2  ;;  %v2396_v22 = vrot.slane %v2097_v9, %v15535_v60 }
 0x206   :  { %v2400_v1 = vrot.slane %v2097_v9, %v15544_v40  ;;  %v2404_v54 = vrot.slane %v2097_v9, %v17641_v10  ;;  %v2408_v21 = vrot.slane %v2097_v9, %v17642_v2  ;;  %v2636_v37 = vsel %vm2607_vm6, %v2348_v30, %v2635_v33  ;;  %v17673_v9 = vld [vmem:[#allocation45_spill] sm:$0xff]  ;;  %v17674_v30 = vld [vmem:[#allocation47_spill] sm:$0xff] }
 0x207   :  { %v2642_v15 = vsel %vm2607_vm6, %v2352_v57, %v2641_v31  ;;  %v2648_v43 = vsel %vm2607_vm6, %v2356_v12, %v2647_v61  ;;  %v2654_v44 = vsel %vm2607_vm6, %v2360_v0, %v2653_v8  ;;  %v2637_v39 = vsel %vm2609_vm7, %v2364_v24, %v2636_v37 }
 0x208   :  { %v2643_v32 = vsel %vm2609_vm7, %v2368_v11, %v2642_v15  ;;  %v2649_v16 = vsel %vm2609_vm7, %v2372_v38, %v2648_v43  ;;  %v2655_v27 = vsel %vm2609_vm7, %v2376_v52, %v2654_v44  ;;  %v16128_v56 = vsel %vm2601_vm3, %v2396_v22, %v2380_v14  ;;  %2724 = vst [vmem:[#allocation2 + $0x20] sm:$0x7f] %v2637_v39  ;;  %v17677_v22 = vld [vmem:[#allocation29_spill] sm:$0xff]  ;;  %v17681_v43 = vld [vmem:[#allocation31_spill] sm:$0xff] }
 0x209   :  { %v16131_v25 = vsel %vm2601_vm3, %v2400_v1, %v2384_v46  ;;  %v16134_v33 = vsel %vm2601_vm3, %v2404_v54, %v2388_v59  ;;  %v16137_v31 = vsel %vm2601_vm3, %v2408_v21, %v2392_v45  ;;  %2725 = vst [vmem:[#allocation2 + $0x28] sm:$0x7f] %v2643_v32  ;;  %2726 = vst [vmem:[#allocation2 + $0x30] sm:$0x7f] %v2649_v16  ;;  %v17668_v61 = vmax.f32 %v15721_v58, 0.0  ;;  %v17679_v21 = vld [vmem:[#allocation30_spill] sm:$0xff] }
 0x20a   :  { %2727 = vst [vmem:[#allocation2 + $0x38] sm:$0x7f] %v2655_v27  ;;  %v17669_v62 = vmax.f32 %v15726_v26, 0.0  ;;  %v1650_v42 = vmax.f32 %v1594_v13, 0.0  ;;  %v1498_v29 = vadd.f32 %v15908_v23, %v17670_v6  ;;  %v1497_v3 = vadd.f32 %v15914_v51, %v17671_v36  ;;  %v17675_v23 = vld [vmem:[#allocation25_spill] sm:$0xff] }
 0x20b   :  { %v1679_v8 = vmax.f32 %v17668_v61, %v1643_v4  ;;  %v1499_v53 = vadd.f32 %v15920_v41, %v17672_v63  ;;  %v1504_v5 = vadd.f32 %v15926_v35, %v17673_v9  ;;  %v16153_v58 = vadd.f32 %v15932_v19, %v17674_v30 }
 0x20c   :  { %v1681_v7 = vmax.f32 %v17669_v62, %v1645_v34  ;;  %v17676_v57 = vmax.f32 %v17675_v23, 0.0  ;;  %v1596_v51 = vadd.f32 %v15580_v18, %v1498_v29  ;;  %v1595_v41 = vadd.f32 %v15587_v49, %v1497_v3 }
 0x20d   :  { %v1862_v26 = vcombine.low %v16039_v20, %v1679_v8  ;;  %v1863_v4 = vcombine.high %v16039_v20, %v1679_v8  ;;  %v1597_v0 = vadd.f32 %v15591_v50, %v1499_v53  ;;  %v16167_v52 = vadd.f32 %v15577_v47, %v1504_v5 }
 0x20e   :  { %v1864_v34 = vcombine.low %v1680_v28, %v1681_v7  ;;  %v1865_v13 = vcombine.high %v1680_v28, %v1681_v7  ;;  %v1682_v12 = vmax.f32 %v17676_v57, %v1650_v42  ;;  %v1652_v20 = vmax.f32 %v1596_v51, 0.0 }
 0x20f   :  { %v1872_v35 = vrot.slane %v1862_v26, %v15570_v48  ;;  %v1879_v19 = vrot.slane %v1863_v4, %v15570_v48  ;;  %v1651_v38 = vmax.f32 %v1595_v41, 0.0  ;;  %v1653_v28 = vmax.f32 %v1597_v0, 0.0 }
 0x210   :  { %v1886_v24 = vrot.slane %v1864_v34, %v15570_v48  ;;  %v1893_v11 = vrot.slane %v1865_v13, %v15570_v48  ;;  %v17678_v1 = vmax.f32 %v17677_v22, 0.0  ;;  %v17680_v37 = vmax.f32 %v17679_v21, 0.0 }
 0x211   :  { %v17682_v44 = vmax.f32 %v17681_v43, 0.0  ;;  %v1658_v32 = vmax.f32 %v16167_v52, 0.0 }
 0x212   :  { %v1894_v14 = vcombine.low %v1872_v35, %v1886_v24  ;;  %v1895_v46 = vcombine.high %v1872_v35, %v1886_v24  ;;  %v1896_v59 = vcombine.low %v1879_v19, %v1893_v11  ;;  %v1897_v45 = vcombine.high %v1879_v19, %v1893_v11 }
 0x213   :  { %v1684_v54 = vmax.f32 %v17678_v1, %v1652_v20  ;;  %v1683_v15 = vmax.f32 %v17680_v37, %v1651_v38  ;;  %v1685_v39 = vmax.f32 %v17682_v44, %v1653_v28 }
 0x214   :  { %v13102_v16 = vrot.slane %v1894_v14, 9  ;;  %v13103_v27 = vrot.slane %v1895_v46, 9  ;;  %v13104_v61 = vrot.slane %v1896_v59, 9  ;;  %v13105_v47 = vrot.slane %v1897_v45, 9 }
 0x215   :  { %v1898_v8 = vcombine.low %v1682_v12, %v1683_v15  ;;  %v1899_v62 = vcombine.high %v1682_v12, %v1683_v15  ;;  %v1900_v7 = vcombine.low %v1684_v54, %v1685_v39  ;;  %v1901_v42 = vcombine.high %v1684_v54, %v1685_v39  ;;  %v14482_v15 = vld [vmem:[#allocation2] ss:$8 sps:$4 sm:$0xee]  }
 0x216   :  { %v2098_v6 = vmax.f32 %v1894_v14, %v13102_v16  ;;  %v2099_v29 = vmax.f32 %v1895_v46, %v13103_v27  ;;  %v2100_v36 = vmax.f32 %v1896_v59, %v13104_v61  ;;  %v2101_v3 = vmax.f32 %v1897_v45, %v13105_v47  ;;  %v17683_v27 = vld [vmem:[#allocation32_spill] sm:$0xff] }
 0x217   :  { %v1908_v63 = vrot.slane %v1898_v8, %v15570_v48  ;;  %v1915_v53 = vrot.slane %v1899_v62, %v15570_v48  ;;  %v1922_v9 = vrot.slane %v1900_v7, %v15570_v48  ;;  %v1929_v5 = vrot.slane %v1901_v42, %v15570_v48  ;;  %v17685_v62 = vld [vmem:[#allocation48_spill] sm:$0xff]  ;;  %v17686_v42 = vld [vmem:[#allocation50_spill] sm:$0xff] }
 0x218   :  { %v2412_v30 = vrot.slane %v2098_v6, %v15535_v60  ;;  %v2416_v26 = vrot.slane %v2098_v6, %v15544_v40  ;;  %v2420_v4 = vrot.slane %v2098_v6, %v17641_v10  ;;  %v2424_v34 = vrot.slane %v2098_v6, %v17642_v2 }
 0x219   :  { %v2428_v13 = vrot.slane %v2099_v29, %v15535_v60  ;;  %v2432_v23 = vrot.slane %v2099_v29, %v15544_v40  ;;  %v2436_v57 = vrot.slane %v2099_v29, %v17641_v10  ;;  %v2440_v12 = vrot.slane %v2099_v29, %v17642_v2  ;;  %v14484_v29 = vld [vmem:[#allocation2 + $0x4] ss:$8 sps:$4 sm:$0xff]  }
 0x21a   :  { %v2444_v51 = vrot.slane %v2100_v36, %v15535_v60  ;;  %v2448_v41 = vrot.slane %v2100_v36, %v15544_v40  ;;  %v2452_v0 = vrot.slane %v2100_v36, %v17641_v10  ;;  %v2456_v35 = vrot.slane %v2100_v36, %v17642_v2 }
 0x21b   :  { %v2460_v19 = vrot.slane %v2101_v3, %v15535_v60  ;;  %v2464_v24 = vrot.slane %v2101_v3, %v15544_v40  ;;  %v2468_v11 = vrot.slane %v2101_v3, %v17641_v10  ;;  %v2472_v20 = vrot.slane %v2101_v3, %v17642_v2 }
 0x21c   :  { %v2657_v38 = vsel %vm2603_vm4, %v2412_v30, %v16128_v56  ;;  %v2663_v28 = vsel %vm2603_vm4, %v2416_v26, %v16131_v25  ;;  %v2669_v52 = vsel %vm2603_vm4, %v2420_v4, %v16134_v33  ;;  %v2675_v14 = vsel %vm2603_vm4, %v2424_v34, %v16137_v31  ;;  %v17687_v4 = vld [vmem:[#allocation33_spill] sm:$0xff] }
 0x21d   :  { %v2658_v46 = vsel %vm2605_vm5, %v2428_v13, %v2657_v38  ;;  %v2664_v59 = vsel %vm2605_vm5, %v2432_v23, %v2663_v28  ;;  %v2670_v45 = vsel %vm2605_vm5, %v2436_v57, %v2669_v52  ;;  %v2676_v22 = vsel %vm2605_vm5, %v2440_v12, %v2675_v14 }
 0x21e   :  { %v2659_v1 = vsel %vm2607_vm6, %v2444_v51, %v2658_v46  ;;  %v2665_v56 = vsel %vm2607_vm6, %v2448_v41, %v2664_v59  ;;  %v2671_v25 = vsel %vm2607_vm6, %v2452_v0, %v2670_v45  ;;  %v2677_v54 = vsel %vm2607_vm6, %v2456_v35, %v2676_v22  ;;  %v14485_v59 = vld [vmem:[#allocation2 + $0x10] ss:$8 sps:$4 sm:$0xee]   ;;  %v14487_v45 = vld [vmem:[#allocation2 + $0x14] ss:$8 sps:$4 sm:$0xff]  }
 0x21f   :  { %v2660_v33 = vsel %vm2609_vm7, %v2460_v19, %v2659_v1  ;;  %v2666_v31 = vsel %vm2609_vm7, %v2464_v24, %v2665_v56  ;;  %v2672_v21 = vsel %vm2609_vm7, %v2468_v11, %v2671_v25  ;;  %v2678_v37 = vsel %vm2609_vm7, %v2472_v20, %v2677_v54  ;;  %v14488_v54 = vld [vmem:[#allocation2 + $0x20] ss:$8 sps:$4 sm:$0xff]  }
 0x220   :  { %v1930_v43 = vcombine.low %v1908_v63, %v1922_v9  ;;  %v1931_v44 = vcombine.high %v1908_v63, %v1922_v9  ;;  %v1932_v39 = vcombine.low %v1915_v53, %v1929_v5  ;;  %v1933_v16 = vcombine.high %v1915_v53, %v1929_v5 }
 0x221   :  { %v17684_v61 = vmax.f32 %v17683_v27, 0.0  ;;  %v1604_v8 = vadd.f32 %v15580_v18, %v16153_v58  ;;  %v1505_v7 = vadd.f32 %v15938_v17, %v17685_v62  ;;  %v1507_v6 = vadd.f32 %v15944_v55, %v17686_v42  ;;  %v14490_v27 = vld [vmem:[#allocation2 + $0x24] ss:$8 sps:$4 sm:$0x77]  }
 0x222   :  { %v13106_v36 = vrot.slane %v1930_v43, 9  ;;  %v13107_v3 = vrot.slane %v1931_v44, 9  ;;  %v13108_v30 = vrot.slane %v1932_v39, 9  ;;  %v13109_v63 = vrot.slane %v1933_v16, 9  ;;  %v17691_v42 = vld [vmem:[#allocation54_spill] sm:$0xff] }
 0x223   :  { %v16218_v47 = vmax.f32 %v17684_v61, %v1658_v32  ;;  %v1660_v9 = vmax.f32 %v1604_v8, 0.0  ;;  %v1603_v53 = vadd.f32 %v15587_v49, %v1505_v7  ;;  %v1605_v32 = vadd.f32 %v15591_v50, %v1507_v6  ;;  %v14493_v61 = vld [vmem:[#allocation2 + $0x34] ss:$8 sps:$4 sm:$0x77]   ;;  %v17689_v8 = vld [vmem:[#allocation34_spill] sm:$0xff] }
 0x224   :  { %v16229_v5 = vrot.slane %v14482_v15, %v15570_v48  ;;  %v2102_v18 = vmax.f32 %v1930_v43, %v13106_v36  ;;  %v2103_v58 = vmax.f32 %v1931_v44, %v13107_v3  ;;  %v2104_v26 = vmax.f32 %v1932_v39, %v13108_v30  ;;  %v14491_v15 = vld [vmem:[#allocation2 + $0x30] ss:$8 sps:$4 sm:$0xff]  }
 0x225   :  { %v2105_v17 = vmax.f32 %v1933_v16, %v13109_v63  ;;  %v17688_v34 = vmax.f32 %v17687_v4, 0.0  ;;  %v1659_v13 = vmax.f32 %v1603_v53, 0.0  ;;  %v1661_v23 = vmax.f32 %v1605_v32, 0.0 }
 0x226   :  { %v16234_v57 = vrot.slane %v14484_v29, %v15570_v48  ;;  %v2476_v12 = vrot.slane %v2102_v18, %v15535_v60  ;;  %v2480_v49 = vrot.slane %v2102_v18, %v15544_v40  ;;  %v2484_v50 = vrot.slane %v2102_v18, %v17641_v10 }
 0x227   :  { %v1688_v55 = vmax.f32 %v17688_v34, %v1660_v9  ;;  %v2488_v51 = vrot.slane %v2102_v18, %v17642_v2  ;;  %v2492_v41 = vrot.slane %v2103_v58, %v15535_v60  ;;  %v2496_v0 = vrot.slane %v2103_v58, %v15544_v40 }
 0x228   :  { %v2500_v35 = vrot.slane %v2103_v58, %v17641_v10  ;;  %v2504_v19 = vrot.slane %v2103_v58, %v17642_v2  ;;  %v2508_v24 = vrot.slane %v2104_v26, %v15535_v60  ;;  %v2512_v11 = vrot.slane %v2104_v26, %v15544_v40 }
 0x229   :  { %v2516_v20 = vrot.slane %v2104_v26, %v17641_v10  ;;  %v2520_v38 = vrot.slane %v2104_v26, %v17642_v2  ;;  %v2524_v28 = vrot.slane %v2105_v17, %v15535_v60  ;;  %v2528_v52 = vrot.slane %v2105_v17, %v15544_v40 }
 0x22a   :  { %v2532_v14 = vrot.slane %v2105_v17, %v17641_v10  ;;  %v2536_v46 = vrot.slane %v2105_v17, %v17642_v2  ;;  %v2661_v22 = vsel %vm2611_vm8, %v2476_v12, %v2660_v33  ;;  %v2667_v1 = vsel %vm2611_vm8, %v2480_v49, %v2666_v31 }
 0x22b   :  { %v2673_v56 = vsel %vm2611_vm8, %v2484_v50, %v2672_v21  ;;  %v2679_v25 = vsel %vm2611_vm8, %v2488_v51, %v2678_v37  ;;  %v2680_v43 = vsel %vm2631_vm9, %v2508_v24, %v2492_v41  ;;  %v2686_v44 = vsel %vm2631_vm9, %v2512_v11, %v2496_v0  ;;  %2728 = vst [vmem:[#allocation2 + $0x40] sm:$0xfe] %v2661_v22 }
 0x22c   :  { %v2692_v39 = vsel %vm2631_vm9, %v2516_v20, %v2500_v35  ;;  %v2698_v16 = vsel %vm2631_vm9, %v2520_v38, %v2504_v19  ;;  %2729 = vst [vmem:[#allocation2 + $0x48] sm:$0xfe] %v2667_v1  ;;  %2730 = vst [vmem:[#allocation2 + $0x50] sm:$0xfe] %v2673_v56  ;;  %v16261_v33 = vsel %vm2601_vm3, %v2524_v28, %v2680_v43  ;;  %v17690_v62 = vmax.f32 %v17689_v8, 0.0 }
 0x22d   :  { %2731 = vst [vmem:[#allocation2 + $0x58] sm:$0xfe] %v2679_v25  ;;  %v16264_v31 = vsel %vm2601_vm3, %v2528_v52, %v2686_v44  ;;  %v16267_v21 = vsel %vm2601_vm3, %v2532_v14, %v2692_v39  ;;  %v16270_v37 = vsel %vm2601_vm3, %v2536_v46, %v2698_v16  ;;  %v17692_v6 = vmax.f32 %v17691_v42, 0.0 }
 0x22e   :  { %v1687_v7 = vmax.f32 %v17690_v62, %v1659_v13  ;;  %v3372_v36 = vrot.slane %v14485_v59, %v15570_v48  ;;  %v16278_v3 = vrot.slane %v14487_v45, %v15570_v48  ;;  %v16281_v30 = vrot.slane %v14488_v54, %v15570_v48 }
 0x22f   :  { %v1689_v29 = vmax.f32 %v17692_v6, %v1661_v23  ;;  %v16284_v63 = vrot.slane %v14491_v15, %v15570_v48  ;;  %v16292_v17 = vrot.slane %v14490_v27, %v15570_v48  ;;  %v16295_v4 = vrot.slane %v14493_v61, %v15570_v48 }
 0x230   :  { %v1934_v9 = vcombine.low %v16218_v47, %v1687_v7  ;;  %v1935_v53 = vcombine.high %v16218_v47, %v1687_v7  ;;  %v3381_v58 = vcombine.high %v16229_v5, %v3372_v36  ;;  %v3382_v26 = vcombine.low %v16234_v57, %v16278_v3 }
 0x231   :  { %v1936_v32 = vcombine.low %v1688_v55, %v1689_v29  ;;  %v1937_v18 = vcombine.high %v1688_v55, %v1689_v29  ;;  %v3380_v55 = vcombine.low %v16229_v5, %v3372_v36  ;;  %v3383_v12 = vcombine.high %v16234_v57, %v16278_v3  ;;  %v16387_v57 = vld [vmem:[#allocation8 + $0x9c8] sm:$0xff] }
 0x232   :  { %v1944_v34 = vrot.slane %v1934_v9, %v15570_v48  ;;  %v1951_v13 = vrot.slane %v1935_v53, %v15570_v48  ;;  %v3416_v49 = vcombine.low %v16281_v30, %v16284_v63  ;;  %v3417_v50 = vcombine.high %v16281_v30, %v16284_v63  ;;  %v16389_v3 = vld [vmem:[#allocation8 + $0x9e8] sm:$0xff] }
 0x233   :  { %v1958_v23 = vrot.slane %v1936_v32, %v15570_v48  ;;  %v1965_v47 = vrot.slane %v1937_v18, %v15570_v48  ;;  %v14494_v19 = vld [vmem:[#allocation2 + $0x40] ss:$8 sps:$4 sm:$0xee]   ;;  %v3418_v24 = vcombine.low %v16292_v17, %v16295_v4  ;;  %v3419_v5 = vcombine.high %v16292_v17, %v16295_v4 }
 0x234   :  { %v14496_v11 = vld [vmem:[#allocation2 + $0x50] ss:$8 sps:$4 sm:$0xee]   ;;  %v3498_v38 = vrot.slane %v3381_v58, 7  ;;  %v16318_v28 = vrot.slane %v3382_v26, 7  ;;  %v3430_v45 = vrot.slane %v14494_v19, %v15570_v48  ;;  %v13122_v1 = vrot.slane %v3380_v55, 9 }
 0x235   :  { %v1966_v51 = vcombine.low %v1944_v34, %v1958_v23  ;;  %v1967_v41 = vcombine.high %v1944_v34, %v1958_v23  ;;  %v1968_v0 = vcombine.low %v1951_v13, %v1965_v47  ;;  %v1969_v35 = vcombine.high %v1951_v13, %v1965_v47 }
 0x236   :  { %v3444_v22 = vrot.slane %v14496_v11, %v15570_v48  ;;  %v3500_v56 = vrot.slane %v3498_v38, 2  ;;  %v3503_v61 = vrot.slane %v16318_v28, 2 }
 0x237   :  { %v13110_v52 = vrot.slane %v1966_v51, 9  ;;  %v13111_v14 = vrot.slane %v1967_v41, 9  ;;  %v13112_v46 = vrot.slane %v1968_v0, 9  ;;  %v13113_v59 = vrot.slane %v1969_v35, 9 }
 0x238   :  { %v3452_v39 = vcombine.low %v3430_v45, %v3444_v22  ;;  %v3453_v16 = vcombine.high %v3430_v45, %v3444_v22  ;;  %v16332_v27 = vsel %vm16325_vm13, %v3500_v56, %v16318_v28  ;;  %v3510_v45 = vrot.slane %v3417_v50, 7 }
 0x239   :  { %v2106_v25 = vmax.f32 %v1966_v51, %v13110_v52  ;;  %v2107_v54 = vmax.f32 %v1967_v41, %v13111_v14  ;;  %v2108_v15 = vmax.f32 %v1968_v0, %v13112_v46  ;;  %v2109_v43 = vmax.f32 %v1969_v35, %v13113_v59 }
 0x23a   :  { %v3504_v46 = vrot.slane %v3383_v12, 7  ;;  %v3507_v59 = vrot.slane %v3416_v49, 7  ;;  %v3513_v22 = vrot.slane %v3418_v24, 7  ;;  %v3499_v56 = vsel %vm16325_vm13, %v13122_v1, %v3498_v38 }
 0x23b   :  { %v2540_v8 = vrot.slane %v2106_v25, %v15535_v60  ;;  %v2544_v62 = vrot.slane %v2106_v25, %v15544_v40  ;;  %v2548_v7 = vrot.slane %v2106_v25, %v17641_v10  ;;  %v2552_v42 = vrot.slane %v2106_v25, %v17642_v2 }
 0x23c   :  { %v2556_v6 = vrot.slane %v2107_v54, %v15535_v60  ;;  %v2560_v29 = vrot.slane %v2107_v54, %v15544_v40  ;;  %v2564_v36 = vrot.slane %v2107_v54, %v17641_v10  ;;  %v2568_v9 = vrot.slane %v2107_v54, %v17642_v2 }
 0x23d   :  { %v2572_v53 = vrot.slane %v2108_v15, %v15535_v60  ;;  %v2576_v32 = vrot.slane %v2108_v15, %v15544_v40  ;;  %v2580_v18 = vrot.slane %v2108_v15, %v17641_v10  ;;  %v2584_v58 = vrot.slane %v2108_v15, %v17642_v2 }
 0x23e   :  { %v2588_v26 = vrot.slane %v2109_v43, %v15535_v60  ;;  %v2592_v34 = vrot.slane %v2109_v43, %v15544_v40  ;;  %v2596_v13 = vrot.slane %v2109_v43, %v17641_v10  ;;  %v2600_v23 = vrot.slane %v2109_v43, %v17642_v2  ;;  %v3227_v2 = vld [vmem:[#allocation8 + $0x538] sm:$0xff] }
 0x23f   :  { %v2682_v47 = vsel %vm2603_vm4, %v2540_v8, %v16261_v33  ;;  %v2688_v55 = vsel %vm2603_vm4, %v2544_v62, %v16264_v31  ;;  %v2694_v51 = vsel %vm2603_vm4, %v2548_v7, %v16267_v21  ;;  %v2700_v41 = vsel %vm2603_vm4, %v2552_v42, %v16270_v37  ;;  %v3876_v62 = vld [vmem:[#allocation8 + $0xdc8] sm:$0xff] }
 0x240   :  { %v2683_v0 = vsel %vm2605_vm5, %v2556_v6, %v2682_v47  ;;  %v2689_v35 = vsel %vm2605_vm5, %v2560_v29, %v2688_v55  ;;  %v2695_v19 = vsel %vm2605_vm5, %v2564_v36, %v2694_v51  ;;  %v2701_v11 = vsel %vm2605_vm5, %v2568_v9, %v2700_v41  ;;  %v16409_v36 = vld [vmem:[#allocation8 + $0x988] sm:$0xff] }
 0x241   :  { %v2684_v20 = vsel %vm2607_vm6, %v2572_v53, %v2683_v0  ;;  %v2690_v33 = vsel %vm2607_vm6, %v2576_v32, %v2689_v35  ;;  %v2696_v31 = vsel %vm2607_vm6, %v2580_v18, %v2695_v19  ;;  %v2702_v28 = vsel %vm2607_vm6, %v2584_v58, %v2701_v11  ;;  %v16411_v9 = vld [vmem:[#allocation8 + $0x9a8] sm:$0xff] }
 0x242   :  { %v2685_v21 = vsel %vm2609_vm7, %v2588_v26, %v2684_v20  ;;  %v2691_v37 = vsel %vm2609_vm7, %v2592_v34, %v2690_v33  ;;  %v2697_v52 = vsel %vm2609_vm7, %v2596_v13, %v2696_v31  ;;  %v2703_v14 = vsel %vm2609_vm7, %v2600_v23, %v2702_v28  ;;  %v16420_v47 = vld [vmem:[#allocation8 + $0xd88] sm:$0xff]  ;;  %v14498_v20 = vld [vmem:[#allocation2 + $0x44] ss:$8 sps:$4 sm:$0xff]  }
 0x243   :  { %2732 = vst [vmem:[#allocation2 + $0x60] sm:$0x7f] %v2685_v21  ;;  %2733 = vst [vmem:[#allocation2 + $0x68] sm:$0x7f] %v2691_v37  ;;  %v3516_v25 = vrot.slane %v3419_v5, 7  ;;  %v13123_v54 = vrot.slane %v3452_v39, 9  ;;  %v3540_v30 = vcombine.low %v3499_v56, %v16332_v27  ;;  %v3505_v63 = vsel %vm16325_vm13, %v3503_v61, %v3504_v46 }
 0x244   :  { %2734 = vst [vmem:[#allocation2 + $0x70] sm:$0x7f] %v2697_v52  ;;  %2735 = vst [vmem:[#allocation2 + $0x78] sm:$0x7f] %v2703_v14  ;;  %v16385_v15 = vrot.slane %v3453_v16, 7  ;;  %v3506_v12 = vrot.slane %v3504_v46, 2  ;;  %v3541_v4 = vcombine.high %v3499_v56, %v16332_v27  ;;  %v13183_v1 = vcombine.high %v16387_v57, %v16389_v3 }
 0x245   :  { %v3509_v49 = vrot.slane %v3507_v59, 2  ;;  %v3512_v43 = vrot.slane %v3510_v45, 2  ;;  %v3515_v50 = vrot.slane %v3513_v22, 2  ;;  %v3880_v27 = vld [vmem:[#allocation8 + $0xde8] sm:$0xff]  ;;  %v3550_v7 = vrot.slane %v3540_v30, %v15570_v48 }
 0x246   :  { %v3521_v17 = vsel %vm16325_vm13, %v13123_v54, %v16385_v15  ;;  %v3508_v24 = vsel %vm16325_vm13, %v3506_v12, %v3507_v59  ;;  %5333 = vmatprep.subr.bf16.mxu0 %v13183_v1  ;;  %v3557_v18 = vrot.slane %v3541_v4, %v15570_v48  ;;  %v13311_v23 = vcombine.high %v3876_v62, %v3880_v27  ;;  %v16422_v55 = vld [vmem:[#allocation8 + $0xda8] sm:$0xff] }
 0x247   :  { %v3511_v5 = vsel %vm16325_vm13, %v3509_v49, %v3510_v45  ;;  %v3514_v38 = vsel %vm16325_vm13, %v3512_v43, %v3513_v22  ;;  %v3517_v39 = vsel %vm16325_vm13, %v3515_v50, %v3516_v25  ;;  %v3542_v16 = vcombine.low %v3505_v63, %v3508_v24  ;;  %v16424_v19 = vld [vmem:[#allocation8 + $0x948] sm:$0xff] }
 0x248   :  { %v3576_v61 = vcombine.low %v3511_v5, %v3514_v38  ;;  %v3543_v8 = vcombine.high %v3505_v63, %v3508_v24  ;;  %v3578_v42 = vcombine.low %v3517_v39, %v3521_v17  ;;  %v3577_v6 = vcombine.high %v3511_v5, %v3514_v38  ;;  %v16426_v11 = vld [vmem:[#allocation8 + $0x968] sm:$0xff]  ;;  %5386 = vmatprep.subr.bf16.mxu1 %v13311_v23 }
 0x249   :  { %v3579_v29 = vcombine.high %v3517_v39, %v3521_v17  ;;  %v3564_v53 = vrot.slane %v3542_v16, %v15570_v48  ;;  %v14499_v37 = vld [vmem:[#allocation2 + $0x54] ss:$8 sps:$4 sm:$0xff]   ;;  %v13182_v46 = vcombine.low %v16387_v57, %v16389_v3  ;;  %v13310_v59 = vcombine.low %v3876_v62, %v3880_v27 }
 0x24a   :  { %v3586_v32 = vrot.slane %v3576_v61, %v15570_v48  ;;  %v3571_v58 = vrot.slane %v3543_v8, %v15570_v48  ;;  %v3600_v26 = vrot.slane %v3578_v42, %v15570_v48  ;;  %v3593_v34 = vrot.slane %v3577_v6, %v15570_v48  ;;  %v14500_v52 = vld [vmem:[#allocation2 + $0x60] ss:$8 sps:$4 sm:$0xff]   ;;  %v14502_v56 = vld [vmem:[#allocation2 + $0x64] ss:$8 sps:$4 sm:$0x77]   ;;  %v16442_v30 = vld [vmem:[#allocation8 + $0xd48] sm:$0xff] }
 0x24b   :  { %v3607_v13 = vrot.slane %v3579_v29, %v15570_v48  ;;  %v3572_v51 = vcombine.low %v3550_v7, %v3564_v53  ;;  %v3573_v41 = vcombine.high %v3550_v7, %v3564_v53  ;;  %v14503_v14 = vld [vmem:[#allocation2 + $0x70] ss:$8 sps:$4 sm:$0xff]   ;;  %v13174_v45 = vcombine.low %v16409_v36, %v16411_v9  ;;  %v14505_v25 = vld [vmem:[#allocation2 + $0x74] ss:$8 sps:$4 sm:$0x77]  }
 0x24c   :  { %v3574_v0 = vcombine.low %v3557_v18, %v3571_v58  ;;  %v3575_v35 = vcombine.high %v3557_v18, %v3571_v58  ;;  %v3608_v33 = vcombine.low %v3586_v32, %v3600_v26  ;;  %v3609_v31 = vcombine.high %v3586_v32, %v3600_v26  ;;  %v16444_v57 = vld [vmem:[#allocation8 + $0xd68] sm:$0xff] }
 0x24d   :  { %v3610_v28 = vcombine.low %v3593_v34, %v3607_v13  ;;  %v3611_v21 = vcombine.high %v3593_v34, %v3607_v13  ;;  %v13175_v22 = vcombine.high %v16409_v36, %v16411_v9  ;;  %v13302_v3 = vcombine.low %v16420_v47, %v16422_v55  ;;  %v16467_v27 = vld [vmem:[#allocation8 + $0x908] sm:$0xff] }
 0x24e   :  { %v16434_v54 = vpack.c.bf16 %v3609_v31, %v3573_v41  ;;  %v16438_v49 = vpack.c.bf16 %v3608_v33, %v3572_v51  ;;  %v13303_v63 = vcombine.high %v16420_v47, %v16422_v55  ;;  %v13166_v50 = vcombine.low %v16424_v19, %v16426_v11  ;;  %v3728_v7 = vld [vmem:[#allocation8 + $0x928] sm:$0xff] }
 0x24f   :  { %v16436_v12 = vpack.c.bf16 %v3611_v21, %v3575_v35  ;;  %v16440_v43 = vpack.c.bf16 %v3610_v28, %v3574_v0  ;;  %v13167_v17 = vcombine.high %v16424_v19, %v16426_v11  ;;  %v3437_v4 = vrot.slane %v14498_v20, %v15570_v48  ;;  %v3856_v13 = vld [vmem:[#allocation8 + $0xd28] sm:$0xff] }
 0x250   :  { %5259 = vmatprep.mubr.bf16.mxu0 %v16434_v54  ;;  %v3451_v24 = vrot.slane %v14499_v37, %v15570_v48  ;;  %v3466_v5 = vrot.slane %v14500_v52, %v15570_v48  ;;  %v3473_v38 = vrot.slane %v14502_v56, %v15570_v48  ;;  %v3480_v1 = vrot.slane %v14503_v14, %v15570_v48  ;;  %v3716_v28 = vld [vmem:[#allocation8 + $0x8c8] sm:$0xff] }
 0x251   :  { %5312 = vmatprep.mubr.bf16.mxu1 %v16436_v12  ;;  %5260 = vmatmul.mubr.bf16.vlgmr.msra.gmra.mxu0 %v16438_v49  ;;  %v3487_v39 = vrot.slane %v14505_v25, %v15570_v48  ;;  %v13295_v16 = vcombine.high %v16442_v30, %v16444_v57  ;;  %v3522_v62 = vrot.slane %v16385_v15, 2  ;;  %v13294_v36 = vcombine.low %v16442_v30, %v16444_v57  ;;  %v3852_v15 = vld [vmem:[#allocation8 + $0xd08] sm:$0xff] }
 0x252   :  { %5313 = vmatmul.mubr.bf16.vlgmr.msra.gmra.mxu1 %v16440_v43  ;;  %5334 = vmatpush1.bf16.msra.mxu0 %v13182_v46  ;;  %v3454_v61 = vcombine.low %v3437_v4, %v3451_v24  ;;  %v3455_v8 = vcombine.high %v3437_v4, %v3451_v24  ;;  %v3488_v42 = vcombine.low %v3466_v5, %v3480_v1  ;;  %v3720_v21 = vld [vmem:[#allocation8 + $0x8e8] sm:$0xff] }
 0x253   :  { %5387 = vmatpush1.bf16.msra.mxu1 %v13310_v59  ;;  %5335 = vmatprep.subr.bf16.mxu0 %v13175_v22  ;;  %v3489_v6 = vcombine.high %v3466_v5, %v3480_v1  ;;  %v3490_v29 = vcombine.low %v3473_v38, %v3487_v39  ;;  %v3491_v9 = vcombine.high %v3473_v38, %v3487_v39  ;;  %v3844_v25 = vld [vmem:[#allocation8 + $0xcc8] sm:$0xff] }
 0x254   :  { %5388 = vmatprep.subr.bf16.mxu1 %v13303_v63  ;;  %v3523_v53 = vrot.slane %v3454_v61, 7  ;;  %v3526_v32 = vrot.slane %v3455_v8, 7  ;;  %v3529_v18 = vrot.slane %v3488_v42, 7  ;;  %v13158_v34 = vcombine.low %v16467_v27, %v3728_v7  ;;  %v3848_v30 = vld [vmem:[#allocation8 + $0xce8] sm:$0xff] }
 0x255   :  { %v3532_v58 = vrot.slane %v3489_v6, 7  ;;  %v3535_v26 = vrot.slane %v3490_v29, 7  ;;  %v13159_v51 = vcombine.high %v16467_v27, %v3728_v7  ;;  %v3538_v19 = vrot.slane %v3491_v9, 7  ;;  %v3708_v8 = vld [vmem:[#allocation8 + $0x888] sm:$0xff] }
 0x256   :  { %5336 = vmatpush1.bf16.msra.mxu0 %v13174_v45  ;;  %v3524_v23 = vsel %vm16325_vm13, %v3522_v62, %v3523_v53  ;;  %v3525_v47 = vrot.slane %v3523_v53, 2  ;;  %v3528_v55 = vrot.slane %v3526_v32, 2  ;;  %v3531_v41 = vrot.slane %v3529_v18, 2  ;;  %v3712_v7 = vld [vmem:[#allocation8 + $0x8a8] sm:$0xff] }
 0x257   :  { %5389 = vmatpush1.bf16.msra.mxu1 %v13302_v3  ;;  %5337 = vmatprep.subr.bf16.mxu0 %v13167_v17  ;;  %v3534_v0 = vrot.slane %v3532_v58, 2  ;;  %v3537_v35 = vrot.slane %v3535_v26, 2  ;;  %v13286_v33 = vcombine.low %v3852_v15, %v3856_v13  ;;  %v13287_v31 = vcombine.high %v3852_v15, %v3856_v13  ;;  %v3836_v42 = vld [vmem:[#allocation8 + $0xc88] sm:$0xff] }
 0x258   :  { %5390 = vmatprep.subr.bf16.mxu1 %v13295_v16  ;;  %v3527_v11 = vsel %vm16325_vm13, %v3525_v47, %v3526_v32  ;;  %v3530_v20 = vsel %vm16325_vm13, %v3528_v55, %v3529_v18  ;;  %v3533_v37 = vsel %vm16325_vm13, %v3531_v41, %v3532_v58  ;;  %v13151_v63 = vcombine.high %v3716_v28, %v3720_v21  ;;  %v3840_v6 = vld [vmem:[#allocation8 + $0xca8] sm:$0xff] }
 0x259   :  { %v3536_v52 = vsel %vm16325_vm13, %v3534_v0, %v3535_v26  ;;  %v3539_v14 = vsel %vm16325_vm13, %v3537_v35, %v3538_v19  ;;  %v3612_v46 = vcombine.low %v3524_v23, %v3527_v11  ;;  %v3614_v59 = vcombine.low %v3530_v20, %v3533_v37  ;;  %v3700_v18 = vld [vmem:[#allocation8 + $0x848] sm:$0xff] }
 0x25a   :  { %v3648_v45 = vcombine.low %v3536_v52, %v3539_v14  ;;  %v3613_v22 = vcombine.high %v3524_v23, %v3527_v11  ;;  %v3615_v56 = vcombine.high %v3530_v20, %v3533_v37  ;;  %5338 = vmatpush1.bf16.msra.mxu0 %v13166_v50  ;;  %v3649_v3 = vcombine.high %v3536_v52, %v3539_v14  ;;  %v3704_v58 = vld [vmem:[#allocation8 + $0x868] sm:$0xff] }
 0x25b   :  { %v3622_v57 = vrot.slane %v3612_v46, %v15570_v48  ;;  %5391 = vmatpush1.bf16.msra.mxu1 %v13294_v36  ;;  %5339 = vmatprep.subr.bf16.mxu0 %v13159_v51  ;;  %v3636_v17 = vrot.slane %v3614_v59, %v15570_v48  ;;  %v13150_v50 = vcombine.low %v3716_v28, %v3720_v21  ;;  %v3828_v13 = vld [vmem:[#allocation8 + $0xc48] sm:$0xff] }
 0x25c   :  { %v3656_v4 = vrot.slane %v3648_v45, %v15570_v48  ;;  %v3629_v44 = vrot.slane %v3613_v22, %v15570_v48  ;;  %v3643_v24 = vrot.slane %v3615_v56, %v15570_v48  ;;  %5392 = vmatprep.subr.bf16.mxu1 %v13287_v31  ;;  %v3663_v5 = vrot.slane %v3649_v3, %v15570_v48  ;;  %v3832_v23 = vld [vmem:[#allocation8 + $0xc68] sm:$0xff] }
 0x25d   :  { %v13279_v38 = vcombine.high %v3844_v25, %v3848_v30  ;;  %v3645_v1 = vcombine.high %v3622_v57, %v3636_v17  ;;  %v3644_v61 = vcombine.low %v3622_v57, %v3636_v17  ;;  %v13278_v32 = vcombine.low %v3844_v25, %v3848_v30  ;;  %v3692_v51 = vld [vmem:[#allocation8 + $0x808] sm:$0xff] }
 0x25e   :  { %v3664_v39 = vcombine.high %v3656_v4, %v3656_v4  ;;  %v3647_v16 = vcombine.high %v3629_v44, %v3643_v24  ;;  %5340 = vmatpush1.bf16.msra.mxu0 %v13158_v34  ;;  %v3665_v62 = vcombine.high %v3663_v5, %v3663_v5  ;;  %v3646_v27 = vcombine.low %v3629_v44, %v3643_v24  ;;  %v3696_v41 = vld [vmem:[#allocation8 + $0x828] sm:$0xff] }
 0x25f   :  { %5393 = vmatpush1.bf16.msra.mxu1 %v13286_v33  ;;  %5341 = vmatprep.subr.bf16.mxu0 %v13151_v63  ;;  %v16493_v36 = vpack.c.bf16 %v3656_v4, %v3644_v61  ;;  %v13143_v26 = vcombine.high %v3708_v8, %v3712_v7  ;;  %v13271_v34 = vcombine.high %v3836_v42, %v3840_v6  ;;  %v3820_v19 = vld [vmem:[#allocation8 + $0xc08] sm:$0xff] }
 0x260   :  { %v16491_v29 = vpack.c.bf16 %v3664_v39, %v3645_v1  ;;  %5394 = vmatprep.subr.bf16.mxu1 %v13279_v38  ;;  %v16495_v9 = vpack.c.bf16 %v3665_v62, %v3647_v16  ;;  %v16497_v53 = vpack.c.bf16 %v3663_v5, %v3646_v27  ;;  %v13142_v15 = vcombine.low %v3708_v8, %v3712_v7  ;;  %v3824_v11 = vld [vmem:[#allocation8 + $0xc28] sm:$0xff] }
 0x261   :  { %v13135_v47 = vcombine.high %v3700_v18, %v3704_v58  ;;  %v13270_v55 = vcombine.low %v3836_v42, %v3840_v6  ;;  %v13263_v0 = vcombine.high %v3828_v13, %v3832_v23  ;;  %v13134_v35 = vcombine.low %v3700_v18, %v3704_v58  ;;  %v3812_v31 = vld [vmem:[#allocation8 + $0xbc8] sm:$0xff] }
 0x262   :  { %5269 = vmatprep.mubr.bf16.mxu0 %v16491_v29  ;;  %5342 = vmatpush1.bf16.msra.mxu0 %v13150_v50  ;;  %v13127_v20 = vcombine.high %v3692_v51, %v3696_v41  ;;  %v13262_v33 = vcombine.low %v3828_v13, %v3832_v23  ;;  %v3816_v28 = vld [vmem:[#allocation8 + $0xbe8] sm:$0xff]  ;;  %v13255_v21 = vcombine.high %v3820_v19, %v3824_v11 }
 0x263   :  { %5322 = vmatprep.mubr.bf16.mxu1 %v16495_v9  ;;  %5270 = vmatmul.mubr.bf16.gmra.mxu0 %v16493_v36  ;;  %v13126_v37 = vcombine.low %v3692_v51, %v3696_v41  ;;  %v3940_v52 = vld [vmem:[#allocation8 + $0xfc8] sm:$0xff]  ;;  %v13247_v46 = vcombine.high %v3812_v31, %v3816_v28  ;;  %v13254_v59 = vcombine.low %v3820_v19, %v3824_v11 }
 0x264   :  { %5323 = vmatmul.mubr.bf16.gmra.mxu1 %v16497_v53  ;;  %5365 = vmatprep.mubr.bf16.mxu0 %v16434_v54  ;;  %v3944_v14 = vld [vmem:[#allocation8 + $0xfe8] sm:$0xff]  ;;  %v13246_v25 = vcombine.low %v3812_v31, %v3816_v28 }
 0x265   :  { %5418 = vmatprep.mubr.bf16.mxu1 %v16436_v12  ;;  %5395 = vmatpush1.bf16.msra.mxu1 %v13278_v32  ;;  %v3804_v45 = vld [vmem:[#allocation8 + $0xb88] sm:$0xff]  ;;  %v13375_v56 = vcombine.high %v3940_v52, %v3944_v14  ;;  %v13374_v63 = vcombine.low %v3940_v52, %v3944_v14 }
 0x266   :  { %5343 = vmatprep.subr.bf16.mxu0 %v13143_v26  ;;  %5396 = vmatprep.subr.bf16.mxu1 %v13271_v34  ;;  %v3808_v22 = vld [vmem:[#allocation8 + $0xba8] sm:$0xff] }
 0x267   :  { %5344 = vmatpush1.bf16.msra.mxu0 %v13142_v15  ;;  %v3932_v30 = vld [vmem:[#allocation8 + $0xf88] sm:$0xff]  ;;  %v13239_v3 = vcombine.high %v3804_v45, %v3808_v22  ;;  %v13238_v24 = vcombine.low %v3804_v45, %v3808_v22 }
 0x268   :  { %5345 = vmatprep.subr.bf16.mxu0 %v13135_v47  ;;  %v3936_v57 = vld [vmem:[#allocation8 + $0xfa8] sm:$0xff] }
 0x269   :  { %5397 = vmatpush1.bf16.msra.mxu1 %v13270_v55  ;;  %v3796_v17 = vld [vmem:[#allocation8 + $0xb48] sm:$0xff]  ;;  %v13367_v44 = vcombine.high %v3932_v30, %v3936_v57  ;;  %v13366_v1 = vcombine.low %v3932_v30, %v3936_v57  ;;  %v3749_v57 = vld [vmem:[#allocation8 + $0x9d0] sm:$0xff] }
 0x26a   :  { %5398 = vmatprep.subr.bf16.mxu1 %v13263_v0  ;;  %v3800_v4 = vld [vmem:[#allocation8 + $0xb68] sm:$0xff] }
 0x26b   :  { %5346 = vmatpush1.bf16.msra.mxu0 %v13134_v35  ;;  %v3924_v5 = vld [vmem:[#allocation8 + $0xf48] sm:$0xff]  ;;  %v13231_v38 = vcombine.high %v3796_v17, %v3800_v4  ;;  %v13230_v8 = vcombine.low %v3796_v17, %v3800_v4  ;;  %v3877_v4 = vld [vmem:[#allocation8 + $0xdd0] sm:$0xff] }
 0x26c   :  { %5347 = vmatprep.subr.bf16.mxu0 %v13127_v20  ;;  %v3928_v50 = vld [vmem:[#allocation8 + $0xf68] sm:$0xff] }
 0x26d   :  { %5399 = vmatpush1.bf16.msra.mxu1 %v13262_v33  ;;  %v3788_v39 = vld [vmem:[#allocation8 + $0xb08] sm:$0xff]  ;;  %v13359_v61 = vcombine.high %v3924_v5, %v3928_v50  ;;  %v13358_v42 = vcombine.low %v3924_v5, %v3928_v50  ;;  %v3741_v50 = vld [vmem:[#allocation8 + $0x990] sm:$0xff] }
 0x26e   :  { %5400 = vmatprep.subr.bf16.mxu1 %v13255_v21  ;;  %v3792_v16 = vld [vmem:[#allocation8 + $0xb28] sm:$0xff] }
 0x26f   :  { %5348 = vmatpush1.bf16.msra.mxu0 %v13126_v37  ;;  %v3916_v62 = vld [vmem:[#allocation8 + $0xf08] sm:$0xff]  ;;  %v13223_v7 = vcombine.high %v3788_v39, %v3792_v16  ;;  %v13222_v58 = vcombine.low %v3788_v39, %v3792_v16  ;;  %v3869_v16 = vld [vmem:[#allocation8 + $0xd90] sm:$0xff] }
 0x270   :  { %5349 = vmatprep.subr.bf16.mxu0 %v13247_v46  ;;  %v3920_v27 = vld [vmem:[#allocation8 + $0xf28] sm:$0xff] }
 0x271   :  { %5401 = vmatpush1.bf16.msra.mxu1 %v13254_v59  ;;  %v3780_v6 = vld [vmem:[#allocation8 + $0xac8] sm:$0xff]  ;;  %v13351_v18 = vcombine.high %v3916_v62, %v3920_v27  ;;  %v13350_v13 = vcombine.low %v3916_v62, %v3920_v27  ;;  %v3733_v27 = vld [vmem:[#allocation8 + $0x950] sm:$0xff] }
 0x272   :  { %5402 = vmatprep.subr.bf16.mxu1 %v13375_v56  ;;  %v3784_v32 = vld [vmem:[#allocation8 + $0xae8] sm:$0xff] }
 0x273   :  { %5350 = vmatpush2.bf16.msra.mxu0 %v13246_v25  ;;  %v3908_v26 = vld [vmem:[#allocation8 + $0xec8] sm:$0xff]  ;;  %v13215_v15 = vcombine.high %v3780_v6, %v3784_v32  ;;  %v13214_v51 = vcombine.low %v3780_v6, %v3784_v32  ;;  %v3861_v32 = vld [vmem:[#allocation8 + $0xd50] sm:$0xff] }
 0x274   :  { %5351 = vmatprep.subr.bf16.mxu0 %v13239_v3  ;;  %v3912_v34 = vld [vmem:[#allocation8 + $0xee8] sm:$0xff]  ;;  %v3753_v3 = vld [vmem:[#allocation8 + $0x9f0] sm:$0xff] }
 0x275   :  { %5403 = vmatpush2.bf16.msra.mxu1 %v13374_v63  ;;  %v3772_v23 = vld [vmem:[#allocation8 + $0xa88] sm:$0xff]  ;;  %v13343_v55 = vcombine.high %v3908_v26, %v3912_v34  ;;  %v13342_v19 = vcombine.low %v3908_v26, %v3912_v34  ;;  %v13184_v39 = vcombine.low %v3749_v57, %v3753_v3  ;;  %v3725_v34 = vld [vmem:[#allocation8 + $0x910] sm:$0xff] }
 0x276   :  { %5404 = vmatprep.subr.bf16.mxu1 %v13367_v44  ;;  %v3776_v47 = vld [vmem:[#allocation8 + $0xaa8] sm:$0xff]  ;;  %v3881_v44 = vld [vmem:[#allocation8 + $0xdf0] sm:$0xff] }
 0x277   :  { %5352 = vmatpush2.bf16.msra.mxu0 %v13238_v24  ;;  %v3900_v41 = vld [vmem:[#allocation8 + $0xe88] sm:$0xff]  ;;  %v13207_v35 = vcombine.high %v3772_v23, %v3776_v47  ;;  %v13206_v31 = vcombine.low %v3772_v23, %v3776_v47  ;;  %v13185_v24 = vcombine.high %v3749_v57, %v3753_v3  ;;  %v13312_v62 = vcombine.low %v3877_v4, %v3881_v44  ;;  %v3853_v47 = vld [vmem:[#allocation8 + $0xd10] sm:$0xff] }
 0x278   :  { %5353 = vmatprep.subr.bf16.mxu0 %v13231_v38  ;;  %v3904_v0 = vld [vmem:[#allocation8 + $0xea8] sm:$0xff]  ;;  %v3745_v38 = vld [vmem:[#allocation8 + $0x9b0] sm:$0xff] }
 0x279   :  { %5405 = vmatpush2.bf16.msra.mxu1 %v13366_v1  ;;  %v3764_v11 = vld [vmem:[#allocation8 + $0xa48] sm:$0xff]  ;;  %v13335_v33 = vcombine.high %v3900_v41, %v3904_v0  ;;  %v13334_v52 = vcombine.low %v3900_v41, %v3904_v0  ;;  %v13313_v1 = vcombine.high %v3877_v4, %v3881_v44  ;;  %v13176_v6 = vcombine.low %v3741_v50, %v3745_v38  ;;  %v3717_v0 = vld [vmem:[#allocation8 + $0x8d0] sm:$0xff] }
 0x27a   :  { %5406 = vmatprep.subr.bf16.mxu1 %v13359_v61  ;;  %v3768_v20 = vld [vmem:[#allocation8 + $0xa68] sm:$0xff]  ;;  %v3873_v61 = vld [vmem:[#allocation8 + $0xdb0] sm:$0xff] }
 0x27b   :  { %5354 = vmatpush2.bf16.msra.mxu0 %v13230_v8  ;;  %v3892_v28 = vld [vmem:[#allocation8 + $0xe48] sm:$0xff]  ;;  %v13199_v37 = vcombine.high %v3764_v11, %v3768_v20  ;;  %v13198_v45 = vcombine.low %v3764_v11, %v3768_v20  ;;  %v13177_v8 = vcombine.high %v3741_v50, %v3745_v38  ;;  %v13304_v26 = vcombine.low %v3869_v16, %v3873_v61  ;;  %v3845_v20 = vld [vmem:[#allocation8 + $0xcd0] sm:$0xff] }
 0x27c   :  { %5355 = vmatprep.subr.bf16.mxu0 %v13223_v7  ;;  %v3896_v21 = vld [vmem:[#allocation8 + $0xe68] sm:$0xff]  ;;  %v3737_v7 = vld [vmem:[#allocation8 + $0x970] sm:$0xff] }
 0x27d   :  { %5407 = vmatpush2.bf16.msra.mxu1 %v13358_v42  ;;  %v3756_v14 = vld [vmem:[#allocation8 + $0xa08] sm:$0xff]  ;;  %v13327_v59 = vcombine.high %v3892_v28, %v3896_v21  ;;  %v13326_v30 = vcombine.low %v3892_v28, %v3896_v21  ;;  %v13305_v42 = vcombine.high %v3869_v16, %v3873_v61  ;;  %v13168_v23 = vcombine.low %v3733_v27, %v3737_v7  ;;  %v3709_v21 = vld [vmem:[#allocation8 + $0x890] sm:$0xff] }
 0x27e   :  { %5408 = vmatprep.subr.bf16.mxu1 %v13351_v18  ;;  %v3760_v46 = vld [vmem:[#allocation8 + $0xa28] sm:$0xff]  ;;  %v3865_v18 = vld [vmem:[#allocation8 + $0xd70] sm:$0xff] }
 0x27f   :  { %5356 = vmatpush2.bf16.msra.mxu0 %v13222_v58  ;;  %v3884_v22 = vld [vmem:[#allocation8 + $0xe08] sm:$0xff]  ;;  %v13191_v25 = vcombine.high %v3756_v14, %v3760_v46  ;;  %v13190_v17 = vcombine.low %v3756_v14, %v3760_v46  ;;  %v13169_v58 = vcombine.high %v3733_v27, %v3737_v7  ;;  %v13296_v41 = vcombine.low %v3861_v32, %v3865_v18  ;;  %v3837_v46 = vld [vmem:[#allocation8 + $0xc90] sm:$0xff] }
 0x280   :  { %5357 = vmatprep.subr.bf16.mxu0 %v13215_v15  ;;  %v3888_v56 = vld [vmem:[#allocation8 + $0xe28] sm:$0xff]  ;;  %v3729_v15 = vld [vmem:[#allocation8 + $0x930] sm:$0xff] }
 0x281   :  { %5409 = vmatpush2.bf16.msra.mxu1 %v13350_v13  ;;  %v13319_v63 = vcombine.high %v3884_v22, %v3888_v56  ;;  %v13318_v5 = vcombine.low %v3884_v22, %v3888_v56  ;;  %v13297_v13 = vcombine.high %v3861_v32, %v3865_v18  ;;  %v13160_v11 = vcombine.low %v3725_v34, %v3729_v15  ;;  %v3701_v56 = vld [vmem:[#allocation8 + $0x850] sm:$0xff] }
 0x282   :  { %5410 = vmatprep.subr.bf16.mxu1 %v13343_v55  ;;  %v3857_v55 = vld [vmem:[#allocation8 + $0xd30] sm:$0xff] }
 0x283   :  { %5358 = vmatpush2.bf16.msra.mxu0 %v13214_v51  ;;  %v13161_v51 = vcombine.high %v3725_v34, %v3729_v15  ;;  %v13288_v28 = vcombine.low %v3853_v47, %v3857_v55  ;;  %v3829_v3 = vld [vmem:[#allocation8 + $0xc50] sm:$0xff] }
 0x284   :  { %5359 = vmatprep.subr.bf16.mxu0 %v13207_v35  ;;  %v3721_v35 = vld [vmem:[#allocation8 + $0x8f0] sm:$0xff] }
 0x285   :  { %5411 = vmatpush2.bf16.msra.mxu1 %v13342_v19  ;;  %v13289_v19 = vcombine.high %v3853_v47, %v3857_v55  ;;  %v13152_v14 = vcombine.low %v3717_v0, %v3721_v35  ;;  %v3693_v44 = vld [vmem:[#allocation8 + $0x810] sm:$0xff] }
 0x286   :  { %5412 = vmatprep.subr.bf16.mxu1 %v13335_v33  ;;  %v3849_v33 = vld [vmem:[#allocation8 + $0xcf0] sm:$0xff] }
 0x287   :  { %5360 = vmatpush2.bf16.msra.mxu0 %v13206_v31  ;;  %v13153_v31 = vcombine.high %v3717_v0, %v3721_v35  ;;  %v13280_v22 = vcombine.low %v3845_v20, %v3849_v33  ;;  %v3821_v38 = vld [vmem:[#allocation8 + $0xc10] sm:$0xff] }
 0x288   :  { %5361 = vmatprep.subr.bf16.mxu0 %v13199_v37  ;;  %v3713_v37 = vld [vmem:[#allocation8 + $0x8b0] sm:$0xff] }
 0x289   :  { %5413 = vmatpush2.bf16.msra.mxu1 %v13334_v52  ;;  %v13281_v52 = vcombine.high %v3845_v20, %v3849_v33  ;;  %v13144_v57 = vcombine.low %v3709_v21, %v3713_v37  ;;  %v3813_v61 = vld [vmem:[#allocation8 + $0xbd0] sm:$0xff] }
 0x28a   :  { %5414 = vmatprep.subr.bf16.mxu1 %v13327_v59  ;;  %v3841_v59 = vld [vmem:[#allocation8 + $0xcb0] sm:$0xff] }
 0x28b   :  { %5362 = vmatpush2.bf16.msra.mxu0 %v13198_v45  ;;  %v13145_v45 = vcombine.high %v3709_v21, %v3713_v37  ;;  %v13272_v4 = vcombine.low %v3837_v46, %v3841_v59  ;;  %v3941_v7 = vld [vmem:[#allocation8 + $0xfd0] sm:$0xff] }
 0x28c   :  { %5363 = vmatprep.subr.bf16.mxu0 %v13191_v25  ;;  %v3705_v25 = vld [vmem:[#allocation8 + $0x870] sm:$0xff] }
 0x28d   :  { %5415 = vmatpush2.bf16.msra.mxu1 %v13326_v30  ;;  %v13273_v30 = vcombine.high %v3837_v46, %v3841_v59  ;;  %v13136_v50 = vcombine.low %v3701_v56, %v3705_v25  ;;  %v3805_v18 = vld [vmem:[#allocation8 + $0xb90] sm:$0xff] }
 0x28e   :  { %5416 = vmatprep.subr.bf16.mxu1 %v13319_v63  ;;  %v3833_v63 = vld [vmem:[#allocation8 + $0xc70] sm:$0xff] }
 0x28f   :  { %5364 = vmatpush2.bf16.msra.mxu0 %v13190_v17  ;;  %v13137_v17 = vcombine.high %v3701_v56, %v3705_v25  ;;  %v13264_v16 = vcombine.low %v3829_v3, %v3833_v63  ;;  %v3933_v15 = vld [vmem:[#allocation8 + $0xf90] sm:$0xff] }
 0x290   :  { %5439 = vmatprep.subr.bf16.mxu0 %v13185_v24  ;;  %v3697_v24 = vld [vmem:[#allocation8 + $0x830] sm:$0xff] }
 0x291   :  { %5417 = vmatpush2.bf16.msra.mxu1 %v13318_v5  ;;  %v13265_v5 = vcombine.high %v3829_v3, %v3833_v63  ;;  %v13128_v27 = vcombine.low %v3693_v44, %v3697_v24  ;;  %v3797_v55 = vld [vmem:[#allocation8 + $0xb50] sm:$0xff] }
 0x292   :  { %5366 = vmatmul.mubr.bf16.vlgmr.msra.gmra.mxu0 %v16438_v49  ;;  %5492 = vmatprep.subr.bf16.mxu1 %v13313_v1  ;;  %v3825_v1 = vld [vmem:[#allocation8 + $0xc30] sm:$0xff] }
 0x293   :  { %5375 = vmatprep.mubr.bf16.mxu0 %v16491_v29  ;;  %5440 = vmatpush1.bf16.msra.mxu0 %v13184_v39  ;;  %v13129_v39 = vcombine.high %v3693_v44, %v3697_v24  ;;  %v13256_v32 = vcombine.low %v3821_v38, %v3825_v1  ;;  %v3925_v35 = vld [vmem:[#allocation8 + $0xf50] sm:$0xff] }
 0x294   :  { %5419 = vmatmul.mubr.bf16.vlgmr.msra.gmra.mxu1 %v16440_v43  ;;  %5441 = vmatprep.subr.bf16.mxu0 %v13177_v8  ;;  %v3817_v8 = vld [vmem:[#allocation8 + $0xbf0] sm:$0xff] }
 0x295   :  { %5428 = vmatprep.mubr.bf16.mxu1 %v16495_v9  ;;  %5493 = vmatpush1.bf16.msra.mxu1 %v13312_v62  ;;  %v13257_v62 = vcombine.high %v3821_v38, %v3825_v1  ;;  %v13248_v34 = vcombine.low %v3813_v61, %v3817_v8  ;;  %v3789_v33 = vld [vmem:[#allocation8 + $0xb10] sm:$0xff] }
 0x296   :  { %5494 = vmatprep.subr.bf16.mxu1 %v13305_v42  ;;  %v3945_v42 = vld [vmem:[#allocation8 + $0xff0] sm:$0xff] }
 0x297   :  { %5442 = vmatpush1.bf16.msra.mxu0 %v13176_v6  ;;  %v13249_v6 = vcombine.high %v3813_v61, %v3817_v8  ;;  %v13376_v47 = vcombine.low %v3941_v7, %v3945_v42  ;;  %v3917_v37 = vld [vmem:[#allocation8 + $0xf10] sm:$0xff] }
 0x298   :  { %5443 = vmatprep.subr.bf16.mxu0 %v13169_v58  ;;  %v3809_v58 = vld [vmem:[#allocation8 + $0xbb0] sm:$0xff] }
 0x299   :  { %5495 = vmatpush1.bf16.msra.mxu1 %v13304_v26  ;;  %v13377_v26 = vcombine.high %v3941_v7, %v3945_v42  ;;  %v13240_v0 = vcombine.low %v3805_v18, %v3809_v58  ;;  %v3781_v59 = vld [vmem:[#allocation8 + $0xad0] sm:$0xff] }
 0x29a   :  { %5376 = vmatmul.mubr.bf16.gmra.mxu0 %v16493_v36  ;;  %5496 = vmatprep.subr.bf16.mxu1 %v13297_v13  ;;  %v3937_v13 = vld [vmem:[#allocation8 + $0xfb0] sm:$0xff] }
 0x29b   :  { %5444 = vmatpush1.bf16.msra.mxu0 %v13168_v23  ;;  %5471 = vmatprep.mubr.bf16.mxu0 %v16434_v54  ;;  %v13241_v23 = vcombine.high %v3805_v18, %v3809_v58  ;;  %v13368_v20 = vcombine.low %v3933_v15, %v3937_v13  ;;  %v3909_v25 = vld [vmem:[#allocation8 + $0xed0] sm:$0xff] }
 0x29c   :  { %5429 = vmatmul.mubr.bf16.gmra.mxu1 %v16497_v53  ;;  %5445 = vmatprep.subr.bf16.mxu0 %v13161_v51  ;;  %v3801_v51 = vld [vmem:[#allocation8 + $0xb70] sm:$0xff] }
 0x29d   :  { %5497 = vmatpush1.bf16.msra.mxu1 %v13296_v41  ;;  %5524 = vmatprep.mubr.bf16.mxu1 %v16436_v12  ;;  %v13369_v41 = vcombine.high %v3933_v15, %v3937_v13  ;;  %v13232_v21 = vcombine.low %v3797_v55, %v3801_v51  ;;  %v3773_v63 = vld [vmem:[#allocation8 + $0xa90] sm:$0xff]  ;;  %v3750_v13 = vld [vmem:[#allocation8 + $0x9d8] sm:$0xff] }
 0x29e   :  { %5498 = vmatprep.subr.bf16.mxu1 %v13289_v19  ;;  %v3929_v19 = vld [vmem:[#allocation8 + $0xf70] sm:$0xff] }
 0x29f   :  { %5446 = vmatpush1.bf16.msra.mxu0 %v13160_v11  ;;  %v13233_v11 = vcombine.high %v3797_v55, %v3801_v51  ;;  %v13360_v46 = vcombine.low %v3925_v35, %v3929_v19  ;;  %v3901_v24 = vld [vmem:[#allocation8 + $0xe90] sm:$0xff]  ;;  %v3878_v51 = vld [vmem:[#allocation8 + $0xdd8] sm:$0xff] }
 0x2a0   :  { %5447 = vmatprep.subr.bf16.mxu0 %v13153_v31  ;;  %v3793_v31 = vld [vmem:[#allocation8 + $0xb30] sm:$0xff] }
 0x2a1   :  { %5499 = vmatpush1.bf16.msra.mxu1 %v13288_v28  ;;  %v13361_v28 = vcombine.high %v3925_v35, %v3929_v19  ;;  %v13224_v56 = vcombine.low %v3789_v33, %v3793_v31  ;;  %v3765_v1 = vld [vmem:[#allocation8 + $0xa50] sm:$0xff]  ;;  %v3742_v19 = vld [vmem:[#allocation8 + $0x998] sm:$0xff] }
 0x2a2   :  { %5500 = vmatprep.subr.bf16.mxu1 %v13281_v52  ;;  %v3921_v52 = vld [vmem:[#allocation8 + $0xf30] sm:$0xff] }
 0x2a3   :  { %5448 = vmatpush1.bf16.msra.mxu0 %v13152_v14  ;;  %v13225_v14 = vcombine.high %v3789_v33, %v3793_v31  ;;  %v13352_v3 = vcombine.low %v3917_v37, %v3921_v52  ;;  %v3893_v8 = vld [vmem:[#allocation8 + $0xe50] sm:$0xff]  ;;  %v3870_v31 = vld [vmem:[#allocation8 + $0xd98] sm:$0xff] }
 0x2a4   :  { %5449 = vmatprep.subr.bf16.mxu0 %v13145_v45  ;;  %v3785_v45 = vld [vmem:[#allocation8 + $0xaf0] sm:$0xff] }
 0x2a5   :  { %5501 = vmatpush1.bf16.msra.mxu1 %v13280_v22  ;;  %v13353_v22 = vcombine.high %v3917_v37, %v3921_v52  ;;  %v13216_v44 = vcombine.low %v3781_v59, %v3785_v45  ;;  %v3757_v42 = vld [vmem:[#allocation8 + $0xa10] sm:$0xff]  ;;  %v3734_v52 = vld [vmem:[#allocation8 + $0x958] sm:$0xff] }
 0x2a6   :  { %5502 = vmatprep.subr.bf16.mxu1 %v13273_v30  ;;  %v3913_v30 = vld [vmem:[#allocation8 + $0xef0] sm:$0xff] }
 0x2a7   :  { %5450 = vmatpush1.bf16.msra.mxu0 %v13144_v57  ;;  %v13217_v57 = vcombine.high %v3781_v59, %v3785_v45  ;;  %v13344_v38 = vcombine.low %v3909_v25, %v3913_v30  ;;  %v3885_v58 = vld [vmem:[#allocation8 + $0xe10] sm:$0xff]  ;;  %v3862_v45 = vld [vmem:[#allocation8 + $0xd58] sm:$0xff] }
 0x2a8   :  { %5451 = vmatprep.subr.bf16.mxu0 %v13137_v17  ;;  %v3777_v17 = vld [vmem:[#allocation8 + $0xab0] sm:$0xff] }
 0x2a9   :  { %5503 = vmatpush1.bf16.msra.mxu1 %v13272_v4  ;;  %v13345_v4 = vcombine.high %v3909_v25, %v3913_v30  ;;  %v13208_v61 = vcombine.low %v3773_v63, %v3777_v17  ;;  %v3726_v30 = vld [vmem:[#allocation8 + $0x918] sm:$0xff] }
 0x2aa   :  { %5504 = vmatprep.subr.bf16.mxu1 %v13265_v5  ;;  %v3905_v5 = vld [vmem:[#allocation8 + $0xeb0] sm:$0xff] }
 0x2ab   :  { %5452 = vmatpush1.bf16.msra.mxu0 %v13136_v50  ;;  %v13209_v50 = vcombine.high %v3773_v63, %v3777_v17  ;;  %v13336_v7 = vcombine.low %v3901_v24, %v3905_v5  ;;  %v3854_v17 = vld [vmem:[#allocation8 + $0xd18] sm:$0xff] }
 0x2ac   :  { %5453 = vmatprep.subr.bf16.mxu0 %v13129_v39  ;;  %v3769_v39 = vld [vmem:[#allocation8 + $0xa70] sm:$0xff] }
 0x2ad   :  { %5505 = vmatpush1.bf16.msra.mxu1 %v13264_v16  ;;  %v13337_v16 = vcombine.high %v3901_v24, %v3905_v5  ;;  %v13200_v18 = vcombine.low %v3765_v1, %v3769_v39  ;;  %v3718_v5 = vld [vmem:[#allocation8 + $0x8d8] sm:$0xff] }
 0x2ae   :  { %5506 = vmatprep.subr.bf16.mxu1 %v13257_v62  ;;  %v3897_v62 = vld [vmem:[#allocation8 + $0xe70] sm:$0xff] }
 0x2af   :  { %5454 = vmatpush1.bf16.msra.mxu0 %v13128_v27  ;;  %v13201_v27 = vcombine.high %v3765_v1, %v3769_v39  ;;  %v13328_v15 = vcombine.low %v3893_v8, %v3897_v62  ;;  %v3846_v39 = vld [vmem:[#allocation8 + $0xcd8] sm:$0xff] }
 0x2b0   :  { %5455 = vmatprep.subr.bf16.mxu0 %v13249_v6  ;;  %v3761_v6 = vld [vmem:[#allocation8 + $0xa30] sm:$0xff] }
 0x2b1   :  { %5507 = vmatpush1.bf16.msra.mxu1 %v13256_v32  ;;  %v13329_v32 = vcombine.high %v3893_v8, %v3897_v62  ;;  %v13192_v55 = vcombine.low %v3757_v42, %v3761_v6  ;;  %v3710_v62 = vld [vmem:[#allocation8 + $0x898] sm:$0xff] }
 0x2b2   :  { %5508 = vmatprep.subr.bf16.mxu1 %v13377_v26  ;;  %v3889_v26 = vld [vmem:[#allocation8 + $0xe30] sm:$0xff] }
 0x2b3   :  { %5456 = vmatpush2.bf16.msra.mxu0 %v13248_v34  ;;  %v13193_v34 = vcombine.high %v3757_v42, %v3761_v6  ;;  %v13320_v35 = vcombine.low %v3885_v58, %v3889_v26  ;;  %v3838_v6 = vld [vmem:[#allocation8 + $0xc98] sm:$0xff] }
 0x2b4   :  { %5457 = vmatprep.subr.bf16.mxu0 %v13241_v23  ;;  %v3754_v23 = vld [vmem:[#allocation8 + $0x9f8] sm:$0xff] }
 0x2b5   :  { %5509 = vmatpush2.bf16.msra.mxu1 %v13376_v47  ;;  %v13321_v47 = vcombine.high %v3885_v58, %v3889_v26  ;;  %v13186_v33 = vcombine.low %v3750_v13, %v3754_v23  ;;  %v3702_v58 = vld [vmem:[#allocation8 + $0x858] sm:$0xff] }
 0x2b6   :  { %5510 = vmatprep.subr.bf16.mxu1 %v13369_v41  ;;  %v3882_v41 = vld [vmem:[#allocation8 + $0xdf8] sm:$0xff] }
 0x2b7   :  { %5458 = vmatpush2.bf16.msra.mxu0 %v13240_v0  ;;  %v13187_v0 = vcombine.high %v3750_v13, %v3754_v23  ;;  %v13314_v37 = vcombine.low %v3878_v51, %v3882_v41  ;;  %v3706_v26 = vld [vmem:[#allocation8 + $0x878] sm:$0xff] }
 0x2b8   :  { %5459 = vmatprep.subr.bf16.mxu0 %v13233_v11  ;;  %v3746_v11 = vld [vmem:[#allocation8 + $0x9b8] sm:$0xff]  ;;  %v13139_v23 = vcombine.high %v3702_v58, %v3706_v26 }
 0x2b9   :  { %5511 = vmatpush2.bf16.msra.mxu1 %v13368_v20  ;;  %v13315_v20 = vcombine.high %v3878_v51, %v3882_v41  ;;  %v13178_v59 = vcombine.low %v3742_v19, %v3746_v11  ;;  %v3834_v13 = vld [vmem:[#allocation8 + $0xc78] sm:$0xff] }
 0x2ba   :  { %5512 = vmatprep.subr.bf16.mxu1 %v13361_v28  ;;  %v3874_v28 = vld [vmem:[#allocation8 + $0xdb8] sm:$0xff] }
 0x2bb   :  { %5460 = vmatpush2.bf16.msra.mxu0 %v13232_v21  ;;  %v13179_v21 = vcombine.high %v3742_v19, %v3746_v11  ;;  %v13306_v25 = vcombine.low %v3870_v31, %v3874_v28  ;;  %v3698_v51 = vld [vmem:[#allocation8 + $0x838] sm:$0xff] }
 0x2bc   :  { %5461 = vmatprep.subr.bf16.mxu0 %v13225_v14  ;;  %v3738_v14 = vld [vmem:[#allocation8 + $0x978] sm:$0xff] }
 0x2bd   :  { %5513 = vmatpush2.bf16.msra.mxu1 %v13360_v46  ;;  %v13307_v46 = vcombine.high %v3870_v31, %v3874_v28  ;;  %v13170_v63 = vcombine.low %v3734_v52, %v3738_v14  ;;  %v3826_v19 = vld [vmem:[#allocation8 + $0xc38] sm:$0xff] }
 0x2be   :  { %5514 = vmatprep.subr.bf16.mxu1 %v13353_v22  ;;  %v3866_v22 = vld [vmem:[#allocation8 + $0xd78] sm:$0xff] }
 0x2bf   :  { %5462 = vmatpush2.bf16.msra.mxu0 %v13224_v56  ;;  %v13171_v56 = vcombine.high %v3734_v52, %v3738_v14  ;;  %v13298_v24 = vcombine.low %v3862_v45, %v3866_v22  ;;  %v3818_v31 = vld [vmem:[#allocation8 + $0xbf8] sm:$0xff] }
 0x2c0   :  { %5463 = vmatprep.subr.bf16.mxu0 %v13217_v57  ;;  %v3730_v57 = vld [vmem:[#allocation8 + $0x938] sm:$0xff] }
 0x2c1   :  { %5515 = vmatpush2.bf16.msra.mxu1 %v13352_v3  ;;  %v13299_v3 = vcombine.high %v3862_v45, %v3866_v22  ;;  %v13162_v1 = vcombine.low %v3726_v30, %v3730_v57  ;;  %v3946_v52 = vld [vmem:[#allocation8 + $0xff8] sm:$0xff] }
 0x2c2   :  { %5516 = vmatprep.subr.bf16.mxu1 %v13345_v4  ;;  %v3858_v4 = vld [vmem:[#allocation8 + $0xd38] sm:$0xff] }
 0x2c3   :  { %5464 = vmatpush2.bf16.msra.mxu0 %v13216_v44  ;;  %v13163_v44 = vcombine.high %v3726_v30, %v3730_v57  ;;  %v13290_v8 = vcombine.low %v3854_v17, %v3858_v4  ;;  %v3810_v45 = vld [vmem:[#allocation8 + $0xbb8] sm:$0xff] }
 0x2c4   :  { %5465 = vmatprep.subr.bf16.mxu0 %v13209_v50  ;;  %v3722_v50 = vld [vmem:[#allocation8 + $0x8f8] sm:$0xff] }
 0x2c5   :  { %5517 = vmatpush2.bf16.msra.mxu1 %v13344_v38  ;;  %v13291_v38 = vcombine.high %v3854_v17, %v3858_v4  ;;  %v13154_v42 = vcombine.low %v3718_v5, %v3722_v50  ;;  %v3938_v30 = vld [vmem:[#allocation8 + $0xfb8] sm:$0xff] }
 0x2c6   :  { %5518 = vmatprep.subr.bf16.mxu1 %v13337_v16  ;;  %v3850_v16 = vld [vmem:[#allocation8 + $0xcf8] sm:$0xff] }
 0x2c7   :  { %5466 = vmatpush2.bf16.msra.mxu0 %v13208_v61  ;;  %v13155_v61 = vcombine.high %v3718_v5, %v3722_v50  ;;  %v3802_v17 = vld [vmem:[#allocation8 + $0xb78] sm:$0xff] }
 0x2c8   :  { %5467 = vmatprep.subr.bf16.mxu0 %v13201_v27  ;;  %v3714_v27 = vld [vmem:[#allocation8 + $0x8b8] sm:$0xff] }
 0x2c9   :  { %5519 = vmatpush2.bf16.msra.mxu1 %v13336_v7  ;;  %v13283_v7 = vcombine.high %v3846_v39, %v3850_v16  ;;  %v3930_v5 = vld [vmem:[#allocation8 + $0xf78] sm:$0xff] }
 0x2ca   :  { %5520 = vmatprep.subr.bf16.mxu1 %v13329_v32  ;;  %v3842_v32 = vld [vmem:[#allocation8 + $0xcb8] sm:$0xff] }
 0x2cb   :  { %5468 = vmatpush2.bf16.msra.mxu0 %v13200_v18  ;;  %v13282_v18 = vcombine.low %v3846_v39, %v3850_v16  ;;  %v3794_v39 = vld [vmem:[#allocation8 + $0xb38] sm:$0xff] }
 0x2cc   :  { %5469 = vmatprep.subr.bf16.mxu0 %v13193_v34  ;;  %v13275_v34 = vcombine.high %v3838_v6, %v3842_v32 }
 0x2cd   :  { %5521 = vmatpush2.bf16.msra.mxu1 %v13328_v15  ;;  %v13146_v15 = vcombine.low %v3710_v62, %v3714_v27 }
 0x2ce   :  { %5522 = vmatprep.subr.bf16.mxu1 %v13321_v47  ;;  %v13274_v47 = vcombine.low %v3838_v6, %v3842_v32  ;;  %v3786_v6 = vld [vmem:[#allocation8 + $0xaf8] sm:$0xff] }
 0x2cf   :  { %5470 = vmatpush2.bf16.msra.mxu0 %v13192_v55  ;;  %v3694_v55 = vld [vmem:[#allocation8 + $0x818] sm:$0xff] }
 0x2d0   :  { %5545 = vmatprep.subr.bf16.mxu0 %v13187_v0  ;;  %v13138_v0 = vcombine.low %v3702_v58, %v3706_v26  ;;  %v13131_v11 = vcombine.high %v3694_v55, %v3698_v51  ;;  %v3914_v58 = vld [vmem:[#allocation8 + $0xef8] sm:$0xff] }
 0x2d1   :  { %5523 = vmatpush2.bf16.msra.mxu1 %v13320_v35  ;;  %v3822_v35 = vld [vmem:[#allocation8 + $0xc18] sm:$0xff] }
 0x2d2   :  { %5472 = vmatmul.mubr.bf16.vlgmr.msra.gmra.mxu0 %v16438_v49  ;;  %5598 = vmatprep.subr.bf16.mxu1 %v13315_v20  ;;  %v13259_v28 = vcombine.high %v3822_v35, %v3826_v19 }
 0x2d3   :  { %5481 = vmatprep.mubr.bf16.mxu0 %v16491_v29  ;;  %5546 = vmatpush1.bf16.msra.mxu0 %v13186_v33  ;;  %v3814_v33 = vld [vmem:[#allocation8 + $0xbd8] sm:$0xff] }
 0x2d4   :  { %5525 = vmatmul.mubr.bf16.vlgmr.msra.gmra.mxu1 %v16440_v43  ;;  %5547 = vmatprep.subr.bf16.mxu0 %v13179_v21  ;;  %v13130_v21 = vcombine.low %v3694_v55, %v3698_v51  ;;  %v13251_v14 = vcombine.high %v3814_v33, %v3818_v31  ;;  %v3906_v55 = vld [vmem:[#allocation8 + $0xeb8] sm:$0xff] }
 0x2d5   :  { %5534 = vmatprep.mubr.bf16.mxu1 %v16495_v9  ;;  %5599 = vmatpush1.bf16.msra.mxu1 %v13314_v37  ;;  %v3942_v37 = vld [vmem:[#allocation8 + $0xfd8] sm:$0xff] }
 0x2d6   :  { %5600 = vmatprep.subr.bf16.mxu1 %v13307_v46  ;;  %v13258_v46 = vcombine.low %v3822_v35, %v3826_v19  ;;  %v13379_v22 = vcombine.high %v3942_v37, %v3946_v52  ;;  %v3770_v35 = vld [vmem:[#allocation8 + $0xa78] sm:$0xff] }
 0x2d7   :  { %5548 = vmatpush1.bf16.msra.mxu0 %v13178_v59  ;;  %v3806_v59 = vld [vmem:[#allocation8 + $0xb98] sm:$0xff] }
 0x2d8   :  { %5549 = vmatprep.subr.bf16.mxu0 %v13171_v56  ;;  %v13250_v56 = vcombine.low %v3814_v33, %v3818_v31  ;;  %v13243_v57 = vcombine.high %v3806_v59, %v3810_v45  ;;  %v3898_v33 = vld [vmem:[#allocation8 + $0xe78] sm:$0xff] }
 0x2d9   :  { %5601 = vmatpush1.bf16.msra.mxu1 %v13306_v25  ;;  %v3934_v25 = vld [vmem:[#allocation8 + $0xf98] sm:$0xff] }
 0x2da   :  { %5482 = vmatmul.mubr.bf16.gmra.mxu0 %v16493_v36  ;;  %5602 = vmatprep.subr.bf16.mxu1 %v13299_v3  ;;  %v13378_v3 = vcombine.low %v3942_v37, %v3946_v52  ;;  %v13371_v4 = vcombine.high %v3934_v25, %v3938_v30  ;;  %v3762_v37 = vld [vmem:[#allocation8 + $0xa38] sm:$0xff] }
 0x2db   :  { %5550 = vmatpush1.bf16.msra.mxu0 %v13170_v63  ;;  %5577 = vmatprep.mubr.bf16.mxu0 %v16434_v54  ;;  %v13147_v54 = vcombine.high %v3710_v62, %v3714_v27  ;;  %v3798_v63 = vld [vmem:[#allocation8 + $0xb58] sm:$0xff] }
 0x2dc   :  { %5535 = vmatmul.mubr.bf16.gmra.mxu1 %v16497_v53  ;;  %5551 = vmatprep.subr.bf16.mxu0 %v13163_v44  ;;  %v13242_v44 = vcombine.low %v3806_v59, %v3810_v45  ;;  %v13235_v50 = vcombine.high %v3798_v63, %v3802_v17  ;;  %v3922_v62 = vld [vmem:[#allocation8 + $0xf38] sm:$0xff] }
 0x2dd   :  { %5603 = vmatpush1.bf16.msra.mxu1 %v13298_v24  ;;  %5630 = vmatprep.mubr.bf16.mxu1 %v16436_v12  ;;  %v3830_v12 = vld [vmem:[#allocation8 + $0xc58] sm:$0xff] }
 0x2de   :  { %5604 = vmatprep.subr.bf16.mxu1 %v13291_v38  ;;  %v13267_v41 = vcombine.high %v3830_v12, %v3834_v13  ;;  %v13266_v20 = vcombine.low %v3830_v12, %v3834_v13  ;;  %v3926_v24 = vld [vmem:[#allocation8 + $0xf58] sm:$0xff]  ;;  %v13370_v38 = vcombine.low %v3934_v25, %v3938_v30 }
 0x2df   :  { %5552 = vmatpush1.bf16.msra.mxu0 %v13162_v1  ;;  %v3790_v1 = vld [vmem:[#allocation8 + $0xb18] sm:$0xff]  ;;  %v13363_v16 = vcombine.high %v3926_v24, %v3930_v5 }
 0x2e0   :  { %5553 = vmatprep.subr.bf16.mxu0 %v13155_v61  ;;  %v13234_v61 = vcombine.low %v3798_v63, %v3802_v17  ;;  %v13227_v27 = vcombine.high %v3790_v1, %v3794_v39  ;;  %v3778_v12 = vld [vmem:[#allocation8 + $0xab8] sm:$0xff]  ;;  %v3116_v63 = vld [vmem:[#allocation8 + $0x1c0] sm:$0xff] }
 0x2e1   :  { %5605 = vmatpush1.bf16.msra.mxu1 %v13290_v8  ;;  %v3918_v8 = vld [vmem:[#allocation8 + $0xf18] sm:$0xff]  ;;  %v3120_v17 = vld [vmem:[#allocation8 + $0x1e0] sm:$0xff] }
 0x2e2   :  { %5606 = vmatprep.subr.bf16.mxu1 %v13283_v7  ;;  %v13362_v7 = vcombine.low %v3926_v24, %v3930_v5  ;;  %v13355_v32 = vcombine.high %v3918_v8, %v3922_v62  ;;  %v14512_v52 = vld [vmem:[#allocation2 + $0x40] ss:$8 sps:$4 sm:$0xff]  }
 0x2e3   :  { %5554 = vmatpush1.bf16.msra.mxu0 %v13154_v42  ;;  %v3782_v42 = vld [vmem:[#allocation8 + $0xad8] sm:$0xff] }
 0x2e4   :  { %5555 = vmatprep.subr.bf16.mxu0 %v13147_v54  ;;  %v13226_v54 = vcombine.low %v3790_v1, %v3794_v39  ;;  %v13219_v26 = vcombine.high %v3782_v42, %v3786_v6  ;;  %v3886_v45 = vld [vmem:[#allocation8 + $0xe18] sm:$0xff]  ;;  %v3248_v1 = vld [vmem:[#allocation8 + $0x5e0] sm:$0xff] }
 0x2e5   :  { %5607 = vmatpush1.bf16.msra.mxu1 %v13282_v18  ;;  %v3910_v18 = vld [vmem:[#allocation8 + $0xed8] sm:$0xff] }
 0x2e6   :  { %5608 = vmatprep.subr.bf16.mxu1 %v13275_v34  ;;  %v13354_v34 = vcombine.low %v3918_v8, %v3922_v62  ;;  %v13347_v13 = vcombine.high %v3910_v18, %v3914_v58  ;;  %v14506_v30 = vld [vmem:[#allocation2] ss:$8 sps:$4 sm:$0xff]   ;;  %v13437_v8 = vcombine.high %v3116_v63, %v3120_v17 }
 0x2e7   :  { %5556 = vmatpush1.bf16.msra.mxu0 %v13146_v15  ;;  %v3774_v15 = vld [vmem:[#allocation8 + $0xa98] sm:$0xff]  ;;  %v2778_v62 = vrot.slane %v14506_v30, %v15570_v48 }
 0x2e8   :  { %5557 = vmatprep.subr.bf16.mxu0 %v13139_v23  ;;  %v13218_v23 = vcombine.low %v3782_v42, %v3786_v6  ;;  %v13211_v51 = vcombine.high %v3774_v15, %v3778_v12  ;;  %v14509_v5 = vld [vmem:[#allocation2 + $0x20] ss:$8 sps:$4 sm:$0xff]  }
 0x2e9   :  { %5609 = vmatpush1.bf16.msra.mxu1 %v13274_v47  ;;  %v3902_v47 = vld [vmem:[#allocation8 + $0xe98] sm:$0xff]  ;;  %v3108_v42 = vld [vmem:[#allocation8 + $0x180] sm:$0xff] }
 0x2ea   :  { %5610 = vmatprep.subr.bf16.mxu1 %v13267_v41  ;;  %v13346_v41 = vcombine.low %v3910_v18, %v3914_v58  ;;  %v13339_v19 = vcombine.high %v3902_v47, %v3906_v55  ;;  %v3112_v6 = vld [vmem:[#allocation8 + $0x1a0] sm:$0xff]  ;;  %v14518_v18 = vld [vmem:[#allocation2 + $0x30] ss:$8 sps:$4 sm:$0xff]  }
 0x2eb   :  { %5558 = vmatpush1.bf16.msra.mxu0 %v13138_v0  ;;  %v3766_v0 = vld [vmem:[#allocation8 + $0xa58] sm:$0xff] }
 0x2ec   :  { %5559 = vmatprep.subr.bf16.mxu0 %v13131_v11  ;;  %v13210_v11 = vcombine.low %v3774_v15, %v3778_v12  ;;  %v13203_v31 = vcombine.high %v3766_v0, %v3770_v35  ;;  %v13202_v59 = vcombine.low %v3766_v0, %v3770_v35  ;;  %v13436_v15 = vcombine.low %v3116_v63, %v3120_v17  ;;  %v3236_v12 = vld [vmem:[#allocation8 + $0x580] sm:$0xff] }
 0x2ed   :  { %5611 = vmatpush1.bf16.msra.mxu1 %v13266_v20  ;;  %v3894_v20 = vld [vmem:[#allocation8 + $0xe58] sm:$0xff] }
 0x2ee   :  { %5612 = vmatprep.subr.bf16.mxu1 %v13259_v28  ;;  %v13338_v28 = vcombine.low %v3902_v47, %v3906_v55  ;;  %v13429_v55 = vcombine.high %v3108_v42, %v3112_v6 }
 0x2ef   :  { %5560 = vmatpush1.bf16.msra.mxu0 %v13130_v21  ;;  %v3758_v21 = vld [vmem:[#allocation8 + $0xa18] sm:$0xff] }
 0x2f0   :  { %5561 = vmatprep.subr.bf16.mxu0 %v13251_v14  ;;  %v13331_v14 = vcombine.high %v3894_v20, %v3898_v33  ;;  %v13195_v25 = vcombine.high %v3758_v21, %v3762_v37 }
 0x2f1   :  { %5613 = vmatpush1.bf16.msra.mxu1 %v13258_v46  ;;  %v14511_v46 = vld [vmem:[#allocation2 + $0x24] ss:$8 sps:$4 sm:$0x33]  }
 0x2f2   :  { %5614 = vmatprep.subr.bf16.mxu1 %v13379_v22  ;;  %v3890_v22 = vld [vmem:[#allocation8 + $0xe38] sm:$0xff]  ;;  %v2821_v39 = vrot.slane %v14511_v46, %v15570_v48 }
 0x2f3   :  { %5562 = vmatpush2.bf16.msra.mxu0 %v13250_v56  ;;  %v14521_v56 = vld [vmem:[#allocation2 + $0x50] ss:$8 sps:$4 sm:$0xff]   ;;  %v13323_v24 = vcombine.high %v3886_v45, %v3890_v22 }
 0x2f4   :  { %5563 = vmatprep.subr.bf16.mxu0 %v13243_v57  ;;  %v14508_v57 = vld [vmem:[#allocation2 + $0x4] ss:$8 sps:$4 sm:$0xff]  }
 0x2f5   :  { %5615 = vmatpush2.bf16.msra.mxu1 %v13378_v3  ;;  %v13330_v3 = vcombine.low %v3894_v20, %v3898_v33  ;;  %v3104_v20 = vld [vmem:[#allocation8 + $0x160] sm:$0xff] }
 0x2f6   :  { %5616 = vmatprep.subr.bf16.mxu1 %v13371_v4  ;;  %v16522_v4 = vrot.slane %v14512_v52, %v15570_v48 }
 0x2f7   :  { %5564 = vmatpush2.bf16.msra.mxu0 %v13242_v44  ;;  %v14520_v44 = vld [vmem:[#allocation2 + $0x34] ss:$8 sps:$4 sm:$0x33]  }
 0x2f8   :  { %5565 = vmatprep.subr.bf16.mxu0 %v13235_v50  ;;  %v13194_v50 = vcombine.low %v3758_v21, %v3762_v37  ;;  %v2835_v58 = vrot.slane %v14520_v44, %v15570_v48 }
 0x2f9   :  { %5617 = vmatpush2.bf16.msra.mxu1 %v13370_v38  ;;  %v3244_v38 = vld [vmem:[#allocation8 + $0x5c0] sm:$0xff] }
 0x2fa   :  { %5618 = vmatprep.subr.bf16.mxu1 %v13363_v16  ;;  %v14515_v16 = vld [vmem:[#allocation2 + $0x10] ss:$8 sps:$4 sm:$0xff]   ;;  %v13564_v0 = vcombine.low %v3244_v38, %v3248_v1 }
 0x2fb   :  { %5566 = vmatpush2.bf16.msra.mxu0 %v13234_v61  ;;  %v16526_v61 = vrot.slane %v14521_v56, %v15570_v48 }
 0x2fc   :  { %5567 = vmatprep.subr.bf16.mxu0 %v13227_v27  ;;  %v14517_v27 = vld [vmem:[#allocation2 + $0x14] ss:$8 sps:$4 sm:$0xff]  }
 0x2fd   :  { %5619 = vmatpush2.bf16.msra.mxu1 %v13362_v7  ;;  %v13322_v7 = vcombine.low %v3886_v45, %v3890_v22  ;;  %v13115_v47 = vcombine.low %v2835_v58, %v16526_v61  ;;  %v3228_v45 = vld [vmem:[#allocation8 + $0x540] sm:$0xff] }
 0x2fe   :  { %5620 = vmatprep.subr.bf16.mxu1 %v13355_v32  ;;  %v2785_v32 = vrot.slane %v14508_v57, %v15570_v48  ;;  %v3232_v22 = vld [vmem:[#allocation8 + $0x560] sm:$0xff] }
 0x2ff   :  { %5568 = vmatpush2.bf16.msra.mxu0 %v13226_v54  ;;  %v13114_v54 = vcombine.low %v2821_v39, %v16522_v4  ;;  %v3220_v39 = vld [vmem:[#allocation8 + $0x500] sm:$0xff] }
 0x300   :  { %5569 = vmatprep.subr.bf16.mxu0 %v13219_v26  ;;  %v13565_v26 = vcombine.high %v3244_v38, %v3248_v1  ;;  %v16540_v33 = vrot.slane %v2785_v32, %v15570_v48  ;;  %v3212_v58 = vld [vmem:[#allocation8 + $0x4c0] sm:$0xff] }
 0x301   :  { %5621 = vmatpush2.bf16.msra.mxu1 %v13354_v34  ;;  %v2814_v34 = vrot.slane %v14509_v5, %v15570_v48 }
 0x302   :  { %5622 = vmatprep.subr.bf16.mxu1 %v13347_v13  ;;  %v3240_v13 = vld [vmem:[#allocation8 + $0x5a0] sm:$0xff] }
 0x303   :  { %5570 = vmatpush2.bf16.msra.mxu0 %v13218_v23  ;;  %v2792_v23 = vrot.slane %v14515_v16, %v15570_v48  ;;  %v13557_v37 = vcombine.high %v3236_v12, %v3240_v13  ;;  %v16550_v52 = vrot.slane %v2814_v34, %v15570_v48  ;;  %v13556_v57 = vcombine.low %v3236_v12, %v3240_v13  ;;  %v3224_v16 = vld [vmem:[#allocation8 + $0x520] sm:$0xff] }
 0x304   :  { %5571 = vmatprep.subr.bf16.mxu0 %v13211_v51  ;;  %v16536_v51 = vrot.slane %v2778_v62, %v15570_v48  ;;  %v13548_v62 = vcombine.low %v3228_v45, %v3232_v22  ;;  %v13541_v32 = vcombine.high %v3220_v39, %v3224_v16  ;;  %v3076_v12 = vld [vmem:[#allocation8 + $0x80] sm:$0xff] }
 0x305   :  { %5623 = vmatpush2.bf16.msra.mxu1 %v13346_v41  ;;  %v2799_v41 = vrot.slane %v14517_v27, %v15570_v48  ;;  %v16554_v56 = vrot.slane %v2792_v23, %v15570_v48 }
 0x306   :  { %5624 = vmatprep.subr.bf16.mxu1 %v13339_v19 }
 0x307   :  { %5572 = vmatpush2.bf16.msra.mxu0 %v13210_v11  ;;  %v3100_v11 = vld [vmem:[#allocation8 + $0x140] sm:$0xff] }
 0x308   :  { %5573 = vmatprep.subr.bf16.mxu0 %v13203_v31  ;;  %v16543_v31 = vrot.slane %v13114_v54, %v15570_v48  ;;  %v13421_v30 = vcombine.high %v3100_v11, %v3104_v20  ;;  %v13420_v38 = vcombine.low %v3100_v11, %v3104_v20  ;;  %v3072_v11 = vld [vmem:[#allocation8 + $0x60] sm:$0xff] }
 0x309   :  { %5625 = vmatpush2.bf16.msra.mxu1 %v13338_v28  ;;  %v2828_v28 = vrot.slane %v14518_v18, %v15570_v48 }
 0x30a   :  { %5626 = vmatprep.subr.bf16.mxu1 %v13331_v14  ;;  %v2979_v17 = vcombine.high %v16550_v52, %v16543_v31 }
 0x30b   :  { %5574 = vmatpush2.bf16.msra.mxu0 %v13202_v59  ;;  %v13428_v59 = vcombine.low %v3108_v42, %v3112_v6  ;;  %v16569_v44 = vrot.slane %v2828_v28, %v15570_v48  ;;  %v3084_v42 = vld [vmem:[#allocation8 + $0xc0] sm:$0xff] }
 0x30c   :  { %5575 = vmatprep.subr.bf16.mxu0 %v13195_v25  ;;  %v3088_v6 = vld [vmem:[#allocation8 + $0xe0] sm:$0xff] }
 0x30d   :  { %5627 = vmatpush2.bf16.msra.mxu1 %v13330_v3  ;;  %v13405_v34 = vcombine.high %v3084_v42, %v3088_v6 }
 0x30e   :  { %5628 = vmatprep.subr.bf16.mxu1 %v13323_v24  ;;  %v3096_v24 = vld [vmem:[#allocation8 + $0x120] sm:$0xff] }
 0x30f   :  { %5576 = vmatpush2.bf16.msra.mxu0 %v13194_v50  ;;  %v13549_v50 = vcombine.high %v3228_v45, %v3232_v22 }
 0x310   :  { %6931 = vmatprep.subr.bf16.mxu0 %v13437_v8 }
 0x311   :  { %5629 = vmatpush2.bf16.msra.mxu1 %v13322_v7  ;;  %v5261_v35 = vpop.f32.mrf.mxu0 }
 0x312   :  { %v5314_v19 = vpop.f32.mrf.mxu1  ;;  %5578 = vmatmul.mubr.bf16.vlgmr.msra.gmra.mxu0 %v16438_v49  ;;  %6984 = vmatprep.subr.bf16.mxu1 %v13565_v26  ;;  %v16557_v49 = vrot.slane %v13115_v47, %v15570_v48  ;;  %v3216_v26 = vld [vmem:[#allocation8 + $0x4e0] sm:$0xff]  ;;  %v13404_v47 = vcombine.low %v3084_v42, %v3088_v6 }
 0x313   :  { %v16547_v21 = vadd.f32 %v5314_v19, %v5261_v35  ;;  %5587 = vmatprep.mubr.bf16.mxu0 %v16491_v29  ;;  %6932 = vmatpush1.bf16.msra.mxu0 %v13436_v15  ;;  %v5263_v14 = vpop.f32.mrf.mxu0  ;;  %v16563_v29 = vrot.slane %v2799_v41, %v15570_v48  ;;  %v13540_v15 = vcombine.low %v3220_v39, %v3224_v16  ;;  %v3208_v41 = vld [vmem:[#allocation8 + $0x4a0] sm:$0xff] }
 0x314   :  { %v5316_v46 = vpop.f32.mrf.mxu1  ;;  %5631 = vmatmul.mubr.bf16.vlgmr.msra.gmra.mxu1 %v16440_v43  ;;  %6933 = vmatprep.subr.bf16.mxu0 %v13429_v55  ;;  %v3092_v43 = vld [vmem:[#allocation8 + $0x100] sm:$0xff]  ;;  %v2981_v1 = vcombine.high %v16569_v44, %v16557_v49  ;;  %v13533_v13 = vcombine.high %v3212_v58, %v3216_v26  ;;  %v13532_v35 = vcombine.low %v3212_v58, %v3216_v26 }
 0x315   :  { %v16560_v25 = vadd.f32 %v5316_v46, %v5263_v14  ;;  %5640 = vmatprep.mubr.bf16.mxu1 %v16495_v9  ;;  %6985 = vmatpush1.bf16.msra.mxu1 %v13564_v0  ;;  %v5265_v3 = vpop.f32.mrf.mxu0  ;;  %v2943_v9 = vcombine.high %v16536_v51, %v16540_v33  ;;  %v13413_v8 = vcombine.high %v3092_v43, %v3096_v24  ;;  %v3204_v55 = vld [vmem:[#allocation8 + $0x480] sm:$0xff] }
 0x316   :  { %v5318_v63 = vpop.f32.mrf.mxu1  ;;  %6986 = vmatprep.subr.bf16.mxu1 %v13557_v37  ;;  %v2945_v7 = vcombine.high %v16554_v56, %v16563_v29  ;;  %v13412_v18 = vcombine.low %v3092_v43, %v3096_v24  ;;  %v3068_v19 = vld [vmem:[#allocation8 + $0x40] sm:$0xff]  ;;  %v13525_v20 = vcombine.high %v3204_v55, %v3208_v41 }
 0x317   :  { %v16571_v5 = vadd.f32 %v5318_v63, %v5265_v3  ;;  %6934 = vmatpush1.bf16.msra.mxu0 %v13428_v59  ;;  %v16577_v27 = vpack.c.bf16 %v2979_v17, %v2943_v9  ;;  %v16587_v23 = vpop.f32.mrf.mxu0  ;;  %v3196_v14 = vld [vmem:[#allocation8 + $0x440] sm:$0xff]  ;;  %v13389_v45 = vcombine.high %v3068_v19, %v3072_v11 }
 0x318   :  { %6935 = vmatprep.subr.bf16.mxu0 %v13421_v30  ;;  %v16583_v54 = vpack.c.bf16 %v2981_v1, %v2945_v7  ;;  %v16589_v0 = vpop.f32.mrf.mxu1  ;;  %v3200_v46 = vld [vmem:[#allocation8 + $0x460] sm:$0xff] }
 0x319   :  { %6987 = vmatpush1.bf16.msra.mxu1 %v13556_v57  ;;  %v13524_v57 = vcombine.low %v3204_v55, %v3208_v41  ;;  %v3060_v3 = vld [vmem:[#allocation8] sm:$0xff]  ;;  %v13517_v43 = vcombine.high %v3196_v14, %v3200_v46 }
 0x31a   :  { %5588 = vmatmul.mubr.bf16.gmra.mxu0 %v16493_v36  ;;  %6988 = vmatprep.subr.bf16.mxu1 %v13549_v50  ;;  %v3080_v36 = vld [vmem:[#allocation8 + $0xa0] sm:$0xff] }
 0x31b   :  { %6936 = vmatpush1.bf16.msra.mxu0 %v13420_v38  ;;  %6963 = vmatprep.mubr.bf16.mxu0 %v16577_v27  ;;  %v13396_v37 = vcombine.low %v3076_v12, %v3080_v36  ;;  %v3064_v63 = vld [vmem:[#allocation8 + $0x20] sm:$0xff]  ;;  %v13388_v38 = vcombine.low %v3068_v19, %v3072_v11 }
 0x31c   :  { %5641 = vmatmul.mubr.bf16.gmra.mxu1 %v16497_v53  ;;  %6937 = vmatprep.subr.bf16.mxu0 %v13413_v8  ;;  %v13397_v53 = vcombine.high %v3076_v12, %v3080_v36  ;;  %v3188_v9 = vld [vmem:[#allocation8 + $0x400] sm:$0xff]  ;;  %v13381_v16 = vcombine.high %v3060_v3, %v3064_v63 }
 0x31d   :  { %6989 = vmatpush1.bf16.msra.mxu1 %v13548_v62  ;;  %7016 = vmatprep.mubr.bf16.mxu1 %v16583_v54  ;;  %v3192_v1 = vld [vmem:[#allocation8 + $0x420] sm:$0xff]  ;;  %v13516_v62 = vcombine.low %v3196_v14, %v3200_v46 }
 0x31e   :  { %6990 = vmatprep.subr.bf16.mxu1 %v13541_v32  ;;  %v3180_v7 = vld [vmem:[#allocation8 + $0x3c0] sm:$0xff]  ;;  %v13509_v6 = vcombine.high %v3188_v9, %v3192_v1  ;;  %v13380_v32 = vcombine.low %v3060_v3, %v3064_v63 }
 0x31f   :  { %6938 = vmatpush1.bf16.msra.mxu0 %v13412_v18  ;;  %v3184_v42 = vld [vmem:[#allocation8 + $0x3e0] sm:$0xff] }
 0x320   :  { %6939 = vmatprep.subr.bf16.mxu0 %v13405_v34  ;;  %v3308_v18 = vld [vmem:[#allocation8 + $0x7c0] sm:$0xff]  ;;  %v13501_v26 = vcombine.high %v3180_v7, %v3184_v42  ;;  %v13508_v34 = vcombine.low %v3188_v9, %v3192_v1  ;;  %v14527_v1 = vld [vmem:[#allocation2 + $0x70] ss:$8 sps:$4 sm:$0xff]  }
 0x321   :  { %6991 = vmatpush1.bf16.msra.mxu1 %v13540_v15  ;;  %v3312_v58 = vld [vmem:[#allocation8 + $0x7e0] sm:$0xff] }
 0x322   :  { %6992 = vmatprep.subr.bf16.mxu1 %v13533_v13  ;;  %v3172_v15 = vld [vmem:[#allocation8 + $0x380] sm:$0xff]  ;;  %v13629_v36 = vcombine.high %v3308_v18, %v3312_v58  ;;  %v13500_v13 = vcombine.low %v3180_v7, %v3184_v42 }
 0x323   :  { %v5271_v28 = vpop.f32.mrf.mxu0  ;;  %6940 = vmatpush1.bf16.msra.mxu0 %v13404_v47  ;;  %v3176_v12 = vld [vmem:[#allocation8 + $0x3a0] sm:$0xff] }
 0x324   :  { %v5324_v59 = vpop.f32.mrf.mxu1  ;;  %6941 = vmatprep.subr.bf16.mxu0 %v13397_v53  ;;  %v3300_v47 = vld [vmem:[#allocation8 + $0x780] sm:$0xff]  ;;  %v13493_v41 = vcombine.high %v3172_v15, %v3176_v12  ;;  %v13628_v53 = vcombine.low %v3308_v18, %v3312_v58 }
 0x325   :  { %v16591_v22 = vadd.f32 %v5324_v59, %v5271_v28  ;;  %v5273_v30 = vpop.f32.mrf.mxu0  ;;  %6993 = vmatpush1.bf16.msra.mxu1 %v13532_v35  ;;  %v3304_v55 = vld [vmem:[#allocation8 + $0x7a0] sm:$0xff] }
 0x326   :  { %v5326_v17 = vpop.f32.mrf.mxu1  ;;  %6994 = vmatprep.subr.bf16.mxu1 %v13525_v20  ;;  %v3164_v35 = vld [vmem:[#allocation8 + $0x340] sm:$0xff]  ;;  %v13621_v11 = vcombine.high %v3300_v47, %v3304_v55  ;;  %v13492_v20 = vcombine.low %v3172_v15, %v3176_v12  ;;  %v13620_v46 = vcombine.low %v3300_v47, %v3304_v55  ;;  %v14523_v15 = vld [vmem:[#allocation2 + $0x54] ss:$8 sps:$4 sm:$0xff]  }
 0x327   :  { %v16593_v24 = vadd.f32 %v5326_v17, %v5273_v30  ;;  %v5275_v50 = vpop.f32.mrf.mxu0  ;;  %6942 = vmatpush1.bf16.msra.mxu0 %v13396_v37  ;;  %v3168_v19 = vld [vmem:[#allocation8 + $0x360] sm:$0xff] }
 0x328   :  { %v5328_v39 = vpop.f32.mrf.mxu1  ;;  %6943 = vmatprep.subr.bf16.mxu0 %v13389_v45  ;;  %v3292_v28 = vld [vmem:[#allocation8 + $0x740] sm:$0xff]  ;;  %v13485_v14 = vcombine.high %v3164_v35, %v3168_v19 }
 0x329   :  { %v16595_v8 = vadd.f32 %v5328_v39, %v5275_v50  ;;  %6995 = vmatpush1.bf16.msra.mxu1 %v13524_v57  ;;  %v3296_v37 = vld [vmem:[#allocation8 + $0x760] sm:$0xff]  ;;  %v13484_v57 = vcombine.low %v3164_v35, %v3168_v19 }
 0x32a   :  { %6996 = vmatprep.subr.bf16.mxu1 %v13517_v43  ;;  %v3156_v59 = vld [vmem:[#allocation8 + $0x300] sm:$0xff]  ;;  %v13613_v30 = vcombine.high %v3292_v28, %v3296_v37  ;;  %v13612_v50 = vcombine.low %v3292_v28, %v3296_v37 }
 0x32b   :  { %6944 = vmatpush1.bf16.msra.mxu0 %v13388_v38  ;;  %v3160_v45 = vld [vmem:[#allocation8 + $0x320] sm:$0xff] }
 0x32c   :  { %6945 = vmatprep.subr.bf16.mxu0 %v13381_v16  ;;  %v3284_v3 = vld [vmem:[#allocation8 + $0x700] sm:$0xff]  ;;  %v13477_v17 = vcombine.high %v3156_v59, %v3160_v45 }
 0x32d   :  { %6997 = vmatpush1.bf16.msra.mxu1 %v13516_v62  ;;  %v3288_v63 = vld [vmem:[#allocation8 + $0x720] sm:$0xff]  ;;  %v13476_v62 = vcombine.low %v3156_v59, %v3160_v45 }
 0x32e   :  { %6998 = vmatprep.subr.bf16.mxu1 %v13509_v6  ;;  %v14524_v43 = vld [vmem:[#allocation2 + $0x60] ss:$8 sps:$4 sm:$0xff]   ;;  %v13605_v39 = vcombine.high %v3284_v3, %v3288_v63  ;;  %v14526_v16 = vld [vmem:[#allocation2 + $0x64] ss:$8 sps:$4 sm:$0x33]   ;;  %v13604_v58 = vcombine.low %v3284_v3, %v3288_v63 }
 0x32f   :  { %6946 = vmatpush1.bf16.msra.mxu0 %v13380_v32  ;;  %v3148_v38 = vld [vmem:[#allocation8 + $0x2c0] sm:$0xff]  ;;  %v14529_v6 = vld [vmem:[#allocation2 + $0x74] ss:$8 sps:$4 sm:$0x33]   ;;  %v2885_v12 = vrot.slane %v14524_v43, %v15570_v48  ;;  %v2872_v43 = vcombine.high %v16522_v4, %v16526_v61 }
 0x330   :  { %6947 = vmatprep.subr.bf16.mxu0 %v13501_v26  ;;  %v3152_v9 = vld [vmem:[#allocation8 + $0x2e0] sm:$0xff]  ;;  %v2906_v35 = vrot.slane %v14529_v6, %v15570_v48 }
 0x331   :  { %6999 = vmatpush1.bf16.msra.mxu1 %v13508_v34  ;;  %v3276_v7 = vld [vmem:[#allocation8 + $0x6c0] sm:$0xff]  ;;  %v13469_v18 = vcombine.high %v3148_v38, %v3152_v9  ;;  %v13468_v47 = vcombine.low %v3148_v38, %v3152_v9 }
 0x332   :  { %7000 = vmatprep.subr.bf16.mxu1 %v13629_v36  ;;  %v3280_v42 = vld [vmem:[#allocation8 + $0x6e0] sm:$0xff]  ;;  %v16599_v36 = vrot.slane %v14527_v1, %v15570_v48 }
 0x333   :  { %6948 = vmatpush2.bf16.msra.mxu0 %v13500_v13  ;;  %v14514_v32 = vld [vmem:[#allocation2 + $0x44] ss:$8 sps:$4 sm:$0xff]   ;;  %v13597_v13 = vcombine.high %v3276_v7, %v3280_v42 }
 0x334   :  { %6949 = vmatprep.subr.bf16.mxu0 %v13493_v41  ;;  %v3140_v26 = vld [vmem:[#allocation8 + $0x280] sm:$0xff]  ;;  %v2856_v37 = vrot.slane %v14514_v32, %v15570_v48  ;;  %v2907_v3 = vcombine.low %v2885_v12, %v16599_v36 }
 0x335   :  { %7001 = vmatpush2.bf16.msra.mxu1 %v13628_v53  ;;  %v3144_v34 = vld [vmem:[#allocation8 + $0x2a0] sm:$0xff]  ;;  %v2892_v53 = vrot.slane %v14526_v16, %v15570_v48 }
 0x336   :  { %7002 = vmatprep.subr.bf16.mxu1 %v13621_v11  ;;  %v3268_v55 = vld [vmem:[#allocation8 + $0x680] sm:$0xff]  ;;  %v13461_v19 = vcombine.high %v3140_v26, %v3144_v34  ;;  %v13596_v11 = vcombine.low %v3276_v7, %v3280_v42  ;;  %v13460_v45 = vcombine.low %v3140_v26, %v3144_v34  ;;  %v3117_v34 = vld [vmem:[#allocation8 + $0x1c8] sm:$0xff] }
 0x337   :  { %6950 = vmatpush2.bf16.msra.mxu0 %v13492_v20  ;;  %v3272_v41 = vld [vmem:[#allocation8 + $0x6a0] sm:$0xff]  ;;  %v2909_v63 = vcombine.low %v2892_v53, %v2906_v35  ;;  %v3249_v35 = vld [vmem:[#allocation8 + $0x5e8] sm:$0xff] }
 0x338   :  { %6951 = vmatprep.subr.bf16.mxu0 %v13485_v14  ;;  %v3132_v20 = vld [vmem:[#allocation8 + $0x240] sm:$0xff]  ;;  %v2870_v14 = vrot.slane %v14523_v15, %v15570_v48  ;;  %v13589_v59 = vcombine.high %v3268_v55, %v3272_v41  ;;  %v3121_v15 = vld [vmem:[#allocation8 + $0x1e8] sm:$0xff] }
 0x339   :  { %7003 = vmatpush2.bf16.msra.mxu1 %v13620_v46  ;;  %v3136_v28 = vld [vmem:[#allocation8 + $0x260] sm:$0xff]  ;;  %v2908_v46 = vcombine.high %v2885_v12, %v16599_v36 }
 0x33a   :  { %7004 = vmatprep.subr.bf16.mxu1 %v13613_v30  ;;  %v3260_v30 = vld [vmem:[#allocation8 + $0x640] sm:$0xff]  ;;  %v2874_v1 = vcombine.high %v2856_v37, %v2870_v14  ;;  %v2873_v16 = vcombine.low %v2856_v37, %v2870_v14  ;;  %v13452_v7 = vcombine.low %v3132_v20, %v3136_v28 }
 0x33b   :  { %6952 = vmatpush2.bf16.msra.mxu0 %v13484_v57  ;;  %v3264_v57 = vld [vmem:[#allocation8 + $0x660] sm:$0xff] }
 0x33c   :  { %6953 = vmatprep.subr.bf16.mxu0 %v13477_v17  ;;  %v13453_v17 = vcombine.high %v3132_v20, %v3136_v28  ;;  %v3124_v38 = vld [vmem:[#allocation8 + $0x200] sm:$0xff]  ;;  %v13118_v32 = vcombine.low %v2874_v1, %v2885_v12  ;;  %v13580_v4 = vcombine.low %v3260_v30, %v3264_v57  ;;  %v3245_v12 = vld [vmem:[#allocation8 + $0x5c8] sm:$0xff]  ;;  %v2978_v20 = vcombine.low %v16550_v52, %v16543_v31 }
 0x33d   :  { %7005 = vmatpush2.bf16.msra.mxu1 %v13612_v50  ;;  %v13588_v50 = vcombine.low %v3268_v55, %v3272_v41  ;;  %v3128_v9 = vld [vmem:[#allocation8 + $0x220] sm:$0xff]  ;;  %v13117_v55 = vcombine.high %v16526_v61, %v2873_v16  ;;  %v13439_v61 = vcombine.high %v3117_v34, %v3121_v15  ;;  %v2980_v31 = vcombine.low %v16569_v44, %v16557_v49  ;;  %v3101_v1 = vld [vmem:[#allocation8 + $0x148] sm:$0xff] }
 0x33e   :  { %7006 = vmatprep.subr.bf16.mxu1 %v13605_v39  ;;  %v13120_v39 = vcombine.low %v2908_v46, %v2892_v53  ;;  %v3252_v42 = vld [vmem:[#allocation8 + $0x600] sm:$0xff]  ;;  %v13445_v26 = vcombine.high %v3124_v38, %v3128_v9  ;;  %v13444_v53 = vcombine.low %v3124_v38, %v3128_v9  ;;  %v13567_v52 = vcombine.high %v3245_v12, %v3249_v35 }
 0x33f   :  { %6954 = vmatpush2.bf16.msra.mxu0 %v13476_v62  ;;  %v13581_v62 = vcombine.high %v3260_v30, %v3264_v57  ;;  %v3256_v6 = vld [vmem:[#allocation8 + $0x620] sm:$0xff]  ;;  %v16631_v46 = vrot.slane %v13117_v55, %v15570_v48  ;;  %v2942_v30 = vcombine.low %v16536_v51, %v16540_v33  ;;  %v13438_v57 = vcombine.low %v3117_v34, %v3121_v15  ;;  %v16647_v33 = vpop.f32.mrf.mxu0  ;;  %v3097_v55 = vld [vmem:[#allocation8 + $0x128] sm:$0xff] }
 0x340   :  { %6955 = vmatprep.subr.bf16.mxu0 %v13469_v18  ;;  %v13119_v18 = vcombine.high %v2870_v14, %v2907_v3  ;;  %v13573_v41 = vcombine.high %v3252_v42, %v3256_v6  ;;  %v13572_v28 = vcombine.low %v3252_v42, %v3256_v6  ;;  %v2944_v51 = vcombine.low %v16554_v56, %v16563_v29  ;;  %v3229_v6 = vld [vmem:[#allocation8 + $0x548] sm:$0xff] }
 0x341   :  { %7007 = vmatpush2.bf16.msra.mxu1 %v13604_v58  ;;  %v13121_v58 = vcombine.high %v16599_v36, %v2909_v63  ;;  %v16615_v36 = vrot.slane %v13118_v32, %v15570_v48  ;;  %v16643_v38 = vpack.c.bf16 %v2978_v20, %v2942_v30  ;;  %v13566_v44 = vcombine.low %v3245_v12, %v3249_v35  ;;  %v3233_v32 = vld [vmem:[#allocation8 + $0x568] sm:$0xff] }
 0x342   :  { %7008 = vmatprep.subr.bf16.mxu1 %v13597_v13  ;;  %v13116_v13 = vcombine.low %v2872_v43, %v2856_v37  ;;  %v3237_v43 = vld [vmem:[#allocation8 + $0x588] sm:$0xff]  ;;  %v16651_v16 = vpack.c.bf16 %v2980_v31, %v2944_v51  ;;  %v13551_v35 = vcombine.high %v3229_v6, %v3233_v32  ;;  %v13550_v31 = vcombine.low %v3229_v6, %v3233_v32 }
 0x343   :  { %6956 = vmatpush2.bf16.msra.mxu0 %v13468_v47  ;;  %v16611_v47 = vrot.slane %v13120_v39, %v15570_v48  ;;  %v3105_v39 = vld [vmem:[#allocation8 + $0x168] sm:$0xff] }
 0x344   :  { %6957 = vmatprep.subr.bf16.mxu0 %v13461_v19  ;;  %v16618_v19 = vrot.slane %v13119_v18, %v15570_v48  ;;  %v16626_v37 = vrot.slane %v13116_v13, %v15570_v48  ;;  %v3093_v13 = vld [vmem:[#allocation8 + $0x108] sm:$0xff] }
 0x345   :  { %7009 = vmatpush2.bf16.msra.mxu1 %v13596_v11  ;;  %v16621_v11 = vrot.slane %v13121_v58, %v15570_v48  ;;  %v3034_v14 = vcombine.high %v16611_v47, %v16611_v47 }
 0x346   :  { %7010 = vmatprep.subr.bf16.mxu1 %v13589_v59  ;;  %v3109_v59 = vld [vmem:[#allocation8 + $0x188] sm:$0xff]  ;;  %v3015_v3 = vcombine.high %v16626_v37, %v16615_v36  ;;  %v3017_v63 = vcombine.high %v16631_v46, %v16618_v19  ;;  %v3016_v12 = vcombine.low %v16631_v46, %v16618_v19 }
 0x347   :  { %6958 = vmatpush2.bf16.msra.mxu0 %v13460_v45  ;;  %v3113_v45 = vld [vmem:[#allocation8 + $0x1a8] sm:$0xff] }
 0x348   :  { %6959 = vmatprep.subr.bf16.mxu0 %v13453_v17  ;;  %v3035_v17 = vcombine.high %v16621_v11, %v16621_v11  ;;  %v13431_v49 = vcombine.high %v3109_v59, %v3113_v45  ;;  %v16649_v9 = vpack.c.bf16 %v3034_v14, %v3015_v3  ;;  %v13430_v29 = vcombine.low %v3109_v59, %v3113_v45  ;;  %v3085_v19 = vld [vmem:[#allocation8 + $0xc8] sm:$0xff] }
 0x349   :  { %7011 = vmatpush2.bf16.msra.mxu1 %v13588_v50  ;;  %v3241_v50 = vld [vmem:[#allocation8 + $0x5a8] sm:$0xff]  ;;  %v13415_v45 = vcombine.high %v3093_v13, %v3097_v55  ;;  %v16680_v3 = vpack.c.bf16 %v16621_v11, %v3016_v12 }
 0x34a   :  { %7012 = vmatprep.subr.bf16.mxu1 %v13581_v62  ;;  %v16653_v62 = vpop.f32.mrf.mxu1  ;;  %v13559_v42 = vcombine.high %v3237_v43, %v3241_v50  ;;  %v16657_v56 = vpack.c.bf16 %v3035_v17, %v3017_v63  ;;  %v13558_v15 = vcombine.low %v3237_v43, %v3241_v50  ;;  %v3089_v46 = vld [vmem:[#allocation8 + $0xe8] sm:$0xff] }
 0x34b   :  { %6960 = vmatpush2.bf16.msra.mxu0 %v13452_v7  ;;  %v3213_v17 = vld [vmem:[#allocation8 + $0x4c8] sm:$0xff]  ;;  %v13406_v32 = vcombine.low %v3085_v19, %v3089_v46 }
 0x34c   :  { %6961 = vmatprep.subr.bf16.mxu0 %v13445_v26  ;;  %v3014_v26 = vcombine.low %v16626_v37, %v16615_v36  ;;  %v13422_v36 = vcombine.low %v3101_v1, %v3105_v39  ;;  %v3217_v43 = vld [vmem:[#allocation8 + $0x4e8] sm:$0xff] }
 0x34d   :  { %7013 = vmatpush2.bf16.msra.mxu1 %v13580_v4  ;;  %v13423_v4 = vcombine.high %v3101_v1, %v3105_v39  ;;  %v3077_v1 = vld [vmem:[#allocation8 + $0x88] sm:$0xff] }
 0x34e   :  { %7014 = vmatprep.subr.bf16.mxu1 %v13573_v41  ;;  %v16672_v59 = vpack.c.bf16 %v16611_v47, %v3014_v26  ;;  %v13414_v47 = vcombine.low %v3093_v13, %v3097_v55  ;;  %v3081_v39 = vld [vmem:[#allocation8 + $0xa8] sm:$0xff]  ;;  %v13534_v55 = vcombine.low %v3213_v17, %v3217_v43 }
 0x34f   :  { %6962 = vmatpush2.bf16.msra.mxu0 %v13444_v53 }
 0x350   :  { %7037 = vmatprep.subr.bf16.mxu0 %v13439_v61  ;;  %v3221_v61 = vld [vmem:[#allocation8 + $0x508] sm:$0xff] }
 0x351   :  { %7015 = vmatpush2.bf16.msra.mxu1 %v13572_v28  ;;  %v3225_v28 = vld [vmem:[#allocation8 + $0x528] sm:$0xff] }
 0x352   :  { %v5367_v7 = vpop.f32.mrf.mxu0  ;;  %6964 = vmatmul.mubr.bf16.vlgmr.msra.gmra.mxu0 %v16643_v38  ;;  %7090 = vmatprep.subr.bf16.mxu1 %v13567_v52  ;;  %v13543_v63 = vcombine.high %v3221_v61, %v3225_v28  ;;  %v13542_v11 = vcombine.low %v3221_v61, %v3225_v28  ;;  %v13398_v61 = vcombine.low %v3077_v1, %v3081_v39  ;;  %v3197_v28 = vld [vmem:[#allocation8 + $0x448] sm:$0xff] }
 0x353   :  { %6973 = vmatprep.mubr.bf16.mxu0 %v16649_v9  ;;  %7038 = vmatpush1.bf16.msra.mxu0 %v13438_v57 }
 0x354   :  { %v5420_v18 = vpop.f32.mrf.mxu1  ;;  %7017 = vmatmul.mubr.bf16.vlgmr.msra.gmra.mxu1 %v16651_v16  ;;  %v5369_v58 = vpop.f32.mrf.mxu0  ;;  %7039 = vmatprep.subr.bf16.mxu0 %v13431_v49  ;;  %v13407_v49 = vcombine.high %v3085_v19, %v3089_v46  ;;  %v3061_v19 = vld [vmem:[#allocation8 + $0x8] sm:$0xff] }
 0x355   :  { %v16662_v34 = vadd.f32 %v5420_v18, %v5367_v7  ;;  %7026 = vmatprep.mubr.bf16.mxu1 %v16657_v56  ;;  %7091 = vmatpush1.bf16.msra.mxu1 %v13566_v44  ;;  %v3205_v18 = vld [vmem:[#allocation8 + $0x488] sm:$0xff] }
 0x356   :  { %v5422_v41 = vpop.f32.mrf.mxu1  ;;  %v5371_v53 = vpop.f32.mrf.mxu0  ;;  %7092 = vmatprep.subr.bf16.mxu1 %v13559_v42  ;;  %v3065_v46 = vld [vmem:[#allocation8 + $0x28] sm:$0xff] }
 0x357   :  { %v16667_v20 = vadd.f32 %v5422_v41, %v5369_v58  ;;  %7040 = vmatpush1.bf16.msra.mxu0 %v13430_v29  ;;  %v13535_v29 = vcombine.high %v3213_v17, %v3217_v43  ;;  %v3209_v58 = vld [vmem:[#allocation8 + $0x4a8] sm:$0xff]  ;;  %v13383_v43 = vcombine.high %v3061_v19, %v3065_v46 }
 0x358   :  { %v5424_v37 = vpop.f32.mrf.mxu1  ;;  %v16669_v14 = vpop.f32.mrf.mxu0  ;;  %7041 = vmatprep.subr.bf16.mxu0 %v13423_v4  ;;  %v3069_v41 = vld [vmem:[#allocation8 + $0x48] sm:$0xff] }
 0x359   :  { %v16674_v30 = vadd.f32 %v5424_v37, %v5371_v53  ;;  %7093 = vmatpush1.bf16.msra.mxu1 %v13558_v15  ;;  %v13399_v15 = vcombine.high %v3077_v1, %v3081_v39  ;;  %v3073_v53 = vld [vmem:[#allocation8 + $0x68] sm:$0xff]  ;;  %v13382_v1 = vcombine.low %v3061_v19, %v3065_v46 }
 0x35a   :  { %v16676_v52 = vpop.f32.mrf.mxu1  ;;  %v5377_v57 = vpop.f32.mrf.mxu0  ;;  %6974 = vmatmul.mubr.bf16.gmra.mxu0 %v16672_v59  ;;  %7094 = vmatprep.subr.bf16.mxu1 %v13551_v35  ;;  %v13527_v35 = vcombine.high %v3205_v18, %v3209_v58  ;;  %v3201_v37 = vld [vmem:[#allocation8 + $0x468] sm:$0xff] }
 0x35b   :  { %7042 = vmatpush1.bf16.msra.mxu0 %v13422_v36  ;;  %7069 = vmatprep.mubr.bf16.mxu0 %v16577_v27  ;;  %v3193_v17 = vld [vmem:[#allocation8 + $0x428] sm:$0xff] }
 0x35c   :  { %v5430_v50 = vpop.f32.mrf.mxu1  ;;  %7027 = vmatmul.mubr.bf16.gmra.mxu1 %v16680_v3  ;;  %v5379_v51 = vpop.f32.mrf.mxu0  ;;  %7043 = vmatprep.subr.bf16.mxu0 %v13415_v45  ;;  %v13391_v45 = vcombine.high %v3069_v41, %v3073_v53  ;;  %v3309_v39 = vld [vmem:[#allocation8 + $0x7c8] sm:$0xff] }
 0x35d   :  { %v16684_v44 = vadd.f32 %v5430_v50, %v5377_v57  ;;  %7095 = vmatpush1.bf16.msra.mxu1 %v13550_v31  ;;  %7122 = vmatprep.mubr.bf16.mxu1 %v16583_v54  ;;  %v13526_v31 = vcombine.low %v3205_v18, %v3209_v58  ;;  %v13519_v57 = vcombine.high %v3197_v28, %v3201_v37  ;;  %v3177_v18 = vld [vmem:[#allocation8 + $0x3a8] sm:$0xff] }
 0x35e   :  { %v5432_v7 = vpop.f32.mrf.mxu1  ;;  %v5381_v42 = vpop.f32.mrf.mxu0  ;;  %7096 = vmatprep.subr.bf16.mxu1 %v13543_v63  ;;  %v13390_v63 = vcombine.low %v3069_v41, %v3073_v53  ;;  %v13518_v50 = vcombine.low %v3197_v28, %v3201_v37  ;;  %v3165_v53 = vld [vmem:[#allocation8 + $0x348] sm:$0xff] }
 0x35f   :  { %v16687_v6 = vadd.f32 %v5432_v7, %v5379_v51  ;;  %7044 = vmatpush1.bf16.msra.mxu0 %v13414_v47  ;;  %v3189_v47 = vld [vmem:[#allocation8 + $0x408] sm:$0xff] }
 0x360   :  { %v5434_v26 = vpop.f32.mrf.mxu1  ;;  %v5383_v4 = vpop.f32.mrf.mxu0  ;;  %7045 = vmatprep.subr.bf16.mxu0 %v13407_v49  ;;  %v3181_v51 = vld [vmem:[#allocation8 + $0x3c8] sm:$0xff] }
 0x361   :  { %v16689_v13 = vadd.f32 %v5434_v26, %v5381_v42  ;;  %7097 = vmatpush1.bf16.msra.mxu1 %v13542_v11  ;;  %v3185_v49 = vld [vmem:[#allocation8 + $0x3e8] sm:$0xff]  ;;  %v13511_v11 = vcombine.high %v3189_v47, %v3193_v17 }
 0x362   :  { %v5436_v12 = vpop.f32.mrf.mxu1  ;;  %7098 = vmatprep.subr.bf16.mxu1 %v13535_v29  ;;  %v3313_v7 = vld [vmem:[#allocation8 + $0x7e8] sm:$0xff]  ;;  %v13503_v42 = vcombine.high %v3181_v51, %v3185_v49  ;;  %v13510_v29 = vcombine.low %v3189_v47, %v3193_v17  ;;  %v13502_v26 = vcombine.low %v3181_v51, %v3185_v49 }
 0x363   :  { %v16691_v36 = vadd.f32 %v5436_v12, %v5383_v4  ;;  %7046 = vmatpush1.bf16.msra.mxu0 %v13406_v32  ;;  %v3173_v32 = vld [vmem:[#allocation8 + $0x388] sm:$0xff]  ;;  %v13631_v58 = vcombine.high %v3309_v39, %v3313_v7  ;;  %v13630_v41 = vcombine.low %v3309_v39, %v3313_v7 }
 0x364   :  { %7047 = vmatprep.subr.bf16.mxu0 %v13399_v15  ;;  %v3301_v4 = vld [vmem:[#allocation8 + $0x788] sm:$0xff] }
 0x365   :  { %17697 = vst [vmem:[#allocation35_spill] sm:$0xff] %v16691_v36  ;;  %7099 = vmatpush1.bf16.msra.mxu1 %v13534_v55  ;;  %v3305_v15 = vld [vmem:[#allocation8 + $0x7a8] sm:$0xff]  ;;  %v13495_v55 = vcombine.high %v3173_v32, %v3177_v18 }
 0x366   :  { %7100 = vmatprep.subr.bf16.mxu1 %v13527_v35  ;;  %v3169_v12 = vld [vmem:[#allocation8 + $0x368] sm:$0xff]  ;;  %v13623_v35 = vcombine.high %v3301_v4, %v3305_v15 }
 0x367   :  { %7048 = vmatpush1.bf16.msra.mxu0 %v13398_v61  ;;  %v13494_v61 = vcombine.low %v3173_v32, %v3177_v18  ;;  %v3293_v28 = vld [vmem:[#allocation8 + $0x748] sm:$0xff] }
 0x368   :  { %7049 = vmatprep.subr.bf16.mxu0 %v13391_v45  ;;  %v3297_v37 = vld [vmem:[#allocation8 + $0x768] sm:$0xff]  ;;  %v13487_v45 = vcombine.high %v3165_v53, %v3169_v12 }
 0x369   :  { %7101 = vmatpush1.bf16.msra.mxu1 %v13526_v31  ;;  %v13622_v31 = vcombine.low %v3301_v4, %v3305_v15  ;;  %v3157_v19 = vld [vmem:[#allocation8 + $0x308] sm:$0xff] }
 0x36a   :  { %7102 = vmatprep.subr.bf16.mxu1 %v13519_v57  ;;  %v3161_v46 = vld [vmem:[#allocation8 + $0x328] sm:$0xff]  ;;  %v13615_v57 = vcombine.high %v3293_v28, %v3297_v37 }
 0x36b   :  { %7050 = vmatpush1.bf16.msra.mxu0 %v13390_v63  ;;  %v13486_v63 = vcombine.low %v3165_v53, %v3169_v12  ;;  %v3285_v47 = vld [vmem:[#allocation8 + $0x708] sm:$0xff] }
 0x36c   :  { %7051 = vmatprep.subr.bf16.mxu0 %v13383_v43  ;;  %v3289_v17 = vld [vmem:[#allocation8 + $0x728] sm:$0xff]  ;;  %v13479_v43 = vcombine.high %v3157_v19, %v3161_v46 }
 0x36d   :  { %7103 = vmatpush1.bf16.msra.mxu1 %v13518_v50  ;;  %v13614_v50 = vcombine.low %v3293_v28, %v3297_v37  ;;  %v3149_v51 = vld [vmem:[#allocation8 + $0x2c8] sm:$0xff] }
 0x36e   :  { %7104 = vmatprep.subr.bf16.mxu1 %v13511_v11  ;;  %v3153_v49 = vld [vmem:[#allocation8 + $0x2e8] sm:$0xff]  ;;  %v13607_v11 = vcombine.high %v3285_v47, %v3289_v17 }
 0x36f   :  { %7052 = vmatpush1.bf16.msra.mxu0 %v13382_v1  ;;  %v13478_v1 = vcombine.low %v3157_v19, %v3161_v46  ;;  %v3277_v39 = vld [vmem:[#allocation8 + $0x6c8] sm:$0xff] }
 0x370   :  { %7053 = vmatprep.subr.bf16.mxu0 %v13503_v42  ;;  %v3281_v7 = vld [vmem:[#allocation8 + $0x6e8] sm:$0xff]  ;;  %v13471_v42 = vcombine.high %v3149_v51, %v3153_v49 }
 0x371   :  { %7105 = vmatpush1.bf16.msra.mxu1 %v13510_v29  ;;  %v13606_v29 = vcombine.low %v3285_v47, %v3289_v17  ;;  %v3141_v32 = vld [vmem:[#allocation8 + $0x288] sm:$0xff] }
 0x372   :  { %7106 = vmatprep.subr.bf16.mxu1 %v13631_v58  ;;  %v3145_v18 = vld [vmem:[#allocation8 + $0x2a8] sm:$0xff]  ;;  %v13599_v58 = vcombine.high %v3277_v39, %v3281_v7 }
 0x373   :  { %7054 = vmatpush2.bf16.msra.mxu0 %v13502_v26  ;;  %v13470_v26 = vcombine.low %v3149_v51, %v3153_v49  ;;  %v3269_v4 = vld [vmem:[#allocation8 + $0x688] sm:$0xff]  ;;  %v3118_v51 = vld [vmem:[#allocation8 + $0x1d0] sm:$0xff] }
 0x374   :  { %7055 = vmatprep.subr.bf16.mxu0 %v13495_v55  ;;  %v3273_v15 = vld [vmem:[#allocation8 + $0x6a8] sm:$0xff]  ;;  %v13463_v55 = vcombine.high %v3141_v32, %v3145_v18  ;;  %v3122_v49 = vld [vmem:[#allocation8 + $0x1f0] sm:$0xff] }
 0x375   :  { %7107 = vmatpush2.bf16.msra.mxu1 %v13630_v41  ;;  %v13598_v41 = vcombine.low %v3277_v39, %v3281_v7  ;;  %v3133_v53 = vld [vmem:[#allocation8 + $0x248] sm:$0xff]  ;;  %v3246_v39 = vld [vmem:[#allocation8 + $0x5d0] sm:$0xff] }
 0x376   :  { %7108 = vmatprep.subr.bf16.mxu1 %v13623_v35  ;;  %v3137_v12 = vld [vmem:[#allocation8 + $0x268] sm:$0xff]  ;;  %v13591_v35 = vcombine.high %v3269_v4, %v3273_v15  ;;  %v3250_v7 = vld [vmem:[#allocation8 + $0x5f0] sm:$0xff] }
 0x377   :  { %7056 = vmatpush2.bf16.msra.mxu0 %v13494_v61  ;;  %v13462_v61 = vcombine.low %v3141_v32, %v3145_v18  ;;  %v3261_v28 = vld [vmem:[#allocation8 + $0x648] sm:$0xff]  ;;  %v3110_v32 = vld [vmem:[#allocation8 + $0x190] sm:$0xff] }
 0x378   :  { %7057 = vmatprep.subr.bf16.mxu0 %v13487_v45  ;;  %v3265_v37 = vld [vmem:[#allocation8 + $0x668] sm:$0xff]  ;;  %v13455_v45 = vcombine.high %v3133_v53, %v3137_v12  ;;  %v3114_v18 = vld [vmem:[#allocation8 + $0x1b0] sm:$0xff] }
 0x379   :  { %7109 = vmatpush2.bf16.msra.mxu1 %v13622_v31  ;;  %v13590_v31 = vcombine.low %v3269_v4, %v3273_v15  ;;  %v3125_v19 = vld [vmem:[#allocation8 + $0x208] sm:$0xff]  ;;  %v3238_v4 = vld [vmem:[#allocation8 + $0x590] sm:$0xff] }
 0x37a   :  { %7110 = vmatprep.subr.bf16.mxu1 %v13615_v57  ;;  %v3129_v46 = vld [vmem:[#allocation8 + $0x228] sm:$0xff]  ;;  %v13583_v57 = vcombine.high %v3261_v28, %v3265_v37  ;;  %v3242_v15 = vld [vmem:[#allocation8 + $0x5b0] sm:$0xff] }
 0x37b   :  { %7058 = vmatpush2.bf16.msra.mxu0 %v13486_v63  ;;  %v13454_v63 = vcombine.low %v3133_v53, %v3137_v12  ;;  %v3253_v47 = vld [vmem:[#allocation8 + $0x608] sm:$0xff]  ;;  %v3102_v53 = vld [vmem:[#allocation8 + $0x150] sm:$0xff] }
 0x37c   :  { %7059 = vmatprep.subr.bf16.mxu0 %v13479_v43  ;;  %v3257_v17 = vld [vmem:[#allocation8 + $0x628] sm:$0xff]  ;;  %v13447_v43 = vcombine.high %v3125_v19, %v3129_v46  ;;  %v3106_v12 = vld [vmem:[#allocation8 + $0x170] sm:$0xff] }
 0x37d   :  { %7111 = vmatpush2.bf16.msra.mxu1 %v13614_v50  ;;  %v13582_v50 = vcombine.low %v3261_v28, %v3265_v37  ;;  %v13432_v28 = vcombine.low %v3110_v32, %v3114_v18  ;;  %v3230_v37 = vld [vmem:[#allocation8 + $0x550] sm:$0xff] }
 0x37e   :  { %7112 = vmatprep.subr.bf16.mxu1 %v13607_v11  ;;  %v13575_v11 = vcombine.high %v3253_v47, %v3257_v17 }
 0x37f   :  { %7060 = vmatpush2.bf16.msra.mxu0 %v13478_v1  ;;  %v13446_v1 = vcombine.low %v3125_v19, %v3129_v46  ;;  %v13425_v46 = vcombine.high %v3102_v53, %v3106_v12 }
 0x380   :  { %7061 = vmatprep.subr.bf16.mxu0 %v13471_v42  ;;  %v13441_v42 = vcombine.high %v3118_v51, %v3122_v49 }
 0x381   :  { %7113 = vmatpush2.bf16.msra.mxu1 %v13606_v29  ;;  %v13574_v29 = vcombine.low %v3253_v47, %v3257_v17  ;;  %v3094_v47 = vld [vmem:[#allocation8 + $0x110] sm:$0xff] }
 0x382   :  { %7114 = vmatprep.subr.bf16.mxu1 %v13599_v58  ;;  %v13569_v58 = vcombine.high %v3246_v39, %v3250_v7  ;;  %v3098_v17 = vld [vmem:[#allocation8 + $0x130] sm:$0xff] }
 0x383   :  { %7062 = vmatpush2.bf16.msra.mxu0 %v13470_v26  ;;  %v13440_v26 = vcombine.low %v3118_v51, %v3122_v49 }
 0x384   :  { %7063 = vmatprep.subr.bf16.mxu0 %v13463_v55  ;;  %v13433_v55 = vcombine.high %v3110_v32, %v3114_v18 }
 0x385   :  { %7115 = vmatpush2.bf16.msra.mxu1 %v13598_v41  ;;  %v13568_v41 = vcombine.low %v3246_v39, %v3250_v7  ;;  %v3226_v39 = vld [vmem:[#allocation8 + $0x530] sm:$0xff] }
 0x386   :  { %7116 = vmatprep.subr.bf16.mxu1 %v13591_v35 }
 0x387   :  { %7064 = vmatpush2.bf16.msra.mxu0 %v13462_v61  ;;  %v13561_v61 = vcombine.high %v3238_v4, %v3242_v15 }
 0x388   :  { %7065 = vmatprep.subr.bf16.mxu0 %v13455_v45  ;;  %v3234_v45 = vld [vmem:[#allocation8 + $0x570] sm:$0xff] }
 0x389   :  { %7117 = vmatpush2.bf16.msra.mxu1 %v13590_v31  ;;  %v13553_v51 = vcombine.high %v3230_v37, %v3234_v45  ;;  %v13552_v18 = vcombine.low %v3230_v37, %v3234_v45 }
 0x38a   :  { %7118 = vmatprep.subr.bf16.mxu1 %v13583_v57 }
 0x38b   :  { %7066 = vmatpush2.bf16.msra.mxu0 %v13454_v63  ;;  %v13560_v63 = vcombine.low %v3238_v4, %v3242_v15 }
 0x38c   :  { %7067 = vmatprep.subr.bf16.mxu0 %v13447_v43 }
 0x38d   :  { %7119 = vmatpush2.bf16.msra.mxu1 %v13582_v50 }
 0x38e   :  { %7120 = vmatprep.subr.bf16.mxu1 %v13575_v11  ;;  %v13424_v11 = vcombine.low %v3102_v53, %v3106_v12  ;;  %v13416_v53 = vcombine.low %v3094_v47, %v3098_v17  ;;  %v3214_v12 = vld [vmem:[#allocation8 + $0x4d0] sm:$0xff] }
 0x38f   :  { %7068 = vmatpush2.bf16.msra.mxu0 %v13446_v1  ;;  %v3222_v1 = vld [vmem:[#allocation8 + $0x510] sm:$0xff] }
 0x390   :  { %7143 = vmatprep.subr.bf16.mxu0 %v13441_v42 }
 0x391   :  { %7121 = vmatpush2.bf16.msra.mxu1 %v13574_v29  ;;  %v13417_v29 = vcombine.high %v3094_v47, %v3098_v17 }
 0x392   :  { %v5473_v35 = vpop.f32.mrf.mxu0  ;;  %7070 = vmatmul.mubr.bf16.vlgmr.msra.gmra.mxu0 %v16643_v38  ;;  %7196 = vmatprep.subr.bf16.mxu1 %v13569_v58  ;;  %v3086_v58 = vld [vmem:[#allocation8 + $0xd0] sm:$0xff] }
 0x393   :  { %7079 = vmatprep.mubr.bf16.mxu0 %v16649_v9  ;;  %7144 = vmatpush1.bf16.msra.mxu0 %v13440_v26  ;;  %v3090_v26 = vld [vmem:[#allocation8 + $0xf0] sm:$0xff] }
 0x394   :  { %v5526_v31 = vpop.f32.mrf.mxu1  ;;  %7123 = vmatmul.mubr.bf16.vlgmr.msra.gmra.mxu1 %v16651_v16  ;;  %v5475_v19 = vpop.f32.mrf.mxu0  ;;  %7145 = vmatprep.subr.bf16.mxu0 %v13433_v55  ;;  %v13545_v55 = vcombine.high %v3222_v1, %v3226_v39  ;;  %v13409_v37 = vcombine.high %v3086_v58, %v3090_v26 }
 0x395   :  { %v16696_v57 = vadd.f32 %v5526_v31, %v5473_v35  ;;  %7132 = vmatprep.mubr.bf16.mxu1 %v16657_v56  ;;  %7197 = vmatpush1.bf16.msra.mxu1 %v13568_v41  ;;  %v3218_v35 = vld [vmem:[#allocation8 + $0x4f0] sm:$0xff]  ;;  %v13544_v31 = vcombine.low %v3222_v1, %v3226_v39 }
 0x396   :  { %v5528_v43 = vpop.f32.mrf.mxu1  ;;  %v5477_v50 = vpop.f32.mrf.mxu0  ;;  %7198 = vmatprep.subr.bf16.mxu1 %v13561_v61  ;;  %v13537_v47 = vcombine.high %v3214_v12, %v3218_v35  ;;  %v13536_v1 = vcombine.low %v3214_v12, %v3218_v35  ;;  %v3070_v39 = vld [vmem:[#allocation8 + $0x50] sm:$0xff] }
 0x397   :  { %17698 = vst [vmem:[#allocation36_spill] sm:$0xff] %v16696_v57  ;;  %v16699_v49 = vadd.f32 %v5528_v43, %v5475_v19  ;;  %7146 = vmatpush1.bf16.msra.mxu0 %v13432_v28  ;;  %v3078_v19 = vld [vmem:[#allocation8 + $0x90] sm:$0xff]  ;;  %v7860_v57 = vld [vmem:[#allocation8 + $0x15a0] sm:$0xff] }
 0x398   :  { %v5530_v7 = vpop.f32.mrf.mxu1  ;;  %v5479_v42 = vpop.f32.mrf.mxu0  ;;  %7147 = vmatprep.subr.bf16.mxu0 %v13425_v46  ;;  %v3082_v46 = vld [vmem:[#allocation8 + $0xb0] sm:$0xff] }
 0x399   :  { %17699 = vst [vmem:[#allocation37_spill] sm:$0xff] %v16699_v49  ;;  %v16701_v32 = vadd.f32 %v5530_v7, %v5477_v50  ;;  %7199 = vmatpush1.bf16.msra.mxu1 %v13560_v63  ;;  %v13408_v50 = vcombine.low %v3086_v58, %v3090_v26  ;;  %v3198_v58 = vld [vmem:[#allocation8 + $0x450] sm:$0xff] }
 0x39a   :  { %v5532_v4 = vpop.f32.mrf.mxu1  ;;  %v5483_v15 = vpop.f32.mrf.mxu0  ;;  %7080 = vmatmul.mubr.bf16.gmra.mxu0 %v16672_v59  ;;  %7200 = vmatprep.subr.bf16.mxu1 %v13553_v51  ;;  %v3206_v51 = vld [vmem:[#allocation8 + $0x490] sm:$0xff] }
 0x39b   :  { %17700 = vst [vmem:[#allocation23_spill] sm:$0xff] %v16701_v32  ;;  %v16704_v41 = vadd.f32 %v5532_v4, %v5479_v42  ;;  %7148 = vmatpush1.bf16.msra.mxu0 %v13424_v11  ;;  %7175 = vmatprep.mubr.bf16.mxu0 %v16577_v27  ;;  %v3210_v11 = vld [vmem:[#allocation8 + $0x4b0] sm:$0xff] }
 0x39c   :  { %v5536_v61 = vpop.f32.mrf.mxu1  ;;  %7133 = vmatmul.mubr.bf16.gmra.mxu1 %v16680_v3  ;;  %v5485_v28 = vpop.f32.mrf.mxu0  ;;  %7149 = vmatprep.subr.bf16.mxu0 %v13417_v29  ;;  %v13401_v29 = vcombine.high %v3078_v19, %v3082_v46  ;;  %v3074_v4 = vld [vmem:[#allocation8 + $0x70] sm:$0xff] }
 0x39d   :  { %17701 = vst [vmem:[#allocation20_spill] sm:$0xff] %v16704_v41  ;;  %v16708_v45 = vadd.f32 %v5536_v61, %v5483_v15  ;;  %7201 = vmatpush1.bf16.msra.mxu1 %v13552_v18  ;;  %7228 = vmatprep.mubr.bf16.mxu1 %v16583_v54  ;;  %v3202_v26 = vld [vmem:[#allocation8 + $0x470] sm:$0xff]  ;;  %v13392_v12 = vcombine.low %v3070_v39, %v3074_v4 }
 0x39e   :  { %v5538_v63 = vpop.f32.mrf.mxu1  ;;  %v5487_v43 = vpop.f32.mrf.mxu0  ;;  %7202 = vmatprep.subr.bf16.mxu1 %v13545_v55  ;;  %v13529_v55 = vcombine.high %v3206_v51, %v3210_v11  ;;  %v3190_v35 = vld [vmem:[#allocation8 + $0x410] sm:$0xff] }
 0x39f   :  { %17702 = vst [vmem:[#allocation21_spill] sm:$0xff] %v16708_v45  ;;  %v16711_v17 = vadd.f32 %v5538_v63, %v5485_v28  ;;  %7150 = vmatpush1.bf16.msra.mxu0 %v13416_v53  ;;  %v13400_v53 = vcombine.low %v3078_v19, %v3082_v46  ;;  %v13393_v28 = vcombine.high %v3070_v39, %v3074_v4  ;;  %v3062_v63 = vld [vmem:[#allocation8 + $0x10] sm:$0xff] }
 0x3a0   :  { %v5540_v7 = vpop.f32.mrf.mxu1  ;;  %v5489_v42 = vpop.f32.mrf.mxu0  ;;  %7151 = vmatprep.subr.bf16.mxu0 %v13409_v37  ;;  %v13528_v37 = vcombine.low %v3206_v51, %v3210_v11  ;;  %v3186_v19 = vld [vmem:[#allocation8 + $0x3f0] sm:$0xff] }
 0x3a1   :  { %17703 = vst [vmem:[#allocation38_spill] sm:$0xff] %v16711_v17  ;;  %v16713_v18 = vadd.f32 %v5540_v7, %v5487_v43  ;;  %7203 = vmatpush1.bf16.msra.mxu1 %v13544_v31  ;;  %v3066_v43 = vld [vmem:[#allocation8 + $0x30] sm:$0xff]  ;;  %v13521_v31 = vcombine.high %v3198_v58, %v3202_v26  ;;  %v7868_v17 = vld [vmem:[#allocation8 + $0x15e0] sm:$0xff] }
 0x3a2   :  { %v5542_v15 = vpop.f32.mrf.mxu1  ;;  %7204 = vmatprep.subr.bf16.mxu1 %v13537_v47  ;;  %v3194_v7 = vld [vmem:[#allocation8 + $0x430] sm:$0xff]  ;;  %v13385_v47 = vcombine.high %v3062_v63, %v3066_v43 }
 0x3a3   :  { %17704 = vst [vmem:[#allocation39_spill] sm:$0xff] %v16713_v18  ;;  %v16715_v61 = vadd.f32 %v5542_v15, %v5489_v42  ;;  %7152 = vmatpush1.bf16.msra.mxu0 %v13408_v50  ;;  %v13520_v42 = vcombine.low %v3198_v58, %v3202_v26  ;;  %v3182_v50 = vld [vmem:[#allocation8 + $0x3d0] sm:$0xff]  ;;  %v13513_v46 = vcombine.high %v3190_v35, %v3194_v7  ;;  %v7740_v18 = vld [vmem:[#allocation8 + $0x11e0] sm:$0xff] }
 0x3a4   :  { %7153 = vmatprep.subr.bf16.mxu0 %v13401_v29  ;;  %v13384_v29 = vcombine.low %v3062_v63, %v3066_v43  ;;  %v3314_v51 = vld [vmem:[#allocation8 + $0x7f0] sm:$0xff]  ;;  %v13505_v11 = vcombine.high %v3182_v50, %v3186_v19  ;;  %v13512_v15 = vcombine.low %v3190_v35, %v3194_v7 }
 0x3a5   :  { %17705 = vst [vmem:[#allocation27_spill] sm:$0xff] %v16715_v61  ;;  %7205 = vmatpush1.bf16.msra.mxu1 %v13536_v1  ;;  %v3310_v1 = vld [vmem:[#allocation8 + $0x7d0] sm:$0xff]  ;;  %v3259_v61 = vld [vmem:[#allocation8 + $0x638] sm:$0xff] }
 0x3a6   :  { %7206 = vmatprep.subr.bf16.mxu1 %v13529_v55  ;;  %v3174_v55 = vld [vmem:[#allocation8 + $0x390] sm:$0xff]  ;;  %v13633_v4 = vcombine.high %v3310_v1, %v3314_v51 }
 0x3a7   :  { %7154 = vmatpush1.bf16.msra.mxu0 %v13400_v53  ;;  %v3178_v39 = vld [vmem:[#allocation8 + $0x3b0] sm:$0xff]  ;;  %v13504_v53 = vcombine.low %v3182_v50, %v3186_v19 }
 0x3a8   :  { %7155 = vmatprep.subr.bf16.mxu0 %v13393_v28  ;;  %v3302_v28 = vld [vmem:[#allocation8 + $0x790] sm:$0xff]  ;;  %v13497_v26 = vcombine.high %v3174_v55, %v3178_v39 }
 0x3a9   :  { %7207 = vmatpush1.bf16.msra.mxu1 %v13528_v37  ;;  %v3306_v58 = vld [vmem:[#allocation8 + $0x7b0] sm:$0xff]  ;;  %v13632_v37 = vcombine.low %v3310_v1, %v3314_v51 }
 0x3aa   :  { %7208 = vmatprep.subr.bf16.mxu1 %v13521_v31  ;;  %v3166_v31 = vld [vmem:[#allocation8 + $0x350] sm:$0xff]  ;;  %v13625_v43 = vcombine.high %v3302_v28, %v3306_v58 }
 0x3ab   :  { %7156 = vmatpush1.bf16.msra.mxu0 %v13392_v12  ;;  %v3170_v63 = vld [vmem:[#allocation8 + $0x370] sm:$0xff]  ;;  %v13496_v12 = vcombine.low %v3174_v55, %v3178_v39 }
 0x3ac   :  { %7157 = vmatprep.subr.bf16.mxu0 %v13385_v47  ;;  %v3294_v47 = vld [vmem:[#allocation8 + $0x750] sm:$0xff]  ;;  %v13489_v7 = vcombine.high %v3166_v31, %v3170_v63 }
 0x3ad   :  { %7209 = vmatpush1.bf16.msra.mxu1 %v13520_v42  ;;  %v3298_v35 = vld [vmem:[#allocation8 + $0x770] sm:$0xff]  ;;  %v13624_v42 = vcombine.low %v3302_v28, %v3306_v58 }
 0x3ae   :  { %7210 = vmatprep.subr.bf16.mxu1 %v13513_v46  ;;  %v3158_v46 = vld [vmem:[#allocation8 + $0x310] sm:$0xff]  ;;  %v13617_v19 = vcombine.high %v3294_v47, %v3298_v35 }
 0x3af   :  { %7158 = vmatpush1.bf16.msra.mxu0 %v13384_v29  ;;  %v3162_v50 = vld [vmem:[#allocation8 + $0x330] sm:$0xff]  ;;  %v13488_v29 = vcombine.low %v3166_v31, %v3170_v63 }
 0x3b0   :  { %7159 = vmatprep.subr.bf16.mxu0 %v13505_v11  ;;  %v3286_v11 = vld [vmem:[#allocation8 + $0x710] sm:$0xff]  ;;  %v13481_v51 = vcombine.high %v3158_v46, %v3162_v50 }
 0x3b1   :  { %7211 = vmatpush1.bf16.msra.mxu1 %v13512_v15  ;;  %v3290_v1 = vld [vmem:[#allocation8 + $0x730] sm:$0xff]  ;;  %v13616_v15 = vcombine.low %v3294_v47, %v3298_v35 }
 0x3b2   :  { %7212 = vmatprep.subr.bf16.mxu1 %v13633_v4  ;;  %v3150_v4 = vld [vmem:[#allocation8 + $0x2d0] sm:$0xff]  ;;  %v13609_v39 = vcombine.high %v3286_v11, %v3290_v1 }
 0x3b3   :  { %7160 = vmatpush2.bf16.msra.mxu0 %v13504_v53  ;;  %v3154_v55 = vld [vmem:[#allocation8 + $0x2f0] sm:$0xff]  ;;  %v13480_v53 = vcombine.low %v3158_v46, %v3162_v50 }
 0x3b4   :  { %7161 = vmatprep.subr.bf16.mxu0 %v13497_v26  ;;  %v3278_v26 = vld [vmem:[#allocation8 + $0x6d0] sm:$0xff]  ;;  %v13473_v58 = vcombine.high %v3150_v4, %v3154_v55 }
 0x3b5   :  { %7213 = vmatpush2.bf16.msra.mxu1 %v13632_v37  ;;  %v3282_v28 = vld [vmem:[#allocation8 + $0x6f0] sm:$0xff]  ;;  %v13608_v37 = vcombine.low %v3286_v11, %v3290_v1 }
 0x3b6   :  { %7214 = vmatprep.subr.bf16.mxu1 %v13625_v43  ;;  %v3142_v43 = vld [vmem:[#allocation8 + $0x290] sm:$0xff]  ;;  %v13601_v63 = vcombine.high %v3278_v26, %v3282_v28 }
 0x3b7   :  { %7162 = vmatpush2.bf16.msra.mxu0 %v13496_v12  ;;  %v3146_v31 = vld [vmem:[#allocation8 + $0x2b0] sm:$0xff]  ;;  %v13472_v12 = vcombine.low %v3150_v4, %v3154_v55 }
 0x3b8   :  { %7163 = vmatprep.subr.bf16.mxu0 %v13489_v7  ;;  %v3270_v7 = vld [vmem:[#allocation8 + $0x690] sm:$0xff]  ;;  %v13465_v35 = vcombine.high %v3142_v43, %v3146_v31 }
 0x3b9   :  { %7215 = vmatpush2.bf16.msra.mxu1 %v13624_v42  ;;  %v3274_v47 = vld [vmem:[#allocation8 + $0x6b0] sm:$0xff]  ;;  %v13600_v42 = vcombine.low %v3278_v26, %v3282_v28 }
 0x3ba   :  { %7216 = vmatprep.subr.bf16.mxu1 %v13617_v19  ;;  %v3134_v19 = vld [vmem:[#allocation8 + $0x250] sm:$0xff]  ;;  %v13593_v50 = vcombine.high %v3270_v7, %v3274_v47 }
 0x3bb   :  { %7164 = vmatpush2.bf16.msra.mxu0 %v13488_v29  ;;  %v3138_v46 = vld [vmem:[#allocation8 + $0x270] sm:$0xff]  ;;  %v13464_v29 = vcombine.low %v3142_v43, %v3146_v31  ;;  %v3123_v43 = vld [vmem:[#allocation8 + $0x1f8] sm:$0xff] }
 0x3bc   :  { %7165 = vmatprep.subr.bf16.mxu0 %v13481_v51  ;;  %v3262_v51 = vld [vmem:[#allocation8 + $0x650] sm:$0xff]  ;;  %v13457_v1 = vcombine.high %v3134_v19, %v3138_v46 }
 0x3bd   :  { %7217 = vmatpush2.bf16.msra.mxu1 %v13616_v15  ;;  %v3266_v11 = vld [vmem:[#allocation8 + $0x670] sm:$0xff]  ;;  %v13592_v15 = vcombine.low %v3270_v7, %v3274_v47  ;;  %v3251_v7 = vld [vmem:[#allocation8 + $0x5f8] sm:$0xff] }
 0x3be   :  { %7218 = vmatprep.subr.bf16.mxu1 %v13609_v39  ;;  %v3126_v39 = vld [vmem:[#allocation8 + $0x210] sm:$0xff]  ;;  %v13585_v55 = vcombine.high %v3262_v51, %v3266_v11 }
 0x3bf   :  { %7166 = vmatpush2.bf16.msra.mxu0 %v13480_v53  ;;  %v3130_v4 = vld [vmem:[#allocation8 + $0x230] sm:$0xff]  ;;  %v13456_v53 = vcombine.low %v3134_v19, %v3138_v46  ;;  %v3115_v19 = vld [vmem:[#allocation8 + $0x1b8] sm:$0xff] }
 0x3c0   :  { %7167 = vmatprep.subr.bf16.mxu0 %v13473_v58  ;;  %v3254_v58 = vld [vmem:[#allocation8 + $0x610] sm:$0xff]  ;;  %v13449_v28 = vcombine.high %v3126_v39, %v3130_v4 }
 0x3c1   :  { %7219 = vmatpush2.bf16.msra.mxu1 %v13608_v37  ;;  %v3258_v26 = vld [vmem:[#allocation8 + $0x630] sm:$0xff]  ;;  %v13584_v37 = vcombine.low %v3262_v51, %v3266_v11  ;;  %v3243_v51 = vld [vmem:[#allocation8 + $0x5b8] sm:$0xff] }
 0x3c2   :  { %7220 = vmatprep.subr.bf16.mxu1 %v13601_v63  ;;  %v3119_v63 = vld [vmem:[#allocation8 + $0x1d8] sm:$0xff]  ;;  %v13577_v31 = vcombine.high %v3254_v58, %v3258_v26 }
 0x3c3   :  { %7168 = vmatpush2.bf16.msra.mxu0 %v13472_v12  ;;  %v13448_v12 = vcombine.low %v3126_v39, %v3130_v4  ;;  %v13443_v47 = vcombine.high %v3119_v63, %v3123_v43  ;;  %v3107_v39 = vld [vmem:[#allocation8 + $0x178] sm:$0xff] }
 0x3c4   :  { %7169 = vmatprep.subr.bf16.mxu0 %v13465_v35  ;;  %v3247_v35 = vld [vmem:[#allocation8 + $0x5d8] sm:$0xff] }
 0x3c5   :  { %7221 = vmatpush2.bf16.msra.mxu1 %v13600_v42  ;;  %v13576_v42 = vcombine.low %v3254_v58, %v3258_v26  ;;  %v13571_v46 = vcombine.high %v3247_v35, %v3251_v7  ;;  %v3231_v26 = vld [vmem:[#allocation8 + $0x558] sm:$0xff] }
 0x3c6   :  { %7222 = vmatprep.subr.bf16.mxu1 %v13593_v50  ;;  %v3111_v50 = vld [vmem:[#allocation8 + $0x198] sm:$0xff] }
 0x3c7   :  { %7170 = vmatpush2.bf16.msra.mxu0 %v13464_v29  ;;  %v13442_v29 = vcombine.low %v3119_v63, %v3123_v43  ;;  %v13435_v11 = vcombine.high %v3111_v50, %v3115_v19  ;;  %v13434_v58 = vcombine.low %v3111_v50, %v3115_v19 }
 0x3c8   :  { %7171 = vmatprep.subr.bf16.mxu0 %v13457_v1  ;;  %v3239_v1 = vld [vmem:[#allocation8 + $0x598] sm:$0xff] }
 0x3c9   :  { %7223 = vmatpush2.bf16.msra.mxu1 %v13592_v15  ;;  %v13570_v15 = vcombine.low %v3247_v35, %v3251_v7  ;;  %v3095_v35 = vld [vmem:[#allocation8 + $0x118] sm:$0xff] }
 0x3ca   :  { %7224 = vmatprep.subr.bf16.mxu1 %v13585_v55  ;;  %v3103_v55 = vld [vmem:[#allocation8 + $0x158] sm:$0xff] }
 0x3cb   :  { %7172 = vmatpush2.bf16.msra.mxu0 %v13456_v53  ;;  %v13563_v53 = vcombine.high %v3239_v1, %v3243_v51  ;;  %v13427_v43 = vcombine.high %v3103_v55, %v3107_v39  ;;  %v3099_v7 = vld [vmem:[#allocation8 + $0x138] sm:$0xff] }
 0x3cc   :  { %7173 = vmatprep.subr.bf16.mxu0 %v13449_v28  ;;  %v3235_v28 = vld [vmem:[#allocation8 + $0x578] sm:$0xff] }
 0x3cd   :  { %7225 = vmatpush2.bf16.msra.mxu1 %v13584_v37  ;;  %v13555_v50 = vcombine.high %v3231_v26, %v3235_v28 }
 0x3ce   :  { %7226 = vmatprep.subr.bf16.mxu1 %v13577_v31 }
 0x3cf   :  { %7174 = vmatpush2.bf16.msra.mxu0 %v13448_v12  ;;  %v13562_v12 = vcombine.low %v3239_v1, %v3243_v51  ;;  %v13554_v1 = vcombine.low %v3231_v26, %v3235_v28  ;;  %v3087_v51 = vld [vmem:[#allocation8 + $0xd8] sm:$0xff] }
 0x3d0   :  { %7249 = vmatprep.subr.bf16.mxu0 %v13443_v47 }
 0x3d1   :  { %7227 = vmatpush2.bf16.msra.mxu1 %v13576_v42 }
 0x3d2   :  { %v5579_v4 = vpop.f32.mrf.mxu0  ;;  %7176 = vmatmul.mubr.bf16.vlgmr.msra.gmra.mxu0 %v16643_v38  ;;  %7302 = vmatprep.subr.bf16.mxu1 %v13571_v46  ;;  %v13426_v46 = vcombine.low %v3103_v55, %v3107_v39  ;;  %v13418_v55 = vcombine.low %v3095_v35, %v3099_v7  ;;  %v3215_v39 = vld [vmem:[#allocation8 + $0x4d8] sm:$0xff] }
 0x3d3   :  { %7185 = vmatprep.mubr.bf16.mxu0 %v16649_v9  ;;  %7250 = vmatpush1.bf16.msra.mxu0 %v13442_v29  ;;  %v3223_v29 = vld [vmem:[#allocation8 + $0x518] sm:$0xff] }
 0x3d4   :  { %v5632_v37 = vpop.f32.mrf.mxu1  ;;  %7229 = vmatmul.mubr.bf16.vlgmr.msra.gmra.mxu1 %v16651_v16  ;;  %v5581_v63 = vpop.f32.mrf.mxu0  ;;  %7251 = vmatprep.subr.bf16.mxu0 %v13435_v11 }
 0x3d5   :  { %v16720_v31 = vadd.f32 %v5632_v37, %v5579_v4  ;;  %7238 = vmatprep.mubr.bf16.mxu1 %v16657_v56  ;;  %7303 = vmatpush1.bf16.msra.mxu1 %v13570_v15  ;;  %v13419_v4 = vcombine.high %v3095_v35, %v3099_v7  ;;  %v3091_v15 = vld [vmem:[#allocation8 + $0xf8] sm:$0xff] }
 0x3d6   :  { %v5634_v47 = vpop.f32.mrf.mxu1  ;;  %v5583_v42 = vpop.f32.mrf.mxu0  ;;  %7304 = vmatprep.subr.bf16.mxu1 %v13563_v53  ;;  %v13547_v53 = vcombine.high %v3223_v29, %v3227_v2  ;;  %v13411_v28 = vcombine.high %v3087_v51, %v3091_v15  ;;  %v13410_v7 = vcombine.low %v3087_v51, %v3091_v15  ;;  %v3199_v51 = vld [vmem:[#allocation8 + $0x458] sm:$0xff] }
 0x3d7   :  { %17706 = vst [vmem:[#allocation24_spill] sm:$0xff] %v16720_v31  ;;  %v16723_v19 = vadd.f32 %v5634_v47, %v5581_v63  ;;  %7252 = vmatpush1.bf16.msra.mxu0 %v13434_v58  ;;  %v3219_v63 = vld [vmem:[#allocation8 + $0x4f8] sm:$0xff]  ;;  %v13546_v47 = vcombine.low %v3223_v29, %v3227_v2 }
 0x3d8   :  { %v5636_v11 = vpop.f32.mrf.mxu1  ;;  %v5585_v10 = vpop.f32.mrf.mxu0  ;;  %7253 = vmatprep.subr.bf16.mxu0 %v13427_v43  ;;  %v13538_v2 = vcombine.low %v3215_v39, %v3219_v63  ;;  %v3075_v29 = vld [vmem:[#allocation8 + $0x78] sm:$0xff] }
 0x3d9   :  { %17707 = vst [vmem:[#allocation28_spill] sm:$0xff] %v16723_v19  ;;  %v16725_v37 = vadd.f32 %v5636_v11, %v5583_v42  ;;  %7305 = vmatpush1.bf16.msra.mxu1 %v13562_v12  ;;  %v3211_v11 = vld [vmem:[#allocation8 + $0x4b8] sm:$0xff] }
 0x3da   :  { %v5638_v40 = vpop.f32.mrf.mxu1  ;;  %v5589_v60 = vpop.f32.mrf.mxu0  ;;  %7186 = vmatmul.mubr.bf16.gmra.mxu0 %v16672_v59  ;;  %7306 = vmatprep.subr.bf16.mxu1 %v13555_v50  ;;  %v3203_v15 = vld [vmem:[#allocation8 + $0x478] sm:$0xff] }
 0x3db   :  { %17708 = vst [vmem:[#allocation40_spill] sm:$0xff] %v16725_v37  ;;  %v16728_v58 = vadd.f32 %v5638_v40, %v5585_v10  ;;  %7254 = vmatpush1.bf16.msra.mxu0 %v13426_v46  ;;  %7281 = vmatprep.mubr.bf16.mxu0 %v16577_v27  ;;  %v3079_v40 = vld [vmem:[#allocation8 + $0x98] sm:$0xff]  ;;  %v13539_v27 = vcombine.high %v3215_v39, %v3219_v63 }
 0x3dc   :  { %v5642_v43 = vpop.f32.mrf.mxu1  ;;  %7239 = vmatmul.mubr.bf16.gmra.mxu1 %v16680_v3  ;;  %v5591_v26 = vpop.f32.mrf.mxu0  ;;  %7255 = vmatprep.subr.bf16.mxu0 %v13419_v4  ;;  %v3083_v10 = vld [vmem:[#allocation8 + $0xb8] sm:$0xff] }
 0x3dd   :  { %17709 = vst [vmem:[#allocation41_spill] sm:$0xff] %v16728_v58  ;;  %v16732_v12 = vadd.f32 %v5642_v43, %v5589_v60  ;;  %7307 = vmatpush1.bf16.msra.mxu1 %v13554_v1  ;;  %7334 = vmatprep.mubr.bf16.mxu1 %v16583_v54  ;;  %v3207_v46 = vld [vmem:[#allocation8 + $0x498] sm:$0xff]  ;;  %v13403_v60 = vcombine.high %v3079_v40, %v3083_v10 }
 0x3de   :  { %v5644_v42 = vpop.f32.mrf.mxu1  ;;  %v5593_v50 = vpop.f32.mrf.mxu0  ;;  %7308 = vmatprep.subr.bf16.mxu1 %v13547_v53  ;;  %v3071_v54 = vld [vmem:[#allocation8 + $0x58] sm:$0xff]  ;;  %v13531_v53 = vcombine.high %v3207_v46, %v3211_v11 }
 0x3df   :  { %17710 = vst [vmem:[#allocation42_spill] sm:$0xff] %v16732_v12  ;;  %v16735_v35 = vadd.f32 %v5644_v42, %v5591_v26  ;;  %7256 = vmatpush1.bf16.msra.mxu0 %v13418_v55  ;;  %v13402_v55 = vcombine.low %v3079_v40, %v3083_v10  ;;  %v13395_v26 = vcombine.high %v3071_v54, %v3075_v29  ;;  %v3063_v42 = vld [vmem:[#allocation8 + $0x18] sm:$0xff] }
 0x3e0   :  { %v5646_v4 = vpop.f32.mrf.mxu1  ;;  %v5595_v58 = vpop.f32.mrf.mxu0  ;;  %7257 = vmatprep.subr.bf16.mxu0 %v13411_v28  ;;  %v13530_v28 = vcombine.low %v3207_v46, %v3211_v11  ;;  %v13394_v39 = vcombine.low %v3071_v54, %v3075_v29  ;;  %v3191_v63 = vld [vmem:[#allocation8 + $0x418] sm:$0xff] }
 0x3e1   :  { %17711 = vst [vmem:[#allocation44_spill] sm:$0xff] %v16735_v35  ;;  %v16737_v1 = vadd.f32 %v5646_v4, %v5593_v50  ;;  %7309 = vmatpush1.bf16.msra.mxu1 %v13546_v47  ;;  %v3067_v50 = vld [vmem:[#allocation8 + $0x38] sm:$0xff]  ;;  %v13523_v47 = vcombine.high %v3199_v51, %v3203_v15  ;;  %v14543_v35 = vld [vmem:[#allocation2 + $0x34] ss:$8 sps:$4 sm:$0xff]  }
 0x3e2   :  { %v5648_v43 = vpop.f32.mrf.mxu1  ;;  %7310 = vmatprep.subr.bf16.mxu1 %v13539_v27  ;;  %v3195_v4 = vld [vmem:[#allocation8 + $0x438] sm:$0xff]  ;;  %v13387_v27 = vcombine.high %v3063_v42, %v3067_v50 }
 0x3e3   :  { %17712 = vst [vmem:[#allocation26_spill] sm:$0xff] %v16737_v1  ;;  %v16739_v12 = vadd.f32 %v5648_v43, %v5595_v58  ;;  %7258 = vmatpush1.bf16.msra.mxu0 %v13410_v7  ;;  %v13522_v58 = vcombine.low %v3199_v51, %v3203_v15  ;;  %v3183_v7 = vld [vmem:[#allocation8 + $0x3d8] sm:$0xff]  ;;  %v13515_v10 = vcombine.high %v3191_v63, %v3195_v4 }
 0x3e4   :  { %7259 = vmatprep.subr.bf16.mxu0 %v13403_v60  ;;  %v3187_v40 = vld [vmem:[#allocation8 + $0x3f8] sm:$0xff]  ;;  %v13386_v60 = vcombine.low %v3063_v42, %v3067_v50  ;;  %v13514_v43 = vcombine.low %v3191_v63, %v3195_v4 }
 0x3e5   :  { %17713 = vst [vmem:[#allocation22_spill] sm:$0xff] %v16739_v12  ;;  %7311 = vmatpush1.bf16.msra.mxu1 %v13538_v2  ;;  %v3311_v2 = vld [vmem:[#allocation8 + $0x7d8] sm:$0xff]  ;;  %v13507_v11 = vcombine.high %v3183_v7, %v3187_v40  ;;  %v14539_v12 = vld [vmem:[#allocation2 + $0x30] ss:$8 sps:$4 sm:$0xff]  }
 0x3e6   :  { %7312 = vmatprep.subr.bf16.mxu1 %v13531_v53  ;;  %v3315_v46 = vld [vmem:[#allocation8 + $0x7f8] sm:$0xff] }
 0x3e7   :  { %7260 = vmatpush1.bf16.msra.mxu0 %v13402_v55  ;;  %v3175_v53 = vld [vmem:[#allocation8 + $0x398] sm:$0xff]  ;;  %v13635_v29 = vcombine.high %v3311_v2, %v3315_v46  ;;  %v13506_v55 = vcombine.low %v3183_v7, %v3187_v40 }
 0x3e8   :  { %7261 = vmatprep.subr.bf16.mxu0 %v13395_v26  ;;  %v3179_v54 = vld [vmem:[#allocation8 + $0x3b8] sm:$0xff] }
 0x3e9   :  { %7313 = vmatpush1.bf16.msra.mxu1 %v13530_v28  ;;  %v3303_v26 = vld [vmem:[#allocation8 + $0x798] sm:$0xff]  ;;  %v13499_v15 = vcombine.high %v3175_v53, %v3179_v54  ;;  %v13634_v28 = vcombine.low %v3311_v2, %v3315_v46 }
 0x3ea   :  { %7314 = vmatprep.subr.bf16.mxu1 %v13523_v47  ;;  %v3307_v51 = vld [vmem:[#allocation8 + $0x7b8] sm:$0xff] }
 0x3eb   :  { %7262 = vmatpush1.bf16.msra.mxu0 %v13394_v39  ;;  %v3167_v47 = vld [vmem:[#allocation8 + $0x358] sm:$0xff]  ;;  %v13627_v50 = vcombine.high %v3303_v26, %v3307_v51  ;;  %v13498_v39 = vcombine.low %v3175_v53, %v3179_v54 }
 0x3ec   :  { %7263 = vmatprep.subr.bf16.mxu0 %v13387_v27  ;;  %v3171_v42 = vld [vmem:[#allocation8 + $0x378] sm:$0xff] }
 0x3ed   :  { %7315 = vmatpush1.bf16.msra.mxu1 %v13522_v58  ;;  %v3295_v27 = vld [vmem:[#allocation8 + $0x758] sm:$0xff]  ;;  %v13491_v4 = vcombine.high %v3167_v47, %v3171_v42  ;;  %v13626_v58 = vcombine.low %v3303_v26, %v3307_v51 }
 0x3ee   :  { %7316 = vmatprep.subr.bf16.mxu1 %v13515_v10  ;;  %v3299_v63 = vld [vmem:[#allocation8 + $0x778] sm:$0xff] }
 0x3ef   :  { %7264 = vmatpush1.bf16.msra.mxu0 %v13386_v60  ;;  %v3159_v10 = vld [vmem:[#allocation8 + $0x318] sm:$0xff]  ;;  %v13619_v40 = vcombine.high %v3295_v27, %v3299_v63  ;;  %v13490_v60 = vcombine.low %v3167_v47, %v3171_v42 }
 0x3f0   :  { %7265 = vmatprep.subr.bf16.mxu0 %v13507_v11  ;;  %v3163_v7 = vld [vmem:[#allocation8 + $0x338] sm:$0xff] }
 0x3f1   :  { %7317 = vmatpush1.bf16.msra.mxu1 %v13514_v43  ;;  %v3287_v11 = vld [vmem:[#allocation8 + $0x718] sm:$0xff]  ;;  %v13483_v46 = vcombine.high %v3159_v10, %v3163_v7  ;;  %v13618_v43 = vcombine.low %v3295_v27, %v3299_v63 }
 0x3f2   :  { %7318 = vmatprep.subr.bf16.mxu1 %v13635_v29  ;;  %v3291_v2 = vld [vmem:[#allocation8 + $0x738] sm:$0xff] }
 0x3f3   :  { %7266 = vmatpush2.bf16.msra.mxu0 %v13506_v55  ;;  %v3151_v29 = vld [vmem:[#allocation8 + $0x2d8] sm:$0xff]  ;;  %v13611_v54 = vcombine.high %v3287_v11, %v3291_v2  ;;  %v13482_v55 = vcombine.low %v3159_v10, %v3163_v7 }
 0x3f4   :  { %7267 = vmatprep.subr.bf16.mxu0 %v13499_v15  ;;  %v3155_v53 = vld [vmem:[#allocation8 + $0x2f8] sm:$0xff] }
 0x3f5   :  { %7319 = vmatpush2.bf16.msra.mxu1 %v13634_v28  ;;  %v3279_v15 = vld [vmem:[#allocation8 + $0x6d8] sm:$0xff]  ;;  %v13475_v51 = vcombine.high %v3151_v29, %v3155_v53  ;;  %v13610_v28 = vcombine.low %v3287_v11, %v3291_v2  ;;  %v14535_v11 = vld [vmem:[#allocation2 + $0x14] ss:$8 sps:$4 sm:$0xff]  }
 0x3f6   :  { %7320 = vmatprep.subr.bf16.mxu1 %v13627_v50  ;;  %v3283_v26 = vld [vmem:[#allocation8 + $0x6f8] sm:$0xff] }
 0x3f7   :  { %7268 = vmatpush2.bf16.msra.mxu0 %v13498_v39  ;;  %v3143_v50 = vld [vmem:[#allocation8 + $0x298] sm:$0xff]  ;;  %v13603_v42 = vcombine.high %v3279_v15, %v3283_v26  ;;  %v13474_v39 = vcombine.low %v3151_v29, %v3155_v53 }
 0x3f8   :  { %7269 = vmatprep.subr.bf16.mxu0 %v13491_v4  ;;  %v3147_v47 = vld [vmem:[#allocation8 + $0x2b8] sm:$0xff] }
 0x3f9   :  { %7321 = vmatpush2.bf16.msra.mxu1 %v13626_v58  ;;  %v3271_v4 = vld [vmem:[#allocation8 + $0x698] sm:$0xff]  ;;  %v13467_v63 = vcombine.high %v3143_v50, %v3147_v47 }
 0x3fa   :  { %7322 = vmatprep.subr.bf16.mxu1 %v13619_v40  ;;  %v3275_v27 = vld [vmem:[#allocation8 + $0x6b8] sm:$0xff]  ;;  %v13602_v40 = vcombine.low %v3279_v15, %v3283_v26 }
 0x3fb   :  { %7270 = vmatpush2.bf16.msra.mxu0 %v13490_v60  ;;  %v14530_v58 = vld [vmem:[#allocation2] ss:$8 sps:$4 sm:$0xcc]   ;;  %v14532_v60 = vld [vmem:[#allocation2 + $0x4] ss:$8 sps:$4 sm:$0xff]   ;;  %v13594_v15 = vcombine.low %v3271_v4, %v3275_v27 }
 0x3fc   :  { %7271 = vmatprep.subr.bf16.mxu0 %v13483_v46  ;;  %v3135_v10 = vld [vmem:[#allocation8 + $0x258] sm:$0xff]  ;;  %v14533_v46 = vld [vmem:[#allocation2 + $0x10] ss:$8 sps:$4 sm:$0xcc]   ;;  %v7397_v37 = vrot.slane %v14530_v58, %v15570_v48 }
 0x3fd   :  { %7323 = vmatpush2.bf16.msra.mxu1 %v13618_v43  ;;  %v3139_v7 = vld [vmem:[#allocation8 + $0x278] sm:$0xff]  ;;  %v13595_v43 = vcombine.high %v3271_v4, %v3275_v27  ;;  %v7418_v4 = vrot.slane %v14535_v11, %v15570_v48 }
 0x3fe   :  { %7324 = vmatprep.subr.bf16.mxu1 %v13611_v54  ;;  %v14536_v2 = vld [vmem:[#allocation2 + $0x20] ss:$8 sps:$4 sm:$0xff]   ;;  %v13466_v54 = vcombine.low %v3143_v50, %v3147_v47  ;;  %v14538_v53 = vld [vmem:[#allocation2 + $0x24] ss:$8 sps:$4 sm:$0xff]   ;;  %v7446_v50 = vrot.slane %v14539_v12, %v15570_v48 }
 0x3ff   :  { %7272 = vmatpush2.bf16.msra.mxu0 %v13482_v55  ;;  %v3263_v55 = vld [vmem:[#allocation8 + $0x658] sm:$0xff]  ;;  %v14544_v47 = vld [vmem:[#allocation2 + $0x50] ss:$8 sps:$4 sm:$0xcc]   ;;  %v7439_v58 = vrot.slane %v14538_v53, %v15570_v48  ;;  %v7736_v12 = vld [vmem:[#allocation8 + $0x11c0] sm:$0xff] }
 0x400   :  { %7273 = vmatprep.subr.bf16.mxu0 %v13475_v51  ;;  %v3267_v29 = vld [vmem:[#allocation8 + $0x678] sm:$0xff]  ;;  %v13459_v51 = vcombine.high %v3135_v10, %v3139_v7 }
 0x401   :  { %7325 = vmatpush2.bf16.msra.mxu1 %v13610_v28  ;;  %v14541_v1 = vld [vmem:[#allocation2 + $0x40] ss:$8 sps:$4 sm:$0xcc]   ;;  %v13587_v19 = vcombine.high %v3263_v55, %v3267_v29 }
 0x402   :  { %7326 = vmatprep.subr.bf16.mxu1 %v13603_v42  ;;  %v3127_v26 = vld [vmem:[#allocation8 + $0x218] sm:$0xff]  ;;  %v7411_v42 = vrot.slane %v14533_v46, %v15570_v48  ;;  %v7468_v46 = vrot.slane %v14541_v1, %v15570_v48  ;;  %v13701_v1 = vcombine.high %v7736_v12, %v7740_v18 }
 0x403   :  { %7274 = vmatpush2.bf16.msra.mxu0 %v13474_v39  ;;  %v3131_v28 = vld [vmem:[#allocation8 + $0x238] sm:$0xff]  ;;  %v7432_v39 = vrot.slane %v14536_v2, %v15570_v48  ;;  %v13586_v2 = vcombine.low %v3263_v55, %v3267_v29  ;;  %v7728_v29 = vld [vmem:[#allocation8 + $0x1180] sm:$0xff] }
 0x404   :  { %7275 = vmatprep.subr.bf16.mxu0 %v13467_v63  ;;  %v13458_v63 = vcombine.low %v3135_v10, %v3139_v7  ;;  %v3255_v31 = vld [vmem:[#allocation8 + $0x618] sm:$0xff]  ;;  %v13451_v27 = vcombine.high %v3127_v26, %v3131_v28  ;;  %v13450_v11 = vcombine.low %v3127_v26, %v3131_v28  ;;  %v13642_v41 = vcombine.high %v7439_v58, %v7468_v46  ;;  %v7856_v28 = vld [vmem:[#allocation8 + $0x1580] sm:$0xff] }
 0x405   :  { %7327 = vmatpush2.bf16.msra.mxu1 %v13602_v40  ;;  %v7404_v40 = vrot.slane %v14532_v60, %v15570_v48  ;;  %v13579_v10 = vcombine.high %v3255_v31, %v3259_v61  ;;  %v7455_v7 = vcombine.high %v7432_v39, %v7446_v50  ;;  %v7482_v60 = vrot.slane %v14544_v47, %v15570_v48 }
 0x406   :  { %7328 = vmatprep.subr.bf16.mxu1 %v13595_v43  ;;  %v7453_v43 = vrot.slane %v14543_v35, %v15570_v48  ;;  %v7454_v53 = vcombine.low %v7432_v39, %v7446_v50  ;;  %v13578_v55 = vcombine.low %v3255_v31, %v3259_v61  ;;  %v13700_v26 = vcombine.low %v7736_v12, %v7740_v18  ;;  %v7848_v12 = vld [vmem:[#allocation8 + $0x1540] sm:$0xff] }
 0x407   :  { %7276 = vmatpush2.bf16.msra.mxu0 %v13466_v54  ;;  %v7419_v54 = vcombine.high %v7397_v37, %v7411_v42  ;;  %v7421_v45 = vcombine.high %v7404_v40, %v7418_v4  ;;  %v7420_v32 = vcombine.low %v7404_v40, %v7418_v4  ;;  %v13640_v47 = vcombine.low %v7455_v7, %v7439_v58 }
 0x408   :  { %7277 = vmatprep.subr.bf16.mxu0 %v13459_v51  ;;  %v7864_v51 = vld [vmem:[#allocation8 + $0x15c0] sm:$0xff]  ;;  %v7456_v35 = vcombine.low %v7439_v58, %v7453_v43  ;;  %v13639_v36 = vcombine.high %v7418_v4, %v7454_v53  ;;  %v16752_v46 = vrot.slane %v13642_v41, %v15570_v48  ;;  %v13821_v41 = vcombine.high %v7856_v28, %v7860_v57 }
 0x409   :  { %7329 = vmatpush2.bf16.msra.mxu1 %v13594_v15  ;;  %v7732_v15 = vld [vmem:[#allocation8 + $0x11a0] sm:$0xff]  ;;  %v13636_v37 = vcombine.low %v7419_v54, %v7404_v40  ;;  %v13829_v49 = vcombine.high %v7864_v51, %v7868_v17  ;;  %v13828_v31 = vcombine.low %v7864_v51, %v7868_v17  ;;  %v13637_v40 = vcombine.high %v7411_v42, %v7420_v32 }
 0x40a   :  { %7330 = vmatprep.subr.bf16.mxu1 %v13587_v19  ;;  %v13638_v19 = vcombine.low %v7421_v45, %v7432_v39  ;;  %v13641_v61 = vcombine.high %v7446_v50, %v7456_v35  ;;  %v16756_v45 = vld [vmem:[#allocation8 + $0x1160] sm:$0xff]  ;;  %v16766_v50 = vrot.slane %v13640_v47, %v15570_v48  ;;  %v16774_v32 = vrot.slane %v13639_v36, %v15570_v48 }
 0x40b   :  { %7278 = vmatpush2.bf16.msra.mxu0 %v13458_v63  ;;  %v13643_v63 = vcombine.high %v7453_v43, %v7482_v60  ;;  %v16759_v39 = vrot.slane %v13636_v37, %v15570_v48  ;;  %v13692_v43 = vcombine.low %v7728_v29, %v7732_v15  ;;  %v7852_v54 = vld [vmem:[#allocation8 + $0x1560] sm:$0xff]  ;;  %v13820_v7 = vcombine.low %v7856_v28, %v7860_v57 }
 0x40c   :  { %7279 = vmatprep.subr.bf16.mxu0 %v13451_v27  ;;  %v13693_v27 = vcombine.high %v7728_v29, %v7732_v15  ;;  %v16762_v18 = vrot.slane %v13638_v19, %v15570_v48  ;;  %v7716_v60 = vld [vmem:[#allocation8 + $0x1120] sm:$0xff]  ;;  %v13813_v53 = vcombine.high %v7848_v12, %v7852_v54  ;;  %v16791_v35 = vrot.slane %v13637_v40, %v15570_v48 }
 0x40d   :  { %7331 = vmatpush2.bf16.msra.mxu1 %v13586_v2  ;;  %v16754_v2 = vld [vmem:[#allocation8 + $0x1140] sm:$0xff]  ;;  %v16769_v17 = vrot.slane %v13643_v63, %v15570_v48 }
 0x40e   :  { %7332 = vmatprep.subr.bf16.mxu1 %v13579_v10  ;;  %v13685_v42 = vcombine.high %v16754_v2, %v16756_v45  ;;  %v13684_v29 = vcombine.low %v16754_v2, %v16756_v45  ;;  %v7840_v15 = vld [vmem:[#allocation8 + $0x1500] sm:$0xff]  ;;  %v7564_v63 = vcombine.high %v16791_v35, %v16774_v32 }
 0x40f   :  { %7280 = vmatpush2.bf16.msra.mxu0 %v13450_v11  ;;  %v7844_v37 = vld [vmem:[#allocation8 + $0x1520] sm:$0xff] }
 0x410   :  { %9216 = vmatprep.subr.bf16.mxu0 %v13701_v1  ;;  %v7562_v1 = vcombine.high %v16759_v39, %v16762_v18  ;;  %v13805_v40 = vcombine.high %v7840_v15, %v7844_v37 }
 0x411   :  { %7333 = vmatpush2.bf16.msra.mxu1 %v13578_v55 }
 0x412   :  { %v6965_v4 = vpop.f32.mrf.mxu0  ;;  %7282 = vmatmul.mubr.bf16.vlgmr.msra.gmra.mxu0 %v16643_v38  ;;  %9269 = vmatprep.subr.bf16.mxu1 %v13829_v49 }
 0x413   :  { %v6966_v58 = vadd.f32 %v6965_v4, %v16547_v21  ;;  %7291 = vmatprep.mubr.bf16.mxu0 %v16649_v9  ;;  %9217 = vmatpush1.bf16.msra.mxu0 %v13700_v26  ;;  %v7598_v21 = vcombine.high %v16766_v50, %v16752_v46  ;;  %v16782_v9 = vrot.slane %v13641_v61, %v15570_v48  ;;  %v7708_v61 = vld [vmem:[#allocation8 + $0x10e0] sm:$0xff] }
 0x414   :  { %v7018_v38 = vpop.f32.mrf.mxu1  ;;  %7335 = vmatmul.mubr.bf16.vlgmr.msra.gmra.mxu1 %v16651_v16  ;;  %v6967_v49 = vpop.f32.mrf.mxu0  ;;  %9218 = vmatprep.subr.bf16.mxu0 %v13693_v27  ;;  %v7712_v16 = vld [vmem:[#allocation8 + $0x1100] sm:$0xff] }
 0x415   :  { %v16784_v10 = vadd.f32 %v7018_v38, %v6966_v58  ;;  %7344 = vmatprep.mubr.bf16.mxu1 %v16657_v56  ;;  %9270 = vmatpush1.bf16.msra.mxu1 %v13828_v31  ;;  %v6968_v36 = vadd.f32 %v6967_v49, %v16560_v25  ;;  %v7600_v55 = vcombine.high %v16782_v9, %v16769_v17 }
 0x416   :  { %v7020_v11 = vpop.f32.mrf.mxu1  ;;  %v6969_v51 = vpop.f32.mrf.mxu0  ;;  %9271 = vmatprep.subr.bf16.mxu1 %v13821_v41  ;;  %v5321_v56 = vadd.f32 %v16589_v0, %v16587_v23  ;;  %v13677_v26 = vcombine.high %v7712_v16, %v7716_v60  ;;  %v13812_v0 = vcombine.low %v7848_v12, %v7852_v54  ;;  %v16806_v27 = vpack.c.bf16 %v7598_v21, %v7562_v1  ;;  %v7836_v12 = vld [vmem:[#allocation8 + $0x14e0] sm:$0xff] }
 0x417   :  { %v16797_v25 = vadd.f32 %v7020_v11, %v6968_v36  ;;  %v6970_v57 = vadd.f32 %v6969_v51, %v16571_v5  ;;  %9219 = vmatpush1.bf16.msra.mxu0 %v13692_v43  ;;  %v7704_v5 = vld [vmem:[#allocation8 + $0x10c0] sm:$0xff]  ;;  %v16809_v45 = vpack.c.bf16 %v7600_v55, %v7564_v63  ;;  %v13676_v58 = vcombine.low %v7712_v16, %v7716_v60 }
 0x418   :  { %v7022_v19 = vpop.f32.mrf.mxu1  ;;  %v6971_v47 = vpop.f32.mrf.mxu0  ;;  %9220 = vmatprep.subr.bf16.mxu0 %v13685_v42  ;;  %v7832_v43 = vld [vmem:[#allocation8 + $0x14c0] sm:$0xff] }
 0x419   :  { %v16804_v28 = vadd.f32 %v7022_v19, %v6970_v57  ;;  %9272 = vmatpush1.bf16.msra.mxu1 %v13820_v7  ;;  %v6972_v23 = vadd.f32 %v6971_v47, %v5321_v56  ;;  %v7696_v21 = vld [vmem:[#allocation8 + $0x1080] sm:$0xff]  ;;  %v13797_v60 = vcombine.high %v7832_v43, %v7836_v12 }
 0x41a   :  { %v7024_v31 = vpop.f32.mrf.mxu1  ;;  %v6975_v2 = vpop.f32.mrf.mxu0  ;;  %7292 = vmatmul.mubr.bf16.gmra.mxu0 %v16672_v59  ;;  %9273 = vmatprep.subr.bf16.mxu1 %v13813_v53  ;;  %v13669_v59 = vcombine.high %v7704_v5, %v7708_v61  ;;  %v7700_v36 = vld [vmem:[#allocation8 + $0x10a0] sm:$0xff]  ;;  %v13668_v53 = vcombine.low %v7704_v5, %v7708_v61 }
 0x41b   :  { %v16811_v4 = vadd.f32 %v7024_v31, %v6972_v23  ;;  %v6976_v41 = vadd.f32 %v6975_v2, %v16591_v22  ;;  %9221 = vmatpush1.bf16.msra.mxu0 %v13684_v29  ;;  %9248 = vmatprep.mubr.bf16.mxu0 %v16806_v27  ;;  %v13804_v22 = vcombine.low %v7840_v15, %v7844_v37  ;;  %v7824_v1 = vld [vmem:[#allocation8 + $0x1480] sm:$0xff] }
 0x41c   :  { %v7028_v54 = vpop.f32.mrf.mxu1  ;;  %7345 = vmatmul.mubr.bf16.gmra.mxu1 %v16680_v3  ;;  %v6977_v38 = vpop.f32.mrf.mxu0  ;;  %9222 = vmatprep.subr.bf16.mxu0 %v13677_v26  ;;  %v5331_v3 = vadd.f32 %v16653_v62, %v16647_v33  ;;  %v7828_v55 = vld [vmem:[#allocation8 + $0x14a0] sm:$0xff]  ;;  %v13661_v57 = vcombine.high %v7696_v21, %v7700_v36  ;;  %v13796_v37 = vcombine.low %v7832_v43, %v7836_v12 }
 0x41d   :  { %v16816_v49 = vadd.f32 %v7028_v54, %v6976_v41  ;;  %9274 = vmatpush1.bf16.msra.mxu1 %v13812_v0  ;;  %9301 = vmatprep.mubr.bf16.mxu1 %v16809_v45  ;;  %v6978_v42 = vadd.f32 %v6977_v38, %v16593_v24  ;;  %v7688_v19 = vld [vmem:[#allocation8 + $0x1040] sm:$0xff]  ;;  %v13789_v62 = vcombine.high %v7824_v1, %v7828_v55 }
 0x41e   :  { %v7030_v7 = vpop.f32.mrf.mxu1  ;;  %v6979_v16 = vpop.f32.mrf.mxu0  ;;  %9275 = vmatprep.subr.bf16.mxu1 %v13805_v40  ;;  %v7692_v47 = vld [vmem:[#allocation8 + $0x1060] sm:$0xff]  ;;  %v13788_v5 = vcombine.low %v7824_v1, %v7828_v55 }
 0x41f   :  { %v16822_v11 = vadd.f32 %v7030_v7, %v6978_v42  ;;  %v6980_v51 = vadd.f32 %v6979_v16, %v16595_v8  ;;  %9223 = vmatpush1.bf16.msra.mxu0 %v13676_v58  ;;  %v13660_v8 = vcombine.low %v7696_v21, %v7700_v36  ;;  %v7816_v26 = vld [vmem:[#allocation8 + $0x1440] sm:$0xff]  ;;  %v13653_v0 = vcombine.high %v7688_v19, %v7692_v47 }
 0x420   :  { %v7032_v56 = vpop.f32.mrf.mxu1  ;;  %v6981_v24 = vpop.f32.mrf.mxu0  ;;  %9224 = vmatprep.subr.bf16.mxu0 %v13669_v59  ;;  %v7820_v23 = vld [vmem:[#allocation8 + $0x1460] sm:$0xff]  ;;  %v13652_v40 = vcombine.low %v7688_v19, %v7692_v47 }
 0x421   :  { %v16825_v29 = vadd.f32 %v7032_v56, %v6980_v51  ;;  %9276 = vmatpush1.bf16.msra.mxu1 %v13804_v22  ;;  %v6982_v15 = vadd.f32 %v6981_v24, %v5331_v3  ;;  %v7680_v61 = vld [vmem:[#allocation8 + $0x1000] sm:$0xff]  ;;  %v13781_v2 = vcombine.high %v7816_v26, %v7820_v23  ;;  %v13780_v12 = vcombine.low %v7816_v26, %v7820_v23 }
 0x422   :  { %v7034_v33 = vpop.f32.mrf.mxu1  ;;  %9277 = vmatprep.subr.bf16.mxu1 %v13797_v60  ;;  %v7684_v31 = vld [vmem:[#allocation8 + $0x1020] sm:$0xff] }
 0x423   :  { %v16827_v63 = vadd.f32 %v7034_v33, %v6982_v15  ;;  %9225 = vmatpush1.bf16.msra.mxu0 %v13668_v53  ;;  %v7808_v41 = vld [vmem:[#allocation8 + $0x1400] sm:$0xff]  ;;  %v13645_v43 = vcombine.high %v7680_v61, %v7684_v31  ;;  %v13644_v42 = vcombine.low %v7680_v61, %v7684_v31 }
 0x424   :  { %9226 = vmatprep.subr.bf16.mxu0 %v13661_v57  ;;  %v7812_v58 = vld [vmem:[#allocation8 + $0x1420] sm:$0xff] }
 0x425   :  { %9278 = vmatpush1.bf16.msra.mxu1 %v13796_v37  ;;  %v7800_v54 = vld [vmem:[#allocation8 + $0x13c0] sm:$0xff]  ;;  %v13773_v59 = vcombine.high %v7808_v41, %v7812_v58  ;;  %v13772_v7 = vcombine.low %v7808_v41, %v7812_v58 }
 0x426   :  { %9279 = vmatprep.subr.bf16.mxu1 %v13789_v62  ;;  %v7804_v38 = vld [vmem:[#allocation8 + $0x13e0] sm:$0xff] }
 0x427   :  { %9227 = vmatpush1.bf16.msra.mxu0 %v13660_v8  ;;  %v7928_v22 = vld [vmem:[#allocation8 + $0x17c0] sm:$0xff]  ;;  %v13765_v36 = vcombine.high %v7800_v54, %v7804_v38  ;;  %v13764_v51 = vcombine.low %v7800_v54, %v7804_v38 }
 0x428   :  { %9228 = vmatprep.subr.bf16.mxu0 %v13653_v0  ;;  %v7932_v21 = vld [vmem:[#allocation8 + $0x17e0] sm:$0xff] }
 0x429   :  { %9280 = vmatpush1.bf16.msra.mxu1 %v13788_v5  ;;  %v7792_v16 = vld [vmem:[#allocation8 + $0x1380] sm:$0xff]  ;;  %v13893_v3 = vcombine.high %v7928_v22, %v7932_v21  ;;  %v13892_v56 = vcombine.low %v7928_v22, %v7932_v21 }
 0x42a   :  { %9281 = vmatprep.subr.bf16.mxu1 %v13781_v2  ;;  %v7796_v60 = vld [vmem:[#allocation8 + $0x13a0] sm:$0xff] }
 0x42b   :  { %9229 = vmatpush1.bf16.msra.mxu0 %v13652_v40  ;;  %v7920_v53 = vld [vmem:[#allocation8 + $0x1780] sm:$0xff]  ;;  %v13757_v55 = vcombine.high %v7792_v16, %v7796_v60  ;;  %v13756_v37 = vcombine.low %v7792_v16, %v7796_v60 }
 0x42c   :  { %9230 = vmatprep.subr.bf16.mxu0 %v13645_v43  ;;  %v7924_v1 = vld [vmem:[#allocation8 + $0x17a0] sm:$0xff] }
 0x42d   :  { %9282 = vmatpush1.bf16.msra.mxu1 %v13780_v12  ;;  %v7784_v24 = vld [vmem:[#allocation8 + $0x1340] sm:$0xff]  ;;  %v13885_v15 = vcombine.high %v7920_v53, %v7924_v1  ;;  %v13884_v62 = vcombine.low %v7920_v53, %v7924_v1 }
 0x42e   :  { %9283 = vmatprep.subr.bf16.mxu1 %v13773_v59  ;;  %v7788_v57 = vld [vmem:[#allocation8 + $0x1360] sm:$0xff] }
 0x42f   :  { %9231 = vmatpush1.bf16.msra.mxu0 %v13644_v42  ;;  %v7912_v19 = vld [vmem:[#allocation8 + $0x1740] sm:$0xff]  ;;  %v13749_v33 = vcombine.high %v7784_v24, %v7788_v57  ;;  %v13748_v0 = vcombine.low %v7784_v24, %v7788_v57  ;;  %v14551_v57 = vld [vmem:[#allocation2 + $0x70] ss:$8 sps:$4 sm:$0xff]  }
 0x430   :  { %9232 = vmatprep.subr.bf16.mxu0 %v13765_v36  ;;  %v7916_v47 = vld [vmem:[#allocation8 + $0x1760] sm:$0xff] }
 0x431   :  { %9284 = vmatpush1.bf16.msra.mxu1 %v13772_v7  ;;  %v7776_v8 = vld [vmem:[#allocation8 + $0x1300] sm:$0xff]  ;;  %v13877_v23 = vcombine.high %v7912_v19, %v7916_v47  ;;  %v13876_v2 = vcombine.low %v7912_v19, %v7916_v47  ;;  %v14553_v47 = vld [vmem:[#allocation2 + $0x74] ss:$8 sps:$4 sm:$0xff]  }
 0x432   :  { %9285 = vmatprep.subr.bf16.mxu1 %v13893_v3  ;;  %v7780_v26 = vld [vmem:[#allocation8 + $0x1320] sm:$0xff] }
 0x433   :  { %9233 = vmatpush2.bf16.msra.mxu0 %v13764_v51  ;;  %v7904_v5 = vld [vmem:[#allocation8 + $0x1700] sm:$0xff]  ;;  %v13741_v31 = vcombine.high %v7776_v8, %v7780_v26  ;;  %v13740_v43 = vcombine.low %v7776_v8, %v7780_v26 }
 0x434   :  { %9234 = vmatprep.subr.bf16.mxu0 %v13757_v55  ;;  %v7908_v61 = vld [vmem:[#allocation8 + $0x1720] sm:$0xff] }
 0x435   :  { %9286 = vmatpush2.bf16.msra.mxu1 %v13892_v56  ;;  %v7768_v40 = vld [vmem:[#allocation8 + $0x12c0] sm:$0xff]  ;;  %v13869_v58 = vcombine.high %v7904_v5, %v7908_v61  ;;  %v13868_v59 = vcombine.low %v7904_v5, %v7908_v61  ;;  %v14550_v5 = vld [vmem:[#allocation2 + $0x54] ss:$8 sps:$4 sm:$0xff]  }
 0x436   :  { %9287 = vmatprep.subr.bf16.mxu1 %v13885_v15  ;;  %v7772_v41 = vld [vmem:[#allocation8 + $0x12e0] sm:$0xff] }
 0x437   :  { %9235 = vmatpush2.bf16.msra.mxu0 %v13756_v37  ;;  %v7896_v12 = vld [vmem:[#allocation8 + $0x16c0] sm:$0xff]  ;;  %v13733_v38 = vcombine.high %v7768_v40, %v7772_v41  ;;  %v13732_v36 = vcombine.low %v7768_v40, %v7772_v41 }
 0x438   :  { %9236 = vmatprep.subr.bf16.mxu0 %v13749_v33  ;;  %v7900_v54 = vld [vmem:[#allocation8 + $0x16e0] sm:$0xff] }
 0x439   :  { %9288 = vmatpush2.bf16.msra.mxu1 %v13884_v62  ;;  %v7760_v42 = vld [vmem:[#allocation8 + $0x1280] sm:$0xff]  ;;  %v13861_v21 = vcombine.high %v7896_v12, %v7900_v54  ;;  %v13860_v51 = vcombine.low %v7896_v12, %v7900_v54 }
 0x43a   :  { %9289 = vmatprep.subr.bf16.mxu1 %v13877_v23  ;;  %v7764_v22 = vld [vmem:[#allocation8 + $0x12a0] sm:$0xff] }
 0x43b   :  { %9237 = vmatpush2.bf16.msra.mxu0 %v13748_v0  ;;  %v7888_v7 = vld [vmem:[#allocation8 + $0x1680] sm:$0xff]  ;;  %v13725_v60 = vcombine.high %v7760_v42, %v7764_v22  ;;  %v13724_v15 = vcombine.low %v7760_v42, %v7764_v22 }
 0x43c   :  { %9238 = vmatprep.subr.bf16.mxu0 %v13741_v31  ;;  %v7892_v16 = vld [vmem:[#allocation8 + $0x16a0] sm:$0xff] }
 0x43d   :  { %9290 = vmatpush2.bf16.msra.mxu1 %v13876_v2  ;;  %v14547_v3 = vld [vmem:[#allocation2 + $0x60] ss:$8 sps:$4 sm:$0xff]   ;;  %v14549_v55 = vld [vmem:[#allocation2 + $0x64] ss:$8 sps:$4 sm:$0xff]   ;;  %v13853_v56 = vcombine.high %v7888_v7, %v7892_v16  ;;  %v13852_v62 = vcombine.low %v7888_v7, %v7892_v16  ;;  %v7865_v16 = vld [vmem:[#allocation8 + $0x15c8] sm:$0xff] }
 0x43e   :  { %9291 = vmatprep.subr.bf16.mxu1 %v13869_v58  ;;  %v7752_v53 = vld [vmem:[#allocation8 + $0x1240] sm:$0xff]  ;;  %v7503_v23 = vrot.slane %v14547_v3, %v15570_v48  ;;  %v7510_v0 = vrot.slane %v14549_v55, %v15570_v48  ;;  %v7517_v58 = vrot.slane %v14551_v57, %v15570_v48 }
 0x43f   :  { %9239 = vmatpush2.bf16.msra.mxu0 %v13740_v43  ;;  %v7756_v1 = vld [vmem:[#allocation8 + $0x1260] sm:$0xff]  ;;  %v7524_v43 = vrot.slane %v14553_v47, %v15570_v48  ;;  %v7561_v47 = vcombine.low %v16759_v39, %v16762_v18  ;;  %v7563_v39 = vcombine.low %v16791_v35, %v16774_v32 }
 0x440   :  { %9240 = vmatprep.subr.bf16.mxu0 %v13733_v38  ;;  %v14546_v24 = vld [vmem:[#allocation2 + $0x44] ss:$8 sps:$4 sm:$0xff]   ;;  %v13717_v33 = vcombine.high %v7752_v53, %v7756_v1  ;;  %v13716_v31 = vcombine.low %v7752_v53, %v7756_v1  ;;  %v7737_v38 = vld [vmem:[#allocation8 + $0x11c8] sm:$0xff]  ;;  %v16835_v42 = vrot.slane %v7503_v23, %v15570_v48  ;;  %v16838_v22 = vrot.slane %v7510_v0, %v15570_v48 }
 0x441   :  { %9292 = vmatpush2.bf16.msra.mxu1 %v13868_v59  ;;  %v7880_v37 = vld [vmem:[#allocation8 + $0x1640] sm:$0xff]  ;;  %v7475_v41 = vrot.slane %v14546_v24, %v15570_v48  ;;  %v7741_v59 = vld [vmem:[#allocation8 + $0x11e8] sm:$0xff]  ;;  %v16848_v53 = vrot.slane %v7524_v43, %v15570_v48  ;;  %v7597_v1 = vcombine.low %v16766_v50, %v16752_v46  ;;  %v7599_v46 = vcombine.low %v16782_v9, %v16769_v17 }
 0x442   :  { %9293 = vmatprep.subr.bf16.mxu1 %v13861_v21  ;;  %v7884_v19 = vld [vmem:[#allocation8 + $0x1660] sm:$0xff]  ;;  %v7489_v21 = vrot.slane %v14550_v5, %v15570_v48  ;;  %v13703_v55 = vcombine.high %v7737_v38, %v7741_v59  ;;  %v7653_v57 = vcombine.high %v16838_v22, %v16838_v22  ;;  %v7861_v23 = vld [vmem:[#allocation8 + $0x15a8] sm:$0xff] }
 0x443   :  { %9241 = vmatpush2.bf16.msra.mxu0 %v13732_v36  ;;  %v7744_v8 = vld [vmem:[#allocation8 + $0x1200] sm:$0xff]  ;;  %v13845_v61 = vcombine.high %v7880_v37, %v7884_v19  ;;  %v13844_v54 = vcombine.low %v7880_v37, %v7884_v19  ;;  %v16842_v3 = vrot.slane %v7475_v41, %v15570_v48  ;;  %v7729_v37 = vld [vmem:[#allocation8 + $0x1188] sm:$0xff]  ;;  %v16867_v0 = vpack.c.bf16 %v7597_v1, %v7561_v47 }
 0x444   :  { %9242 = vmatprep.subr.bf16.mxu0 %v13725_v60  ;;  %v7748_v26 = vld [vmem:[#allocation8 + $0x1220] sm:$0xff]  ;;  %v7869_v60 = vld [vmem:[#allocation8 + $0x15e8] sm:$0xff] }
 0x445   :  { %9294 = vmatpush2.bf16.msra.mxu1 %v13860_v51  ;;  %v7872_v2 = vld [vmem:[#allocation8 + $0x1600] sm:$0xff]  ;;  %v13709_v12 = vcombine.high %v7744_v8, %v7748_v26  ;;  %v13708_v7 = vcombine.low %v7744_v8, %v7748_v26  ;;  %v16845_v51 = vrot.slane %v7517_v58, %v15570_v48  ;;  %v7634_v24 = vcombine.high %v16842_v3, %v16835_v42  ;;  %v7733_v19 = vld [vmem:[#allocation8 + $0x11a8] sm:$0xff] }
 0x446   :  { %9295 = vmatprep.subr.bf16.mxu1 %v13853_v56  ;;  %v7876_v40 = vld [vmem:[#allocation8 + $0x1620] sm:$0xff]  ;;  %v13831_v50 = vcombine.high %v7865_v16, %v7869_v60  ;;  %v7654_v8 = vcombine.high %v16848_v53, %v16848_v53  ;;  %v7857_v26 = vld [vmem:[#allocation8 + $0x1588] sm:$0xff]  ;;  %v13695_v18 = vcombine.high %v7729_v37, %v7733_v19  ;;  %v13830_v17 = vcombine.low %v7865_v16, %v7869_v60 }
 0x447   :  { %9243 = vmatpush2.bf16.msra.mxu0 %v13724_v15  ;;  %v13837_v36 = vcombine.high %v7872_v2, %v7876_v40  ;;  %v13836_v56 = vcombine.low %v7872_v2, %v7876_v40  ;;  %v16857_v15 = vrot.slane %v7489_v21, %v15570_v48  ;;  %v16871_v9 = vpack.c.bf16 %v7653_v57, %v7634_v24  ;;  %v7721_v5 = vld [vmem:[#allocation8 + $0x1148] sm:$0xff] }
 0x448   :  { %9244 = vmatprep.subr.bf16.mxu0 %v13717_v33  ;;  %v13702_v33 = vcombine.low %v7737_v38, %v7741_v59  ;;  %v13823_v40 = vcombine.high %v7857_v26, %v7861_v23  ;;  %v13694_v35 = vcombine.low %v7729_v37, %v7733_v19  ;;  %v7849_v58 = vld [vmem:[#allocation8 + $0x1548] sm:$0xff]  ;;  %v7633_v38 = vcombine.low %v16842_v3, %v16835_v42 }
 0x449   :  { %9296 = vmatpush2.bf16.msra.mxu1 %v13852_v62  ;;  %v7636_v62 = vcombine.high %v16857_v15, %v16845_v51  ;;  %v7853_v43 = vld [vmem:[#allocation8 + $0x1568] sm:$0xff]  ;;  %v5427_v42 = vadd.f32 %v16676_v52, %v16669_v14 }
 0x44a   :  { %9297 = vmatprep.subr.bf16.mxu1 %v13845_v61  ;;  %v7725_v61 = vld [vmem:[#allocation8 + $0x1168] sm:$0xff]  ;;  %v13814_v14 = vcombine.low %v7849_v58, %v7853_v43 }
 0x44b   :  { %9245 = vmatpush2.bf16.msra.mxu0 %v13716_v31  ;;  %v16873_v31 = vpack.c.bf16 %v7599_v46, %v7563_v39  ;;  %v16878_v32 = vpack.c.bf16 %v7654_v8, %v7636_v62  ;;  %v13687_v59 = vcombine.high %v7721_v5, %v7725_v61  ;;  %v7717_v16 = vld [vmem:[#allocation8 + $0x1128] sm:$0xff]  ;;  %v13686_v57 = vcombine.low %v7721_v5, %v7725_v61 }
 0x44c   :  { %9246 = vmatprep.subr.bf16.mxu0 %v13709_v12  ;;  %v7845_v37 = vld [vmem:[#allocation8 + $0x1528] sm:$0xff]  ;;  %v16895_v46 = vpack.c.bf16 %v16838_v22, %v7633_v38 }
 0x44d   :  { %9298 = vmatpush2.bf16.msra.mxu1 %v13844_v54  ;;  %v7705_v52 = vld [vmem:[#allocation8 + $0x10c8] sm:$0xff] }
 0x44e   :  { %9299 = vmatprep.subr.bf16.mxu1 %v13837_v36  ;;  %v13822_v36 = vcombine.low %v7857_v26, %v7861_v23 }
 0x44f   :  { %9247 = vmatpush2.bf16.msra.mxu0 %v13708_v7  ;;  %v7713_v7 = vld [vmem:[#allocation8 + $0x1108] sm:$0xff] }
 0x450   :  { %9322 = vmatprep.subr.bf16.mxu0 %v13703_v55  ;;  %v7635_v55 = vcombine.low %v16857_v15, %v16845_v51  ;;  %v13678_v39 = vcombine.low %v7713_v7, %v7717_v16 }
 0x451   :  { %9300 = vmatpush2.bf16.msra.mxu1 %v13836_v56  ;;  %v13815_v56 = vcombine.high %v7849_v58, %v7853_v43 }
 0x452   :  { %v7071_v2 = vpop.f32.mrf.mxu0  ;;  %9249 = vmatmul.mubr.bf16.vlgmr.msra.gmra.mxu0 %v16867_v0  ;;  %9375 = vmatprep.subr.bf16.mxu1 %v13831_v50  ;;  %v13679_v50 = vcombine.high %v7713_v7, %v7717_v16  ;;  %v16901_v8 = vpack.c.bf16 %v16848_v53, %v7635_v55 }
 0x453   :  { %v7072_v41 = vadd.f32 %v7071_v2, %v16662_v34  ;;  %9258 = vmatprep.mubr.bf16.mxu0 %v16871_v9  ;;  %9323 = vmatpush1.bf16.msra.mxu0 %v13702_v33  ;;  %v7709_v33 = vld [vmem:[#allocation8 + $0x10e8] sm:$0xff] }
 0x454   :  { %v7124_v12 = vpop.f32.mrf.mxu1  ;;  %9302 = vmatmul.mubr.bf16.vlgmr.msra.gmra.mxu1 %v16873_v31  ;;  %v7073_v54 = vpop.f32.mrf.mxu0  ;;  %9324 = vmatprep.subr.bf16.mxu0 %v13695_v18  ;;  %v7833_v18 = vld [vmem:[#allocation8 + $0x14c8] sm:$0xff]  ;;  %v13671_v2 = vcombine.high %v7705_v52, %v7709_v33 }
 0x455   :  { %v16883_v21 = vadd.f32 %v7124_v12, %v7072_v41  ;;  %9311 = vmatprep.mubr.bf16.mxu1 %v16878_v32  ;;  %9376 = vmatpush1.bf16.msra.mxu1 %v13830_v17  ;;  %v7074_v34 = vadd.f32 %v7073_v54, %v16667_v20  ;;  %v7841_v20 = vld [vmem:[#allocation8 + $0x1508] sm:$0xff] }
 0x456   :  { %v7126_v60 = vpop.f32.mrf.mxu1  ;;  %v7075_v1 = vpop.f32.mrf.mxu0  ;;  %9377 = vmatprep.subr.bf16.mxu1 %v13823_v40  ;;  %v13807_v26 = vcombine.high %v7841_v20, %v7845_v37  ;;  %v7837_v17 = vld [vmem:[#allocation8 + $0x14e8] sm:$0xff] }
 0x457   :  { %v16891_v3 = vadd.f32 %v7126_v60, %v7074_v34  ;;  %v7076_v24 = vadd.f32 %v7075_v1, %v16674_v30  ;;  %9325 = vmatpush1.bf16.msra.mxu0 %v13694_v35  ;;  %v7697_v41 = vld [vmem:[#allocation8 + $0x1088] sm:$0xff]  ;;  %v13799_v12 = vcombine.high %v7833_v18, %v7837_v17 }
 0x458   :  { %v7128_v19 = vpop.f32.mrf.mxu1  ;;  %v7077_v47 = vpop.f32.mrf.mxu0  ;;  %9326 = vmatprep.subr.bf16.mxu0 %v13687_v59  ;;  %v7701_v35 = vld [vmem:[#allocation8 + $0x10a8] sm:$0xff]  ;;  %v13670_v59 = vcombine.low %v7705_v52, %v7709_v33 }
 0x459   :  { %v16897_v51 = vadd.f32 %v7128_v19, %v7076_v24  ;;  %9378 = vmatpush1.bf16.msra.mxu1 %v13822_v36  ;;  %v7078_v15 = vadd.f32 %v7077_v47, %v5427_v42  ;;  %v7825_v34 = vld [vmem:[#allocation8 + $0x1488] sm:$0xff]  ;;  %v13663_v60 = vcombine.high %v7697_v41, %v7701_v35 }
 0x45a   :  { %v7130_v62 = vpop.f32.mrf.mxu1  ;;  %v7081_v30 = vpop.f32.mrf.mxu0  ;;  %9259 = vmatmul.mubr.bf16.gmra.mxu0 %v16895_v46  ;;  %9379 = vmatprep.subr.bf16.mxu1 %v13815_v56  ;;  %v7829_v36 = vld [vmem:[#allocation8 + $0x14a8] sm:$0xff]  ;;  %v13798_v56 = vcombine.low %v7833_v18, %v7837_v17 }
 0x45b   :  { %v16903_v22 = vadd.f32 %v7130_v62, %v7078_v15  ;;  %v7082_v23 = vadd.f32 %v7081_v30, %v16684_v44  ;;  %9327 = vmatpush1.bf16.msra.mxu0 %v13686_v57  ;;  %9354 = vmatprep.mubr.bf16.mxu0 %v16806_v27  ;;  %v13806_v44 = vcombine.low %v7841_v20, %v7845_v37  ;;  %v17716_v1 = vld [vmem:[#allocation35_spill] sm:$0xff] }
 0x45c   :  { %v7134_v5 = vpop.f32.mrf.mxu1  ;;  %9312 = vmatmul.mubr.bf16.gmra.mxu1 %v16901_v8  ;;  %v7083_v61 = vpop.f32.mrf.mxu0  ;;  %9328 = vmatprep.subr.bf16.mxu0 %v13679_v50  ;;  %v7689_v42 = vld [vmem:[#allocation8 + $0x1048] sm:$0xff]  ;;  %v13791_v20 = vcombine.high %v7825_v34, %v7829_v36  ;;  %v13662_v37 = vcombine.low %v7697_v41, %v7701_v35  ;;  %v13790_v15 = vcombine.low %v7825_v34, %v7829_v36 }
 0x45d   :  { %v16908_v53 = vadd.f32 %v7134_v5, %v7082_v23  ;;  %9380 = vmatpush1.bf16.msra.mxu1 %v13814_v14  ;;  %9407 = vmatprep.mubr.bf16.mxu1 %v16809_v45  ;;  %v7084_v40 = vadd.f32 %v7083_v61, %v16687_v6  ;;  %v7693_v24 = vld [vmem:[#allocation8 + $0x1068] sm:$0xff] }
 0x45e   :  { %v7136_v58 = vpop.f32.mrf.mxu1  ;;  %v7085_v43 = vpop.f32.mrf.mxu0  ;;  %9381 = vmatprep.subr.bf16.mxu1 %v13807_v26  ;;  %v7817_v19 = vld [vmem:[#allocation8 + $0x1448] sm:$0xff]  ;;  %v13655_v50 = vcombine.high %v7689_v42, %v7693_v24  ;;  %v13654_v62 = vcombine.low %v7689_v42, %v7693_v24 }
 0x45f   :  { %17714 = vst [vmem:[#allocation45_spill] sm:$0xff] %v16908_v53  ;;  %v16912_v54 = vadd.f32 %v7136_v58, %v7084_v40  ;;  %v7086_v38 = vadd.f32 %v7085_v43, %v16689_v13  ;;  %9329 = vmatpush1.bf16.msra.mxu0 %v13678_v39  ;;  %v7821_v47 = vld [vmem:[#allocation8 + $0x1468] sm:$0xff]  ;;  %v14557_v53 = vld [vmem:[#allocation11 + $0x1b8] sm:$0xff]  }
 0x460   :  { %v7138_v7 = vpop.f32.mrf.mxu1  ;;  %v7087_v16 = vpop.f32.mrf.mxu0  ;;  %9330 = vmatprep.subr.bf16.mxu0 %v13671_v2  ;;  %v7681_v14 = vld [vmem:[#allocation8 + $0x1008] sm:$0xff]  ;;  %v13783_v33 = vcombine.high %v7817_v19, %v7821_v47  ;;  %v13782_v39 = vcombine.low %v7817_v19, %v7821_v47 }
 0x461   :  { %17715 = vst [vmem:[#allocation47_spill] sm:$0xff] %v16912_v54  ;;  %v16915_v6 = vadd.f32 %v7138_v7, %v7086_v38  ;;  %9382 = vmatpush1.bf16.msra.mxu1 %v13806_v44  ;;  %v7088_v55 = vadd.f32 %v7087_v16, %v17716_v1  ;;  %v7685_v52 = vld [vmem:[#allocation8 + $0x1028] sm:$0xff] }
 0x462   :  { %v7140_v57 = vpop.f32.mrf.mxu1  ;;  %9383 = vmatprep.subr.bf16.mxu1 %v13799_v12  ;;  %v7809_v30 = vld [vmem:[#allocation8 + $0x1408] sm:$0xff]  ;;  %v13647_v23 = vcombine.high %v7681_v14, %v7685_v52  ;;  %v13646_v61 = vcombine.low %v7681_v14, %v7685_v52 }
 0x463   :  { %v16918_v13 = vadd.f32 %v7140_v57, %v7088_v55  ;;  %9331 = vmatpush1.bf16.msra.mxu0 %v13670_v59  ;;  %v7813_v26 = vld [vmem:[#allocation8 + $0x1428] sm:$0xff] }
 0x464   :  { %9332 = vmatprep.subr.bf16.mxu0 %v13663_v60  ;;  %v7801_v18 = vld [vmem:[#allocation8 + $0x13c8] sm:$0xff]  ;;  %v13775_v5 = vcombine.high %v7809_v30, %v7813_v26  ;;  %v13774_v41 = vcombine.low %v7809_v30, %v7813_v26 }
 0x465   :  { %9384 = vmatpush1.bf16.msra.mxu1 %v13798_v56  ;;  %v7805_v17 = vld [vmem:[#allocation8 + $0x13e8] sm:$0xff] }
 0x466   :  { %9385 = vmatprep.subr.bf16.mxu1 %v13791_v20  ;;  %v7929_v2 = vld [vmem:[#allocation8 + $0x17c8] sm:$0xff]  ;;  %v13767_v44 = vcombine.high %v7801_v18, %v7805_v17  ;;  %v13766_v12 = vcombine.low %v7801_v18, %v7805_v17 }
 0x467   :  { %9333 = vmatpush1.bf16.msra.mxu0 %v13662_v37  ;;  %v7933_v40 = vld [vmem:[#allocation8 + $0x17e8] sm:$0xff] }
 0x468   :  { %9334 = vmatprep.subr.bf16.mxu0 %v13655_v50  ;;  %v7793_v35 = vld [vmem:[#allocation8 + $0x1388] sm:$0xff]  ;;  %v13895_v43 = vcombine.high %v7929_v2, %v7933_v40  ;;  %v13894_v36 = vcombine.low %v7929_v2, %v7933_v40 }
 0x469   :  { %9386 = vmatpush1.bf16.msra.mxu1 %v13790_v15  ;;  %v7797_v58 = vld [vmem:[#allocation8 + $0x13a8] sm:$0xff] }
 0x46a   :  { %9387 = vmatprep.subr.bf16.mxu1 %v13783_v33  ;;  %v7921_v38 = vld [vmem:[#allocation8 + $0x1788] sm:$0xff]  ;;  %v13759_v34 = vcombine.high %v7793_v35, %v7797_v58  ;;  %v13758_v1 = vcombine.low %v7793_v35, %v7797_v58 }
 0x46b   :  { %9335 = vmatpush1.bf16.msra.mxu0 %v13654_v62  ;;  %v7925_v59 = vld [vmem:[#allocation8 + $0x17a8] sm:$0xff] }
 0x46c   :  { %9336 = vmatprep.subr.bf16.mxu0 %v13647_v23  ;;  %v7785_v7 = vld [vmem:[#allocation8 + $0x1348] sm:$0xff]  ;;  %v13887_v60 = vcombine.high %v7921_v38, %v7925_v59  ;;  %v13886_v24 = vcombine.low %v7921_v38, %v7925_v59 }
 0x46d   :  { %9388 = vmatpush1.bf16.msra.mxu1 %v13782_v39  ;;  %v7789_v16 = vld [vmem:[#allocation8 + $0x1368] sm:$0xff] }
 0x46e   :  { %9389 = vmatprep.subr.bf16.mxu1 %v13775_v5  ;;  %v7913_v55 = vld [vmem:[#allocation8 + $0x1748] sm:$0xff]  ;;  %v13751_v42 = vcombine.high %v7785_v7, %v7789_v16  ;;  %v13750_v19 = vcombine.low %v7785_v7, %v7789_v16 }
 0x46f   :  { %9337 = vmatpush1.bf16.msra.mxu0 %v13646_v61  ;;  %v7917_v56 = vld [vmem:[#allocation8 + $0x1768] sm:$0xff] }
 0x470   :  { %9338 = vmatprep.subr.bf16.mxu0 %v13767_v44  ;;  %v7777_v57 = vld [vmem:[#allocation8 + $0x1308] sm:$0xff]  ;;  %v13879_v37 = vcombine.high %v7913_v55, %v7917_v56  ;;  %v13878_v14 = vcombine.low %v7913_v55, %v7917_v56 }
 0x471   :  { %9390 = vmatpush1.bf16.msra.mxu1 %v13774_v41  ;;  %v7781_v20 = vld [vmem:[#allocation8 + $0x1328] sm:$0xff] }
 0x472   :  { %9391 = vmatprep.subr.bf16.mxu1 %v13895_v43  ;;  %v7905_v47 = vld [vmem:[#allocation8 + $0x1708] sm:$0xff]  ;;  %v13743_v15 = vcombine.high %v7777_v57, %v7781_v20  ;;  %v13742_v30 = vcombine.low %v7777_v57, %v7781_v20  ;;  %v7738_v20 = vld [vmem:[#allocation8 + $0x11d0] sm:$0xff] }
 0x473   :  { %9339 = vmatpush2.bf16.msra.mxu0 %v13766_v12  ;;  %v7909_v50 = vld [vmem:[#allocation8 + $0x1728] sm:$0xff] }
 0x474   :  { %9340 = vmatprep.subr.bf16.mxu0 %v13759_v34  ;;  %v7769_v52 = vld [vmem:[#allocation8 + $0x12c8] sm:$0xff]  ;;  %v13871_v62 = vcombine.high %v7905_v47, %v7909_v50  ;;  %v13870_v18 = vcombine.low %v7905_v47, %v7909_v50  ;;  %v7866_v50 = vld [vmem:[#allocation8 + $0x15d0] sm:$0xff] }
 0x475   :  { %9392 = vmatpush2.bf16.msra.mxu1 %v13894_v36  ;;  %v7773_v33 = vld [vmem:[#allocation8 + $0x12e8] sm:$0xff] }
 0x476   :  { %9393 = vmatprep.subr.bf16.mxu1 %v13887_v60  ;;  %v7897_v26 = vld [vmem:[#allocation8 + $0x16c8] sm:$0xff]  ;;  %v13735_v39 = vcombine.high %v7769_v52, %v7773_v33  ;;  %v13734_v2 = vcombine.low %v7769_v52, %v7773_v33  ;;  %v7730_v33 = vld [vmem:[#allocation8 + $0x1190] sm:$0xff] }
 0x477   :  { %9341 = vmatpush2.bf16.msra.mxu0 %v13758_v1  ;;  %v7901_v23 = vld [vmem:[#allocation8 + $0x16e8] sm:$0xff] }
 0x478   :  { %9342 = vmatprep.subr.bf16.mxu0 %v13751_v42  ;;  %v7761_v17 = vld [vmem:[#allocation8 + $0x1288] sm:$0xff]  ;;  %v13863_v61 = vcombine.high %v7897_v26, %v7901_v23  ;;  %v13862_v35 = vcombine.low %v7897_v26, %v7901_v23  ;;  %v7858_v23 = vld [vmem:[#allocation8 + $0x1590] sm:$0xff] }
 0x479   :  { %9394 = vmatpush2.bf16.msra.mxu1 %v13886_v24  ;;  %v7765_v5 = vld [vmem:[#allocation8 + $0x12a8] sm:$0xff] }
 0x47a   :  { %9395 = vmatprep.subr.bf16.mxu1 %v13879_v37  ;;  %v7889_v40 = vld [vmem:[#allocation8 + $0x1688] sm:$0xff]  ;;  %v13727_v41 = vcombine.high %v7761_v17, %v7765_v5  ;;  %v13726_v38 = vcombine.low %v7761_v17, %v7765_v5  ;;  %v7742_v37 = vld [vmem:[#allocation8 + $0x11f0] sm:$0xff] }
 0x47b   :  { %9343 = vmatpush2.bf16.msra.mxu0 %v13750_v19  ;;  %v7893_v44 = vld [vmem:[#allocation8 + $0x16a8] sm:$0xff]  ;;  %v13704_v26 = vcombine.low %v7738_v20, %v7742_v37  ;;  %v7722_v5 = vld [vmem:[#allocation8 + $0x1150] sm:$0xff] }
 0x47c   :  { %9344 = vmatprep.subr.bf16.mxu0 %v13743_v15  ;;  %v7753_v58 = vld [vmem:[#allocation8 + $0x1248] sm:$0xff]  ;;  %v13855_v12 = vcombine.high %v7889_v40, %v7893_v44  ;;  %v13854_v7 = vcombine.low %v7889_v40, %v7893_v44  ;;  %v7870_v15 = vld [vmem:[#allocation8 + $0x15f0] sm:$0xff] }
 0x47d   :  { %9396 = vmatpush2.bf16.msra.mxu1 %v13878_v14  ;;  %v7757_v43 = vld [vmem:[#allocation8 + $0x1268] sm:$0xff]  ;;  %v13705_v14 = vcombine.high %v7738_v20, %v7742_v37  ;;  %v13832_v17 = vcombine.low %v7866_v50, %v7870_v15 }
 0x47e   :  { %9397 = vmatprep.subr.bf16.mxu1 %v13871_v62  ;;  %v7881_v59 = vld [vmem:[#allocation8 + $0x1648] sm:$0xff]  ;;  %v13719_v36 = vcombine.high %v7753_v58, %v7757_v43  ;;  %v13718_v55 = vcombine.low %v7753_v58, %v7757_v43  ;;  %v7734_v62 = vld [vmem:[#allocation8 + $0x11b0] sm:$0xff] }
 0x47f   :  { %9345 = vmatpush2.bf16.msra.mxu0 %v13742_v30  ;;  %v7885_v34 = vld [vmem:[#allocation8 + $0x1668] sm:$0xff]  ;;  %v13833_v30 = vcombine.high %v7866_v50, %v7870_v15  ;;  %v7850_v58 = vld [vmem:[#allocation8 + $0x1550] sm:$0xff] }
 0x480   :  { %9346 = vmatprep.subr.bf16.mxu0 %v13735_v39  ;;  %v7745_v16 = vld [vmem:[#allocation8 + $0x1208] sm:$0xff]  ;;  %v13847_v1 = vcombine.high %v7881_v59, %v7885_v34  ;;  %v13846_v57 = vcombine.low %v7881_v59, %v7885_v34  ;;  %v7862_v39 = vld [vmem:[#allocation8 + $0x15b0] sm:$0xff] }
 0x481   :  { %9398 = vmatpush2.bf16.msra.mxu1 %v13870_v18  ;;  %v7749_v60 = vld [vmem:[#allocation8 + $0x1228] sm:$0xff]  ;;  %v13697_v18 = vcombine.high %v7730_v33, %v7734_v62  ;;  %v13825_v40 = vcombine.high %v7858_v23, %v7862_v39  ;;  %v7854_v43 = vld [vmem:[#allocation8 + $0x1570] sm:$0xff] }
 0x482   :  { %9399 = vmatprep.subr.bf16.mxu1 %v13863_v61  ;;  %v7873_v56 = vld [vmem:[#allocation8 + $0x1608] sm:$0xff]  ;;  %v13711_v24 = vcombine.high %v7745_v16, %v7749_v60  ;;  %v13710_v47 = vcombine.low %v7745_v16, %v7749_v60  ;;  %v7726_v61 = vld [vmem:[#allocation8 + $0x1170] sm:$0xff]  ;;  %v13824_v16 = vcombine.low %v7858_v23, %v7862_v39 }
 0x483   :  { %9347 = vmatpush2.bf16.msra.mxu0 %v13734_v2  ;;  %v7877_v42 = vld [vmem:[#allocation8 + $0x1628] sm:$0xff]  ;;  %v13689_v59 = vcombine.high %v7722_v5, %v7726_v61  ;;  %v7714_v60 = vld [vmem:[#allocation8 + $0x1110] sm:$0xff]  ;;  %v13688_v37 = vcombine.low %v7722_v5, %v7726_v61 }
 0x484   :  { %9348 = vmatprep.subr.bf16.mxu0 %v13727_v41  ;;  %v13839_v19 = vcombine.high %v7873_v56, %v7877_v42  ;;  %v13838_v52 = vcombine.low %v7873_v56, %v7877_v42  ;;  %v17717_v44 = vld [vmem:[#allocation36_spill] sm:$0xff]  ;;  %v13817_v42 = vcombine.high %v7850_v58, %v7854_v43  ;;  %v17721_v61 = vld [vmem:[#allocation21_spill] sm:$0xff] }
 0x485   :  { %9400 = vmatpush2.bf16.msra.mxu1 %v13862_v35  ;;  %v13696_v35 = vcombine.low %v7730_v33, %v7734_v62  ;;  %v17720_v33 = vld [vmem:[#allocation20_spill] sm:$0xff] }
 0x486   :  { %9401 = vmatprep.subr.bf16.mxu1 %v13855_v12  ;;  %v7710_v23 = vld [vmem:[#allocation8 + $0x10f0] sm:$0xff] }
 0x487   :  { %9349 = vmatpush2.bf16.msra.mxu0 %v13726_v38 }
 0x488   :  { %9350 = vmatprep.subr.bf16.mxu0 %v13719_v36  ;;  %v17718_v36 = vld [vmem:[#allocation37_spill] sm:$0xff] }
 0x489   :  { %9402 = vmatpush2.bf16.msra.mxu1 %v13854_v7 }
 0x48a   :  { %9403 = vmatprep.subr.bf16.mxu1 %v13847_v1  ;;  %v7718_v1 = vld [vmem:[#allocation8 + $0x1130] sm:$0xff] }
 0x48b   :  { %9351 = vmatpush2.bf16.msra.mxu0 %v13718_v55 }
 0x48c   :  { %9352 = vmatprep.subr.bf16.mxu0 %v13711_v24 }
 0x48d   :  { %9404 = vmatpush2.bf16.msra.mxu1 %v13846_v57  ;;  %v17719_v57 = vld [vmem:[#allocation23_spill] sm:$0xff] }
 0x48e   :  { %9405 = vmatprep.subr.bf16.mxu1 %v13839_v19  ;;  %v7842_v19 = vld [vmem:[#allocation8 + $0x1510] sm:$0xff] }
 0x48f   :  { %9353 = vmatpush2.bf16.msra.mxu0 %v13710_v47  ;;  %v7846_v47 = vld [vmem:[#allocation8 + $0x1530] sm:$0xff] }
 0x490   :  { %9428 = vmatprep.subr.bf16.mxu0 %v13705_v14  ;;  %v13681_v14 = vcombine.high %v7714_v60, %v7718_v1 }
 0x491   :  { %9406 = vmatpush2.bf16.msra.mxu1 %v13838_v52 }
 0x492   :  { %v7177_v2 = vpop.f32.mrf.mxu0  ;;  %9355 = vmatmul.mubr.bf16.vlgmr.msra.gmra.mxu0 %v16867_v0  ;;  %9481 = vmatprep.subr.bf16.mxu1 %v13833_v30  ;;  %v13816_v30 = vcombine.low %v7850_v58, %v7854_v43 }
 0x493   :  { %v7178_v41 = vadd.f32 %v7177_v2, %v17717_v44  ;;  %9364 = vmatprep.mubr.bf16.mxu0 %v16871_v9  ;;  %9429 = vmatpush1.bf16.msra.mxu0 %v13704_v26  ;;  %v7706_v26 = vld [vmem:[#allocation8 + $0x10d0] sm:$0xff] }
 0x494   :  { %v7230_v12 = vpop.f32.mrf.mxu1  ;;  %9408 = vmatmul.mubr.bf16.vlgmr.msra.gmra.mxu1 %v16873_v31  ;;  %v7179_v38 = vpop.f32.mrf.mxu0  ;;  %9430 = vmatprep.subr.bf16.mxu0 %v13697_v18  ;;  %v7834_v44 = vld [vmem:[#allocation8 + $0x14d0] sm:$0xff]  ;;  %v13673_v43 = vcombine.high %v7706_v26, %v7710_v23 }
 0x495   :  { %v16924_v34 = vadd.f32 %v7230_v12, %v7178_v41  ;;  %9417 = vmatprep.mubr.bf16.mxu1 %v16878_v32  ;;  %9482 = vmatpush1.bf16.msra.mxu1 %v13832_v17  ;;  %v7180_v7 = vadd.f32 %v7179_v38, %v17718_v36  ;;  %v13809_v17 = vcombine.high %v7842_v19, %v7846_v47  ;;  %v7838_v41 = vld [vmem:[#allocation8 + $0x14f0] sm:$0xff]  ;;  %v17722_v38 = vld [vmem:[#allocation38_spill] sm:$0xff] }
 0x496   :  { %v7232_v55 = vpop.f32.mrf.mxu1  ;;  %v7181_v56 = vpop.f32.mrf.mxu0  ;;  %9483 = vmatprep.subr.bf16.mxu1 %v13825_v40  ;;  %v13680_v40 = vcombine.low %v7714_v60, %v7718_v1  ;;  %v13808_v36 = vcombine.low %v7842_v19, %v7846_v47  ;;  %v13801_v1 = vcombine.high %v7834_v44, %v7838_v41  ;;  %v17724_v19 = vld [vmem:[#allocation27_spill] sm:$0xff] }
 0x497   :  { %v16928_v24 = vadd.f32 %v7232_v55, %v7180_v7  ;;  %v7182_v20 = vadd.f32 %v7181_v56, %v17719_v57  ;;  %9431 = vmatpush1.bf16.msra.mxu0 %v13696_v35  ;;  %v7698_v7 = vld [vmem:[#allocation8 + $0x1090] sm:$0xff] }
 0x498   :  { %v7234_v50 = vpop.f32.mrf.mxu1  ;;  %v7183_v15 = vpop.f32.mrf.mxu0  ;;  %9432 = vmatprep.subr.bf16.mxu0 %v13689_v59 }
 0x499   :  { %v16931_v52 = vadd.f32 %v7234_v50, %v7182_v20  ;;  %9484 = vmatpush1.bf16.msra.mxu1 %v13824_v16  ;;  %v7184_v62 = vadd.f32 %v7183_v15, %v17720_v33  ;;  %v7702_v16 = vld [vmem:[#allocation8 + $0x10b0] sm:$0xff]  ;;  %v13672_v20 = vcombine.low %v7706_v26, %v7710_v23 }
 0x49a   :  { %v7236_v39 = vpop.f32.mrf.mxu1  ;;  %v7187_v18 = vpop.f32.mrf.mxu0  ;;  %9365 = vmatmul.mubr.bf16.gmra.mxu0 %v16895_v46  ;;  %9485 = vmatprep.subr.bf16.mxu1 %v13817_v42  ;;  %v17723_v42 = vld [vmem:[#allocation39_spill] sm:$0xff]  ;;  %v7830_v50 = vld [vmem:[#allocation8 + $0x14b0] sm:$0xff]  ;;  %v13665_v33 = vcombine.high %v7698_v7, %v7702_v16  ;;  %v13664_v26 = vcombine.low %v7698_v7, %v7702_v16 }
 0x49b   :  { %v16935_v5 = vadd.f32 %v7236_v39, %v7184_v62  ;;  %v7188_v2 = vadd.f32 %v7187_v18, %v17721_v61  ;;  %9433 = vmatpush1.bf16.msra.mxu0 %v13688_v37  ;;  %9460 = vmatprep.mubr.bf16.mxu0 %v16806_v27  ;;  %v7826_v37 = vld [vmem:[#allocation8 + $0x1490] sm:$0xff] }
 0x49c   :  { %v7240_v35 = vpop.f32.mrf.mxu1  ;;  %9418 = vmatmul.mubr.bf16.gmra.mxu1 %v16901_v8  ;;  %v7189_v58 = vpop.f32.mrf.mxu0  ;;  %9434 = vmatprep.subr.bf16.mxu0 %v13681_v14  ;;  %v7690_v39 = vld [vmem:[#allocation8 + $0x1050] sm:$0xff]  ;;  %v13793_v61 = vcombine.high %v7826_v37, %v7830_v50 }
 0x49d   :  { %v16940_v12 = vadd.f32 %v7240_v35, %v7188_v2  ;;  %9486 = vmatpush1.bf16.msra.mxu1 %v13816_v30  ;;  %9513 = vmatprep.mubr.bf16.mxu1 %v16809_v45  ;;  %v7190_v59 = vadd.f32 %v7189_v58, %v17722_v38  ;;  %v13800_v30 = vcombine.low %v7834_v44, %v7838_v41  ;;  %v7694_v18 = vld [vmem:[#allocation8 + $0x1070] sm:$0xff] }
 0x49e   :  { %v7242_v55 = vpop.f32.mrf.mxu1  ;;  %v7191_v60 = vpop.f32.mrf.mxu0  ;;  %9487 = vmatprep.subr.bf16.mxu1 %v13809_v17  ;;  %v7818_v23 = vld [vmem:[#allocation8 + $0x1450] sm:$0xff]  ;;  %v13657_v35 = vcombine.high %v7690_v39, %v7694_v18  ;;  %v13792_v58 = vcombine.low %v7826_v37, %v7830_v50  ;;  %v13656_v44 = vcombine.low %v7690_v39, %v7694_v18 }
 0x49f   :  { %v16944_v56 = vadd.f32 %v7242_v55, %v7190_v59  ;;  %v7192_v57 = vadd.f32 %v7191_v60, %v17723_v42  ;;  %9435 = vmatpush1.bf16.msra.mxu0 %v13680_v40  ;;  %v7822_v40 = vld [vmem:[#allocation8 + $0x1470] sm:$0xff] }
 0x4a0   :  { %v7244_v15 = vpop.f32.mrf.mxu1  ;;  %v7193_v14 = vpop.f32.mrf.mxu0  ;;  %9436 = vmatprep.subr.bf16.mxu0 %v13673_v43  ;;  %v7682_v43 = vld [vmem:[#allocation8 + $0x1010] sm:$0xff]  ;;  %v13785_v59 = vcombine.high %v7818_v23, %v7822_v40  ;;  %v13784_v60 = vcombine.low %v7818_v23, %v7822_v40 }
 0x4a1   :  { %v16947_v62 = vadd.f32 %v7244_v15, %v7192_v57  ;;  %9488 = vmatpush1.bf16.msra.mxu1 %v13808_v36  ;;  %v7194_v47 = vadd.f32 %v7193_v14, %v17724_v19  ;;  %v7686_v38 = vld [vmem:[#allocation8 + $0x1030] sm:$0xff] }
 0x4a2   :  { %v7246_v17 = vpop.f32.mrf.mxu1  ;;  %9489 = vmatprep.subr.bf16.mxu1 %v13801_v1  ;;  %v7810_v41 = vld [vmem:[#allocation8 + $0x1410] sm:$0xff]  ;;  %v13649_v55 = vcombine.high %v7682_v43, %v7686_v38  ;;  %v13648_v42 = vcombine.low %v7682_v43, %v7686_v38 }
 0x4a3   :  { %v16950_v2 = vadd.f32 %v7246_v17, %v7194_v47  ;;  %9437 = vmatpush1.bf16.msra.mxu0 %v13672_v20  ;;  %v7814_v36 = vld [vmem:[#allocation8 + $0x1430] sm:$0xff] }
 0x4a4   :  { %9438 = vmatprep.subr.bf16.mxu0 %v13665_v33  ;;  %v7802_v1 = vld [vmem:[#allocation8 + $0x13d0] sm:$0xff]  ;;  %v13777_v16 = vcombine.high %v7810_v41, %v7814_v36  ;;  %v13776_v50 = vcombine.low %v7810_v41, %v7814_v36 }
 0x4a5   :  { %9490 = vmatpush1.bf16.msra.mxu1 %v13800_v30  ;;  %v7806_v7 = vld [vmem:[#allocation8 + $0x13f0] sm:$0xff] }
 0x4a6   :  { %9491 = vmatprep.subr.bf16.mxu1 %v13793_v61  ;;  %v7930_v57 = vld [vmem:[#allocation8 + $0x17d0] sm:$0xff]  ;;  %v13769_v37 = vcombine.high %v7802_v1, %v7806_v7  ;;  %v13768_v19 = vcombine.low %v7802_v1, %v7806_v7 }
 0x4a7   :  { %9439 = vmatpush1.bf16.msra.mxu0 %v13664_v26  ;;  %v7934_v20 = vld [vmem:[#allocation8 + $0x17f0] sm:$0xff] }
 0x4a8   :  { %9440 = vmatprep.subr.bf16.mxu0 %v13657_v35  ;;  %v7794_v15 = vld [vmem:[#allocation8 + $0x1390] sm:$0xff]  ;;  %v13897_v33 = vcombine.high %v7930_v57, %v7934_v20  ;;  %v13896_v18 = vcombine.low %v7930_v57, %v7934_v20 }
 0x4a9   :  { %9492 = vmatpush1.bf16.msra.mxu1 %v13792_v58  ;;  %v7798_v14 = vld [vmem:[#allocation8 + $0x13b0] sm:$0xff] }
 0x4aa   :  { %9493 = vmatprep.subr.bf16.mxu1 %v13785_v59  ;;  %v7922_v47 = vld [vmem:[#allocation8 + $0x1790] sm:$0xff]  ;;  %v13761_v39 = vcombine.high %v7794_v15, %v7798_v14  ;;  %v13760_v23 = vcombine.low %v7794_v15, %v7798_v14 }
 0x4ab   :  { %9441 = vmatpush1.bf16.msra.mxu0 %v13656_v44  ;;  %v7926_v30 = vld [vmem:[#allocation8 + $0x17b0] sm:$0xff] }
 0x4ac   :  { %9442 = vmatprep.subr.bf16.mxu0 %v13649_v55  ;;  %v7786_v17 = vld [vmem:[#allocation8 + $0x1350] sm:$0xff]  ;;  %v13889_v26 = vcombine.high %v7922_v47, %v7926_v30  ;;  %v13888_v43 = vcombine.low %v7922_v47, %v7926_v30 }
 0x4ad   :  { %9494 = vmatpush1.bf16.msra.mxu1 %v13784_v60  ;;  %v7790_v61 = vld [vmem:[#allocation8 + $0x1370] sm:$0xff] }
 0x4ae   :  { %9495 = vmatprep.subr.bf16.mxu1 %v13777_v16  ;;  %v7914_v40 = vld [vmem:[#allocation8 + $0x1750] sm:$0xff]  ;;  %v13753_v58 = vcombine.high %v7786_v17, %v7790_v61  ;;  %v13752_v41 = vcombine.low %v7786_v17, %v7790_v61 }
 0x4af   :  { %9443 = vmatpush1.bf16.msra.mxu0 %v13648_v42  ;;  %v7918_v35 = vld [vmem:[#allocation8 + $0x1770] sm:$0xff] }
 0x4b0   :  { %9444 = vmatprep.subr.bf16.mxu0 %v13769_v37  ;;  %v7778_v38 = vld [vmem:[#allocation8 + $0x1310] sm:$0xff]  ;;  %v13881_v44 = vcombine.high %v7914_v40, %v7918_v35  ;;  %v13880_v1 = vcombine.low %v7914_v40, %v7918_v35 }
 0x4b1   :  { %9496 = vmatpush1.bf16.msra.mxu1 %v13776_v50  ;;  %v7782_v59 = vld [vmem:[#allocation8 + $0x1330] sm:$0xff] }
 0x4b2   :  { %9497 = vmatprep.subr.bf16.mxu1 %v13897_v33  ;;  %v7906_v36 = vld [vmem:[#allocation8 + $0x1710] sm:$0xff]  ;;  %v13745_v60 = vcombine.high %v7778_v38, %v7782_v59  ;;  %v13744_v57 = vcombine.low %v7778_v38, %v7782_v59 }
 0x4b3   :  { %9445 = vmatpush2.bf16.msra.mxu0 %v13768_v19  ;;  %v7910_v55 = vld [vmem:[#allocation8 + $0x1730] sm:$0xff] }
 0x4b4   :  { %9446 = vmatprep.subr.bf16.mxu0 %v13761_v39  ;;  %v7770_v7 = vld [vmem:[#allocation8 + $0x12d0] sm:$0xff]  ;;  %v13873_v42 = vcombine.high %v7906_v36, %v7910_v55  ;;  %v13872_v15 = vcombine.low %v7906_v36, %v7910_v55 }
 0x4b5   :  { %9498 = vmatpush2.bf16.msra.mxu1 %v13896_v18  ;;  %v7774_v16 = vld [vmem:[#allocation8 + $0x12f0] sm:$0xff] }
 0x4b6   :  { %9499 = vmatprep.subr.bf16.mxu1 %v13889_v26  ;;  %v7898_v20 = vld [vmem:[#allocation8 + $0x16d0] sm:$0xff]  ;;  %v13737_v50 = vcombine.high %v7770_v7, %v7774_v16  ;;  %v13736_v47 = vcombine.low %v7770_v7, %v7774_v16  ;;  %v7739_v16 = vld [vmem:[#allocation8 + $0x11d8] sm:$0xff] }
 0x4b7   :  { %9447 = vmatpush2.bf16.msra.mxu0 %v13760_v23  ;;  %v7902_v37 = vld [vmem:[#allocation8 + $0x16f0] sm:$0xff] }
 0x4b8   :  { %9448 = vmatprep.subr.bf16.mxu0 %v13753_v58  ;;  %v7762_v14 = vld [vmem:[#allocation8 + $0x1290] sm:$0xff]  ;;  %v13865_v19 = vcombine.high %v7898_v20, %v7902_v37  ;;  %v13864_v17 = vcombine.low %v7898_v20, %v7902_v37  ;;  %v7867_v37 = vld [vmem:[#allocation8 + $0x15d8] sm:$0xff] }
 0x4b9   :  { %9500 = vmatpush2.bf16.msra.mxu1 %v13888_v43  ;;  %v7766_v33 = vld [vmem:[#allocation8 + $0x12b0] sm:$0xff] }
 0x4ba   :  { %9501 = vmatprep.subr.bf16.mxu1 %v13881_v44  ;;  %v7890_v30 = vld [vmem:[#allocation8 + $0x1690] sm:$0xff]  ;;  %v13729_v18 = vcombine.high %v7762_v14, %v7766_v33  ;;  %v13728_v40 = vcombine.low %v7762_v14, %v7766_v33  ;;  %v7731_v33 = vld [vmem:[#allocation8 + $0x1198] sm:$0xff] }
 0x4bb   :  { %9449 = vmatpush2.bf16.msra.mxu0 %v13752_v41  ;;  %v7894_v39 = vld [vmem:[#allocation8 + $0x16b0] sm:$0xff] }
 0x4bc   :  { %9450 = vmatprep.subr.bf16.mxu0 %v13745_v60  ;;  %v7754_v61 = vld [vmem:[#allocation8 + $0x1250] sm:$0xff]  ;;  %v13857_v23 = vcombine.high %v7890_v30, %v7894_v39  ;;  %v13856_v38 = vcombine.low %v7890_v30, %v7894_v39  ;;  %v7859_v39 = vld [vmem:[#allocation8 + $0x1598] sm:$0xff] }
 0x4bd   :  { %9502 = vmatpush2.bf16.msra.mxu1 %v13880_v1  ;;  %v7758_v26 = vld [vmem:[#allocation8 + $0x1270] sm:$0xff] }
 0x4be   :  { %9503 = vmatprep.subr.bf16.mxu1 %v13873_v42  ;;  %v7882_v35 = vld [vmem:[#allocation8 + $0x1650] sm:$0xff]  ;;  %v13721_v43 = vcombine.high %v7754_v61, %v7758_v26  ;;  %v13720_v36 = vcombine.low %v7754_v61, %v7758_v26  ;;  %v7743_v42 = vld [vmem:[#allocation8 + $0x11f8] sm:$0xff] }
 0x4bf   :  { %9451 = vmatpush2.bf16.msra.mxu0 %v13744_v57  ;;  %v7886_v58 = vld [vmem:[#allocation8 + $0x1670] sm:$0xff]  ;;  %v13706_v30 = vcombine.low %v7739_v16, %v7743_v42  ;;  %v7723_v26 = vld [vmem:[#allocation8 + $0x1158] sm:$0xff] }
 0x4c0   :  { %9452 = vmatprep.subr.bf16.mxu0 %v13737_v50  ;;  %v7746_v59 = vld [vmem:[#allocation8 + $0x1210] sm:$0xff]  ;;  %v13849_v41 = vcombine.high %v7882_v35, %v7886_v58  ;;  %v13848_v7 = vcombine.low %v7882_v35, %v7886_v58  ;;  %v7871_v50 = vld [vmem:[#allocation8 + $0x15f8] sm:$0xff] }
 0x4c1   :  { %9504 = vmatpush2.bf16.msra.mxu1 %v13872_v15  ;;  %v7750_v44 = vld [vmem:[#allocation8 + $0x1230] sm:$0xff]  ;;  %v13707_v15 = vcombine.high %v7739_v16, %v7743_v42  ;;  %v13834_v61 = vcombine.low %v7867_v37, %v7871_v50  ;;  %v7715_v42 = vld [vmem:[#allocation8 + $0x1118] sm:$0xff] }
 0x4c2   :  { %9505 = vmatprep.subr.bf16.mxu1 %v13865_v19  ;;  %v7874_v55 = vld [vmem:[#allocation8 + $0x1610] sm:$0xff]  ;;  %v13713_v1 = vcombine.high %v7746_v59, %v7750_v44  ;;  %v13712_v20 = vcombine.low %v7746_v59, %v7750_v44  ;;  %v7735_v19 = vld [vmem:[#allocation8 + $0x11b8] sm:$0xff] }
 0x4c3   :  { %9453 = vmatpush2.bf16.msra.mxu0 %v13736_v47  ;;  %v7878_v60 = vld [vmem:[#allocation8 + $0x1630] sm:$0xff]  ;;  %v13835_v47 = vcombine.high %v7867_v37, %v7871_v50  ;;  %v7851_v59 = vld [vmem:[#allocation8 + $0x1558] sm:$0xff] }
 0x4c4   :  { %9454 = vmatprep.subr.bf16.mxu0 %v13729_v18  ;;  %v13841_v57 = vcombine.high %v7874_v55, %v7878_v60  ;;  %v13840_v14 = vcombine.low %v7874_v55, %v7878_v60  ;;  %v7863_v18 = vld [vmem:[#allocation8 + $0x15b8] sm:$0xff]  ;;  %v17725_v58 = vld [vmem:[#allocation24_spill] sm:$0xff] }
 0x4c5   :  { %9506 = vmatpush2.bf16.msra.mxu1 %v13864_v17  ;;  %v13699_v17 = vcombine.high %v7731_v33, %v7735_v19  ;;  %v13827_v35 = vcombine.high %v7859_v39, %v7863_v18  ;;  %v7855_v44 = vld [vmem:[#allocation8 + $0x1578] sm:$0xff]  ;;  %v13826_v16 = vcombine.low %v7859_v39, %v7863_v18 }
 0x4c6   :  { %9507 = vmatprep.subr.bf16.mxu1 %v13857_v23  ;;  %v7727_v23 = vld [vmem:[#allocation8 + $0x1178] sm:$0xff]  ;;  %v13819_v50 = vcombine.high %v7851_v59, %v7855_v44 }
 0x4c7   :  { %9455 = vmatpush2.bf16.msra.mxu0 %v13728_v40  ;;  %v13691_v55 = vcombine.high %v7723_v26, %v7727_v23  ;;  %v17730_v39 = vld [vmem:[#allocation41_spill] sm:$0xff] }
 0x4c8   :  { %9456 = vmatprep.subr.bf16.mxu0 %v13721_v43 }
 0x4c9   :  { %9508 = vmatpush2.bf16.msra.mxu1 %v13856_v38  ;;  %v13698_v38 = vcombine.low %v7731_v33, %v7735_v19  ;;  %v13690_v19 = vcombine.low %v7723_v26, %v7727_v23 }
 0x4ca   :  { %9509 = vmatprep.subr.bf16.mxu1 %v13849_v41 }
 0x4cb   :  { %9457 = vmatpush2.bf16.msra.mxu0 %v13720_v36 }
 0x4cc   :  { %9458 = vmatprep.subr.bf16.mxu0 %v13713_v1  ;;  %v17726_v1 = vld [vmem:[#allocation28_spill] sm:$0xff] }
 0x4cd   :  { %9510 = vmatpush2.bf16.msra.mxu1 %v13848_v7 }
 0x4ce   :  { %9511 = vmatprep.subr.bf16.mxu1 %v13841_v57  ;;  %v7719_v57 = vld [vmem:[#allocation8 + $0x1138] sm:$0xff] }
 0x4cf   :  { %9459 = vmatpush2.bf16.msra.mxu0 %v13712_v20 }
 0x4d0   :  { %9534 = vmatprep.subr.bf16.mxu0 %v13707_v15 }
 0x4d1   :  { %9512 = vmatpush2.bf16.msra.mxu1 %v13840_v14  ;;  %v17728_v14 = vld [vmem:[#allocation40_spill] sm:$0xff] }
 0x4d2   :  { %v7283_v40 = vpop.f32.mrf.mxu0  ;;  %9461 = vmatmul.mubr.bf16.vlgmr.msra.gmra.mxu0 %v16867_v0  ;;  %9587 = vmatprep.subr.bf16.mxu1 %v13835_v47  ;;  %v7843_v47 = vld [vmem:[#allocation8 + $0x1518] sm:$0xff] }
 0x4d3   :  { %v7284_v43 = vadd.f32 %v7283_v40, %v17725_v58  ;;  %9470 = vmatprep.mubr.bf16.mxu0 %v16871_v9  ;;  %9535 = vmatpush1.bf16.msra.mxu0 %v13706_v30  ;;  %v7847_v30 = vld [vmem:[#allocation8 + $0x1538] sm:$0xff] }
 0x4d4   :  { %v7336_v41 = vpop.f32.mrf.mxu1  ;;  %9514 = vmatmul.mubr.bf16.vlgmr.msra.gmra.mxu1 %v16873_v31  ;;  %v7285_v36 = vpop.f32.mrf.mxu0  ;;  %9536 = vmatprep.subr.bf16.mxu0 %v13699_v17  ;;  %v13811_v26 = vcombine.high %v7843_v47, %v7847_v30 }
 0x4d5   :  { %v16956_v60 = vadd.f32 %v7336_v41, %v7284_v43  ;;  %9523 = vmatprep.mubr.bf16.mxu1 %v16878_v32  ;;  %9588 = vmatpush1.bf16.msra.mxu1 %v13834_v61  ;;  %v7286_v7 = vadd.f32 %v7285_v36, %v17726_v1  ;;  %v13683_v61 = vcombine.high %v7715_v42, %v7719_v57  ;;  %v7711_v41 = vld [vmem:[#allocation8 + $0x10f8] sm:$0xff] }
 0x4d6   :  { %v7338_v20 = vpop.f32.mrf.mxu1  ;;  %v7287_v37 = vpop.f32.mrf.mxu0  ;;  %9589 = vmatprep.subr.bf16.mxu1 %v13827_v35  ;;  %v13818_v43 = vcombine.low %v7851_v59, %v7855_v44  ;;  %v7707_v35 = vld [vmem:[#allocation8 + $0x10d8] sm:$0xff] }
 0x4d7   :  { %v16960_v15 = vadd.f32 %v7338_v20, %v7286_v7  ;;  %v7288_v33 = vadd.f32 %v7287_v37, %v17728_v14  ;;  %9537 = vmatpush1.bf16.msra.mxu0 %v13698_v38  ;;  %v17732_v38 = vld [vmem:[#allocation42_spill] sm:$0xff]  ;;  %v13675_v44 = vcombine.high %v7707_v35, %v7711_v41 }
 0x4d8   :  { %v7340_v17 = vpop.f32.mrf.mxu1  ;;  %v7289_v40 = vpop.f32.mrf.mxu0  ;;  %9538 = vmatprep.subr.bf16.mxu0 %v13691_v55  ;;  %v13682_v55 = vcombine.low %v7715_v42, %v7719_v57  ;;  %v7839_v20 = vld [vmem:[#allocation8 + $0x14f8] sm:$0xff] }
 0x4d9   :  { %17727 = vst [vmem:[#allocation25_spill] sm:$0xff] %v16960_v15  ;;  %v16963_v58 = vadd.f32 %v7340_v17, %v7288_v33  ;;  %9590 = vmatpush1.bf16.msra.mxu1 %v13826_v16  ;;  %v7290_v18 = vadd.f32 %v7289_v40, %v17730_v39  ;;  %v7835_v16 = vld [vmem:[#allocation8 + $0x14d8] sm:$0xff]  ;;  %v13810_v17 = vcombine.low %v7843_v47, %v7847_v30 }
 0x4da   :  { %v7342_v36 = vpop.f32.mrf.mxu1  ;;  %v7293_v1 = vpop.f32.mrf.mxu0  ;;  %9471 = vmatmul.mubr.bf16.gmra.mxu0 %v16895_v46  ;;  %9591 = vmatprep.subr.bf16.mxu1 %v13819_v50  ;;  %v17734_v50 = vld [vmem:[#allocation44_spill] sm:$0xff]  ;;  %v7703_v40 = vld [vmem:[#allocation8 + $0x10b8] sm:$0xff]  ;;  %v13803_v57 = vcombine.high %v7835_v16, %v7839_v20 }
 0x4db   :  { %17729 = vst [vmem:[#allocation29_spill] sm:$0xff] %v16963_v58  ;;  %v16967_v23 = vadd.f32 %v7342_v36, %v7290_v18  ;;  %v7294_v7 = vadd.f32 %v7293_v1, %v17732_v38  ;;  %9539 = vmatpush1.bf16.msra.mxu0 %v13690_v19  ;;  %9566 = vmatprep.mubr.bf16.mxu0 %v16806_v27  ;;  %v7699_v19 = vld [vmem:[#allocation8 + $0x1098] sm:$0xff] }
 0x4dc   :  { %v7346_v37 = vpop.f32.mrf.mxu1  ;;  %9524 = vmatmul.mubr.bf16.gmra.mxu1 %v16901_v8  ;;  %v7295_v59 = vpop.f32.mrf.mxu0  ;;  %9540 = vmatprep.subr.bf16.mxu0 %v13683_v61  ;;  %v17736_v18 = vld [vmem:[#allocation26_spill] sm:$0xff]  ;;  %v13674_v61 = vcombine.low %v7707_v35, %v7711_v41  ;;  %v13666_v35 = vcombine.low %v7699_v19, %v7703_v40 }
 0x4dd   :  { %17731 = vst [vmem:[#allocation30_spill] sm:$0xff] %v16967_v23  ;;  %v16972_v14 = vadd.f32 %v7346_v37, %v7294_v7  ;;  %9592 = vmatpush1.bf16.msra.mxu1 %v13818_v43  ;;  %9619 = vmatprep.mubr.bf16.mxu1 %v16809_v45  ;;  %v7296_v33 = vadd.f32 %v7295_v59, %v17734_v50  ;;  %v7827_v1 = vld [vmem:[#allocation8 + $0x1498] sm:$0xff] }
 0x4de   :  { %v7348_v27 = vpop.f32.mrf.mxu1  ;;  %v7297_v42 = vpop.f32.mrf.mxu0  ;;  %9593 = vmatprep.subr.bf16.mxu1 %v13811_v26  ;;  %v7831_v38 = vld [vmem:[#allocation8 + $0x14b8] sm:$0xff]  ;;  %v13667_v45 = vcombine.high %v7699_v19, %v7703_v40  ;;  %v13802_v59 = vcombine.low %v7835_v16, %v7839_v20 }
 0x4df   :  { %17733 = vst [vmem:[#allocation31_spill] sm:$0xff] %v16972_v14  ;;  %v16976_v39 = vadd.f32 %v7348_v27, %v7296_v33  ;;  %v7298_v36 = vadd.f32 %v7297_v42, %v17736_v18  ;;  %9541 = vmatpush1.bf16.msra.mxu0 %v13682_v55  ;;  %v17738_v47 = vld [vmem:[#allocation22_spill] sm:$0xff]  ;;  %v13795_v27 = vcombine.high %v7827_v1, %v7831_v38 }
 0x4e0   :  { %v7350_v43 = vpop.f32.mrf.mxu1  ;;  %v7299_v7 = vpop.f32.mrf.mxu0  ;;  %9542 = vmatprep.subr.bf16.mxu0 %v13675_v44  ;;  %v7691_v26 = vld [vmem:[#allocation8 + $0x1058] sm:$0xff]  ;;  %v13794_v18 = vcombine.low %v7827_v1, %v7831_v38 }
 0x4e1   :  { %17735 = vst [vmem:[#allocation32_spill] sm:$0xff] %v16976_v39  ;;  %v16979_v37 = vadd.f32 %v7350_v43, %v7298_v36  ;;  %9594 = vmatpush1.bf16.msra.mxu1 %v13810_v17  ;;  %v7300_v30 = vadd.f32 %v7299_v7, %v17738_v47  ;;  %v7695_v50 = vld [vmem:[#allocation8 + $0x1078] sm:$0xff] }
 0x4e2   :  { %v7352_v33 = vpop.f32.mrf.mxu1  ;;  %9595 = vmatprep.subr.bf16.mxu1 %v13803_v57  ;;  %v7819_v41 = vld [vmem:[#allocation8 + $0x1458] sm:$0xff]  ;;  %v13659_v44 = vcombine.high %v7691_v26, %v7695_v50  ;;  %v13658_v16 = vcombine.low %v7691_v26, %v7695_v50 }
 0x4e3   :  { %17737 = vst [vmem:[#allocation48_spill] sm:$0xff] %v16979_v37  ;;  %v16982_v42 = vadd.f32 %v7352_v33, %v7300_v30  ;;  %9543 = vmatpush1.bf16.msra.mxu0 %v13674_v61  ;;  %v7823_v55 = vld [vmem:[#allocation8 + $0x1478] sm:$0xff] }
 0x4e4   :  { %9544 = vmatprep.subr.bf16.mxu0 %v13667_v45  ;;  %v7683_v36 = vld [vmem:[#allocation8 + $0x1018] sm:$0xff]  ;;  %v13787_v43 = vcombine.high %v7819_v41, %v7823_v55  ;;  %v13786_v47 = vcombine.low %v7819_v41, %v7823_v55 }
 0x4e5   :  { %17739 = vst [vmem:[#allocation50_spill] sm:$0xff] %v16982_v42  ;;  %9596 = vmatpush1.bf16.msra.mxu1 %v13802_v59  ;;  %v7687_v17 = vld [vmem:[#allocation8 + $0x1038] sm:$0xff] }
 0x4e6   :  { %9597 = vmatprep.subr.bf16.mxu1 %v13795_v27  ;;  %v7811_v20 = vld [vmem:[#allocation8 + $0x1418] sm:$0xff]  ;;  %v13651_v57 = vcombine.high %v7683_v36, %v7687_v17  ;;  %v13650_v45 = vcombine.low %v7683_v36, %v7687_v17 }
 0x4e7   :  { %9545 = vmatpush1.bf16.msra.mxu0 %v13666_v35  ;;  %v7815_v7 = vld [vmem:[#allocation8 + $0x1438] sm:$0xff] }
 0x4e8   :  { %9546 = vmatprep.subr.bf16.mxu0 %v13659_v44  ;;  %v7803_v61 = vld [vmem:[#allocation8 + $0x13d8] sm:$0xff]  ;;  %v13779_v40 = vcombine.high %v7811_v20, %v7815_v7  ;;  %v13778_v59 = vcombine.low %v7811_v20, %v7815_v7 }
 0x4e9   :  { %9598 = vmatpush1.bf16.msra.mxu1 %v13794_v18  ;;  %v7807_v19 = vld [vmem:[#allocation8 + $0x13f8] sm:$0xff] }
 0x4ea   :  { %9599 = vmatprep.subr.bf16.mxu1 %v13787_v43  ;;  %v7931_v30 = vld [vmem:[#allocation8 + $0x17d8] sm:$0xff]  ;;  %v13771_v38 = vcombine.high %v7803_v61, %v7807_v19  ;;  %v13770_v27 = vcombine.low %v7803_v61, %v7807_v19 }
 0x4eb   :  { %9547 = vmatpush1.bf16.msra.mxu0 %v13658_v16  ;;  %v7935_v1 = vld [vmem:[#allocation8 + $0x17f8] sm:$0xff] }
 0x4ec   :  { %9548 = vmatprep.subr.bf16.mxu0 %v13651_v57  ;;  %v7795_v33 = vld [vmem:[#allocation8 + $0x1398] sm:$0xff]  ;;  %v13899_v50 = vcombine.high %v7931_v30, %v7935_v1  ;;  %v13898_v44 = vcombine.low %v7931_v30, %v7935_v1 }
 0x4ed   :  { %9600 = vmatpush1.bf16.msra.mxu1 %v13786_v47  ;;  %v7799_v26 = vld [vmem:[#allocation8 + $0x13b8] sm:$0xff] }
 0x4ee   :  { %9601 = vmatprep.subr.bf16.mxu1 %v13779_v40  ;;  %v7923_v35 = vld [vmem:[#allocation8 + $0x1798] sm:$0xff]  ;;  %v13763_v55 = vcombine.high %v7795_v33, %v7799_v26  ;;  %v13762_v43 = vcombine.low %v7795_v33, %v7799_v26 }
 0x4ef   :  { %9549 = vmatpush1.bf16.msra.mxu0 %v13650_v45  ;;  %v7927_v41 = vld [vmem:[#allocation8 + $0x17b8] sm:$0xff] }
 0x4f0   :  { %9550 = vmatprep.subr.bf16.mxu0 %v13771_v38  ;;  %v7787_v18 = vld [vmem:[#allocation8 + $0x1358] sm:$0xff]  ;;  %v13891_v17 = vcombine.high %v7923_v35, %v7927_v41  ;;  %v13890_v57 = vcombine.low %v7923_v35, %v7927_v41 }
 0x4f1   :  { %9602 = vmatpush1.bf16.msra.mxu1 %v13778_v59  ;;  %v7791_v36 = vld [vmem:[#allocation8 + $0x1378] sm:$0xff] }
 0x4f2   :  { %9603 = vmatprep.subr.bf16.mxu1 %v13899_v50  ;;  %v7915_v16 = vld [vmem:[#allocation8 + $0x1758] sm:$0xff]  ;;  %v13755_v7 = vcombine.high %v7787_v18, %v7791_v36  ;;  %v13754_v40 = vcombine.low %v7787_v18, %v7791_v36 }
 0x4f3   :  { %9551 = vmatpush2.bf16.msra.mxu0 %v13770_v27  ;;  %v7919_v20 = vld [vmem:[#allocation8 + $0x1778] sm:$0xff] }
 0x4f4   :  { %9552 = vmatprep.subr.bf16.mxu0 %v13763_v55  ;;  %v7779_v47 = vld [vmem:[#allocation8 + $0x1318] sm:$0xff]  ;;  %v13883_v19 = vcombine.high %v7915_v16, %v7919_v20  ;;  %v13882_v38 = vcombine.low %v7915_v16, %v7919_v20 }
 0x4f5   :  { %9604 = vmatpush2.bf16.msra.mxu1 %v13898_v44  ;;  %v7783_v61 = vld [vmem:[#allocation8 + $0x1338] sm:$0xff] }
 0x4f6   :  { %9605 = vmatprep.subr.bf16.mxu1 %v13891_v17  ;;  %v7907_v45 = vld [vmem:[#allocation8 + $0x1718] sm:$0xff]  ;;  %v13747_v1 = vcombine.high %v7779_v47, %v7783_v61  ;;  %v13746_v50 = vcombine.low %v7779_v47, %v7783_v61 }
 0x4f7   :  { %9553 = vmatpush2.bf16.msra.mxu0 %v13762_v43  ;;  %v7911_v30 = vld [vmem:[#allocation8 + $0x1738] sm:$0xff] }
 0x4f8   :  { %9554 = vmatprep.subr.bf16.mxu0 %v13755_v7  ;;  %v7771_v59 = vld [vmem:[#allocation8 + $0x12d8] sm:$0xff]  ;;  %v13875_v26 = vcombine.high %v7907_v45, %v7911_v30  ;;  %v13874_v55 = vcombine.low %v7907_v45, %v7911_v30 }
 0x4f9   :  { %9606 = vmatpush2.bf16.msra.mxu1 %v13890_v57  ;;  %v7775_v33 = vld [vmem:[#allocation8 + $0x12f8] sm:$0xff] }
 0x4fa   :  { %9607 = vmatprep.subr.bf16.mxu1 %v13883_v19  ;;  %v7899_v27 = vld [vmem:[#allocation8 + $0x16d8] sm:$0xff]  ;;  %v13739_v41 = vcombine.high %v7771_v59, %v7775_v33  ;;  %v13738_v17 = vcombine.low %v7771_v59, %v7775_v33 }
 0x4fb   :  { %9555 = vmatpush2.bf16.msra.mxu0 %v13754_v40  ;;  %v7903_v35 = vld [vmem:[#allocation8 + $0x16f8] sm:$0xff] }
 0x4fc   :  { %9556 = vmatprep.subr.bf16.mxu0 %v13747_v1  ;;  %v7763_v44 = vld [vmem:[#allocation8 + $0x1298] sm:$0xff]  ;;  %v13867_v36 = vcombine.high %v7899_v27, %v7903_v35  ;;  %v13866_v7 = vcombine.low %v7899_v27, %v7903_v35 }
 0x4fd   :  { %9608 = vmatpush2.bf16.msra.mxu1 %v13882_v38  ;;  %v7767_v18 = vld [vmem:[#allocation8 + $0x12b8] sm:$0xff] }
 0x4fe   :  { %9609 = vmatprep.subr.bf16.mxu1 %v13875_v26  ;;  %v7891_v43 = vld [vmem:[#allocation8 + $0x1698] sm:$0xff]  ;;  %v13731_v20 = vcombine.high %v7763_v44, %v7767_v18  ;;  %v13730_v19 = vcombine.low %v7763_v44, %v7767_v18 }
 0x4ff   :  { %9557 = vmatpush2.bf16.msra.mxu0 %v13746_v50  ;;  %v7895_v16 = vld [vmem:[#allocation8 + $0x16b8] sm:$0xff] }
 0x500   :  { %9558 = vmatprep.subr.bf16.mxu0 %v13739_v41  ;;  %v7755_v57 = vld [vmem:[#allocation8 + $0x1258] sm:$0xff]  ;;  %v13859_v61 = vcombine.high %v7891_v43, %v7895_v16  ;;  %v13858_v1 = vcombine.low %v7891_v43, %v7895_v16 }
 0x501   :  { %9610 = vmatpush2.bf16.msra.mxu1 %v13874_v55  ;;  %v7759_v47 = vld [vmem:[#allocation8 + $0x1278] sm:$0xff] }
 0x502   :  { %9611 = vmatprep.subr.bf16.mxu1 %v13867_v36  ;;  %v7883_v40 = vld [vmem:[#allocation8 + $0x1658] sm:$0xff]  ;;  %v13723_v30 = vcombine.high %v7755_v57, %v7759_v47  ;;  %v13722_v26 = vcombine.low %v7755_v57, %v7759_v47 }
 0x503   :  { %9559 = vmatpush2.bf16.msra.mxu0 %v13738_v17  ;;  %v7887_v45 = vld [vmem:[#allocation8 + $0x1678] sm:$0xff] }
 0x504   :  { %9560 = vmatprep.subr.bf16.mxu0 %v13731_v20  ;;  %v7747_v38 = vld [vmem:[#allocation8 + $0x1218] sm:$0xff]  ;;  %v13851_v33 = vcombine.high %v7883_v40, %v7887_v45  ;;  %v13850_v41 = vcombine.low %v7883_v40, %v7887_v45 }
 0x505   :  { %9612 = vmatpush2.bf16.msra.mxu1 %v13866_v7  ;;  %v7751_v59 = vld [vmem:[#allocation8 + $0x1238] sm:$0xff] }
 0x506   :  { %9613 = vmatprep.subr.bf16.mxu1 %v13859_v61  ;;  %v7875_v50 = vld [vmem:[#allocation8 + $0x1618] sm:$0xff]  ;;  %v13715_v35 = vcombine.high %v7747_v38, %v7751_v59  ;;  %v13714_v44 = vcombine.low %v7747_v38, %v7751_v59 }
 0x507   :  { %9561 = vmatpush2.bf16.msra.mxu0 %v13730_v19  ;;  %v7879_v27 = vld [vmem:[#allocation8 + $0x1638] sm:$0xff]  ;;  %v17014_v19 = vld [vmem:[#allocation9] sm:$0xff] }
 0x508   :  { %9562 = vmatprep.subr.bf16.mxu0 %v13723_v30  ;;  %v13843_v55 = vcombine.high %v7875_v50, %v7879_v27  ;;  %v13842_v18 = vcombine.low %v7875_v50, %v7879_v27  ;;  %v17740_v38 = vld [vmem:[#allocation46_spill] sm:$0xff]  ;;  %v17745_v39 = vld [vmem:[#allocation49_spill] sm:$0xff] }
 0x509   :  { %9614 = vmatpush2.bf16.msra.mxu1 %v13858_v1  ;;  %v17018_v59 = vrot.slane %v17014_v19, %v17740_v38  ;;  %v17059_v48 = vrot.slane %v17014_v19, %v17745_v39  ;;  %v14556_v39 = vld [vmem:[#allocation11 + $0x138] sm:$0xff]  }
 0x50a   :  { %9615 = vmatprep.subr.bf16.mxu1 %v13851_v33 }
 0x50b   :  { %9563 = vmatpush2.bf16.msra.mxu0 %v13722_v26  ;;  %v17741_v26 = vld [vmem:[#allocation43_spill] sm:$0xff] }
 0x50c   :  { %9564 = vmatprep.subr.bf16.mxu0 %v13715_v35  ;;  %v17746_v54 = vsub.s32 3, %v17741_v26 }
 0x50d   :  { %9616 = vmatpush2.bf16.msra.mxu1 %v13850_v41 }
 0x50e   :  { %9617 = vmatprep.subr.bf16.mxu1 %v13843_v55  ;;  %v17065_v58 = vrot.slane %v17014_v19, %v17746_v54  ;;  %v14560_v54 = vld [vmem:[#allocation11 + $0x130] sm:$0xff]  }
 0x50f   :  { %9565 = vmatpush2.bf16.msra.mxu0 %v13714_v44 }
 0x511   :  { %9618 = vmatpush2.bf16.msra.mxu1 %v13842_v18 }
 0x512   :  { %v16984_v36 = vpop.f32.mrf.mxu0  ;;  %9567 = vmatmul.mubr.bf16.vlgmr.msra.gmra.mxu0 %v16867_v0 }
 0x513   :  { %9576 = vmatprep.mubr.bf16.mxu0 %v16871_v9 }
 0x514   :  { %v16988_v17 = vpop.f32.mrf.mxu1  ;;  %9620 = vmatmul.mubr.bf16.vlgmr.msra.gmra.mxu1 %v16873_v31  ;;  %v16991_v43 = vpop.f32.mrf.mxu0 }
 0x515   :  { %9629 = vmatprep.mubr.bf16.mxu1 %v16878_v32 }
 0x516   :  { %v16994_v16 = vpop.f32.mrf.mxu1  ;;  %v16996_v20 = vpop.f32.mrf.mxu0 }
 0x518   :  { %v16998_v7 = vpop.f32.mrf.mxu1  ;;  %v17000_v57 = vpop.f32.mrf.mxu0 }
 0x51a   :  { %v17002_v47 = vpop.f32.mrf.mxu1  ;;  %v17004_v0 = vpop.f32.mrf.mxu0  ;;  %9577 = vmatmul.mubr.bf16.gmra.mxu0 %v16895_v46 }
 0x51c   :  { %v17007_v9 = vpop.f32.mrf.mxu1  ;;  %9630 = vmatmul.mubr.bf16.gmra.mxu1 %v16901_v8  ;;  %v17010_v31 = vpop.f32.mrf.mxu0  ;;  %v17742_v8 = vsub.s32 1, %v17741_v26 }
 0x51e   :  { %v17012_v32 = vpop.f32.mrf.mxu1  ;;  %v9264_v61 = vpop.f32.mrf.mxu0  ;;  %v17024_v50 = vrot.slane %v17014_v19, %v17742_v8 }
 0x520   :  { %v9317_v40 = vpop.f32.mrf.mxu1  ;;  %v9266_v45 = vpop.f32.mrf.mxu0 }
 0x521   :  { %v9318_v30 = vadd.f32 %v9317_v40, %v9264_v61 }
 0x522   :  { %v9319_v1 = vpop.f32.mrf.mxu1 }
 0x523   :  { %v9664_v46 = vadd.f32 %v9318_v30, %v16825_v29  ;;  %v9320_v33 = vadd.f32 %v9319_v1, %v9266_v45 }
 0x525   :  { %v17027_v27 = vadd.f32 %v17018_v59, %v9664_v46  ;;  %v9665_v35 = vadd.f32 %v9320_v33, %v16827_v63 }
 0x527   :  { %v17031_v41 = vadd.f32 %v17024_v50, %v9665_v35 }
 0x552   :  { %v17033_v55 = vpop.f32.mrf.mxu0 }
 0x554   :  { %v17035_v44 = vpop.f32.mrf.mxu1  ;;  %v17037_v18 = vpop.f32.mrf.mxu0 }
 0x556   :  { %v17039_v29 = vpop.f32.mrf.mxu1  ;;  %v17041_v61 = vpop.f32.mrf.mxu0 }
 0x558   :  { %v17043_v40 = vpop.f32.mrf.mxu1  ;;  %v17045_v45 = vpop.f32.mrf.mxu0 }
 0x55a   :  { %v17047_v30 = vpop.f32.mrf.mxu1  ;;  %v17049_v63 = vpop.f32.mrf.mxu0 }
 0x55c   :  { %v17051_v1 = vpop.f32.mrf.mxu1  ;;  %v17053_v46 = vpop.f32.mrf.mxu0 }
 0x55d   :  { %17743 = vst [vmem:[#allocation33_spill] sm:$0xff] %v17053_v46  ;;  %v14555_v46 = vld [vmem:[#allocation11 + $0x1f8] sm:$0xff]  }
 0x55e   :  { %v17055_v33 = vpop.f32.mrf.mxu1  ;;  %v9370_v8 = vpop.f32.mrf.mxu0  ;;  %14161 = vmatprep.subr.bf16.mxu1 %v14555_v46  ;;  %v14570_v46 = vld [vmem:[#allocation11 + $0x158] sm:$0xff]  }
 0x55f   :  { %17744 = vst [vmem:[#allocation34_spill] sm:$0xff] %v17055_v33  ;;  %14162 = vmatpush3.bf16.msra.mxu1 %v14557_v53  ;;  %v14569_v53 = vld [vmem:[#allocation11 + $0x1a0] sm:$0xff]  }
 0x560   :  { %v9423_v35 = vpop.f32.mrf.mxu1  ;;  %v9372_v38 = vpop.f32.mrf.mxu0 }
 0x561   :  { %v9424_v42 = vadd.f32 %v9423_v35, %v9370_v8  ;;  %v14554_v35 = vld [vmem:[#allocation11 + $0x178] sm:$0xff]  }
 0x562   :  { %v9425_v37 = vpop.f32.mrf.mxu1  ;;  %14139 = vmatprep.subr.bf16.mxu0 %v14554_v35  ;;  %v14571_v35 = vld [vmem:[#allocation11 + $0x1d8] sm:$0xff]  }
 0x563   :  { %v9666_v14 = vadd.f32 %v9424_v42, %v16915_v6  ;;  %v9426_v23 = vadd.f32 %v9425_v37, %v9372_v38  ;;  %14140 = vmatpush3.bf16.msra.mxu0 %v14556_v39  ;;  %v14558_v6 = vld [vmem:[#allocation11 + $0x170] sm:$0xff]   ;;  %v14562_v38 = vld [vmem:[#allocation11 + $0x168] sm:$0xff]   ;;  %v14568_v39 = vld [vmem:[#allocation11 + $0x120] sm:$0xff]  }
 0x564   :  { %v14559_v37 = vld [vmem:[#allocation11 + $0x1f0] sm:$0xff]   ;;  %14141 = vmatprep.subr.bf16.mxu0 %v14558_v6  ;;  %v14572_v6 = vld [vmem:[#allocation11 + $0x118] sm:$0xff]  }
 0x565   :  { %v17068_v15 = vadd.f32 %v17059_v48, %v9666_v14  ;;  %v9667_v33 = vadd.f32 %v9426_v23, %v16918_v13  ;;  %v14561_v42 = vld [vmem:[#allocation11 + $0x1b0] sm:$0xff]   ;;  %v14563_v14 = vld [vmem:[#allocation11 + $0x1e8] sm:$0xff]   ;;  %14163 = vmatprep.subr.bf16.mxu1 %v14559_v37  ;;  %v14573_v37 = vld [vmem:[#allocation11 + $0x198] sm:$0xff]  }
 0x566   :  { %14164 = vmatpush3.bf16.msra.mxu1 %v14561_v42  ;;  %v14564_v13 = vld [vmem:[#allocation11 + $0x128] sm:$0xff]   ;;  %v14575_v42 = vld [vmem:[#allocation11 + $0x1d0] sm:$0xff]  }
 0x567   :  { %v17072_v8 = vadd.f32 %v17065_v58, %v9667_v33  ;;  %14142 = vmatpush3.bf16.msra.mxu0 %v14560_v54  ;;  %v14565_v23 = vld [vmem:[#allocation11 + $0x1a8] sm:$0xff]   ;;  %14165 = vmatprep.subr.bf16.mxu1 %v14563_v14  ;;  %v14566_v33 = vld [vmem:[#allocation11 + $0x160] sm:$0xff]   ;;  %v14574_v54 = vld [vmem:[#allocation11 + $0x150] sm:$0xff]  }
 0x568   :  { %14143 = vmatprep.subr.bf16.mxu0 %v14562_v38  ;;  %v14576_v38 = vld [vmem:[#allocation11 + $0x110] sm:$0xff]  }
 0x569   :  { %17747 = vst [vmem:[#allocation54_spill] sm:$0xff] %v17072_v8  ;;  %v14567_v8 = vld [vmem:[#allocation11 + $0x1e0] sm:$0xff]   ;;  %v14577_v14 = vld [vmem:[#allocation11 + $0x190] sm:$0xff]  }
 0x56a   :  { %14166 = vmatpush3.bf16.msra.mxu1 %v14565_v23  ;;  %v14579_v23 = vld [vmem:[#allocation11 + $0x1c8] sm:$0xff]  }
 0x56b   :  { %14144 = vmatpush3.bf16.msra.mxu0 %v14564_v13  ;;  %14167 = vmatprep.subr.bf16.mxu1 %v14567_v8  ;;  %v9304_v13 = vadd.f32 %v16988_v17, %v16984_v36  ;;  %v14578_v8 = vld [vmem:[#allocation11 + $0x148] sm:$0xff]   ;;  %v14582_v36 = vld [vmem:[#allocation11 + $0x140] sm:$0xff]  }
 0x56c   :  { %14145 = vmatprep.subr.bf16.mxu0 %v14566_v33  ;;  %v9306_v33 = vadd.f32 %v16994_v16, %v16991_v43  ;;  %v14583_v17 = vld [vmem:[#allocation11 + $0x1c0] sm:$0xff]  }
 0x56e   :  { %14168 = vmatpush3.bf16.msra.mxu1 %v14569_v53  ;;  %v14581_v53 = vld [vmem:[#allocation11 + $0x188] sm:$0xff]  }
 0x56f   :  { %14146 = vmatpush3.bf16.msra.mxu0 %v14568_v39  ;;  %14169 = vmatprep.subr.bf16.mxu1 %v14571_v35  ;;  %v14580_v39 = vld [vmem:[#allocation11 + $0x108] sm:$0xff]   ;;  %v9308_v35 = vadd.f32 %v16998_v7, %v16996_v20  ;;  %v14585_v20 = vld [vmem:[#allocation11 + $0x180] sm:$0xff]  }
 0x570   :  { %14147 = vmatprep.subr.bf16.mxu0 %v14570_v46  ;;  %v9640_v46 = vadd.f32 %v9304_v13, %v16784_v10  ;;  %v14584_v10 = vld [vmem:[#allocation11 + $0x100] sm:$0xff]  }
 0x571   :  { %v9648_v13 = vadd.f32 %v9308_v35, %v16804_v28  ;;  %v9314_v28 = vadd.f32 %v17007_v9, %v17004_v0 }
 0x572   :  { %14170 = vmatpush3.bf16.msra.mxu1 %v14573_v37  ;;  %v9641_v37 = vadd.f32 %v9306_v33, %v16797_v25  ;;  %v9714_v7 = vadd.f32 %v17018_v59, %v9640_v46 }
 0x573   :  { %14148 = vmatpush3.bf16.msra.mxu0 %v14572_v6  ;;  %14171 = vmatprep.subr.bf16.mxu1 %v14575_v42 }
 0x574   :  { %14149 = vmatprep.subr.bf16.mxu0 %v14574_v54  ;;  %v9310_v54 = vadd.f32 %v17002_v47, %v17000_v57  ;;  %v14586_v57 = vld [vmem:[#allocation11 + $0x78] sm:$0xff]  }
 0x575   :  { %v14587_v47 = vld [vmem:[#allocation11 + $0xf8] sm:$0xff]  }
 0x576   :  { %14172 = vmatpush3.bf16.msra.mxu1 %v14577_v14  ;;  %v9649_v46 = vadd.f32 %v9310_v54, %v16811_v4 }
 0x577   :  { %14150 = vmatpush3.bf16.msra.mxu0 %v14576_v38  ;;  %14173 = vmatprep.subr.bf16.mxu1 %v14579_v23  ;;  %v17748_v38 = vld [vmem:[#allocation51_spill] sm:$0xff] }
 0x578   :  { %14151 = vmatprep.subr.bf16.mxu0 %v14578_v8  ;;  %v17086_v14 = vrot.slane %v17014_v19, %v17748_v38 }
 0x57a   :  { %14174 = vmatpush3.bf16.msra.mxu1 %v14581_v53  ;;  %v9715_v53 = vadd.f32 %v17024_v50, %v9641_v37  ;;  %v9316_v37 = vadd.f32 %v17012_v32, %v17010_v31 }
 0x57b   :  { %14152 = vmatpush3.bf16.msra.mxu0 %v14580_v39  ;;  %14175 = vmatprep.subr.bf16.mxu1 %v14583_v17 }
 0x57c   :  { %14153 = vmatprep.subr.bf16.mxu0 %v14582_v36 }
 0x57e   :  { %14176 = vmatpush3.bf16.msra.mxu1 %v14585_v20  ;;  %v9656_v20 = vadd.f32 %v9314_v28, %v16816_v49 }
 0x57f   :  { %14154 = vmatpush3.bf16.msra.mxu0 %v14584_v10  ;;  %14205 = vmatprep.subr.bf16.mxu1 %v14587_v47  ;;  %v9723_v10 = vadd.f32 %v17024_v50, %v9649_v46 }
 0x580   :  { %14183 = vmatprep.subr.bf16.mxu0 %v14586_v57 }
 0x592   :  { %v9462_v6 = vpop.f32.mrf.mxu0 }
 0x594   :  { %v9515_v43 = vpop.f32.mrf.mxu1  ;;  %v9464_v16 = vpop.f32.mrf.mxu0 }
 0x595   :  { %v9516_v42 = vadd.f32 %v9515_v43, %v9462_v6  ;;  %v17749_v6 = vsub.s32 5, %v17741_v26 }
 0x596   :  { %v9517_v8 = vpop.f32.mrf.mxu1  ;;  %v9466_v25 = vpop.f32.mrf.mxu0 }
 0x597   :  { %v9644_v23 = vadd.f32 %v9516_v42, %v16924_v34  ;;  %v9518_v33 = vadd.f32 %v9517_v8, %v9464_v16  ;;  %v17094_v39 = vrot.slane %v17014_v19, %v17749_v6  ;;  %v9746_v16 = vmax.f32 %v9714_v7, 0.0 }
 0x598   :  { %v9519_v35 = vpop.f32.mrf.mxu1  ;;  %v9468_v36 = vpop.f32.mrf.mxu0  ;;  %v9722_v42 = vadd.f32 %v17018_v59, %v9648_v13 }
 0x599   :  { %v9718_v17 = vadd.f32 %v17086_v14, %v9644_v23  ;;  %v9645_v43 = vadd.f32 %v9518_v33, %v16928_v24  ;;  %v9520_v34 = vadd.f32 %v9519_v35, %v9466_v25  ;;  %v9747_v24 = vmax.f32 %v9715_v53, 0.0 }
 0x59a   :  { %v9521_v8 = vpop.f32.mrf.mxu1  ;;  %v9472_v4 = vpop.f32.mrf.mxu0  ;;  %v9754_v47 = vmax.f32 %v9722_v42, 0.0  ;;  %v9657_v33 = vadd.f32 %v9316_v37, %v16822_v11 }
 0x59b   :  { %v9750_v0 = vmax.f32 %v9718_v17, 0.0  ;;  %v9719_v9 = vadd.f32 %v17094_v39, %v9645_v43  ;;  %v9652_v54 = vadd.f32 %v9520_v34, %v16931_v52  ;;  %v9522_v23 = vadd.f32 %v9521_v8, %v9468_v36 }
 0x59c   :  { %v9525_v7 = vpop.f32.mrf.mxu1  ;;  %v9474_v13 = vpop.f32.mrf.mxu0  ;;  %v9755_v36 = vmax.f32 %v9723_v10, 0.0  ;;  %v9730_v17 = vadd.f32 %v17018_v59, %v9656_v20  ;;  %v9731_v8 = vadd.f32 %v17024_v50, %v9657_v33  ;;  %v9770_v33 = vmax.f32 %v17027_v27, 0.0 }
 0x59d   :  { %v17109_v25 = vmax.f32 %v9746_v16, %v9750_v0  ;;  %v9751_v31 = vmax.f32 %v9719_v9, 0.0  ;;  %v9726_v32 = vadd.f32 %v17086_v14, %v9652_v54  ;;  %v9653_v57 = vadd.f32 %v9522_v23, %v16935_v5 }
 0x59e   :  { %v9526_v6 = vadd.f32 %v9525_v7, %v9472_v4  ;;  %v9527_v52 = vpop.f32.mrf.mxu1  ;;  %v9476_v35 = vpop.f32.mrf.mxu0  ;;  %v9762_v23 = vmax.f32 %v9730_v17, 0.0  ;;  %v9410_v27 = vadd.f32 %v17035_v44, %v17033_v55  ;;  %v17750_v44 = vld [vmem:[#allocation52_spill] sm:$0xff] }
 0x59f   :  { %v17114_v53 = vmax.f32 %v9747_v24, %v9751_v31  ;;  %v9758_v46 = vmax.f32 %v9726_v32, 0.0  ;;  %v9727_v49 = vadd.f32 %v17094_v39, %v9653_v57  ;;  %v9528_v28 = vadd.f32 %v9527_v52, %v9474_v13 }
 0x5a0   :  { %v9660_v43 = vadd.f32 %v9526_v6, %v16940_v12  ;;  %v9529_v34 = vpop.f32.mrf.mxu1  ;;  %v9478_v16 = vpop.f32.mrf.mxu0  ;;  %v9771_v52 = vmax.f32 %v17031_v41, 0.0  ;;  %v9412_v41 = vadd.f32 %v17039_v29, %v17037_v18  ;;  %v17169_v18 = vrot.slane %v17014_v19, %v17750_v44 }
 0x5a1   :  { %v9810_v5 = vcombine.low %v17109_v25, %v17114_v53  ;;  %v9811_v11 = vcombine.high %v17109_v25, %v17114_v53  ;;  %v17123_v42 = vmax.f32 %v9754_v47, %v9758_v46  ;;  %v9759_v37 = vmax.f32 %v9727_v49, 0.0 }
 0x5a2   :  { %v9734_v4 = vadd.f32 %v17086_v14, %v9660_v43  ;;  %v9661_v0 = vadd.f32 %v9528_v28, %v16944_v56  ;;  %v9530_v59 = vadd.f32 %v9529_v34, %v9476_v35  ;;  %v9531_v9 = vpop.f32.mrf.mxu1  ;;  %v9763_v56 = vmax.f32 %v9731_v8, 0.0 }
 0x5a3   :  { %v17128_v12 = vmax.f32 %v9755_v36, %v9759_v37  ;;  %v9532_v54 = vadd.f32 %v9531_v9, %v9478_v16  ;;  %v9414_v36 = vadd.f32 %v17043_v40, %v17041_v61  ;;  %v9643_v43 = vadd.f32 %v9412_v41, %v16891_v3  ;;  %v17753_v9 = vld [vmem:[#allocation33_spill] sm:$0xff]  ;;  %v17757_v41 = vld [vmem:[#allocation47_spill] sm:$0xff] }
 0x5a4   :  { %v9766_v24 = vmax.f32 %v9734_v4, 0.0  ;;  %v9735_v10 = vadd.f32 %v17094_v39, %v9661_v0  ;;  %v9668_v20 = vadd.f32 %v9530_v59, %v16947_v62  ;;  %v9416_v34 = vadd.f32 %v17047_v30, %v17045_v45  ;;  %v17752_v0 = vld [vmem:[#allocation45_spill] sm:$0xff] }
 0x5a5   :  { %v9846_v7 = vcombine.low %v17123_v42, %v17128_v12  ;;  %v9847_v50 = vcombine.high %v17123_v42, %v17128_v12  ;;  %v9669_v13 = vadd.f32 %v9532_v54, %v16950_v2  ;;  %v9420_v16 = vadd.f32 %v17051_v1, %v17049_v63  ;;  %v17754_v54 = vld [vmem:[#allocation34_spill] sm:$0xff] }
 0x5a6   :  { %v17137_v31 = vmax.f32 %v9762_v23, %v9766_v24  ;;  %v9767_v32 = vmax.f32 %v9735_v10, 0.0  ;;  %v9742_v57 = vadd.f32 %v17086_v14, %v9668_v20  ;;  %v9650_v29 = vadd.f32 %v9414_v36, %v16897_v51  ;;  %v17763_v12 = vld [vmem:[#allocation54_spill] sm:$0xff] }
 0x5a7   :  { %v9743_v47 = vadd.f32 %v17094_v39, %v9669_v13  ;;  %v9642_v39 = vadd.f32 %v9410_v27, %v16883_v21  ;;  %v17751_v45 = vsub.s32 7, %v17741_v26  ;;  %v9717_v63 = vadd.f32 %v17065_v58, %v9643_v43 }
 0x5a8   :  { %v17142_v6 = vmax.f32 %v9763_v56, %v9767_v32  ;;  %v9774_v62 = vmax.f32 %v9742_v57, 0.0  ;;  %v9651_v1 = vadd.f32 %v9416_v34, %v16903_v22  ;;  %v9658_v59 = vadd.f32 %v9420_v16, %v17752_v0  ;;  %v17759_v0 = vld [vmem:[#allocation31_spill] sm:$0xff] }
 0x5a9   :  { %v9775_v35 = vmax.f32 %v9743_v47, 0.0  ;;  %v9716_v21 = vadd.f32 %v17059_v48, %v9642_v39  ;;  %v17177_v30 = vrot.slane %v17014_v19, %v17751_v45  ;;  %v9422_v23 = vadd.f32 %v17754_v54, %v17753_v9  ;;  %v17756_v47 = vld [vmem:[#allocation29_spill] sm:$0xff] }
 0x5aa   :  { %v9882_v46 = vcombine.low %v17137_v31, %v17142_v6  ;;  %v9883_v2 = vcombine.high %v17137_v31, %v17142_v6  ;;  %v17149_v49 = vmax.f32 %v9770_v33, %v9774_v62  ;;  %v9724_v19 = vadd.f32 %v17059_v48, %v9650_v29 }
 0x5ab   :  { %v17151_v28 = vmax.f32 %v9771_v52, %v9775_v35  ;;  %v9748_v26 = vmax.f32 %v9716_v21, 0.0  ;;  %v9749_v52 = vmax.f32 %v9717_v63, 0.0  ;;  %v9725_v35 = vadd.f32 %v17065_v58, %v9651_v1 }
 0x5ac   :  { %v9732_v27 = vadd.f32 %v17059_v48, %v9658_v59  ;;  %v9659_v39 = vadd.f32 %v9422_v23, %v17757_v41  ;;  %v9772_v42 = vmax.f32 %v17068_v15, 0.0 }
 0x5ad   :  { %v9918_v14 = vcombine.low %v17149_v49, %v17151_v28  ;;  %v9757_v48 = vmax.f32 %v9725_v35, 0.0 }
 0x5ae   :  { %v9764_v63 = vmax.f32 %v9732_v27, 0.0  ;;  %v9733_v1 = vadd.f32 %v17065_v58, %v9659_v39 }
 0x5d2   :  { %v9568_v17 = vpop.f32.mrf.mxu0 }
 0x5d4   :  { %v9621_v37 = vpop.f32.mrf.mxu1  ;;  %v9570_v8 = vpop.f32.mrf.mxu0 }
 0x5d5   :  { %v9622_v55 = vadd.f32 %v9621_v37, %v9568_v17  ;;  %v17758_v37 = vld [vmem:[#allocation30_spill] sm:$0xff] }
 0x5d6   :  { %v9623_v61 = vpop.f32.mrf.mxu1  ;;  %v9572_v40 = vpop.f32.mrf.mxu0 }
 0x5d7   :  { %v9646_v3 = vadd.f32 %v9622_v55, %v16956_v60  ;;  %v9624_v4 = vadd.f32 %v9623_v61, %v9570_v8  ;;  %v17755_v60 = vld [vmem:[#allocation25_spill] sm:$0xff]  ;;  %v9756_v55 = vmax.f32 %v9724_v19, 0.0 }
 0x5d8   :  { %v9625_v51 = vpop.f32.mrf.mxu1  ;;  %v9574_v24 = vpop.f32.mrf.mxu0 }
 0x5d9   :  { %v9720_v10 = vadd.f32 %v17169_v18, %v9646_v3  ;;  %v9647_v20 = vadd.f32 %v9624_v4, %v17755_v60  ;;  %v9626_v13 = vadd.f32 %v9625_v51, %v9572_v40 }
 0x5da   :  { %v9627_v56 = vpop.f32.mrf.mxu1  ;;  %v9578_v32 = vpop.f32.mrf.mxu0 }
 0x5db   :  { %v9752_v57 = vmax.f32 %v9720_v10, 0.0  ;;  %v9721_v22 = vadd.f32 %v17177_v30, %v9647_v20  ;;  %v9654_v33 = vadd.f32 %v9626_v13, %v17756_v47  ;;  %v9628_v62 = vadd.f32 %v9627_v56, %v9574_v24  ;;  %v17760_v10 = vld [vmem:[#allocation53_spill] sm:$0xff]  ;;  %v17761_v13 = vld [vmem:[#allocation32_spill] sm:$0xff] }
 0x5dc   :  { %v9631_v36 = vpop.f32.mrf.mxu1  ;;  %v9580_v17 = vpop.f32.mrf.mxu0  ;;  %v9820_v60 = vrot.slane %v9810_v5, %v17760_v10  ;;  %v9827_v58 = vrot.slane %v9811_v11, %v17760_v10  ;;  %v17762_v5 = vld [vmem:[#allocation48_spill] sm:$0xff] }
 0x5dd   :  { %v9780_v43 = vmax.f32 %v9748_v26, %v9752_v57  ;;  %v9753_v34 = vmax.f32 %v9721_v22, 0.0  ;;  %v9728_v16 = vadd.f32 %v17169_v18, %v9654_v33  ;;  %v9655_v8 = vadd.f32 %v9628_v62, %v17758_v37 }
 0x5de   :  { %v9632_v21 = vadd.f32 %v9631_v36, %v9578_v32  ;;  %v9633_v29 = vpop.f32.mrf.mxu1  ;;  %v9582_v45 = vpop.f32.mrf.mxu0  ;;  %v9765_v22 = vmax.f32 %v9733_v1, 0.0 }
 0x5df   :  { %v9781_v61 = vmax.f32 %v9749_v52, %v9753_v34  ;;  %v9760_v40 = vmax.f32 %v9728_v16, 0.0  ;;  %v9729_v3 = vadd.f32 %v17177_v30, %v9655_v8  ;;  %v9634_v4 = vadd.f32 %v9633_v29, %v9580_v17 }
 0x5e0   :  { %v9662_v59 = vadd.f32 %v9632_v21, %v17759_v0  ;;  %v9635_v9 = vpop.f32.mrf.mxu1  ;;  %v9584_v53 = vpop.f32.mrf.mxu0  ;;  %v9863_v34 = vrot.slane %v9847_v50, %v17760_v10  ;;  %v9773_v50 = vmax.f32 %v17763_v12, 0.0 }
 0x5e1   :  { %v9812_v54 = vcombine.low %v9780_v43, %v9781_v61  ;;  %v9813_v23 = vcombine.high %v9780_v43, %v9781_v61  ;;  %v9784_v51 = vmax.f32 %v9756_v55, %v9760_v40  ;;  %v9761_v24 = vmax.f32 %v9729_v3, 0.0 }
 0x5e2   :  { %v9736_v20 = vadd.f32 %v17169_v18, %v9662_v59  ;;  %v9663_v26 = vadd.f32 %v9634_v4, %v17761_v13  ;;  %v9636_v19 = vadd.f32 %v9635_v9, %v9582_v45  ;;  %v9637_v11 = vpop.f32.mrf.mxu1  ;;  %v9856_v43 = vrot.slane %v9846_v7, %v17760_v10 }
 0x5e3   :  { %v9834_v56 = vrot.slane %v9812_v54, %v17760_v10  ;;  %v9841_v32 = vrot.slane %v9813_v23, %v17760_v10  ;;  %v9785_v57 = vmax.f32 %v9757_v48, %v9761_v24  ;;  %v9638_v61 = vadd.f32 %v9637_v11, %v9584_v53  ;;  %v17764_v54 = vld [vmem:[#allocation50_spill] sm:$0xff] }
 0x5e4   :  { %v9768_v47 = vmax.f32 %v9736_v20, 0.0  ;;  %v9737_v33 = vadd.f32 %v17177_v30, %v9663_v26  ;;  %v9670_v62 = vadd.f32 %v9636_v19, %v17762_v5  ;;  %v17765_v24 = vld [vmem:[#allocation46_spill] sm:$0xff] }
 0x5e5   :  { %v9842_v52 = vcombine.low %v9820_v60, %v9834_v56  ;;  %v9843_v35 = vcombine.high %v9820_v60, %v9834_v56  ;;  %v9844_v27 = vcombine.low %v9827_v58, %v9841_v32  ;;  %v9845_v41 = vcombine.high %v9827_v58, %v9841_v32  ;;  %v17766_v58 = vld [vmem:[#allocation49_spill] sm:$0xff] }
 0x5e6   :  { %v9848_v39 = vcombine.low %v9784_v51, %v9785_v57  ;;  %v9849_v36 = vcombine.high %v9784_v51, %v9785_v57  ;;  %v9788_v17 = vmax.f32 %v9764_v63, %v9768_v47  ;;  %v9769_v25 = vmax.f32 %v9737_v33, 0.0 }
 0x5e7   :  { %v13901_v16 = vrot.slane %v9843_v35, 9  ;;  %v9744_v21 = vadd.f32 %v17169_v18, %v9670_v62  ;;  %v9892_v18 = vrot.slane %v9882_v46, %v17760_v10  ;;  %v9899_v63 = vrot.slane %v9883_v2, %v17760_v10 }
 0x5e8   :  { %v9870_v37 = vrot.slane %v9848_v39, %v17760_v10  ;;  %v9877_v8 = vrot.slane %v9849_v36, %v17760_v10  ;;  %v9789_v55 = vmax.f32 %v9765_v22, %v9769_v25  ;;  %v13900_v1 = vrot.slane %v9842_v52, 9 }
 0x5e9   :  { %v9993_v29 = vmax.f32 %v9843_v35, %v13901_v16  ;;  %v13902_v0 = vrot.slane %v9844_v27, 9  ;;  %v9776_v9 = vmax.f32 %v9744_v21, 0.0  ;;  %v9671_v23 = vadd.f32 %v9638_v61, %v17764_v54 }
 0x5ea   :  { %v17222_v40 = vcombine.low %v9856_v43, %v9870_v37  ;;  %v17224_v3 = vcombine.high %v9856_v43, %v9870_v37  ;;  %v17226_v7 = vcombine.low %v9863_v34, %v9877_v8  ;;  %v9881_v4 = vcombine.high %v9863_v34, %v9877_v8 }
 0x5eb   :  { %v9884_v45 = vcombine.low %v9788_v17, %v9789_v55  ;;  %v9885_v48 = vcombine.high %v9788_v17, %v9789_v55  ;;  %v9926_v51 = vrot.slane %v9918_v14, %v17760_v10  ;;  %v13903_v46 = vrot.slane %v9845_v41, 9 }
 0x5ec   :  { %v10125_v60 = vrot.slane %v9993_v29, %v17765_v24  ;;  %v13907_v20 = vrot.slane %v9881_v4, 9  ;;  %v9792_v26 = vmax.f32 %v9772_v42, %v9776_v9  ;;  %v9745_v19 = vadd.f32 %v17177_v30, %v9671_v23 }
 0x5ed   :  { %v9906_v59 = vrot.slane %v9884_v45, %v17760_v10  ;;  %v9913_v15 = vrot.slane %v9885_v48, %v17760_v10  ;;  %v10129_v56 = vrot.slane %v9993_v29, %v17766_v58  ;;  %v10137_v32 = vrot.slane %v9993_v29, %v17750_v44 }
 0x5ee   :  { %v17253_v57 = vmax.f32 %v9842_v52, %v13900_v1  ;;  %v17255_v49 = vmax.f32 %v9844_v27, %v13902_v0  ;;  %v10133_v28 = vrot.slane %v9993_v29, %v17748_v38  ;;  %v17258_v22 = vmax.f32 %v9881_v4, %v13907_v20 }
 0x5ef   :  { %v9914_v31 = vcombine.low %v9892_v18, %v9906_v59  ;;  %v9915_v6 = vcombine.high %v9892_v18, %v9906_v59  ;;  %v17246_v2 = vcombine.low %v9899_v63, %v9913_v15  ;;  %v17248_v13 = vcombine.high %v9899_v63, %v9913_v15 }
 0x5f0   :  { %v9777_v47 = vmax.f32 %v9745_v19, 0.0  ;;  %v10163_v33 = vpack.c.bf16 %v10129_v56, %v10129_v56  ;;  %v10165_v5 = vpack.c.bf16 %v10137_v32, %v10137_v32  ;;  %v17260_v62 = vmax.f32 %v9845_v41, %v13903_v46 }
 0x5f1   :  { %v13908_v14 = vrot.slane %v9914_v31, 9  ;;  %v13904_v30 = vrot.slane %v17222_v40, 9  ;;  %v13909_v35 = vrot.slane %v9915_v6, 9  ;;  %v10162_v25 = vpack.c.bf16 %v10125_v60, %v10125_v60 }
 0x5f2   :  { %v9793_v36 = vmax.f32 %v9773_v50, %v9777_v47  ;;  %v10244_v17 = vunpack.c.l.b16 %v10163_v33  ;;  %v10246_v52 = vunpack.c.l.b16 %v10165_v5  ;;  %v10164_v16 = vpack.c.bf16 %v10133_v28, %v10133_v28  ;;  %v14588_v47 = vld [vmem:[#allocation11 + $0x38] sm:$0xff]  }
 0x5f3   :  { %v10000_v39 = vmax.f32 %v9914_v31, %v13908_v14  ;;  %v10015_v41 = vrot.slane %v17253_v57, %v17766_v58  ;;  %v10031_v37 = vrot.slane %v17258_v22, %v17766_v58  ;;  %v10243_v4 = vunpack.c.l.b16 %v10162_v25  ;;  %v14589_v33 = vld [vmem:[#allocation11 + $0xb8] sm:$0xff]  }
 0x5f4   :  { %v9919_v34 = vcombine.low %v9792_v26, %v9793_v36  ;;  %v10245_v0 = vunpack.c.l.b16 %v10164_v16  ;;  %v13905_v46 = vrot.slane %v17224_v3, 9  ;;  %v10023_v20 = vrot.slane %v17253_v57, %v17750_v44  ;;  %v14592_v16 = vld [vmem:[#allocation11 + $0x30] sm:$0xff]  }
 0x5f5   :  { %v10141_v27 = vrot.slane %v10000_v39, %v17765_v24  ;;  %v10149_v53 = vrot.slane %v10000_v39, %v17748_v38  ;;  %v10145_v11 = vrot.slane %v10000_v39, %v17766_v58  ;;  %v10153_v43 = vrot.slane %v10000_v39, %v17750_v44 }
 0x5f6   :  { %v9933_v61 = vrot.slane %v9919_v34, %v17760_v10  ;;  %v10049_v42 = vpack.c.bf16 %v10015_v41, %v10015_v41  ;;  %v10053_v12 = vpack.c.bf16 %v10031_v37, %v10031_v37  ;;  %v17284_v56 = vmax.f32 %v17222_v40, %v13904_v30  ;;  %v14593_v41 = vld [vmem:[#allocation11 + $0xb0] sm:$0xff]  }
 0x5f7   :  { %v10167_v8 = vpack.c.bf16 %v10145_v11, %v10145_v11  ;;  %v10169_v55 = vpack.c.bf16 %v10153_v43, %v10153_v43  ;;  %v10166_v21 = vpack.c.bf16 %v10141_v27, %v10141_v27  ;;  %v10168_v29 = vpack.c.bf16 %v10149_v53, %v10149_v53 }
 0x5f8   :  { %v17272_v63 = vcombine.low %v9926_v51, %v9933_v61  ;;  %v17274_v1 = vcombine.high %v9926_v51, %v9933_v61  ;;  %v10552_v59 = vunpack.c.l.b16 %v10053_v12  ;;  %v10548_v10 = vunpack.c.l.b16 %v10049_v42  ;;  %v14595_v61 = vld [vmem:[#allocation11 + $0xe8] sm:$0xff]  }
 0x5f9   :  { %v10248_v50 = vunpack.c.l.b16 %v10167_v8  ;;  %v10250_v45 = vunpack.c.l.b16 %v10169_v55  ;;  %v10247_v48 = vunpack.c.l.b16 %v10166_v21  ;;  %v10249_v18 = vunpack.c.l.b16 %v10168_v29  ;;  %v14594_v29 = vld [vmem:[#allocation11 + $0x68] sm:$0xff]  }
 0x5fa   :  { %v10557_v60 = vrot.slane %v10552_v59, 7  ;;  %v17286_v32 = vmax.f32 %v9915_v6, %v13909_v35  ;;  %v13910_v25 = vrot.slane %v17246_v2, 9  ;;  %v10051_v30 = vpack.c.bf16 %v10023_v20, %v10023_v20  ;;  %v14591_v6 = vld [vmem:[#allocation11 + $0xf0] sm:$0xff]   ;;  %v14598_v20 = vld [vmem:[#allocation11 + $0x60] sm:$0xff]  }
 0x5fb   :  { %v10253_v15 = vrot.slane %v10248_v50, 7  ;;  %v10257_v9 = vrot.slane %v10250_v45, 7  ;;  %v10251_v54 = vrot.slane %v10247_v48, 7  ;;  %v10255_v23 = vrot.slane %v10249_v18, 7 }
 0x5fc   :  { %v10558_v36 = vsel %vm2631_vm9, %v10557_v60, %v10548_v10  ;;  %v10011_v35 = vrot.slane %v17253_v57, %v17765_v24  ;;  %v13906_v27 = vrot.slane %v17226_v7, 9  ;;  %v10027_v11 = vrot.slane %v17258_v22, %v17765_v24  ;;  %v14597_v60 = vld [vmem:[#allocation11 + $0xa8] sm:$0xff]  }
 0x5fd   :  { %v10254_v31 = vsel %vm2631_vm9, %v10253_v15, %v10244_v17  ;;  %v10258_v26 = vsel %vm2631_vm9, %v10257_v9, %v10246_v52  ;;  %v10252_v51 = vsel %vm2631_vm9, %v10251_v54, %v10243_v4  ;;  %v10256_v19 = vsel %vm2631_vm9, %v10255_v23, %v10245_v0  ;;  %v14590_v52 = vld [vmem:[#allocation11 + $0x70] sm:$0xff]   ;;  %v14596_v15 = vld [vmem:[#allocation11 + $0x28] sm:$0xff]  }
 0x5fe   :  { %v10260_v28 = vpack.c.b16 %v10254_v31, %v10254_v31  ;;  %v10262_v14 = vpack.c.b16 %v10258_v26, %v10258_v26  ;;  %v10259_v5 = vpack.c.b16 %v10252_v51, %v10252_v51  ;;  %v10261_v39 = vpack.c.b16 %v10256_v19, %v10256_v19 }
 0x5ff   :  { %v10039_v17 = vrot.slane %v17258_v22, %v17750_v44  ;;  %v10564_v40 = vpack.c.b16 %v10558_v36, %v10558_v36  ;;  %v10019_v43 = vrot.slane %v17253_v57, %v17748_v38  ;;  %v13911_v34 = vrot.slane %v17248_v13, 9 }
 0x600   :  { %10491 = vmatprep.mubr.bf16.mxu0 %v10260_v28  ;;  %10531 = vmatprep.mubr.bf16.mxu1 %v10262_v14  ;;  %v10048_v37 = vpack.c.bf16 %v10011_v35, %v10011_v35  ;;  %v10035_v8 = vrot.slane %v17258_v22, %v17748_v38  ;;  %v10852_v55 = vrot.slane %v17255_v49, %v17766_v58  ;;  %v10550_v50 = vunpack.c.l.b16 %v10051_v30  ;;  %v14599_v28 = vld [vmem:[#allocation11 + $0xe0] sm:$0xff]  }
 0x601   :  { %10492 = vmatmul.mubr.bf16.vlgmr.msra.gmra.mxu0 %v10259_v5  ;;  %10532 = vmatmul.mubr.bf16.vlgmr.msra.gmra.mxu1 %v10261_v39  ;;  %v10055_v53 = vpack.c.bf16 %v10039_v17, %v10039_v17  ;;  %v10052_v4 = vpack.c.bf16 %v10027_v11, %v10027_v11  ;;  %v10050_v57 = vpack.c.bf16 %v10019_v43, %v10019_v43  ;;  %v13912_v35 = vrot.slane %v17272_v63, 9  ;;  %v14602_v11 = vld [vmem:[#allocation11 + $0x58] sm:$0xff]  }
 0x602   :  { %14184 = vmatpush3.bf16.msra.mxu0 %v14588_v47  ;;  %14206 = vmatpush3.bf16.msra.mxu1 %v14589_v33  ;;  %v10868_v42 = vrot.slane %v17286_v32, %v17766_v58  ;;  %v17307_v12 = vmax.f32 %v17246_v2, %v13910_v25  ;;  %v10054_v45 = vpack.c.bf16 %v10035_v8, %v10035_v8  ;;  %v10547_v9 = vunpack.c.l.b16 %v10048_v37  ;;  %v14600_v25 = vld [vmem:[#allocation11 + $0x20] sm:$0xff]  }
 0x603   :  { %10795 = vmatprep.mubr.bf16.mxu0 %v10564_v40  ;;  %v10554_v21 = vunpack.c.l.b16 %v10055_v53  ;;  %14185 = vmatprep.subr.bf16.mxu0 %v14590_v52  ;;  %v10860_v22 = vrot.slane %v17255_v49, %v17750_v44  ;;  %v10551_v18 = vunpack.c.l.b16 %v10052_v4  ;;  %v10886_v0 = vpack.c.bf16 %v10852_v55, %v10852_v55  ;;  %v14601_v53 = vld [vmem:[#allocation11 + $0xa0] sm:$0xff]  }
 0x604   :  { %14207 = vmatprep.subr.bf16.mxu1 %v14591_v6  ;;  %v10890_v59 = vpack.c.bf16 %v10868_v42, %v10868_v42  ;;  %v10549_v54 = vunpack.c.l.b16 %v10050_v57  ;;  %v10553_v23 = vunpack.c.l.b16 %v10054_v45  ;;  %v10876_v2 = vrot.slane %v17286_v32, %v17750_v44  ;;  %v14604_v57 = vld [vmem:[#allocation11 + $0x18] sm:$0xff]  }
 0x605   :  { %v10561_v48 = vrot.slane %v10554_v21, 7  ;;  %v10555_v31 = vrot.slane %v10551_v18, 7  ;;  %v10848_v51 = vrot.slane %v17255_v49, %v17765_v24  ;;  %v10888_v47 = vpack.c.bf16 %v10860_v22, %v10860_v22  ;;  %v14605_v45 = vld [vmem:[#allocation11 + $0x98] sm:$0xff]   ;;  %v14606_v22 = vld [vmem:[#allocation11 + $0x50] sm:$0xff]  }
 0x606   :  { %14186 = vmatpush3.bf16.msra.mxu0 %v14592_v16  ;;  %14208 = vmatpush3.bf16.msra.mxu1 %v14593_v41  ;;  %v10971_v26 = vunpack.c.l.b16 %v10890_v59  ;;  %v10559_v14 = vrot.slane %v10553_v23, 7  ;;  %v10892_v33 = vpack.c.bf16 %v10876_v2, %v10876_v2  ;;  %v10967_v39 = vunpack.c.l.b16 %v10886_v0  ;;  %v14603_v16 = vld [vmem:[#allocation11 + $0xd8] sm:$0xff]  }
 0x607   :  { %v10562_v10 = vsel %vm2631_vm9, %v10561_v48, %v10550_v50  ;;  %14187 = vmatprep.subr.bf16.mxu0 %v14594_v29  ;;  %14209 = vmatprep.subr.bf16.mxu1 %v14595_v61  ;;  %v17317_v5 = vsel %vm2631_vm9, %v10555_v31, %v10547_v9  ;;  %v10864_v17 = vrot.slane %v17286_v32, %v17765_v24  ;;  %v10969_v41 = vunpack.c.l.b16 %v10888_v47  ;;  %v14609_v47 = vld [vmem:[#allocation11 + $0x90] sm:$0xff]  }
 0x608   :  { %v10566_v19 = vpack.c.b16 %v10562_v10, %v10562_v10  ;;  %v10976_v36 = vrot.slane %v10971_v26, 7  ;;  %v17322_v52 = vmax.f32 %v17248_v13, %v13911_v34  ;;  %v17325_v40 = vsel %vm2631_vm9, %v10559_v14, %v10549_v54  ;;  %v14608_v26 = vld [vmem:[#allocation11 + $0x10] sm:$0xff]  }
 0x609   :  { %v10973_v30 = vunpack.c.l.b16 %v10892_v33  ;;  %v10856_v6 = vrot.slane %v17255_v49, %v17748_v38  ;;  %v10885_v13 = vpack.c.bf16 %v10848_v51, %v10848_v51  ;;  %v10889_v34 = vpack.c.bf16 %v10864_v17, %v10864_v17  ;;  %v14610_v33 = vld [vmem:[#allocation11 + $0x48] sm:$0xff]  }
 0x60a   :  { %10835 = vmatprep.mubr.bf16.mxu1 %v10566_v19  ;;  %14188 = vmatpush3.bf16.msra.mxu0 %v14596_v15  ;;  %v17331_v43 = vsel %vm2631_vm9, %v10976_v36, %v10967_v39  ;;  %v10872_v8 = vrot.slane %v17286_v32, %v17748_v38  ;;  %v11272_v21 = vrot.slane %v17260_v62, %v17766_v58  ;;  %v13913_v4 = vrot.slane %v17274_v1, 9  ;;  %v14607_v15 = vld [vmem:[#allocation11 + $0xd0] sm:$0xff]  }
 0x60b   :  { %14210 = vmatpush3.bf16.msra.mxu1 %v14597_v60  ;;  %14189 = vmatprep.subr.bf16.mxu0 %v14598_v20  ;;  %v10980_v37 = vrot.slane %v10973_v30, 7  ;;  %v10887_v55 = vpack.c.bf16 %v10856_v6, %v10856_v6  ;;  %v10970_v49 = vunpack.c.l.b16 %v10889_v34  ;;  %v11288_v29 = vrot.slane %v17307_v12, %v17766_v58  ;;  %v14611_v30 = vld [vmem:[#allocation11 + $0xc8] sm:$0xff]  }
 0x60c   :  { %14211 = vmatprep.subr.bf16.mxu1 %v14599_v28  ;;  %v11280_v61 = vrot.slane %v17260_v62, %v17750_v44  ;;  %v10891_v50 = vpack.c.bf16 %v10872_v8, %v10872_v8  ;;  %v11296_v32 = vrot.slane %v17307_v12, %v17750_v44  ;;  %v10966_v48 = vunpack.c.l.b16 %v10885_v13 }
 0x60d   :  { %v17343_v42 = vsel %vm2631_vm9, %v10980_v37, %v10969_v41  ;;  %v10974_v18 = vrot.slane %v10970_v49, 7  ;;  %v11306_v0 = vpack.c.bf16 %v11272_v21, %v11272_v21  ;;  %v11310_v59 = vpack.c.bf16 %v11288_v29, %v11288_v29  ;;  %v14612_v37 = vld [vmem:[#allocation11 + $0x8] sm:$0xff]  }
 0x60e   :  { %14190 = vmatpush3.bf16.msra.mxu0 %v14600_v25  ;;  %v10972_v9 = vunpack.c.l.b16 %v10891_v50  ;;  %v11308_v54 = vpack.c.bf16 %v11280_v61, %v11280_v61  ;;  %v11312_v23 = vpack.c.bf16 %v11296_v32, %v11296_v32  ;;  %v11268_v2 = vrot.slane %v17260_v62, %v17765_v24 }
 0x60f   :  { %14212 = vmatpush3.bf16.msra.mxu1 %v14601_v53  ;;  %14191 = vmatprep.subr.bf16.mxu0 %v14602_v11  ;;  %v17350_v10 = vsel %vm2631_vm9, %v10974_v18, %v10966_v48  ;;  %v10968_v60 = vunpack.c.l.b16 %v10887_v55  ;;  %v11391_v20 = vunpack.c.l.b16 %v11310_v59  ;;  %v11284_v31 = vrot.slane %v17307_v12, %v17765_v24 }
 0x610   :  { %14213 = vmatprep.subr.bf16.mxu1 %v14603_v16  ;;  %v10978_v51 = vrot.slane %v10972_v9, 7  ;;  %v11387_v19 = vunpack.c.l.b16 %v11306_v0  ;;  %v11389_v28 = vunpack.c.l.b16 %v11308_v54  ;;  %v11393_v14 = vunpack.c.l.b16 %v11312_v23 }
 0x611   :  { %v11396_v39 = vrot.slane %v11391_v20, 7  ;;  %v11305_v36 = vpack.c.bf16 %v11268_v2, %v11268_v2  ;;  %v11309_v17 = vpack.c.bf16 %v11284_v31, %v11284_v31  ;;  %v11276_v25 = vrot.slane %v17260_v62, %v17748_v38 }
 0x612   :  { %14192 = vmatpush3.bf16.msra.mxu0 %v14604_v57  ;;  %v17357_v6 = vsel %vm2631_vm9, %v10978_v51, %v10968_v60  ;;  %v11400_v53 = vrot.slane %v11393_v14, 7  ;;  %v11292_v11 = vrot.slane %v17307_v12, %v17748_v38  ;;  %v11692_v13 = vrot.slane %v17284_v56, %v17766_v58  ;;  %v14619_v60 = vld [vmem:[#allocation11 + $0x2f8] sm:$0xff]  }
 0x613   :  { %14214 = vmatpush3.bf16.msra.mxu1 %v14605_v45  ;;  %14193 = vmatprep.subr.bf16.mxu0 %v14606_v22  ;;  %v17366_v34 = vmax.f32 %v17224_v3, %v13905_v46  ;;  %v17371_v62 = vmax.f32 %v17226_v7, %v13906_v27  ;;  %v17374_v16 = vsel %vm2631_vm9, %v11396_v39, %v11387_v19  ;;  %v11390_v41 = vunpack.c.l.b16 %v11309_v17  ;;  %v14613_v7 = vld [vmem:[#allocation11 + $0x88] sm:$0xff]   ;;  %v14614_v27 = vld [vmem:[#allocation11 + $0x40] sm:$0xff]   ;;  %v14621_v17 = vld [vmem:[#allocation11 + $0x2b8] sm:$0xff]  }
 0x614   :  { %14215 = vmatprep.subr.bf16.mxu1 %v14607_v15  ;;  %v17379_v12 = vmax.f32 %v17272_v63, %v13912_v35  ;;  %v17382_v8 = vsel %vm2631_vm9, %v11400_v53, %v11389_v28  ;;  %v11307_v3 = vpack.c.bf16 %v11276_v25, %v11276_v25  ;;  %v11311_v46 = vpack.c.bf16 %v11292_v11, %v11292_v11  ;;  %v14615_v35 = vld [vmem:[#allocation11 + $0xc0] sm:$0xff]  }
 0x615   :  { %v17385_v55 = vmax.f32 %v17274_v1, %v13913_v4  ;;  %v11386_v49 = vunpack.c.l.b16 %v11305_v36  ;;  %v11394_v21 = vrot.slane %v11390_v41, 7  ;;  %v11708_v63 = vrot.slane %v17322_v52, %v17766_v58  ;;  %v14616_v22 = vld [vmem:[#allocation11] sm:$0xff]   ;;  %v14622_v41 = vld [vmem:[#allocation11 + $0x270] sm:$0xff]  }
 0x616   :  { %14194 = vmatpush3.bf16.msra.mxu0 %v14608_v26  ;;  %v11392_v29 = vunpack.c.l.b16 %v11311_v46  ;;  %v11726_v61 = vpack.c.bf16 %v11692_v13, %v11692_v13  ;;  %v11700_v57 = vrot.slane %v17284_v56, %v17750_v44  ;;  %v11716_v1 = vrot.slane %v17322_v52, %v17750_v44  ;;  %v14617_v15 = vld [vmem:[#allocation11 + $0x80] sm:$0xff]   ;;  %v14623_v46 = vld [vmem:[#allocation11 + $0x2f0] sm:$0xff]  }
 0x617   :  { %14216 = vmatpush3.bf16.msra.mxu1 %v14609_v47  ;;  %14195 = vmatprep.subr.bf16.mxu0 %v14610_v33  ;;  %v10563_v4 = vpack.c.b16 %v17317_v5, %v17317_v5  ;;  %v17396_v50 = vsel %vm2631_vm9, %v11394_v21, %v11386_v49  ;;  %v11730_v32 = vpack.c.bf16 %v11708_v63, %v11708_v63  ;;  %v11388_v48 = vunpack.c.l.b16 %v11307_v3  ;;  %v14618_v5 = vld [vmem:[#allocation11 + $0x278] sm:$0xff]   ;;  %v14624_v63 = vld [vmem:[#allocation11 + $0x230] sm:$0xff]  }
 0x618   :  { %14217 = vmatprep.subr.bf16.mxu1 %v14611_v30  ;;  %v11688_v45 = vrot.slane %v17284_v56, %v17765_v24  ;;  %v11398_v18 = vrot.slane %v11392_v29, 7  ;;  %v11728_v0 = vpack.c.bf16 %v11700_v57, %v11700_v57  ;;  %v11732_v59 = vpack.c.bf16 %v11716_v1, %v11716_v1  ;;  %v14620_v47 = vld [vmem:[#allocation11 + $0x238] sm:$0xff]   ;;  %v14626_v57 = vld [vmem:[#allocation11 + $0x268] sm:$0xff]  }
 0x619   :  { %v10565_v9 = vpack.c.b16 %v17325_v40, %v17325_v40  ;;  %v11811_v54 = vunpack.c.l.b16 %v11730_v32  ;;  %v11704_v23 = vrot.slane %v17322_v52, %v17765_v24  ;;  %v11696_v2 = vrot.slane %v17284_v56, %v17748_v38 }
 0x61a   :  { %14196 = vmatpush3.bf16.msra.mxu0 %v14612_v37  ;;  %v17407_v20 = vsel %vm2631_vm9, %v11398_v18, %v11388_v48  ;;  %v11807_v31 = vunpack.c.l.b16 %v11726_v61  ;;  %v11813_v26 = vunpack.c.l.b16 %v11732_v59  ;;  %v11712_v51 = vrot.slane %v17322_v52, %v17748_v38  ;;  %v14625_v61 = vld [vmem:[#allocation11 + $0x2b0] sm:$0xff]  }
 0x61b   :  { %14218 = vmatpush3.bf16.msra.mxu1 %v14613_v7  ;;  %14197 = vmatprep.subr.bf16.mxu0 %v14614_v27  ;;  %v11816_v19 = vrot.slane %v11811_v54, 7  ;;  %v11809_v40 = vunpack.c.l.b16 %v11728_v0  ;;  %v11725_v28 = vpack.c.bf16 %v11688_v45, %v11688_v45  ;;  %v11729_v14 = vpack.c.bf16 %v11704_v23, %v11704_v23 }
 0x61c   :  { %14219 = vmatprep.subr.bf16.mxu1 %v14615_v35  ;;  %v11820_v33 = vrot.slane %v11813_v26, 7  ;;  %v11727_v39 = vpack.c.bf16 %v11696_v2, %v11696_v2  ;;  %v11731_v36 = vpack.c.bf16 %v11712_v51, %v11712_v51  ;;  %v12112_v56 = vrot.slane %v17366_v34, %v17766_v58  ;;  %v14630_v26 = vld [vmem:[#allocation11 + $0x260] sm:$0xff]  }
 0x61d   :  { %v17414_v25 = vsel %vm2631_vm9, %v11816_v19, %v11807_v31  ;;  %v11810_v30 = vunpack.c.l.b16 %v11729_v14  ;;  %v12128_v52 = vrot.slane %v17379_v12, %v17766_v58  ;;  %v12120_v53 = vrot.slane %v17366_v34, %v17750_v44  ;;  %v14629_v31 = vld [vmem:[#allocation11 + $0x2a8] sm:$0xff]  }
 0x61e   :  { %14198 = vmatpush3.bf16.msra.mxu0 %v14616_v22  ;;  %v10983_v11 = vpack.c.b16 %v17331_v43, %v17331_v43  ;;  %v10985_v13 = vpack.c.b16 %v17343_v42, %v17343_v42  ;;  %v17425_v37 = vsel %vm2631_vm9, %v11820_v33, %v11809_v40  ;;  %v11812_v3 = vunpack.c.l.b16 %v11731_v36  ;;  %v14627_v22 = vld [vmem:[#allocation11 + $0x2e8] sm:$0xff]  }
 0x61f   :  { %14220 = vmatpush3.bf16.msra.mxu1 %v14617_v15  ;;  %14227 = vmatprep.subr.bf16.mxu0 %v14618_v5  ;;  %v11806_v7 = vunpack.c.l.b16 %v11725_v28  ;;  %v11814_v27 = vrot.slane %v11810_v30, 7  ;;  %v12146_v49 = vpack.c.bf16 %v12112_v56, %v12112_v56  ;;  %v12150_v21 = vpack.c.bf16 %v12128_v52, %v12128_v52  ;;  %v14628_v5 = vld [vmem:[#allocation11 + $0x228] sm:$0xff]   ;;  %v14632_v30 = vld [vmem:[#allocation11 + $0x220] sm:$0xff]  }
 0x620   :  { %14249 = vmatprep.subr.bf16.mxu1 %v14619_v60  ;;  %v11808_v35 = vunpack.c.l.b16 %v11727_v39  ;;  %v11818_v29 = vrot.slane %v11812_v3, 7  ;;  %v12136_v43 = vrot.slane %v17379_v12, %v17750_v44  ;;  %v12108_v42 = vrot.slane %v17366_v34, %v17765_v24 }
 0x621   :  { %10796 = vmatmul.mubr.bf16.vlgmr.msra.gmra.mxu0 %v10563_v4  ;;  %v17432_v1 = vsel %vm2631_vm9, %v11814_v27, %v11806_v7  ;;  %v12231_v4 = vunpack.c.l.b16 %v12150_v21  ;;  %v12148_v32 = vpack.c.bf16 %v12120_v53, %v12120_v53  ;;  %v12124_v45 = vrot.slane %v17379_v12, %v17765_v24  ;;  %v14635_v7 = vld [vmem:[#allocation11 + $0x2d8] sm:$0xff]  }
 0x622   :  { %10836 = vmatmul.mubr.bf16.vlgmr.msra.gmra.mxu1 %v10565_v9  ;;  %14228 = vmatpush3.bf16.msra.mxu0 %v14620_v47  ;;  %v17437_v48 = vsel %vm2631_vm9, %v11818_v29, %v11808_v35  ;;  %v12152_v18 = vpack.c.bf16 %v12136_v43, %v12136_v43  ;;  %v12227_v0 = vunpack.c.l.b16 %v12146_v49  ;;  %v12145_v15 = vpack.c.bf16 %v12108_v42, %v12108_v42  ;;  %v14636_v42 = vld [vmem:[#allocation11 + $0x218] sm:$0xff]  }
 0x623   :  { %11214 = vmatprep.mubr.bf16.mxu0 %v10983_v11  ;;  %14250 = vmatpush3.bf16.msra.mxu1 %v14621_v17  ;;  %v12236_v59 = vrot.slane %v12231_v4, 7  ;;  %v12149_v9 = vpack.c.bf16 %v12124_v45, %v12124_v45  ;;  %v12116_v23 = vrot.slane %v17366_v34, %v17748_v38  ;;  %v12132_v2 = vrot.slane %v17379_v12, %v17748_v38  ;;  %v14631_v34 = vld [vmem:[#allocation11 + $0x2e0] sm:$0xff]   ;;  %v14638_v45 = vld [vmem:[#allocation11 + $0x250] sm:$0xff]  }
 0x624   :  { %11254 = vmatprep.mubr.bf16.mxu1 %v10985_v13  ;;  %14229 = vmatprep.subr.bf16.mxu0 %v14622_v41  ;;  %v12233_v54 = vunpack.c.l.b16 %v12152_v18  ;;  %v12532_v60 = vrot.slane %v17371_v62, %v17766_v58  ;;  %v12229_v19 = vunpack.c.l.b16 %v12148_v32  ;;  %v12548_v28 = vrot.slane %v17385_v55, %v17766_v58  ;;  %v14633_v11 = vld [vmem:[#allocation11 + $0x2a0] sm:$0xff]   ;;  %v14634_v13 = vld [vmem:[#allocation11 + $0x258] sm:$0xff]  }
 0x625   :  { %14251 = vmatprep.subr.bf16.mxu1 %v14623_v46  ;;  %v17446_v51 = vsel %vm2631_vm9, %v12236_v59, %v12227_v0  ;;  %v12230_v40 = vunpack.c.l.b16 %v12149_v9  ;;  %v12226_v47 = vunpack.c.l.b16 %v12145_v15  ;;  %v12147_v12 = vpack.c.bf16 %v12116_v23, %v12116_v23  ;;  %v14637_v32 = vld [vmem:[#allocation11 + $0x298] sm:$0xff]   ;;  %v14642_v23 = vld [vmem:[#allocation11 + $0x248] sm:$0xff]  }
 0x626   :  { %14230 = vmatpush3.bf16.msra.mxu0 %v14624_v63  ;;  %v12240_v14 = vrot.slane %v12233_v54, 7  ;;  %v12151_v33 = vpack.c.bf16 %v12132_v2, %v12132_v2  ;;  %v12566_v36 = vpack.c.bf16 %v12532_v60, %v12532_v60  ;;  %v12570_v56 = vpack.c.bf16 %v12548_v28, %v12548_v28  ;;  %v14643_v60 = vld [vmem:[#allocation11 + $0x2c8] sm:$0xff]  }
 0x627   :  { %14252 = vmatpush3.bf16.msra.mxu1 %v14625_v61  ;;  %14231 = vmatprep.subr.bf16.mxu0 %v14626_v57  ;;  %v12234_v39 = vrot.slane %v12230_v40, 7  ;;  %v12540_v17 = vrot.slane %v17371_v62, %v17750_v44  ;;  %v12556_v58 = vrot.slane %v17385_v55, %v17750_v44  ;;  %v12228_v3 = vunpack.c.l.b16 %v12147_v12  ;;  %v14644_v28 = vld [vmem:[#allocation11 + $0x208] sm:$0xff]  }
 0x628   :  { %14253 = vmatprep.subr.bf16.mxu1 %v14627_v22  ;;  %v17453_v52 = vsel %vm2631_vm9, %v12240_v14, %v12229_v19  ;;  %v12232_v53 = vunpack.c.l.b16 %v12151_v33  ;;  %v12651_v46 = vunpack.c.l.b16 %v12570_v56  ;;  %v12647_v49 = vunpack.c.l.b16 %v12566_v36  ;;  %v14645_v14 = vld [vmem:[#allocation11 + $0x288] sm:$0xff]   ;;  %v14647_v33 = vld [vmem:[#allocation11 + $0x2c0] sm:$0xff]   ;;  %v14650_v56 = vld [vmem:[#allocation11 + $0x378] sm:$0xff]  }
 0x629   :  { %v17458_v41 = vsel %vm2631_vm9, %v12234_v39, %v12226_v47  ;;  %v12568_v21 = vpack.c.bf16 %v12540_v17, %v12540_v17  ;;  %v12572_v63 = vpack.c.bf16 %v12556_v58, %v12556_v58  ;;  %v12528_v29 = vrot.slane %v17371_v62, %v17765_v24  ;;  %v14646_v47 = vld [vmem:[#allocation11 + $0x240] sm:$0xff]   ;;  %v14651_v17 = vld [vmem:[#allocation11 + $0x3f8] sm:$0xff]  }
 0x62a   :  { %14232 = vmatpush3.bf16.msra.mxu0 %v14628_v5  ;;  %v12238_v27 = vrot.slane %v12232_v53, 7  ;;  %v12656_v35 = vrot.slane %v12651_v46, 7  ;;  %v12544_v44 = vrot.slane %v17385_v55, %v17765_v24  ;;  %v12536_v43 = vrot.slane %v17371_v62, %v17748_v38  ;;  %v14639_v24 = vld [vmem:[#allocation11 + $0x2d0] sm:$0xff]   ;;  %v14648_v39 = vld [vmem:[#allocation11 + $0x200] sm:$0xff]   ;;  %v14653_v58 = vld [vmem:[#allocation11 + $0x3b8] sm:$0xff]  }
 0x62b   :  { %14254 = vmatpush3.bf16.msra.mxu1 %v14629_v31  ;;  %14233 = vmatprep.subr.bf16.mxu0 %v14630_v26  ;;  %v12653_v57 = vunpack.c.l.b16 %v12572_v63  ;;  %v12552_v4 = vrot.slane %v17385_v55, %v17748_v38  ;;  %v12649_v18 = vunpack.c.l.b16 %v12568_v21  ;;  %v12565_v0 = vpack.c.bf16 %v12528_v29, %v12528_v29  ;;  %v14640_v5 = vld [vmem:[#allocation11 + $0x210] sm:$0xff]   ;;  %v14649_v36 = vld [vmem:[#allocation11 + $0x280] sm:$0xff]   ;;  %v14660_v21 = vld [vmem:[#allocation11 + $0x328] sm:$0xff]  }
 0x62c   :  { %14255 = vmatprep.subr.bf16.mxu1 %v14631_v34  ;;  %v17467_v61 = vsel %vm2631_vm9, %v12238_v27, %v12228_v3  ;;  %v17472_v22 = vsel %vm2631_vm9, %v12656_v35, %v12647_v49  ;;  %v12569_v59 = vpack.c.bf16 %v12544_v44, %v12544_v44  ;;  %v12567_v15 = vpack.c.bf16 %v12536_v43, %v12536_v43  ;;  %v14641_v55 = vld [vmem:[#allocation11 + $0x290] sm:$0xff]   ;;  %v14658_v49 = vld [vmem:[#allocation11 + $0x368] sm:$0xff]   ;;  %v14662_v63 = vld [vmem:[#allocation11 + $0x360] sm:$0xff]  }
 0x62d   :  { %v12660_v62 = vrot.slane %v12653_v57, 7  ;;  %v12571_v9 = vpack.c.bf16 %v12552_v4, %v12552_v4  ;;  %v12646_v31 = vunpack.c.l.b16 %v12565_v0  ;;  %v10982_v53 = vpack.c.b16 %v17350_v10, %v17350_v10  ;;  %v14655_v46 = vld [vmem:[#allocation11 + $0x3f0] sm:$0xff]   ;;  %v14663_v35 = vld [vmem:[#allocation11 + $0x3e0] sm:$0xff]   ;;  %v14666_v44 = vld [vmem:[#allocation11 + $0x358] sm:$0xff]  }
 0x62e   :  { %14234 = vmatpush3.bf16.msra.mxu0 %v14632_v30  ;;  %v12650_v38 = vunpack.c.l.b16 %v12569_v59  ;;  %v12648_v19 = vunpack.c.l.b16 %v12567_v15  ;;  %v14652_v30 = vld [vmem:[#allocation11 + $0x338] sm:$0xff]   ;;  %v11403_v3 = vpack.c.b16 %v17374_v16, %v17374_v16  ;;  %v14656_v27 = vld [vmem:[#allocation11 + $0x330] sm:$0xff]   ;;  %v14661_v16 = vld [vmem:[#allocation11 + $0x3a8] sm:$0xff]  }
 0x62f   :  { %14256 = vmatpush3.bf16.msra.mxu1 %v14633_v11  ;;  %14235 = vmatprep.subr.bf16.mxu0 %v14634_v13  ;;  %v17475_v54 = vsel %vm2631_vm9, %v12660_v62, %v12649_v18  ;;  %v12652_v2 = vunpack.c.l.b16 %v12571_v9  ;;  %v10984_v11 = vpack.c.b16 %v17357_v6, %v17357_v6  ;;  %v14654_v13 = vld [vmem:[#allocation11 + $0x370] sm:$0xff]   ;;  %v14659_v6 = vld [vmem:[#allocation11 + $0x3e8] sm:$0xff]   ;;  %v14664_v29 = vld [vmem:[#allocation11 + $0x320] sm:$0xff]  }
 0x630   :  { %14257 = vmatprep.subr.bf16.mxu1 %v14635_v7  ;;  %v12654_v26 = vrot.slane %v12650_v38, 7  ;;  %v11405_v7 = vpack.c.b16 %v17382_v8, %v17382_v8  ;;  %v14657_v10 = vld [vmem:[#allocation11 + $0x3b0] sm:$0xff]   ;;  %v14665_v8 = vld [vmem:[#allocation11 + $0x3a0] sm:$0xff]   ;;  %v14667_v43 = vld [vmem:[#allocation11 + $0x3d8] sm:$0xff]  }
 0x631   :  { %v12658_v40 = vrot.slane %v12652_v2, 7  ;;  %v14669_v57 = vld [vmem:[#allocation11 + $0x398] sm:$0xff]   ;;  %v14670_v4 = vld [vmem:[#allocation11 + $0x350] sm:$0xff]   ;;  %v14674_v18 = vld [vmem:[#allocation11 + $0x348] sm:$0xff]  }
 0x632   :  { %14236 = vmatpush3.bf16.msra.mxu0 %v14636_v42  ;;  %v17478_v34 = vsel %vm2631_vm9, %v12654_v26, %v12646_v31  ;;  %v14668_v42 = vld [vmem:[#allocation11 + $0x318] sm:$0xff]   ;;  %v14675_v62 = vld [vmem:[#allocation11 + $0x3c8] sm:$0xff]   ;;  %v14678_v15 = vld [vmem:[#allocation11 + $0x340] sm:$0xff]   ;;  %v11404_v26 = vpack.c.b16 %v17407_v20, %v17407_v20 }
 0x633   :  { %14258 = vmatpush3.bf16.msra.mxu1 %v14637_v32  ;;  %14237 = vmatprep.subr.bf16.mxu0 %v14638_v45  ;;  %v17481_v12 = vsel %vm2631_vm9, %v12658_v40, %v12648_v19  ;;  %v14671_v32 = vld [vmem:[#allocation11 + $0x3d0] sm:$0xff]   ;;  %v14676_v0 = vld [vmem:[#allocation11 + $0x308] sm:$0xff]   ;;  %v14679_v9 = vld [vmem:[#allocation11 + $0x3c0] sm:$0xff]   ;;  %v11823_v40 = vpack.c.b16 %v17414_v25, %v17414_v25 }
 0x634   :  { %14259 = vmatprep.subr.bf16.mxu1 %v14639_v24  ;;  %v14672_v45 = vld [vmem:[#allocation11 + $0x310] sm:$0xff]   ;;  %v14677_v59 = vld [vmem:[#allocation11 + $0x388] sm:$0xff]   ;;  %v14681_v38 = vld [vmem:[#allocation11 + $0x380] sm:$0xff]  }
 0x635   :  { %v14673_v24 = vld [vmem:[#allocation11 + $0x390] sm:$0xff]   ;;  %v14684_v2 = vld [vmem:[#allocation11 + $0x438] sm:$0xff]   ;;  %v14691_v20 = vld [vmem:[#allocation11 + $0x4e8] sm:$0xff]  }
 0x636   :  { %14238 = vmatpush3.bf16.msra.mxu0 %v14640_v5  ;;  %v14680_v5 = vld [vmem:[#allocation11 + $0x300] sm:$0xff]   ;;  %v14685_v31 = vld [vmem:[#allocation11 + $0x4b8] sm:$0xff]   ;;  %v14686_v19 = vld [vmem:[#allocation11 + $0x470] sm:$0xff]  }
 0x637   :  { %14260 = vmatpush3.bf16.msra.mxu1 %v14641_v55  ;;  %14239 = vmatprep.subr.bf16.mxu0 %v14642_v23  ;;  %v14682_v55 = vld [vmem:[#allocation11 + $0x478] sm:$0xff]   ;;  %v14693_v25 = vld [vmem:[#allocation11 + $0x4a8] sm:$0xff]  }
 0x638   :  { %14261 = vmatprep.subr.bf16.mxu1 %v14643_v60  ;;  %v14683_v23 = vld [vmem:[#allocation11 + $0x4f8] sm:$0xff]   ;;  %v11402_v60 = vpack.c.b16 %v17396_v50, %v17396_v50  ;;  %v14689_v50 = vld [vmem:[#allocation11 + $0x4b0] sm:$0xff]  }
 0x63a   :  { %14240 = vmatpush3.bf16.msra.mxu0 %v14644_v28  ;;  %v14687_v28 = vld [vmem:[#allocation11 + $0x4f0] sm:$0xff]  }
 0x63b   :  { %14262 = vmatpush3.bf16.msra.mxu1 %v14645_v14  ;;  %14241 = vmatprep.subr.bf16.mxu0 %v14646_v47  ;;  %v11825_v14 = vpack.c.b16 %v17425_v37, %v17425_v37  ;;  %v14688_v47 = vld [vmem:[#allocation11 + $0x430] sm:$0xff]   ;;  %v14697_v37 = vld [vmem:[#allocation11 + $0x4a0] sm:$0xff]  }
 0x63c   :  { %14263 = vmatprep.subr.bf16.mxu1 %v14647_v33  ;;  %v14690_v33 = vld [vmem:[#allocation11 + $0x468] sm:$0xff]  }
 0x63e   :  { %14242 = vmatpush3.bf16.msra.mxu0 %v14648_v39  ;;  %v14692_v39 = vld [vmem:[#allocation11 + $0x428] sm:$0xff]  }
 0x63f   :  { %14264 = vmatpush3.bf16.msra.mxu1 %v14649_v36  ;;  %14271 = vmatprep.subr.bf16.mxu0 %v14650_v56  ;;  %v14694_v36 = vld [vmem:[#allocation11 + $0x460] sm:$0xff]  }
 0x640   :  { %14293 = vmatprep.subr.bf16.mxu1 %v14651_v17  ;;  %v14695_v56 = vld [vmem:[#allocation11 + $0x4e0] sm:$0xff]  }
 0x641   :  { %11215 = vmatmul.mubr.bf16.vlgmr.msra.gmra.mxu0 %v10982_v53  ;;  %v14696_v17 = vld [vmem:[#allocation11 + $0x420] sm:$0xff]   ;;  %v14699_v53 = vld [vmem:[#allocation11 + $0x4d8] sm:$0xff]  }
 0x642   :  { %11255 = vmatmul.mubr.bf16.vlgmr.msra.gmra.mxu1 %v10984_v11  ;;  %14272 = vmatpush3.bf16.msra.mxu0 %v14652_v30  ;;  %v14698_v30 = vld [vmem:[#allocation11 + $0x458] sm:$0xff]  }
 0x643   :  { %11634 = vmatprep.mubr.bf16.mxu0 %v11403_v3  ;;  %14294 = vmatpush3.bf16.msra.mxu1 %v14653_v58  ;;  %v14700_v58 = vld [vmem:[#allocation11 + $0x418] sm:$0xff]   ;;  %v14703_v3 = vld [vmem:[#allocation11 + $0x4d0] sm:$0xff]  }
 0x644   :  { %11674 = vmatprep.mubr.bf16.mxu1 %v11405_v7  ;;  %14273 = vmatprep.subr.bf16.mxu0 %v14654_v13  ;;  %v14701_v11 = vld [vmem:[#allocation11 + $0x498] sm:$0xff]   ;;  %v14702_v13 = vld [vmem:[#allocation11 + $0x450] sm:$0xff]  }
 0x645   :  { %14295 = vmatprep.subr.bf16.mxu1 %v14655_v46  ;;  %v14704_v46 = vld [vmem:[#allocation11 + $0x410] sm:$0xff]  }
 0x646   :  { %14274 = vmatpush3.bf16.msra.mxu0 %v14656_v27  ;;  %v14705_v7 = vld [vmem:[#allocation11 + $0x490] sm:$0xff]   ;;  %v14706_v27 = vld [vmem:[#allocation11 + $0x448] sm:$0xff]  }
 0x647   :  { %14296 = vmatpush3.bf16.msra.mxu1 %v14657_v10  ;;  %14275 = vmatprep.subr.bf16.mxu0 %v14658_v49  ;;  %v14707_v10 = vld [vmem:[#allocation11 + $0x4c8] sm:$0xff]  }
 0x648   :  { %14297 = vmatprep.subr.bf16.mxu1 %v14659_v6  ;;  %v14708_v49 = vld [vmem:[#allocation11 + $0x408] sm:$0xff]  }
 0x649   :  { %v14709_v6 = vld [vmem:[#allocation11 + $0x488] sm:$0xff]  }
 0x64a   :  { %14276 = vmatpush3.bf16.msra.mxu0 %v14660_v21  ;;  %v14710_v21 = vld [vmem:[#allocation11 + $0x440] sm:$0xff]  }
 0x64b   :  { %14298 = vmatpush3.bf16.msra.mxu1 %v14661_v16  ;;  %14277 = vmatprep.subr.bf16.mxu0 %v14662_v63  ;;  %v14711_v16 = vld [vmem:[#allocation11 + $0x4c0] sm:$0xff]  }
 0x64c   :  { %14299 = vmatprep.subr.bf16.mxu1 %v14663_v35  ;;  %v14712_v63 = vld [vmem:[#allocation11 + $0x400] sm:$0xff]  }
 0x64d   :  { %v14713_v35 = vld [vmem:[#allocation11 + $0x480] sm:$0xff]  }
 0x64e   :  { %14278 = vmatpush3.bf16.msra.mxu0 %v14664_v29  ;;  %v14714_v29 = vld [vmem:[#allocation11 + $0x578] sm:$0xff]  }
 0x64f   :  { %14300 = vmatpush3.bf16.msra.mxu1 %v14665_v8  ;;  %14279 = vmatprep.subr.bf16.mxu0 %v14666_v44  ;;  %v14715_v8 = vld [vmem:[#allocation11 + $0x5f8] sm:$0xff]  }
 0x650   :  { %14301 = vmatprep.subr.bf16.mxu1 %v14667_v43  ;;  %v14716_v44 = vld [vmem:[#allocation11 + $0x538] sm:$0xff]   ;;  %v11822_v43 = vpack.c.b16 %v17432_v1, %v17432_v1  ;;  %v14721_v1 = vld [vmem:[#allocation11 + $0x5b0] sm:$0xff]  }
 0x652   :  { %14280 = vmatpush3.bf16.msra.mxu0 %v14668_v42  ;;  %v14717_v42 = vld [vmem:[#allocation11 + $0x5b8] sm:$0xff]  }
 0x653   :  { %14302 = vmatpush3.bf16.msra.mxu1 %v14669_v57  ;;  %14281 = vmatprep.subr.bf16.mxu0 %v14670_v4  ;;  %v11824_v57 = vpack.c.b16 %v17437_v48, %v17437_v48  ;;  %v14718_v4 = vld [vmem:[#allocation11 + $0x570] sm:$0xff]   ;;  %v14723_v48 = vld [vmem:[#allocation11 + $0x5e8] sm:$0xff]  }
 0x654   :  { %14303 = vmatprep.subr.bf16.mxu1 %v14671_v32  ;;  %v12243_v32 = vpack.c.b16 %v17446_v51, %v17446_v51  ;;  %v14725_v51 = vld [vmem:[#allocation11 + $0x5a8] sm:$0xff]  }
 0x656   :  { %14282 = vmatpush3.bf16.msra.mxu0 %v14672_v45  ;;  %v14719_v45 = vld [vmem:[#allocation11 + $0x5f0] sm:$0xff]  }
 0x657   :  { %14304 = vmatpush3.bf16.msra.mxu1 %v14673_v24  ;;  %14283 = vmatprep.subr.bf16.mxu0 %v14674_v18  ;;  %v12245_v24 = vpack.c.b16 %v17453_v52, %v17453_v52  ;;  %v14720_v18 = vld [vmem:[#allocation11 + $0x530] sm:$0xff]   ;;  %v14729_v52 = vld [vmem:[#allocation11 + $0x5a0] sm:$0xff]  }
 0x658   :  { %14305 = vmatprep.subr.bf16.mxu1 %v14675_v62  ;;  %v14722_v62 = vld [vmem:[#allocation11 + $0x568] sm:$0xff]  }
 0x65a   :  { %14284 = vmatpush3.bf16.msra.mxu0 %v14676_v0  ;;  %v14724_v0 = vld [vmem:[#allocation11 + $0x528] sm:$0xff]  }
 0x65b   :  { %14306 = vmatpush3.bf16.msra.mxu1 %v14677_v59  ;;  %14285 = vmatprep.subr.bf16.mxu0 %v14678_v15  ;;  %v14726_v59 = vld [vmem:[#allocation11 + $0x560] sm:$0xff]  }
 0x65c   :  { %14307 = vmatprep.subr.bf16.mxu1 %v14679_v9  ;;  %v14727_v15 = vld [vmem:[#allocation11 + $0x5e0] sm:$0xff]  }
 0x65d   :  { %v14728_v9 = vld [vmem:[#allocation11 + $0x520] sm:$0xff]  }
 0x65e   :  { %14286 = vmatpush3.bf16.msra.mxu0 %v14680_v5  ;;  %v14730_v5 = vld [vmem:[#allocation11 + $0x558] sm:$0xff]  }
 0x65f   :  { %14308 = vmatpush3.bf16.msra.mxu1 %v14681_v38  ;;  %14315 = vmatprep.subr.bf16.mxu0 %v14682_v55  ;;  %v14731_v38 = vld [vmem:[#allocation11 + $0x5d8] sm:$0xff]  }
 0x660   :  { %14337 = vmatprep.subr.bf16.mxu1 %v14683_v23  ;;  %v14732_v55 = vld [vmem:[#allocation11 + $0x518] sm:$0xff]  }
 0x661   :  { %11635 = vmatmul.mubr.bf16.vlgmr.msra.gmra.mxu0 %v11402_v60  ;;  %v14733_v23 = vld [vmem:[#allocation11 + $0x598] sm:$0xff]   ;;  %v14735_v60 = vld [vmem:[#allocation11 + $0x5d0] sm:$0xff]  }
 0x662   :  { %11675 = vmatmul.mubr.bf16.vlgmr.msra.gmra.mxu1 %v11404_v26  ;;  %14316 = vmatpush3.bf16.msra.mxu0 %v14684_v2  ;;  %v14734_v2 = vld [vmem:[#allocation11 + $0x550] sm:$0xff]  }
 0x663   :  { %12054 = vmatprep.mubr.bf16.mxu0 %v11823_v40  ;;  %14338 = vmatpush3.bf16.msra.mxu1 %v14685_v31  ;;  %v14736_v31 = vld [vmem:[#allocation11 + $0x510] sm:$0xff]   ;;  %v14739_v40 = vld [vmem:[#allocation11 + $0x5c8] sm:$0xff]  }
 0x664   :  { %12094 = vmatprep.mubr.bf16.mxu1 %v11825_v14  ;;  %14317 = vmatprep.subr.bf16.mxu0 %v14686_v19  ;;  %v14737_v26 = vld [vmem:[#allocation11 + $0x590] sm:$0xff]   ;;  %v14738_v19 = vld [vmem:[#allocation11 + $0x548] sm:$0xff]  }
 0x665   :  { %14339 = vmatprep.subr.bf16.mxu1 %v14687_v28  ;;  %v14740_v28 = vld [vmem:[#allocation11 + $0x508] sm:$0xff]  }
 0x666   :  { %14318 = vmatpush3.bf16.msra.mxu0 %v14688_v47  ;;  %v14741_v14 = vld [vmem:[#allocation11 + $0x588] sm:$0xff]   ;;  %v14742_v47 = vld [vmem:[#allocation11 + $0x540] sm:$0xff]  }
 0x667   :  { %14340 = vmatpush3.bf16.msra.mxu1 %v14689_v50  ;;  %14319 = vmatprep.subr.bf16.mxu0 %v14690_v33  ;;  %v14743_v50 = vld [vmem:[#allocation11 + $0x5c0] sm:$0xff]  }
 0x668   :  { %14341 = vmatprep.subr.bf16.mxu1 %v14691_v20  ;;  %v14744_v33 = vld [vmem:[#allocation11 + $0x500] sm:$0xff]  }
 0x669   :  { %v14745_v20 = vld [vmem:[#allocation11 + $0x580] sm:$0xff]  }
 0x66a   :  { %14320 = vmatpush3.bf16.msra.mxu0 %v14692_v39  ;;  %v14746_v39 = vld [vmem:[#allocation11 + $0x678] sm:$0xff]  }
 0x66b   :  { %14342 = vmatpush3.bf16.msra.mxu1 %v14693_v25  ;;  %14321 = vmatprep.subr.bf16.mxu0 %v14694_v36  ;;  %v14747_v25 = vld [vmem:[#allocation11 + $0x6f8] sm:$0xff]  }
 0x66c   :  { %14343 = vmatprep.subr.bf16.mxu1 %v14695_v56  ;;  %v14748_v36 = vld [vmem:[#allocation11 + $0x638] sm:$0xff]   ;;  %v12242_v56 = vpack.c.b16 %v17458_v41, %v17458_v41  ;;  %v14753_v41 = vld [vmem:[#allocation11 + $0x6b0] sm:$0xff]  }
 0x66e   :  { %14322 = vmatpush3.bf16.msra.mxu0 %v14696_v17  ;;  %v14749_v17 = vld [vmem:[#allocation11 + $0x6b8] sm:$0xff]  }
 0x66f   :  { %14344 = vmatpush3.bf16.msra.mxu1 %v14697_v37  ;;  %14323 = vmatprep.subr.bf16.mxu0 %v14698_v30  ;;  %v12244_v37 = vpack.c.b16 %v17467_v61, %v17467_v61  ;;  %v14750_v30 = vld [vmem:[#allocation11 + $0x670] sm:$0xff]   ;;  %v14755_v61 = vld [vmem:[#allocation11 + $0x6e8] sm:$0xff]  }
 0x670   :  { %14345 = vmatprep.subr.bf16.mxu1 %v14699_v53  ;;  %v12663_v53 = vpack.c.b16 %v17472_v22, %v17472_v22  ;;  %v14757_v22 = vld [vmem:[#allocation11 + $0x6a8] sm:$0xff]  }
 0x672   :  { %14324 = vmatpush3.bf16.msra.mxu0 %v14700_v58  ;;  %v14751_v58 = vld [vmem:[#allocation11 + $0x6f0] sm:$0xff]  }
 0x673   :  { %14346 = vmatpush3.bf16.msra.mxu1 %v14701_v11  ;;  %14325 = vmatprep.subr.bf16.mxu0 %v14702_v13  ;;  %v12665_v11 = vpack.c.b16 %v17475_v54, %v17475_v54  ;;  %v14752_v13 = vld [vmem:[#allocation11 + $0x630] sm:$0xff]   ;;  %v14761_v54 = vld [vmem:[#allocation11 + $0x6a0] sm:$0xff]  }
 0x674   :  { %14347 = vmatprep.subr.bf16.mxu1 %v14703_v3  ;;  %v14754_v3 = vld [vmem:[#allocation11 + $0x668] sm:$0xff]  }
 0x676   :  { %14326 = vmatpush3.bf16.msra.mxu0 %v14704_v46  ;;  %v14756_v46 = vld [vmem:[#allocation11 + $0x628] sm:$0xff]  }
 0x677   :  { %14348 = vmatpush3.bf16.msra.mxu1 %v14705_v7  ;;  %14327 = vmatprep.subr.bf16.mxu0 %v14706_v27  ;;  %v14758_v7 = vld [vmem:[#allocation11 + $0x660] sm:$0xff]  }
 0x678   :  { %14349 = vmatprep.subr.bf16.mxu1 %v14707_v10  ;;  %v14759_v27 = vld [vmem:[#allocation11 + $0x6e0] sm:$0xff]  }
 0x679   :  { %v14760_v10 = vld [vmem:[#allocation11 + $0x620] sm:$0xff]  }
 0x67a   :  { %14328 = vmatpush3.bf16.msra.mxu0 %v14708_v49  ;;  %v14762_v49 = vld [vmem:[#allocation11 + $0x658] sm:$0xff]  }
 0x67b   :  { %14350 = vmatpush3.bf16.msra.mxu1 %v14709_v6  ;;  %14329 = vmatprep.subr.bf16.mxu0 %v14710_v21  ;;  %v14763_v6 = vld [vmem:[#allocation11 + $0x6d8] sm:$0xff]  }
 0x67c   :  { %14351 = vmatprep.subr.bf16.mxu1 %v14711_v16  ;;  %v14764_v21 = vld [vmem:[#allocation11 + $0x618] sm:$0xff]  }
 0x67d   :  { %v14765_v16 = vld [vmem:[#allocation11 + $0x698] sm:$0xff]  }
 0x67e   :  { %14330 = vmatpush3.bf16.msra.mxu0 %v14712_v63  ;;  %v14766_v63 = vld [vmem:[#allocation11 + $0x650] sm:$0xff]  }
 0x67f   :  { %14352 = vmatpush3.bf16.msra.mxu1 %v14713_v35  ;;  %14359 = vmatprep.subr.bf16.mxu0 %v14714_v29  ;;  %v14767_v35 = vld [vmem:[#allocation11 + $0x6d0] sm:$0xff]  }
 0x680   :  { %14381 = vmatprep.subr.bf16.mxu1 %v14715_v8  ;;  %v14768_v29 = vld [vmem:[#allocation11 + $0x610] sm:$0xff]  }
 0x681   :  { %12055 = vmatmul.mubr.bf16.vlgmr.msra.gmra.mxu0 %v11822_v43  ;;  %v14769_v8 = vld [vmem:[#allocation11 + $0x690] sm:$0xff]   ;;  %v14771_v43 = vld [vmem:[#allocation11 + $0x6c8] sm:$0xff]  }
 0x682   :  { %12095 = vmatmul.mubr.bf16.vlgmr.msra.gmra.mxu1 %v11824_v57  ;;  %14360 = vmatpush3.bf16.msra.mxu0 %v14716_v44  ;;  %v14770_v44 = vld [vmem:[#allocation11 + $0x648] sm:$0xff]  }
 0x683   :  { %12474 = vmatprep.mubr.bf16.mxu0 %v12243_v32  ;;  %14382 = vmatpush3.bf16.msra.mxu1 %v14717_v42  ;;  %v14772_v42 = vld [vmem:[#allocation11 + $0x608] sm:$0xff]   ;;  %v14775_v32 = vld [vmem:[#allocation11 + $0x6c0] sm:$0xff]  }
 0x684   :  { %12514 = vmatprep.mubr.bf16.mxu1 %v12245_v24  ;;  %14361 = vmatprep.subr.bf16.mxu0 %v14718_v4  ;;  %v14773_v57 = vld [vmem:[#allocation11 + $0x688] sm:$0xff]   ;;  %v14774_v4 = vld [vmem:[#allocation11 + $0x640] sm:$0xff]  }
 0x685   :  { %14383 = vmatprep.subr.bf16.mxu1 %v14719_v45  ;;  %v14776_v45 = vld [vmem:[#allocation11 + $0x600] sm:$0xff]  }
 0x686   :  { %14362 = vmatpush3.bf16.msra.mxu0 %v14720_v18  ;;  %v14777_v24 = vld [vmem:[#allocation11 + $0x680] sm:$0xff]   ;;  %v12662_v18 = vpack.c.b16 %v17478_v34, %v17478_v34 }
 0x687   :  { %14384 = vmatpush3.bf16.msra.mxu1 %v14721_v1  ;;  %14363 = vmatprep.subr.bf16.mxu0 %v14722_v62  ;;  %v12664_v1 = vpack.c.b16 %v17481_v12, %v17481_v12 }
 0x688   :  { %14385 = vmatprep.subr.bf16.mxu1 %v14723_v48 }
 0x68a   :  { %14364 = vmatpush3.bf16.msra.mxu0 %v14724_v0 }
 0x68b   :  { %14386 = vmatpush3.bf16.msra.mxu1 %v14725_v51  ;;  %14365 = vmatprep.subr.bf16.mxu0 %v14726_v59 }
 0x68c   :  { %14387 = vmatprep.subr.bf16.mxu1 %v14727_v15 }
 0x68e   :  { %14366 = vmatpush3.bf16.msra.mxu0 %v14728_v9 }
 0x68f   :  { %14388 = vmatpush3.bf16.msra.mxu1 %v14729_v52  ;;  %14367 = vmatprep.subr.bf16.mxu0 %v14730_v5 }
 0x690   :  { %14389 = vmatprep.subr.bf16.mxu1 %v14731_v38 }
 0x692   :  { %14368 = vmatpush3.bf16.msra.mxu0 %v14732_v55 }
 0x693   :  { %14390 = vmatpush3.bf16.msra.mxu1 %v14733_v23  ;;  %14369 = vmatprep.subr.bf16.mxu0 %v14734_v2 }
 0x694   :  { %14391 = vmatprep.subr.bf16.mxu1 %v14735_v60 }
 0x696   :  { %14370 = vmatpush3.bf16.msra.mxu0 %v14736_v31 }
 0x697   :  { %14392 = vmatpush3.bf16.msra.mxu1 %v14737_v26  ;;  %14371 = vmatprep.subr.bf16.mxu0 %v14738_v19 }
 0x698   :  { %14393 = vmatprep.subr.bf16.mxu1 %v14739_v40 }
 0x69a   :  { %14372 = vmatpush3.bf16.msra.mxu0 %v14740_v28 }
 0x69b   :  { %14394 = vmatpush3.bf16.msra.mxu1 %v14741_v14  ;;  %14373 = vmatprep.subr.bf16.mxu0 %v14742_v47 }
 0x69c   :  { %14395 = vmatprep.subr.bf16.mxu1 %v14743_v50 }
 0x69e   :  { %14374 = vmatpush3.bf16.msra.mxu0 %v14744_v33 }
 0x69f   :  { %14396 = vmatpush3.bf16.msra.mxu1 %v14745_v20  ;;  %14403 = vmatprep.subr.bf16.mxu0 %v14746_v39 }
 0x6a0   :  { %14425 = vmatprep.subr.bf16.mxu1 %v14747_v25 }
 0x6a1   :  { %12475 = vmatmul.mubr.bf16.vlgmr.msra.gmra.mxu0 %v12242_v56 }
 0x6a2   :  { %12515 = vmatmul.mubr.bf16.vlgmr.msra.gmra.mxu1 %v12244_v37  ;;  %14404 = vmatpush3.bf16.msra.mxu0 %v14748_v36 }
 0x6a3   :  { %12894 = vmatprep.mubr.bf16.mxu0 %v12663_v53  ;;  %14426 = vmatpush3.bf16.msra.mxu1 %v14749_v17 }
 0x6a4   :  { %12934 = vmatprep.mubr.bf16.mxu1 %v12665_v11  ;;  %14405 = vmatprep.subr.bf16.mxu0 %v14750_v30 }
 0x6a5   :  { %14427 = vmatprep.subr.bf16.mxu1 %v14751_v58 }
 0x6a6   :  { %14406 = vmatpush3.bf16.msra.mxu0 %v14752_v13 }
 0x6a7   :  { %14428 = vmatpush3.bf16.msra.mxu1 %v14753_v41  ;;  %14407 = vmatprep.subr.bf16.mxu0 %v14754_v3 }
 0x6a8   :  { %14429 = vmatprep.subr.bf16.mxu1 %v14755_v61 }
 0x6aa   :  { %14408 = vmatpush3.bf16.msra.mxu0 %v14756_v46 }
 0x6ab   :  { %14430 = vmatpush3.bf16.msra.mxu1 %v14757_v22  ;;  %14409 = vmatprep.subr.bf16.mxu0 %v14758_v7 }
 0x6ac   :  { %14431 = vmatprep.subr.bf16.mxu1 %v14759_v27 }
 0x6ae   :  { %14410 = vmatpush3.bf16.msra.mxu0 %v14760_v10 }
 0x6af   :  { %14432 = vmatpush3.bf16.msra.mxu1 %v14761_v54  ;;  %14411 = vmatprep.subr.bf16.mxu0 %v14762_v49 }
 0x6b0   :  { %14433 = vmatprep.subr.bf16.mxu1 %v14763_v6 }
 0x6b2   :  { %14412 = vmatpush3.bf16.msra.mxu0 %v14764_v21 }
 0x6b3   :  { %14434 = vmatpush3.bf16.msra.mxu1 %v14765_v16  ;;  %14413 = vmatprep.subr.bf16.mxu0 %v14766_v63 }
 0x6b4   :  { %14435 = vmatprep.subr.bf16.mxu1 %v14767_v35 }
 0x6b6   :  { %14414 = vmatpush3.bf16.msra.mxu0 %v14768_v29 }
 0x6b7   :  { %14436 = vmatpush3.bf16.msra.mxu1 %v14769_v8  ;;  %14415 = vmatprep.subr.bf16.mxu0 %v14770_v44 }
 0x6b8   :  { %14437 = vmatprep.subr.bf16.mxu1 %v14771_v43 }
 0x6ba   :  { %14416 = vmatpush3.bf16.msra.mxu0 %v14772_v42 }
 0x6bb   :  { %14438 = vmatpush3.bf16.msra.mxu1 %v14773_v57  ;;  %14417 = vmatprep.subr.bf16.mxu0 %v14774_v4 }
 0x6bc   :  { %14439 = vmatprep.subr.bf16.mxu1 %v14775_v32 }
 0x6be   :  { %14418 = vmatpush3.bf16.msra.mxu0 %v14776_v45 }
 0x6bf   :  { %14440 = vmatpush3.bf16.msra.mxu1 %v14777_v24 }
 0x6c1   :  { %12895 = vmatmul.mubr.bf16.vlgmr.msra.gmra.mxu0 %v12662_v18  ;;  %v14155_v62 = vpop.f32.mrf.mxu0  ;;  %v14177_v48 = vpop.f32.mrf.mxu1 }
 0x6c2   :  { %12935 = vmatmul.mubr.bf16.vlgmr.msra.gmra.mxu1 %v12664_v1 }
 0x6c3   :  { %v14156_v0 = vpop.f32.mrf.mxu0  ;;  %v14178_v51 = vpop.f32.mrf.mxu1 }
 0x6c4   :  { %v14157_v59 = vadd.f32 %v14156_v0, %v14155_v62  ;;  %v14179_v15 = vadd.f32 %v14178_v51, %v14177_v48 }
 0x6c5   :  { %v14158_v9 = vpop.f32.mrf.mxu0  ;;  %v14180_v52 = vpop.f32.mrf.mxu1 }
 0x6c6   :  { %v10534_v5 = vadd.f32 %v14179_v15, %v14157_v59 }
 0x6c7   :  { %v14159_v38 = vpop.f32.mrf.mxu0  ;;  %v14181_v55 = vpop.f32.mrf.mxu1 }
 0x6e1   :  { %v14199_v23 = vpop.f32.mrf.mxu0 }
 0x6e2   :  { %v14221_v2 = vpop.f32.mrf.mxu1 }
 0x6e3   :  { %v14200_v60 = vpop.f32.mrf.mxu0 }
 0x6e4   :  { %v14201_v34 = vadd.f32 %v14200_v60, %v14199_v23  ;;  %v14222_v31 = vpop.f32.mrf.mxu1 }
 0x6e5   :  { %v14223_v26 = vadd.f32 %v14222_v31, %v14221_v2  ;;  %v14202_v12 = vpop.f32.mrf.mxu0 }
 0x6e6   :  { %v10798_v19 = vadd.f32 %v14201_v34, %v10534_v5  ;;  %v14224_v40 = vpop.f32.mrf.mxu1 }
 0x6e7   :  { %v14203_v28 = vpop.f32.mrf.mxu0 }
 0x6e8   :  { %v10838_v14 = vadd.f32 %v14223_v26, %v10798_v19  ;;  %v14225_v47 = vpop.f32.mrf.mxu1  ;;  %v14138_v19 = vld [vmem:[#allocation12] ss:$0 sm:$0xff] }
 0x701   :  { %v14243_v50 = vpop.f32.mrf.mxu0 }
 0x702   :  { %v14265_v33 = vpop.f32.mrf.mxu1 }
 0x703   :  { %v14244_v20 = vpop.f32.mrf.mxu0 }
 0x704   :  { %v14245_v39 = vadd.f32 %v14244_v20, %v14243_v50  ;;  %v14266_v25 = vpop.f32.mrf.mxu1 }
 0x705   :  { %v14267_v36 = vadd.f32 %v14266_v25, %v14265_v33  ;;  %v14246_v56 = vpop.f32.mrf.mxu0 }
 0x706   :  { %v14268_v17 = vpop.f32.mrf.mxu1 }
 0x707   :  { %v11257_v37 = vadd.f32 %v14267_v36, %v14245_v39  ;;  %v14247_v30 = vpop.f32.mrf.mxu0 }
 0x708   :  { %v14269_v53 = vpop.f32.mrf.mxu1 }
 0x709   :  { %v11262_v58 = vadd.f32 %v11257_v37, %v10838_v14 }
 0x721   :  { %v14287_v11 = vpop.f32.mrf.mxu0 }
 0x722   :  { %v14309_v13 = vpop.f32.mrf.mxu1 }
 0x723   :  { %v14288_v41 = vpop.f32.mrf.mxu0 }
 0x724   :  { %v14289_v3 = vadd.f32 %v14288_v41, %v14287_v11  ;;  %v14310_v61 = vpop.f32.mrf.mxu1 }
 0x725   :  { %v14311_v46 = vadd.f32 %v14310_v61, %v14309_v13  ;;  %v14290_v22 = vpop.f32.mrf.mxu0 }
 0x726   :  { %v14312_v7 = vpop.f32.mrf.mxu1 }
 0x727   :  { %v11677_v27 = vadd.f32 %v14311_v46, %v14289_v3  ;;  %v14291_v10 = vpop.f32.mrf.mxu0 }
 0x728   :  { %v14313_v54 = vpop.f32.mrf.mxu1 }
 0x729   :  { %v11682_v49 = vadd.f32 %v11677_v27, %v11262_v58 }
 0x741   :  { %v14331_v6 = vpop.f32.mrf.mxu0 }
 0x742   :  { %v14353_v21 = vpop.f32.mrf.mxu1 }
 0x743   :  { %v14332_v16 = vpop.f32.mrf.mxu0 }
 0x744   :  { %v14354_v63 = vpop.f32.mrf.mxu1  ;;  %v14333_v1 = vadd.f32 %v14332_v16, %v14331_v6 }
 0x745   :  { %v14334_v35 = vpop.f32.mrf.mxu0  ;;  %v14355_v62 = vadd.f32 %v14354_v63, %v14353_v21 }
 0x746   :  { %v14356_v29 = vpop.f32.mrf.mxu1 }
 0x747   :  { %v14335_v8 = vpop.f32.mrf.mxu0  ;;  %v12097_v51 = vadd.f32 %v14355_v62, %v14333_v1 }
 0x748   :  { %v14357_v44 = vpop.f32.mrf.mxu1 }
 0x749   :  { %v12102_v55 = vadd.f32 %v12097_v51, %v11682_v49 }
 0x761   :  { %v14375_v43 = vpop.f32.mrf.mxu0 }
 0x762   :  { %v14397_v42 = vpop.f32.mrf.mxu1 }
 0x763   :  { %v14376_v57 = vpop.f32.mrf.mxu0 }
 0x764   :  { %v14398_v4 = vpop.f32.mrf.mxu1  ;;  %v14377_v48 = vadd.f32 %v14376_v57, %v14375_v43 }
 0x765   :  { %v14378_v32 = vpop.f32.mrf.mxu0  ;;  %v14399_v0 = vadd.f32 %v14398_v4, %v14397_v42 }
 0x766   :  { %v14400_v45 = vpop.f32.mrf.mxu1 }
 0x767   :  { %v14379_v24 = vpop.f32.mrf.mxu0  ;;  %v12517_v9 = vadd.f32 %v14399_v0, %v14377_v48 }
 0x768   :  { %v14401_v18 = vpop.f32.mrf.mxu1 }
 0x769   :  { %v12522_v34 = vadd.f32 %v12517_v9, %v12102_v55 }
 0x781   :  { %v14419_v59 = vpop.f32.mrf.mxu0 }
 0x782   :  { %v14441_v15 = vpop.f32.mrf.mxu1 }
 0x783   :  { %v14420_v52 = vpop.f32.mrf.mxu0 }
 0x784   :  { %v14421_v5 = vadd.f32 %v14420_v52, %v14419_v59  ;;  %v14442_v38 = vpop.f32.mrf.mxu1 }
 0x785   :  { %v14443_v23 = vadd.f32 %v14442_v38, %v14441_v15  ;;  %v14422_v2 = vpop.f32.mrf.mxu0 }
 0x786   :  { %v14444_v60 = vpop.f32.mrf.mxu1 }
 0x787   :  { %v12937_v31 = vadd.f32 %v14443_v23, %v14421_v5  ;;  %v14423_v26 = vpop.f32.mrf.mxu0 }
 0x788   :  { %v14445_v12 = vpop.f32.mrf.mxu1 }
 0x789   :  { %v12942_v40 = vadd.f32 %v12937_v31, %v12522_v34 }
 0x78b   :  { %v12950_v28 = vadd.f32 %v14138_v19, %v12942_v40 }
 0x78d   :  { %v12951_v14 = vmul.f32 %v12950_v28, %v12950_v28 }
 0x78f   :  { %v12953_v47 = vsel %vm12952_vm14, %v12951_v14, 0.0 }
 0x790   :  { %12954 = vadd.xlane.f32.xlu0 %v12953_v47 }
 0x819   :  { %v12955_v50 = vpop.xlane.xlu0 %12954 }
 0x81a   :  { %v12956_v33 = vmax.f32 %v12955_v50, 1e-24 }
 0x81c   :  { %14778 = vrsqrt.f32 %v12956_v33 }
 0x829   :  { %v14779_v20 = vpop.eup %14778 }
 0x82a   :  { %v12958_v39 = vmul.f32 %v14779_v20, %v12950_v28 }
 0x82c   :  { %12959 = vst [vmem:[#allocation14] sm:$0x3] %v12958_v39 }
 0x82d   :  { %14911 = shalt.err (!%p14908_p6)
}
 0x82e   :  { %12969 = dma.vmem_to_hbm [thread:$0]  %s12967_s1, 32, %s17529_s7, [#allocation5]  }
 0x82f   :  { %14928 = dma.done.wait [#allocation5], 32  }
 0x830   :  { %14929 = vsyncadd [#allocation5], 4294967264 }
 0x831   :  { %12973 = vsyncpa [#allocation4], 1 }
 0x832   :  { %12974 = vsyncpa [#allocation7], 1 }
 0x833   :  { %12975 = vsyncpa [#allocation10], 1 }
 0x834   :  { %12976 = vsyncpa [#allocation13], 1 }
 0x835   :  { %12977 = vsyncpa [#allocation5], 1 }

</bundles_post_ra>
